<compile_context>
chip_gen: v5e
topology: v5e:2x2
jax: 0.10.0
libtpu: 0.0.40
codegen_flags: <defaults>
</compile_context>

<pallas_src>
import jax
import jax.numpy as jnp
from jax.experimental import pallas as pl
from jax.experimental.pallas import tpu as pltpu

EPS = 1e-5
# Peak in-kernel footprint at these shapes is ~11 MiB (weights x2 buffers,
# tap-concat operands, scratch); 24 MiB gives ~2x headroom and stays under the
# 32 MiB scoped default (v6e/v7x) while raising v5e's 16 MiB default.
VMEM_LIMIT = 24 * 1024 * 1024


# --------------------------- layout / weight helpers -------------------------

def _pad_channels(c, w, lane=128):
    """Smallest padded channel count so W*C_pad is a multiple of `lane`."""
    assert lane % w == 0, "W must divide 128 for the lane-dense layout"
    return ((c * w + lane - 1) // lane) * (lane // w)


def fold_convT_weight(wt, W, Cin_p, Cout_p):
    """ConvTranspose3d weight (Cin, Cout, 3, 3, 3) -> (9*W*Cin_p, W*Cout_p).

    Activation rows are (d, h) planes, lanes are (w, c).  Tap t = kd*3+kh acts
    on rows shifted by (kd-1)*Hp + (kh-1); kw is folded into the
    block-structured weight.  Channels are zero-padded to Cin_p / Cout_p.
    """
    Cin, Cout = wt.shape[0], wt.shape[1]
    wtp = jnp.pad(wt, ((0, Cin_p - Cin), (0, Cout_p - Cout),
                       (0, 0), (0, 0), (0, 0)))
    K = jnp.flip(wtp, axis=(2, 3, 4))                    # correlation-equivalent
    wi = jnp.arange(W)[:, None, None]
    wo = jnp.arange(W)[None, :, None]
    kw = jnp.arange(3)[None, None, :]
    sel = (wi == wo + kw - 1).astype(wt.dtype)           # (W, W, 3)
    M = jnp.einsum('pwk,iodhk->dhpiwo', sel, K)          # (3,3,W,Cin_p,W,Cout_p)
    return M.reshape(9 * W * Cin_p, W * Cout_p)


def _lane_vec(v, Cp, W):
    """Per-channel vector -> (1, W*Cp) lane layout (w-major, c-minor), 0-padded."""
    return jnp.tile(jnp.pad(v, (0, Cp - v.shape[0])), W)[None, :]


def _chan_fold_matrix(Cp, W):
    """(W*Cp, W*Cp) 0/1 matrix: row_vec @ A sums over the W copies of each
    channel folded into lanes and broadcasts the per-channel total back."""
    l = jnp.arange(W * Cp)
    return (l[:, None] % Cp == l[None, :] % Cp).astype(jnp.float32)


def _row_mask(N, D, H):
    """(N*Dp*Hp, 1) f32 mask selecting interior (d, h) rows (halo rows -> 0)."""
    Dp, Hp = D + 2, H + 2
    r = jnp.arange(N * Dp * Hp) % (Dp * Hp)
    dp, hp = r // Hp, r % Hp
    m = (dp >= 1) & (dp <= D) & (hp >= 1) & (hp <= H)
    return m.astype(jnp.float32)[:, None]


# ------------------------------- fused kernel --------------------------------

def _make_kernel(shifts, PR, NR, WC1p, count):
    inv_count = 1.0 / count

    def kernel(x_ref, m_ref, w1_ref, b1_ref, g1_ref, be1_ref, a1_ref,
               w2_ref, b2_ref, g2_ref, be2_ref, a2_ref, o_ref, apad_ref):
        mask = m_ref[...]                                      # (NR, 1)

        # ---- ConvTranspose3d #1: 9 row-shifted taps -> one MXU matmul ----
        xcat = jnp.concatenate(
            [x_ref[PR + off: PR + off + NR, :] for off in shifts], axis=1)
        y1 = jnp.dot(xcat, w1_ref[...], preferred_element_type=jnp.float32)
        y1 = (y1 + b1_ref[...]) * mask                         # (NR, WC1p)

        # ---- BatchNorm1 (training-mode batch statistics) + ReLU ----
        s1 = jnp.dot(jnp.sum(y1, axis=0, keepdims=True), a1_ref[...],
                     preferred_element_type=jnp.float32)
        q1 = jnp.dot(jnp.sum(y1 * y1, axis=0, keepdims=True), a1_ref[...],
                     preferred_element_type=jnp.float32)
        mean1 = s1 * inv_count
        var1 = q1 * inv_count - mean1 * mean1
        scale1 = g1_ref[...] * jax.lax.rsqrt(var1 + EPS)
        shift1 = be1_ref[...] - mean1 * scale1
        act = jnp.maximum(y1 * scale1 + shift1, 0.0) * mask

        # ---- ConvTranspose3d #2 on the VMEM-resident padded activation ----
        apad_ref[0:PR, :] = jnp.zeros((PR, WC1p), jnp.float32)         # halo band
        apad_ref[PR + NR: PR + NR + PR, :] = jnp.zeros((PR, WC1p), jnp.float32)
        apad_ref[PR: PR + NR, :] = act                                 # 8-aligned
        acat = jnp.concatenate(
            [apad_ref[PR + off: PR + off + NR, :] for off in shifts], axis=1)
        y2 = jnp.dot(acat, w2_ref[...], preferred_element_type=jnp.float32)
        y2 = (y2 + b2_ref[...]) * mask                         # (NR, WC0p)

        # ---- BatchNorm2 + residual add ----
        s2 = jnp.dot(jnp.sum(y2, axis=0, keepdims=True), a2_ref[...],
                     preferred_element_type=jnp.float32)
        q2 = jnp.dot(jnp.sum(y2 * y2, axis=0, keepdims=True), a2_ref[...],
                     preferred_element_type=jnp.float32)
        mean2 = s2 * inv_count
        var2 = q2 * inv_count - mean2 * mean2
        scale2 = g2_ref[...] * jax.lax.rsqrt(var2 + EPS)
        shift2 = be2_ref[...] - mean2 * scale2
        o_ref[...] = x_ref[PR: PR + NR, :] + (y2 * scale2 + shift2) * mask

    return kernel


# ------------------------------- forward pass --------------------------------

def bottlenect3d_forward(x, params):
    """x: (N, C0, D, H, W) f32 -> x + block(x).  Training-mode BatchNorm."""
    N, C0, D, H, W = x.shape
    C1 = params["g1"].shape[0]
    Dp, Hp = D + 2, H + 2
    NR = N * Dp * Hp                        # (n, dp, hp) plane rows incl. halos
    PR = ((Hp + 1 + 7) // 8) * 8            # 8-aligned global pad >= max tap shift
    NRP = NR + 2 * PR
    C0p = _pad_channels(C0, W)
    C1p = _pad_channels(C1, W)
    WC0p, WC1p = W * C0p, W * C1p
    count = float(N * D * H * W)
    shifts = [(kd - 1) * Hp + (kh - 1) for kd in range(3) for kh in range(3)]

    # NCDHW -> rows=(n, dp, hp), lanes=(w, c_pad); zero d/h halo + PR global pad.
    x_t = jnp.transpose(x, (0, 2, 3, 4, 1))
    x_t = jnp.pad(x_t, ((0, 0), (1, 1), (1, 1), (0, 0), (0, C0p - C0)))
    x_rows = x_t.reshape(NR, WC0p)
    x_pad = jnp.pad(x_rows, ((PR, PR), (0, 0)))

    w1cat = fold_convT_weight(params["wt1"], W, C0p, C1p)     # (9*WC0p, WC1p)
    w2cat = fold_convT_weight(params["wt2"], W, C1p, C0p)     # (9*WC1p, WC0p)
    b1l = _lane_vec(params["b1"], C1p, W)
    g1l = _lane_vec(params["g1"], C1p, W)
    be1l = _lane_vec(params["be1"], C1p, W)
    b2l = _lane_vec(params["b2"], C0p, W)
    g2l = _lane_vec(params["g2"], C0p, W)
    be2l = _lane_vec(params["be2"], C0p, W)
    A1 = _chan_fold_matrix(C1p, W)
    A2 = _chan_fold_matrix(C0p, W)
    mask = _row_mask(N, D, H)

    operands = (x_pad, mask, w1cat, b1l, g1l, be1l, A1,
                w2cat, b2l, g2l, be2l, A2)

    def _full(shape):
        nd = len(shape)
        return pl.BlockSpec(shape, lambda *_: (0,) * nd)

    kernel = _make_kernel(shifts, PR, NR, WC1p, count)
    out_rows = pl.pallas_call(
        kernel,
        out_shape=jax.ShapeDtypeStruct((NR, WC0p), jnp.float32),
        grid_spec=pltpu.PrefetchScalarGridSpec(
            num_scalar_prefetch=0,
            grid=(1,),
            in_specs=[_full(op.shape) for op in operands],
            out_specs=_full((NR, WC0p)),
            scratch_shapes=[pltpu.VMEM((NRP, WC1p), jnp.float32)]),
        compiler_params=pltpu.CompilerParams(
            dimension_semantics=("arbitrary",),
            vmem_limit_bytes=VMEM_LIMIT),
    )(*operands)

    out = out_rows.reshape(N, Dp, Hp, W, C0p)[:, 1:1 + D, 1:1 + H, :, :C0]
    return jnp.transpose(out, (0, 4, 1, 2, 3))


# ------------------------- pure-JAX reference (check) ------------------------

def reference_forward(x, params):
    def convT(inp, wt, b):
        w_eq = jnp.transpose(jnp.flip(wt, axis=(2, 3, 4)), (1, 0, 2, 3, 4))
        y = jax.lax.conv_general_dilated(
            inp, w_eq, window_strides=(1, 1, 1), padding=[(1, 1)] * 3,
            dimension_numbers=("NCDHW", "OIDHW", "NCDHW"))
        return y + b[None, :, None, None, None]

    def bn(y, g, b):
        mean = jnp.mean(y, axis=(0, 2, 3, 4), keepdims=True)
        var = jnp.mean((y - mean) ** 2, axis=(0, 2, 3, 4), keepdims=True)
        return ((y - mean) / jnp.sqrt(var + EPS)) * g[None, :, None, None, None] \
            + b[None, :, None, None, None]

    a = jax.nn.relu(bn(convT(x, params["wt1"], params["b1"]),
                       params["g1"], params["be1"]))
    y2 = bn(convT(a, params["wt2"], params["b2"]), params["g2"], params["be2"])
    return x + y2


# ---------------------------------- main --------------------------------------

if __name__ == "__main__":
    C0, expand = 4, 5
    C1 = expand * C0
    N, D, H, W = 2, 8, 8, 8

    key = jax.random.PRNGKey(0)
    ks = jax.random.split(key, 9)
    params = {
        "wt1": 0.1 * jax.random.normal(ks[0], (C0, C1, 3, 3, 3), jnp.float32),
        "b1":  0.1 * jax.random.normal(ks[1], (C1,), jnp.float32),
        "g1":  1.0 + 0.1 * jax.random.normal(ks[2], (C1,), jnp.float32),
        "be1": 0.1 * jax.random.normal(ks[3], (C1,), jnp.float32),
        "wt2": 0.1 * jax.random.normal(ks[4], (C1, C0, 3, 3, 3), jnp.float32),
        "b2":  0.1 * jax.random.normal(ks[5], (C0,), jnp.float32),
        "g2":  1.0 + 0.1 * jax.random.normal(ks[6], (C0,), jnp.float32),
        "be2": 0.1 * jax.random.normal(ks[7], (C0,), jnp.float32),
    }
    x = jax.random.normal(ks[8], (N, C0, D, H, W), jnp.float32)

    ref = jax.block_until_ready(reference_forward(x, params))

    fwd = jax.jit(bottlenect3d_forward)
    out = jax.block_until_ready(fwd(x, params))
    assert out.shape == x.shape and out.dtype == x.dtype
    err = float(jnp.max(jnp.abs(out - ref)))
    assert err < 2e-3, f"mismatch vs reference: {err}"

    # TODO(synk): BatchNorm running_mean/running_var buffer updates (a training
    # side effect, not part of forward() output) are not modeled.
    print("KERNEL_OK")
</pallas_src>

<mosaic_0001>
module attributes {stable_mosaic.version = 11 : i64} {
  func.func @kernel(%arg0: i32, %arg1: memref<232x128xf32, #tpu.memory_space<vmem>>, %arg2: memref<200x1xf32, #tpu.memory_space<vmem>>, %arg3: memref<1152x256xf32, #tpu.memory_space<vmem>>, %arg4: memref<1x256xf32, #tpu.memory_space<vmem>>, %arg5: memref<1x256xf32, #tpu.memory_space<vmem>>, %arg6: memref<1x256xf32, #tpu.memory_space<vmem>>, %arg7: memref<256x256xf32, #tpu.memory_space<vmem>>, %arg8: memref<2304x128xf32, #tpu.memory_space<vmem>>, %arg9: memref<1x128xf32, #tpu.memory_space<vmem>>, %arg10: memref<1x128xf32, #tpu.memory_space<vmem>>, %arg11: memref<1x128xf32, #tpu.memory_space<vmem>>, %arg12: memref<128x128xf32, #tpu.memory_space<vmem>>, %arg13: memref<200x128xf32, #tpu.memory_space<vmem>>, %arg14: memref<232x256xf32, #tpu.memory_space<vmem>>) attributes {dimension_semantics = [#tpu.dimension_semantics<arbitrary>], iteration_bounds = array<i64: 1>, scalar_prefetch = 0 : i64, scratch_operands = 1 : i64, tpu.core_type = #tpu.core_type<tc>, window_params = [{pipeline_mode = #tpu.pipeline_mode<synchronous>, transform_indices = @transform_0, window_bounds = array<i64: 232, 128>}, {pipeline_mode = #tpu.pipeline_mode<synchronous>, transform_indices = @transform_1, window_bounds = array<i64: 200, 1>}, {pipeline_mode = #tpu.pipeline_mode<synchronous>, transform_indices = @transform_2, window_bounds = array<i64: 1152, 256>}, {pipeline_mode = #tpu.pipeline_mode<synchronous>, transform_indices = @transform_3, window_bounds = array<i64: 1, 256>}, {pipeline_mode = #tpu.pipeline_mode<synchronous>, transform_indices = @transform_4, window_bounds = array<i64: 1, 256>}, {pipeline_mode = #tpu.pipeline_mode<synchronous>, transform_indices = @transform_5, window_bounds = array<i64: 1, 256>}, {pipeline_mode = #tpu.pipeline_mode<synchronous>, transform_indices = @transform_6, window_bounds = array<i64: 256, 256>}, {pipeline_mode = #tpu.pipeline_mode<synchronous>, transform_indices = @transform_7, window_bounds = array<i64: 2304, 128>}, {pipeline_mode = #tpu.pipeline_mode<synchronous>, transform_indices = @transform_8, window_bounds = array<i64: 1, 128>}, {pipeline_mode = #tpu.pipeline_mode<synchronous>, transform_indices = @transform_9, window_bounds = array<i64: 1, 128>}, {pipeline_mode = #tpu.pipeline_mode<synchronous>, transform_indices = @transform_10, window_bounds = array<i64: 1, 128>}, {pipeline_mode = #tpu.pipeline_mode<synchronous>, transform_indices = @transform_11, window_bounds = array<i64: 128, 128>}, {pipeline_mode = #tpu.pipeline_mode<synchronous>, transform_indices = @transform_12, window_bounds = array<i64: 200, 128>}]} {
    %c0 = arith.constant 0 : index
    %c0_0 = arith.constant 0 : index
    %0 = vector.load %arg2[%c0, %c0_0] : memref<200x1xf32, #tpu.memory_space<vmem>>, vector<200x1xf32>
    %c5 = arith.constant 5 : index
    %c0_1 = arith.constant 0 : index
    %1 = vector.load %arg1[%c5, %c0_1] : memref<232x128xf32, #tpu.memory_space<vmem>>, vector<200x128xf32>
    %c6 = arith.constant 6 : index
    %c0_2 = arith.constant 0 : index
    %2 = vector.load %arg1[%c6, %c0_2] : memref<232x128xf32, #tpu.memory_space<vmem>>, vector<200x128xf32>
    %c7 = arith.constant 7 : index
    %c0_3 = arith.constant 0 : index
    %3 = vector.load %arg1[%c7, %c0_3] : memref<232x128xf32, #tpu.memory_space<vmem>>, vector<200x128xf32>
    %c15 = arith.constant 15 : index
    %c0_4 = arith.constant 0 : index
    %4 = vector.load %arg1[%c15, %c0_4] : memref<232x128xf32, #tpu.memory_space<vmem>>, vector<200x128xf32>
    %c16 = arith.constant 16 : index
    %c0_5 = arith.constant 0 : index
    %5 = vector.load %arg1[%c16, %c0_5] : memref<232x128xf32, #tpu.memory_space<vmem>>, vector<200x128xf32>
    %c17 = arith.constant 17 : index
    %c0_6 = arith.constant 0 : index
    %6 = vector.load %arg1[%c17, %c0_6] : memref<232x128xf32, #tpu.memory_space<vmem>>, vector<200x128xf32>
    %c25 = arith.constant 25 : index
    %c0_7 = arith.constant 0 : index
    %7 = vector.load %arg1[%c25, %c0_7] : memref<232x128xf32, #tpu.memory_space<vmem>>, vector<200x128xf32>
    %c26 = arith.constant 26 : index
    %c0_8 = arith.constant 0 : index
    %8 = vector.load %arg1[%c26, %c0_8] : memref<232x128xf32, #tpu.memory_space<vmem>>, vector<200x128xf32>
    %c27 = arith.constant 27 : index
    %c0_9 = arith.constant 0 : index
    %9 = vector.load %arg1[%c27, %c0_9] : memref<232x128xf32, #tpu.memory_space<vmem>>, vector<200x128xf32>
    %10 = tpu.concatenate %1, %2, %3, %4, %5, %6, %7, %8, %9 in 1 : vector<200x128xf32>, vector<200x128xf32>, vector<200x128xf32>, vector<200x128xf32>, vector<200x128xf32>, vector<200x128xf32>, vector<200x128xf32>, vector<200x128xf32>, vector<200x128xf32> -> vector<200x1152xf32>
    %c0_10 = arith.constant 0 : index
    %c0_11 = arith.constant 0 : index
    %11 = vector.load %arg3[%c0_10, %c0_11] : memref<1152x256xf32, #tpu.memory_space<vmem>>, vector<1152x256xf32>
    %cst = arith.constant dense<0.000000e+00> : vector<200x256xf32>
    %12 = tpu.matmul %10, %11, %cst {dimension_numbers = #tpu.dot_dimension_numbers<[1], [0], [0], [1], [0, 0, 1, 1], [], []>} : vector<200x1152xf32>, vector<1152x256xf32>, vector<200x256xf32> -> vector<200x256xf32>
    %c0_12 = arith.constant 0 : index
    %c0_13 = arith.constant 0 : index
    %13 = vector.load %arg4[%c0_12, %c0_13] : memref<1x256xf32, #tpu.memory_space<vmem>>, vector<1x256xf32>
    %14 = vector.broadcast %13 : vector<1x256xf32> to vector<200x256xf32>
    %15 = arith.addf %12, %14 : vector<200x256xf32>
    %16 = vector.broadcast %0 : vector<200x1xf32> to vector<200x256xf32>
    %17 = arith.mulf %15, %16 : vector<200x256xf32>
    %cst_14 = arith.constant dense<0.000000e+00> : vector<256xf32>
    %18 = vector.multi_reduction <add>, %17, %cst_14 [0] : vector<200x256xf32> to vector<256xf32>
    %19 = vector.shape_cast %18 : vector<256xf32> to vector<1x256xf32>
    %c0_15 = arith.constant 0 : index
    %c0_16 = arith.constant 0 : index
    %20 = vector.load %arg7[%c0_15, %c0_16] : memref<256x256xf32, #tpu.memory_space<vmem>>, vector<256x256xf32>
    %cst_17 = arith.constant dense<0.000000e+00> : vector<1x256xf32>
    %21 = tpu.matmul %19, %20, %cst_17 {dimension_numbers = #tpu.dot_dimension_numbers<[1], [0], [0], [1], [0, 0, 1, 1], [], []>} : vector<1x256xf32>, vector<256x256xf32>, vector<1x256xf32> -> vector<1x256xf32>
    %22 = arith.mulf %17, %17 : vector<200x256xf32>
    %cst_18 = arith.constant dense<0.000000e+00> : vector<256xf32>
    %23 = vector.multi_reduction <add>, %22, %cst_18 [0] : vector<200x256xf32> to vector<256xf32>
    %24 = vector.shape_cast %23 : vector<256xf32> to vector<1x256xf32>
    %c0_19 = arith.constant 0 : index
    %c0_20 = arith.constant 0 : index
    %25 = vector.load %arg7[%c0_19, %c0_20] : memref<256x256xf32, #tpu.memory_space<vmem>>, vector<256x256xf32>
    %cst_21 = arith.constant dense<0.000000e+00> : vector<1x256xf32>
    %26 = tpu.matmul %24, %25, %cst_21 {dimension_numbers = #tpu.dot_dimension_numbers<[1], [0], [0], [1], [0, 0, 1, 1], [], []>} : vector<1x256xf32>, vector<256x256xf32>, vector<1x256xf32> -> vector<1x256xf32>
    %cst_22 = arith.constant 9.765625E-4 : f32
    %27 = vector.broadcast %cst_22 : f32 to vector<1x256xf32>
    %28 = arith.mulf %21, %27 : vector<1x256xf32>
    %cst_23 = arith.constant 9.765625E-4 : f32
    %29 = vector.broadcast %cst_23 : f32 to vector<1x256xf32>
    %30 = arith.mulf %26, %29 : vector<1x256xf32>
    %31 = arith.mulf %28, %28 : vector<1x256xf32>
    %32 = arith.subf %30, %31 : vector<1x256xf32>
    %c0_24 = arith.constant 0 : index
    %c0_25 = arith.constant 0 : index
    %33 = vector.load %arg5[%c0_24, %c0_25] : memref<1x256xf32, #tpu.memory_space<vmem>>, vector<1x256xf32>
    %cst_26 = arith.constant 9.99999974E-6 : f32
    %34 = vector.broadcast %cst_26 : f32 to vector<1x256xf32>
    %35 = arith.addf %32, %34 : vector<1x256xf32>
    %36 = math.rsqrt %35 : vector<1x256xf32>
    %37 = arith.mulf %33, %36 : vector<1x256xf32>
    %c0_27 = arith.constant 0 : index
    %c0_28 = arith.constant 0 : index
    %38 = vector.load %arg6[%c0_27, %c0_28] : memref<1x256xf32, #tpu.memory_space<vmem>>, vector<1x256xf32>
    %39 = arith.mulf %28, %37 : vector<1x256xf32>
    %40 = arith.subf %38, %39 : vector<1x256xf32>
    %41 = vector.broadcast %37 : vector<1x256xf32> to vector<200x256xf32>
    %42 = arith.mulf %17, %41 : vector<200x256xf32>
    %43 = vector.broadcast %40 : vector<1x256xf32> to vector<200x256xf32>
    %44 = arith.addf %42, %43 : vector<200x256xf32>
    %cst_29 = arith.constant 0.000000e+00 : f32
    %45 = vector.broadcast %cst_29 : f32 to vector<200x256xf32>
    %46 = arith.maximumf %44, %45 : vector<200x256xf32>
    %47 = vector.broadcast %0 : vector<200x1xf32> to vector<200x256xf32>
    %48 = arith.mulf %46, %47 : vector<200x256xf32>
    %cst_30 = arith.constant 0.000000e+00 : f32
    %49 = vector.broadcast %cst_30 : f32 to vector<16x256xf32>
    %c0_31 = arith.constant 0 : index
    %c0_32 = arith.constant 0 : index
    %50 = vector.load %arg14[%c0_31, %c0_32] : memref<232x256xf32, #tpu.memory_space<vmem>>, vector<16x256xf32>
    tpu.vector_store %arg14[%c0_31, %c0_32], %49 {strides = array<i32>} : memref<232x256xf32, #tpu.memory_space<vmem>>, vector<16x256xf32>,
    %cst_33 = arith.constant 0.000000e+00 : f32
    %51 = vector.broadcast %cst_33 : f32 to vector<16x256xf32>
    %c216 = arith.constant 216 : index
    %c0_34 = arith.constant 0 : index
    %52 = vector.load %arg14[%c216, %c0_34] : memref<232x256xf32, #tpu.memory_space<vmem>>, vector<16x256xf32>
    tpu.vector_store %arg14[%c216, %c0_34], %51 {strides = array<i32>} : memref<232x256xf32, #tpu.memory_space<vmem>>, vector<16x256xf32>,
    %c16_35 = arith.constant 16 : index
    %c0_36 = arith.constant 0 : index
    %53 = vector.load %arg14[%c16_35, %c0_36] : memref<232x256xf32, #tpu.memory_space<vmem>>, vector<200x256xf32>
    tpu.vector_store %arg14[%c16_35, %c0_36], %48 {strides = array<i32>} : memref<232x256xf32, #tpu.memory_space<vmem>>, vector<200x256xf32>,
    %c5_37 = arith.constant 5 : index
    %c0_38 = arith.constant 0 : index
    %54 = vector.load %arg14[%c5_37, %c0_38] : memref<232x256xf32, #tpu.memory_space<vmem>>, vector<200x256xf32>
    %c6_39 = arith.constant 6 : index
    %c0_40 = arith.constant 0 : index
    %55 = vector.load %arg14[%c6_39, %c0_40] : memref<232x256xf32, #tpu.memory_space<vmem>>, vector<200x256xf32>
    %c7_41 = arith.constant 7 : index
    %c0_42 = arith.constant 0 : index
    %56 = vector.load %arg14[%c7_41, %c0_42] : memref<232x256xf32, #tpu.memory_space<vmem>>, vector<200x256xf32>
    %c15_43 = arith.constant 15 : index
    %c0_44 = arith.constant 0 : index
    %57 = vector.load %arg14[%c15_43, %c0_44] : memref<232x256xf32, #tpu.memory_space<vmem>>, vector<200x256xf32>
    %c16_45 = arith.constant 16 : index
    %c0_46 = arith.constant 0 : index
    %58 = vector.load %arg14[%c16_45, %c0_46] : memref<232x256xf32, #tpu.memory_space<vmem>>, vector<200x256xf32>
    %c17_47 = arith.constant 17 : index
    %c0_48 = arith.constant 0 : index
    %59 = vector.load %arg14[%c17_47, %c0_48] : memref<232x256xf32, #tpu.memory_space<vmem>>, vector<200x256xf32>
    %c25_49 = arith.constant 25 : index
    %c0_50 = arith.constant 0 : index
    %60 = vector.load %arg14[%c25_49, %c0_50] : memref<232x256xf32, #tpu.memory_space<vmem>>, vector<200x256xf32>
    %c26_51 = arith.constant 26 : index
    %c0_52 = arith.constant 0 : index
    %61 = vector.load %arg14[%c26_51, %c0_52] : memref<232x256xf32, #tpu.memory_space<vmem>>, vector<200x256xf32>
    %c27_53 = arith.constant 27 : index
    %c0_54 = arith.constant 0 : index
    %62 = vector.load %arg14[%c27_53, %c0_54] : memref<232x256xf32, #tpu.memory_space<vmem>>, vector<200x256xf32>
    %63 = tpu.concatenate %54, %55, %56, %57, %58, %59, %60, %61, %62 in 1 : vector<200x256xf32>, vector<200x256xf32>, vector<200x256xf32>, vector<200x256xf32>, vector<200x256xf32>, vector<200x256xf32>, vector<200x256xf32>, vector<200x256xf32>, vector<200x256xf32> -> vector<200x2304xf32>
    %c0_55 = arith.constant 0 : index
    %c0_56 = arith.constant 0 : index
    %64 = vector.load %arg8[%c0_55, %c0_56] : memref<2304x128xf32, #tpu.memory_space<vmem>>, vector<2304x128xf32>
    %cst_57 = arith.constant dense<0.000000e+00> : vector<200x128xf32>
    %65 = tpu.matmul %63, %64, %cst_57 {dimension_numbers = #tpu.dot_dimension_numbers<[1], [0], [0], [1], [0, 0, 1, 1], [], []>} : vector<200x2304xf32>, vector<2304x128xf32>, vector<200x128xf32> -> vector<200x128xf32>
    %c0_58 = arith.constant 0 : index
    %c0_59 = arith.constant 0 : index
    %66 = vector.load %arg9[%c0_58, %c0_59] : memref<1x128xf32, #tpu.memory_space<vmem>>, vector<1x128xf32>
    %67 = vector.broadcast %66 : vector<1x128xf32> to vector<200x128xf32>
    %68 = arith.addf %65, %67 : vector<200x128xf32>
    %69 = vector.broadcast %0 : vector<200x1xf32> to vector<200x128xf32>
    %70 = arith.mulf %68, %69 : vector<200x128xf32>
    %cst_60 = arith.constant dense<0.000000e+00> : vector<128xf32>
    %71 = vector.multi_reduction <add>, %70, %cst_60 [0] : vector<200x128xf32> to vector<128xf32>
    %72 = vector.shape_cast %71 : vector<128xf32> to vector<1x128xf32>
    %c0_61 = arith.constant 0 : index
    %c0_62 = arith.constant 0 : index
    %73 = vector.load %arg12[%c0_61, %c0_62] : memref<128x128xf32, #tpu.memory_space<vmem>>, vector<128x128xf32>
    %cst_63 = arith.constant dense<0.000000e+00> : vector<1x128xf32>
    %74 = tpu.matmul %72, %73, %cst_63 {dimension_numbers = #tpu.dot_dimension_numbers<[1], [0], [0], [1], [0, 0, 1, 1], [], []>} : vector<1x128xf32>, vector<128x128xf32>, vector<1x128xf32> -> vector<1x128xf32>
    %75 = arith.mulf %70, %70 : vector<200x128xf32>
    %cst_64 = arith.constant dense<0.000000e+00> : vector<128xf32>
    %76 = vector.multi_reduction <add>, %75, %cst_64 [0] : vector<200x128xf32> to vector<128xf32>
    %77 = vector.shape_cast %76 : vector<128xf32> to vector<1x128xf32>
    %c0_65 = arith.constant 0 : index
    %c0_66 = arith.constant 0 : index
    %78 = vector.load %arg12[%c0_65, %c0_66] : memref<128x128xf32, #tpu.memory_space<vmem>>, vector<128x128xf32>
    %cst_67 = arith.constant dense<0.000000e+00> : vector<1x128xf32>
    %79 = tpu.matmul %77, %78, %cst_67 {dimension_numbers = #tpu.dot_dimension_numbers<[1], [0], [0], [1], [0, 0, 1, 1], [], []>} : vector<1x128xf32>, vector<128x128xf32>, vector<1x128xf32> -> vector<1x128xf32>
    %cst_68 = arith.constant 9.765625E-4 : f32
    %80 = vector.broadcast %cst_68 : f32 to vector<1x128xf32>
    %81 = arith.mulf %74, %80 : vector<1x128xf32>
    %cst_69 = arith.constant 9.765625E-4 : f32
    %82 = vector.broadcast %cst_69 : f32 to vector<1x128xf32>
    %83 = arith.mulf %79, %82 : vector<1x128xf32>
    %84 = arith.mulf %81, %81 : vector<1x128xf32>
    %85 = arith.subf %83, %84 : vector<1x128xf32>
    %c0_70 = arith.constant 0 : index
    %c0_71 = arith.constant 0 : index
    %86 = vector.load %arg10[%c0_70, %c0_71] : memref<1x128xf32, #tpu.memory_space<vmem>>, vector<1x128xf32>
    %cst_72 = arith.constant 9.99999974E-6 : f32
    %87 = vector.broadcast %cst_72 : f32 to vector<1x128xf32>
    %88 = arith.addf %85, %87 : vector<1x128xf32>
    %89 = math.rsqrt %88 : vector<1x128xf32>
    %90 = arith.mulf %86, %89 : vector<1x128xf32>
    %c0_73 = arith.constant 0 : index
    %c0_74 = arith.constant 0 : index
    %91 = vector.load %arg11[%c0_73, %c0_74] : memref<1x128xf32, #tpu.memory_space<vmem>>, vector<1x128xf32>
    %92 = arith.mulf %81, %90 : vector<1x128xf32>
    %93 = arith.subf %91, %92 : vector<1x128xf32>
    %c16_75 = arith.constant 16 : index
    %c0_76 = arith.constant 0 : index
    %94 = vector.load %arg1[%c16_75, %c0_76] : memref<232x128xf32, #tpu.memory_space<vmem>>, vector<200x128xf32>
    %95 = vector.broadcast %90 : vector<1x128xf32> to vector<200x128xf32>
    %96 = arith.mulf %70, %95 : vector<200x128xf32>
    %97 = vector.broadcast %93 : vector<1x128xf32> to vector<200x128xf32>
    %98 = arith.addf %96, %97 : vector<200x128xf32>
    %99 = vector.broadcast %0 : vector<200x1xf32> to vector<200x128xf32>
    %100 = arith.mulf %98, %99 : vector<200x128xf32>
    %101 = arith.addf %94, %100 : vector<200x128xf32>
    %c0_77 = arith.constant 0 : index
    %c0_78 = arith.constant 0 : index
    %102 = vector.load %arg13[%c0_77, %c0_78] : memref<200x128xf32, #tpu.memory_space<vmem>>, vector<200x128xf32>
    tpu.vector_store %arg13[%c0_77, %c0_78], %101 {strides = array<i32>} : memref<200x128xf32, #tpu.memory_space<vmem>>, vector<200x128xf32>,
    return
  }
  func.func @transform_0(%arg0: i32) -> (i32, i32) {
    %c0_i32 = arith.constant 0 : i32
    %c0_i32_0 = arith.constant 0 : i32
    %c0_i32_1 = arith.constant 0 : i32
    return %c0_i32, %c0_i32_0 : i32, i32
  }
  func.func @transform_1(%arg0: i32) -> (i32, i32) {
    %c0_i32 = arith.constant 0 : i32
    %c0_i32_0 = arith.constant 0 : i32
    %c0_i32_1 = arith.constant 0 : i32
    return %c0_i32, %c0_i32_0 : i32, i32
  }
  func.func @transform_2(%arg0: i32) -> (i32, i32) {
    %c0_i32 = arith.constant 0 : i32
    %c0_i32_0 = arith.constant 0 : i32
    %c0_i32_1 = arith.constant 0 : i32
    return %c0_i32, %c0_i32_0 : i32, i32
  }
  func.func @transform_3(%arg0: i32) -> (i32, i32) {
    %c0_i32 = arith.constant 0 : i32
    %c0_i32_0 = arith.constant 0 : i32
    %c0_i32_1 = arith.constant 0 : i32
    return %c0_i32, %c0_i32_0 : i32, i32
  }
  func.func @transform_4(%arg0: i32) -> (i32, i32) {
    %c0_i32 = arith.constant 0 : i32
    %c0_i32_0 = arith.constant 0 : i32
    %c0_i32_1 = arith.constant 0 : i32
    return %c0_i32, %c0_i32_0 : i32, i32
  }
  func.func @transform_5(%arg0: i32) -> (i32, i32) {
    %c0_i32 = arith.constant 0 : i32
    %c0_i32_0 = arith.constant 0 : i32
    %c0_i32_1 = arith.constant 0 : i32
    return %c0_i32, %c0_i32_0 : i32, i32
  }
  func.func @transform_6(%arg0: i32) -> (i32, i32) {
    %c0_i32 = arith.constant 0 : i32
    %c0_i32_0 = arith.constant 0 : i32
    %c0_i32_1 = arith.constant 0 : i32
    return %c0_i32, %c0_i32_0 : i32, i32
  }
  func.func @transform_7(%arg0: i32) -> (i32, i32) {
    %c0_i32 = arith.constant 0 : i32
    %c0_i32_0 = arith.constant 0 : i32
    %c0_i32_1 = arith.constant 0 : i32
    return %c0_i32, %c0_i32_0 : i32, i32
  }
  func.func @transform_8(%arg0: i32) -> (i32, i32) {
    %c0_i32 = arith.constant 0 : i32
    %c0_i32_0 = arith.constant 0 : i32
    %c0_i32_1 = arith.constant 0 : i32
    return %c0_i32, %c0_i32_0 : i32, i32
  }
  func.func @transform_9(%arg0: i32) -> (i32, i32) {
    %c0_i32 = arith.constant 0 : i32
    %c0_i32_0 = arith.constant 0 : i32
    %c0_i32_1 = arith.constant 0 : i32
    return %c0_i32, %c0_i32_0 : i32, i32
  }
  func.func @transform_10(%arg0: i32) -> (i32, i32) {
    %c0_i32 = arith.constant 0 : i32
    %c0_i32_0 = arith.constant 0 : i32
    %c0_i32_1 = arith.constant 0 : i32
    return %c0_i32, %c0_i32_0 : i32, i32
  }
  func.func @transform_11(%arg0: i32) -> (i32, i32) {
    %c0_i32 = arith.constant 0 : i32
    %c0_i32_0 = arith.constant 0 : i32
    %c0_i32_1 = arith.constant 0 : i32
    return %c0_i32, %c0_i32_0 : i32, i32
  }
  func.func @transform_12(%arg0: i32) -> (i32, i32) {
    %c0_i32 = arith.constant 0 : i32
    %c0_i32_0 = arith.constant 0 : i32
    %c0_i32_1 = arith.constant 0 : i32
    return %c0_i32, %c0_i32_0 : i32, i32
  }
}

</mosaic_0001>

<bundles_post_ra>
// kernel: tile.33
= control target key start
LH: loop header
LB: loop body
LE: loop exit
PB: predicated region body
PF: predicated region fallthrough
CT: control target
= control target key end

     0   :  { %s22_s0 = inlined_call_operand.vmem [shape: f32[32], index: 0, kind: input, shape index: {}]   ;;  %s23_s1 = inlined_call_operand.vmem [shape: f32[8,32], index: 1, kind: output, shape index: {}]  }
   0x1   :  { %v4_v0 = vld [vmem:[%s22_s0] ss:$0 sm:$0xff] }
   0x2   :  { %5 = vst [vmem:[%s23_s1] sm:$0xff] %v4_v0 }

// kernel: tile.34
= control target key start
LH: loop header
LB: loop body
LE: loop exit
PB: predicated region body
PF: predicated region fallthrough
CT: control target
= control target key end

     0   :  { %s7_s6 = smov 3  ;;  %s46_s9 = smov 96   ;;  %vm4_vm0 = vcmask 261120   ;;  %vm11_vm1 = vcmask 1048320   ;;  %vm18_vm2 = vcmask 785920   ;;  %vm25_vm3 = vcmask 523520   ;;  %s77_s0 = inlined_call_operand.vmem [shape: f32[8,32], index: 0, kind: input, shape index: {}]   ;;  %s78_s1 = inlined_call_operand.vmem [shape: f32[1,256], index: 1, kind: output, shape index: {}]  }
   0x1   :  { %v39_v0 = vld [vmem:[%s77_s0 + $0x3] ss:$4 sm:%s7_s6]   ;;  %s21_s10 = smov 3  ;;  %s14_s13 = smov 3 }
   0x2   :  { %9 = vrot.lane.b32.xlu0 %v39_v0, %s46_s9  ;;  %v41_v1 = vld [vmem:[%s77_s0 + $0x1] ss:$4 sm:%s21_s10]   ;;  %s47_s14 = smov 32   ;;  %s48_s17 = smov 64  }
   0x3   :  { %23 = vrot.lane.b32.xlu1 %v41_v1, %s47_s14  ;;  %v40_v2 = vld [vmem:[%s77_s0 + $0x2] ss:$4 sm:%s14_s13]   ;;  %s2_s18 = smov 3 }
   0x4   :  { %v3_v3 = vld [vmem:[%s77_s0] ss:$4 sm:%s2_s18]  }
   0x5   :  { %5 = vst.msk [vmem:[#allocation0] ss:$8 sm:$0x3] %vm4_vm0, %v3_v3  }
   0xa   :  { %16 = vrot.lane.b32.xlu0 %v40_v2, %s48_s17 }
  0x74   :  { %v10_v4 = vpop.permute.xlu0 %9  }
  0x75   :  { %12 = vst.msk [vmem:[#allocation0] ss:$8 sm:$0x3] %vm11_vm1, %v10_v4   ;;  %v24_v5 = vpop.permute.xlu1 %23  }
  0x7c   :  { %v17_v6 = vpop.permute.xlu0 %16  }
  0x7d   :  { %19 = vst.msk [vmem:[#allocation0] ss:$8 sm:$0x3] %vm18_vm2, %v17_v6  }
  0x7e   :  { %26 = vst.msk [vmem:[#allocation0] ss:$8 sm:$0x3] %vm25_vm3, %v24_v5  }
  0x85   :  { %v29_v7 = vld [vmem:[#allocation0] sm:$0x1]  ;;  %v34_v8 = vld [vmem:[#allocation0 + $0x8] sm:$0x1] }
  0x86   :  { %32 = vst [vmem:[%s78_s1] sm:$0x1] %v29_v7 }
  0x87   :  { %42 = vst [vmem:[%s78_s1 + $0x1] sm:$0x1] %v34_v8 }

// kernel: tile.48
= control target key start
LH: loop header
LB: loop body
LE: loop exit
PB: predicated region body
PF: predicated region fallthrough
CT: control target
= control target key end

     0   :  { %s22_s0 = inlined_call_operand.vmem [shape: f32[16], index: 0, kind: input, shape index: {}]   ;;  %s23_s1 = inlined_call_operand.vmem [shape: f32[8,16], index: 1, kind: output, shape index: {}]  }
   0x1   :  { %v4_v0 = vld [vmem:[%s22_s0] ss:$0 sm:$0xff] }
   0x2   :  { %5 = vst [vmem:[%s23_s1] sm:$0xff] %v4_v0 }

// kernel: tile.49
= control target key start
LH: loop header
LB: loop body
LE: loop exit
PB: predicated region body
PF: predicated region fallthrough
CT: control target
= control target key end

     0   :  { %s67_s10 = smov 112   ;;  %s68_s11 = smov 80   ;;  %vm3_vm0 = vcmask 130048   ;;  %vm9_vm1 = vcmask 1048448   ;;  %vm15_vm2 = vcmask 917248   ;;  %vm21_vm3 = vcmask 786048   ;;  %s111_s0 = inlined_call_operand.vmem [shape: f32[8,16], index: 0, kind: input, shape index: {}]   ;;  %s112_s1 = inlined_call_operand.vmem [shape: f32[1,128], index: 1, kind: output, shape index: {}]  }
   0x1   :  { %v53_v0 = vld [vmem:[%s111_s0 + $0x7] sm:$0x1]   ;;  %v55_v1 = vld [vmem:[%s111_s0 + $0x5] sm:$0x1]   ;;  %v57_v2 = vld [vmem:[%s111_s0 + $0x3] sm:$0x1]  }
   0x2   :  { %7 = vrot.lane.b32.xlu0 %v53_v0, %s67_s10  ;;  %19 = vrot.lane.b32.xlu1 %v55_v1, %s68_s11  ;;  %s69_s14 = smov 48   ;;  %v54_v3 = vld [vmem:[%s111_s0 + $0x6] sm:$0x1]   ;;  %v56_v4 = vld [vmem:[%s111_s0 + $0x4] sm:$0x1]   ;;  %s70_s21 = smov 96  }
   0x3   :  { %31 = vrot.lane.b32.xlu2 %v57_v2, %s69_s14  ;;  %v58_v5 = vld [vmem:[%s111_s0 + $0x2] sm:$0x1]   ;;  %s71_s22 = smov 64   ;;  %s72_s23 = smov 32   ;;  %v59_v6 = vld [vmem:[%s111_s0 + $0x1] sm:$0x1]  }
   0x4   :  { %s73_s26 = smov 16   ;;  %v2_v7 = vld [vmem:[%s111_s0] sm:$0x1]   ;;  %vm27_vm4 = vcmask 654848   ;;  %vm33_vm5 = vcmask 523648   ;;  %vm39_vm6 = vcmask 392448  }
   0x5   :  { %4 = vst.msk [vmem:[#allocation0] sm:$0x1] %vm3_vm0, %v2_v7   ;;  %vm45_vm7 = vcmask 261248  }
   0xa   :  { %13 = vrot.lane.b32.xlu0 %v54_v3, %s70_s21  ;;  %25 = vrot.lane.b32.xlu1 %v56_v4, %s71_s22 }
   0xb   :  { %37 = vrot.lane.b32.xlu2 %v58_v5, %s72_s23 }
  0x12   :  { %43 = vrot.lane.b32.xlu0 %v59_v6, %s73_s26 }
  0x5d   :  { %v32_v8 = vpop.permute.xlu2 %31  }
  0x65   :  { %v38_v9 = vpop.permute.xlu2 %37  }
  0x74   :  { %v8_v10 = vpop.permute.xlu0 %7   ;;  %v20_v11 = vpop.permute.xlu1 %19  }
  0x75   :  { %10 = vst.msk [vmem:[#allocation0] sm:$0x1] %vm9_vm1, %v8_v10  }
  0x7c   :  { %v14_v12 = vpop.permute.xlu0 %13   ;;  %v26_v13 = vpop.permute.xlu1 %25  }
  0x7d   :  { %16 = vst.msk [vmem:[#allocation0] sm:$0x1] %vm15_vm2, %v14_v12  }
  0x7e   :  { %22 = vst.msk [vmem:[#allocation0] sm:$0x1] %vm21_vm3, %v20_v11  }
  0x7f   :  { %28 = vst.msk [vmem:[#allocation0] sm:$0x1] %vm27_vm4, %v26_v13  }
  0x80   :  { %34 = vst.msk [vmem:[#allocation0] sm:$0x1] %vm33_vm5, %v32_v8  }
  0x81   :  { %40 = vst.msk [vmem:[#allocation0] sm:$0x1] %vm39_vm6, %v38_v9  }
  0x84   :  { %v44_v14 = vpop.permute.xlu0 %43  }
  0x85   :  { %46 = vst.msk [vmem:[#allocation0] sm:$0x1] %vm45_vm7, %v44_v14  }
  0x8c   :  { %v49_v15 = vld [vmem:[#allocation0] sm:$0x1] }
  0x8d   :  { %52 = vst [vmem:[%s112_s1] sm:$0x1] %v49_v15 }

// kernel: bottlenect3d_forward.1
= control target key start
LH: loop header
LB: loop body
LE: loop exit
PB: predicated region body
PF: predicated region fallthrough
CT: control target
= control target key end

     0   :  { %vm3855_vm0 = vcmask 1042432   ;;  %vm2796_vm6 = vcmask 1040384   ;;  %vm3261_vm8 = vcmask 1046528   ;;  %vm3368_vm9 = vcmask 1045504   ;;  %s16377_s2 = inlined_call_operand.vmem [shape: f32[1152,256], index: 2, kind: input, shape index: {}]   ;;  %s16378_s0 = inlined_call_operand.vmem [shape: f32[232,128], index: 0, kind: input, shape index: {}]   ;;  %s16379_s3 = inlined_call_operand.vmem [shape: f32[1,256], index: 3, kind: input, shape index: {}]   ;;  %s16380_s1 = inlined_call_operand.vmem [shape: f32[200,1], index: 1, kind: input, shape index: {}]   ;;  %s16381_s6 = inlined_call_operand.vmem [shape: f32[256,256], index: 6, kind: input, shape index: {}]   ;;  %s16382_s7 = inlined_call_operand.vmem [shape: f32[2304,128], index: 7, kind: input, shape index: {}]   ;;  %s16383_s4 = inlined_call_operand.vmem [shape: f32[1,256], index: 4, kind: input, shape index: {}]   ;;  %s16384_s5 = inlined_call_operand.vmem [shape: f32[1,256], index: 5, kind: input, shape index: {}]   ;;  %s16385_s8 = inlined_call_operand.vmem [shape: f32[1,128], index: 8, kind: input, shape index: {}]   ;;  %s16386_s11 = inlined_call_operand.vmem [shape: f32[128,128], index: 11, kind: input, shape index: {}]   ;;  %s16387_s9 = inlined_call_operand.vmem [shape: f32[1,128], index: 9, kind: input, shape index: {}]   ;;  %s16388_s10 = inlined_call_operand.vmem [shape: f32[1,128], index: 10, kind: input, shape index: {}]   ;;  %s16389_s12 = inlined_call_operand.vmem [shape: f32[200,128], index: 12, kind: output, shape index: {}]  }
   0x1   :  { %v273_v0 = vld [vmem:[%s16377_s2 + $0xf0] sm:$0xff]  ;;  %v271_v1 = vld [vmem:[%s16377_s2 + $0xe0] sm:$0xff]  ;;  %vm3491_vm10 = vcmask 1044480   ;;  %vm3594_vm11 = vcmask 1043456   ;;  %vm3962_vm12 = vcmask 1041408  }
   0x2   :  { %v305_v2 = vld [vmem:[%s16377_s2 + $0x1f0] sm:$0xff]  ;;  %537 = vmatpush.msra.mxu0 %v273_v0  ;;  %v303_v3 = vld [vmem:[%s16377_s2 + $0x1e0] sm:$0xff] }
   0x3   :  { %629 = vmatpush.msra.mxu1 %v305_v2  ;;  %v269_v4 = vld [vmem:[%s16377_s2 + $0xd0] sm:$0xff]  ;;  %v267_v6 = vld [vmem:[%s16377_s2 + $0xc0] sm:$0xff] }
   0x4   :  { %v301_v5 = vld [vmem:[%s16377_s2 + $0x1d0] sm:$0xff]  ;;  %538 = vmatpush.msra.mxu0 %v271_v1  ;;  %v299_v7 = vld [vmem:[%s16377_s2 + $0x1c0] sm:$0xff] }
   0x5   :  { %630 = vmatpush.msra.mxu1 %v303_v3  ;;  %v265_v8 = vld [vmem:[%s16377_s2 + $0xb0] sm:$0xff]  ;;  %v263_v10 = vld [vmem:[%s16377_s2 + $0xa0] sm:$0xff] }
   0x6   :  { %539 = vmatpush.msra.mxu0 %v269_v4  ;;  %v297_v9 = vld [vmem:[%s16377_s2 + $0x1b0] sm:$0xff]  ;;  %v295_v11 = vld [vmem:[%s16377_s2 + $0x1a0] sm:$0xff] }
   0x7   :  { %631 = vmatpush.msra.mxu1 %v301_v5  ;;  %v261_v12 = vld [vmem:[%s16377_s2 + $0x90] sm:$0xff]  ;;  %v259_v14 = vld [vmem:[%s16377_s2 + $0x80] sm:$0xff] }
   0x8   :  { %540 = vmatpush.msra.mxu0 %v267_v6  ;;  %v293_v13 = vld [vmem:[%s16377_s2 + $0x190] sm:$0xff]  ;;  %v291_v15 = vld [vmem:[%s16377_s2 + $0x180] sm:$0xff] }
   0x9   :  { %632 = vmatpush.msra.mxu1 %v299_v7  ;;  %v257_v16 = vld [vmem:[%s16377_s2 + $0x70] sm:$0xff]  ;;  %v255_v18 = vld [vmem:[%s16377_s2 + $0x60] sm:$0xff] }
   0xa   :  { %541 = vmatpush.msra.mxu0 %v265_v8  ;;  %v289_v17 = vld [vmem:[%s16377_s2 + $0x170] sm:$0xff]  ;;  %v287_v19 = vld [vmem:[%s16377_s2 + $0x160] sm:$0xff] }
   0xb   :  { %633 = vmatpush.msra.mxu1 %v297_v9  ;;  %v337_v20 = vld [vmem:[%s16377_s2 + $0x2f0] sm:$0xff]  ;;  %v335_v21 = vld [vmem:[%s16377_s2 + $0x2e0] sm:$0xff] }
   0xc   :  { %542 = vmatpush.msra.mxu0 %v263_v10  ;;  %v253_v22 = vld [vmem:[%s16377_s2 + $0x50] sm:$0xff]  ;;  %7603 = vmatpush.msra.mxu2 %v337_v20  ;;  %v251_v25 = vld [vmem:[%s16377_s2 + $0x40] sm:$0xff] }
   0xd   :  { %634 = vmatpush.msra.mxu1 %v295_v11  ;;  %v285_v23 = vld [vmem:[%s16377_s2 + $0x150] sm:$0xff]  ;;  %v283_v26 = vld [vmem:[%s16377_s2 + $0x140] sm:$0xff] }
   0xe   :  { %543 = vmatpush.msra.mxu0 %v261_v12  ;;  %v333_v24 = vld [vmem:[%s16377_s2 + $0x2d0] sm:$0xff]  ;;  %7604 = vmatpush.msra.mxu2 %v335_v21  ;;  %v331_v27 = vld [vmem:[%s16377_s2 + $0x2c0] sm:$0xff] }
   0xf   :  { %635 = vmatpush.msra.mxu1 %v293_v13  ;;  %v249_v28 = vld [vmem:[%s16377_s2 + $0x30] sm:$0xff]  ;;  %v247_v30 = vld [vmem:[%s16377_s2 + $0x20] sm:$0xff] }
  0x10   :  { %544 = vmatpush.msra.mxu0 %v259_v14  ;;  %v281_v29 = vld [vmem:[%s16377_s2 + $0x130] sm:$0xff]  ;;  %7605 = vmatpush.msra.mxu2 %v333_v24  ;;  %v279_v31 = vld [vmem:[%s16377_s2 + $0x120] sm:$0xff] }
  0x11   :  { %636 = vmatpush.msra.mxu1 %v291_v15  ;;  %v329_v32 = vld [vmem:[%s16377_s2 + $0x2b0] sm:$0xff]  ;;  %v327_v34 = vld [vmem:[%s16377_s2 + $0x2a0] sm:$0xff] }
  0x12   :  { %545 = vmatpush.msra.mxu0 %v257_v16  ;;  %7606 = vmatpush.msra.mxu2 %v331_v27  ;;  %v369_v33 = vld [vmem:[%s16377_s2 + $0x3f0] sm:$0xff]  ;;  %v367_v35 = vld [vmem:[%s16377_s2 + $0x3e0] sm:$0xff] }
  0x13   :  { %637 = vmatpush.msra.mxu1 %v289_v17  ;;  %v245_v36 = vld [vmem:[%s16377_s2 + $0x10] sm:$0xff]  ;;  %7619 = vmatpush.msra.mxu3 %v369_v33  ;;  %v243_v40 = vld [vmem:[%s16377_s2] sm:$0xff] }
  0x14   :  { %546 = vmatpush.msra.mxu0 %v255_v18  ;;  %v277_v37 = vld [vmem:[%s16377_s2 + $0x110] sm:$0xff]  ;;  %7607 = vmatpush.msra.mxu2 %v329_v32  ;;  %v275_v41 = vld [vmem:[%s16377_s2 + $0x100] sm:$0xff] }
  0x15   :  { %638 = vmatpush.msra.mxu1 %v287_v19  ;;  %v325_v38 = vld [vmem:[%s16377_s2 + $0x290] sm:$0xff]  ;;  %7620 = vmatpush.msra.mxu3 %v367_v35  ;;  %v66_v42 = vld [vmem:[%s16378_s0 + $0x5] sm:$0xff]  ;;  %v69_v5 = vld [vmem:[%s16378_s0 + $0x1d] sm:$0xff] }
  0x16   :  { %547 = vmatpush.msra.mxu0 %v253_v22  ;;  %v365_v39 = vld [vmem:[%s16377_s2 + $0x3d0] sm:$0xff]  ;;  %7608 = vmatpush.msra.mxu2 %v327_v34  ;;  %v91_v43 = vld [vmem:[%s16378_s0 + $0x6] sm:$0xff]  ;;  %v94_v6 = vld [vmem:[%s16378_s0 + $0x1e] sm:$0xff] }
  0x17   :  { %639 = vmatpush.msra.mxu1 %v285_v23  ;;  %7621 = vmatpush.msra.mxu3 %v365_v39  ;;  %v323_v44 = vld [vmem:[%s16377_s2 + $0x280] sm:$0xff]  ;;  %v321_v46 = vld [vmem:[%s16377_s2 + $0x270] sm:$0xff] }
  0x18   :  { %548 = vmatpush.msra.mxu0 %v251_v25  ;;  %7609 = vmatpush.msra.mxu2 %v325_v38  ;;  %v363_v45 = vld [vmem:[%s16377_s2 + $0x3c0] sm:$0xff]  ;;  %v361_v47 = vld [vmem:[%s16377_s2 + $0x3b0] sm:$0xff] }
  0x19   :  { %640 = vmatpush.msra.mxu1 %v283_v26  ;;  %7622 = vmatpush.msra.mxu3 %v363_v45  ;;  %v319_v48 = vld [vmem:[%s16377_s2 + $0x260] sm:$0xff]  ;;  %v67_v50 = vld [vmem:[%s16378_s0 + $0xd] sm:$0xff]  ;;  %v68_v60 = vld [vmem:[%s16378_s0 + $0x15] sm:$0xff] }
  0x1a   :  { %549 = vmatpush.msra.mxu0 %v249_v28  ;;  %7610 = vmatpush.msra.mxu2 %v323_v44  ;;  %v359_v49 = vld [vmem:[%s16377_s2 + $0x3a0] sm:$0xff]  ;;  %v92_v51 = vld [vmem:[%s16378_s0 + $0xe] sm:$0xff]  ;;  %v93_v61 = vld [vmem:[%s16378_s0 + $0x16] sm:$0xff] }
  0x1b   :  { %641 = vmatpush.msra.mxu1 %v281_v29  ;;  %7623 = vmatpush.msra.mxu3 %v361_v47  ;;  %v317_v52 = vld [vmem:[%s16377_s2 + $0x250] sm:$0xff]  ;;  %v315_v54 = vld [vmem:[%s16377_s2 + $0x240] sm:$0xff] }
  0x1c   :  { %550 = vmatpush.msra.mxu0 %v247_v30  ;;  %7611 = vmatpush.msra.mxu2 %v321_v46  ;;  %v357_v53 = vld [vmem:[%s16377_s2 + $0x390] sm:$0xff]  ;;  %v355_v55 = vld [vmem:[%s16377_s2 + $0x380] sm:$0xff] }
  0x1d   :  { %642 = vmatpush.msra.mxu1 %v279_v31  ;;  %7624 = vmatpush.msra.mxu3 %v359_v49  ;;  %v313_v56 = vld [vmem:[%s16377_s2 + $0x230] sm:$0xff]  ;;  %v311_v58 = vld [vmem:[%s16377_s2 + $0x220] sm:$0xff] }
  0x1e   :  { %551 = vmatpush.msra.mxu0 %v245_v36  ;;  %7612 = vmatpush.msra.mxu2 %v319_v48  ;;  %v353_v57 = vld [vmem:[%s16377_s2 + $0x370] sm:$0xff]  ;;  %v351_v59 = vld [vmem:[%s16377_s2 + $0x360] sm:$0xff] }
  0x1f   :  { %643 = vmatpush.msra.mxu1 %v277_v37  ;;  %7625 = vmatpush.msra.mxu3 %v357_v53  ;;  %v309_v62 = vld [vmem:[%s16377_s2 + $0x210] sm:$0xff]  ;;  %v307_v0 = vld [vmem:[%s16377_s2 + $0x200] sm:$0xff] }
  0x20   :  { %552 = vmatpush.msra.mxu0 %v243_v40  ;;  %7613 = vmatpush.msra.mxu2 %v317_v52  ;;  %v349_v63 = vld [vmem:[%s16377_s2 + $0x350] sm:$0xff]  ;;  %v347_v1 = vld [vmem:[%s16377_s2 + $0x340] sm:$0xff] }
  0x21   :  { %644 = vmatpush.msra.mxu1 %v275_v41  ;;  %553 = vmatmul.f32.vlgmr.msra.gmra.mxu0 %v66_v42  ;;  %v8244_v2 = vld [vmem:[%s16378_s0 + $0x3f] sm:$0xff]  ;;  %v345_v3 = vld [vmem:[%s16377_s2 + $0x330] sm:$0xff]  ;;  %v124_v9 = vld [vmem:[%s16378_s0 + $0x47] sm:$0xff] }
  0x22   :  { %645 = vmatmul.f32.vlgmr.msra.gmra.mxu1 %v91_v43  ;;  %721 = vmatpush.msrb.mxu0 %v337_v20  ;;  %v343_v4 = vld [vmem:[%s16377_s2 + $0x320] sm:$0xff]  ;;  %v341_v7 = vld [vmem:[%s16377_s2 + $0x310] sm:$0xff] }
  0x23   :  { %813 = vmatpush.msrb.mxu1 %v369_v33  ;;  %7614 = vmatpush.msra.mxu2 %v315_v54  ;;  %v339_v8 = vld [vmem:[%s16377_s2 + $0x300] sm:$0xff]  ;;  %v125_v12 = vld [vmem:[%s16378_s0 + $0x4f] sm:$0xff]  ;;  %v126_v15 = vld [vmem:[%s16378_s0 + $0x57] sm:$0xff] }
  0x24   :  { %722 = vmatpush.msrb.mxu0 %v335_v21  ;;  %7626 = vmatpush.msra.mxu3 %v355_v55  ;;  %v70_v10 = vld [vmem:[%s16378_s0 + $0x25] sm:$0xff]  ;;  %v71_v13 = vld [vmem:[%s16378_s0 + $0x2d] sm:$0xff]  ;;  %v72_v16 = vld [vmem:[%s16378_s0 + $0x35] sm:$0xff] }
  0x25   :  { %814 = vmatpush.msrb.mxu1 %v367_v35  ;;  %7615 = vmatpush.msra.mxu2 %v313_v56  ;;  %v95_v11 = vld [vmem:[%s16378_s0 + $0x26] sm:$0xff]  ;;  %v96_v14 = vld [vmem:[%s16378_s0 + $0x2e] sm:$0xff]  ;;  %v97_v17 = vld [vmem:[%s16378_s0 + $0x36] sm:$0xff] }
  0x26   :  { %723 = vmatpush.msrb.mxu0 %v333_v24  ;;  %7627 = vmatpush.msra.mxu3 %v353_v57  ;;  %v127_v18 = vld [vmem:[%s16378_s0 + $0x5f] sm:$0xff]  ;;  %v128_v21 = vld [vmem:[%s16378_s0 + $0x67] sm:$0xff]  ;;  %v129_v24 = vld [vmem:[%s16378_s0 + $0x6f] sm:$0xff] }
  0x27   :  { %815 = vmatpush.msrb.mxu1 %v365_v39  ;;  %7616 = vmatpush.msra.mxu2 %v311_v58  ;;  %v73_v19 = vld [vmem:[%s16378_s0 + $0x3d] sm:$0xff]  ;;  %v74_v22 = vld [vmem:[%s16378_s0 + $0x45] sm:$0xff]  ;;  %v75_v25 = vld [vmem:[%s16378_s0 + $0x4d] sm:$0xff] }
  0x28   :  { %724 = vmatpush.msrb.mxu0 %v331_v27  ;;  %7628 = vmatpush.msra.mxu3 %v351_v59  ;;  %v98_v20 = vld [vmem:[%s16378_s0 + $0x3e] sm:$0xff]  ;;  %v99_v23 = vld [vmem:[%s16378_s0 + $0x46] sm:$0xff]  ;;  %v100_v26 = vld [vmem:[%s16378_s0 + $0x4e] sm:$0xff] }
  0x29   :  { %816 = vmatpush.msrb.mxu1 %v363_v45  ;;  %556 = vmatmul.f32.gmra.mxu0 %v67_v50  ;;  %v130_v27 = vld [vmem:[%s16378_s0 + $0x77] sm:$0xff]  ;;  %v131_v30 = vld [vmem:[%s16378_s0 + $0x7f] sm:$0xff]  ;;  %v132_v33 = vld [vmem:[%s16378_s0 + $0x87] sm:$0xff] }
  0x2a   :  { %648 = vmatmul.f32.gmra.mxu1 %v92_v51  ;;  %725 = vmatpush.msrb.mxu0 %v329_v32  ;;  %v76_v28 = vld [vmem:[%s16378_s0 + $0x55] sm:$0xff]  ;;  %v77_v31 = vld [vmem:[%s16378_s0 + $0x5d] sm:$0xff]  ;;  %v103_v35 = vld [vmem:[%s16378_s0 + $0x66] sm:$0xff] }
  0x2b   :  { %817 = vmatpush.msrb.mxu1 %v361_v47  ;;  %7617 = vmatpush.msra.mxu2 %v309_v62  ;;  %v101_v29 = vld [vmem:[%s16378_s0 + $0x56] sm:$0xff]  ;;  %v102_v32 = vld [vmem:[%s16378_s0 + $0x5e] sm:$0xff]  ;;  %v79_v37 = vld [vmem:[%s16378_s0 + $0x6d] sm:$0xff] }
  0x2c   :  { %726 = vmatpush.msrb.mxu0 %v327_v34  ;;  %7629 = vmatpush.msra.mxu3 %v349_v63  ;;  %v78_v34 = vld [vmem:[%s16378_s0 + $0x65] sm:$0xff]  ;;  %v133_v36 = vld [vmem:[%s16378_s0 + $0x8f] sm:$0xff]  ;;  %v134_v39 = vld [vmem:[%s16378_s0 + $0x97] sm:$0xff] }
  0x2d   :  { %818 = vmatpush.msrb.mxu1 %v359_v49  ;;  %7618 = vmatpush.msra.mxu2 %v307_v0  ;;  %v80_v40 = vld [vmem:[%s16378_s0 + $0x75] sm:$0xff]  ;;  %v135_v42 = vld [vmem:[%s16378_s0 + $0x9f] sm:$0xff]  ;;  %v136_v45 = vld [vmem:[%s16378_s0 + $0xa7] sm:$0xff] }
  0x2e   :  { %727 = vmatpush.msrb.mxu0 %v325_v38  ;;  %7630 = vmatpush.msra.mxu3 %v347_v1  ;;  %v104_v38 = vld [vmem:[%s16378_s0 + $0x6e] sm:$0xff]  ;;  %v105_v41 = vld [vmem:[%s16378_s0 + $0x76] sm:$0xff]  ;;  %v107_v49 = vld [vmem:[%s16378_s0 + $0x86] sm:$0xff] }
  0x2f   :  { %819 = vmatpush.msrb.mxu1 %v357_v53  ;;  %758 = vmatmul.f32.vlgmr.msra.gmra.mxu2 %v8244_v2  ;;  %v81_v43 = vld [vmem:[%s16378_s0 + $0x7d] sm:$0xff]  ;;  %v465_v50 = vld [vmem:[%s16377_s2 + $0x6f0] sm:$0xff] }
  0x30   :  { %728 = vmatpush.msrb.mxu0 %v323_v44  ;;  %7631 = vmatpush.msra.mxu3 %v345_v3  ;;  %v106_v44 = vld [vmem:[%s16378_s0 + $0x7e] sm:$0xff]  ;;  %v461_v53 = vld [vmem:[%s16377_s2 + $0x6d0] sm:$0xff] }
  0x31   :  { %559 = vmatmul.f32.gmra.mxu0 %v68_v60  ;;  %820 = vmatpush.msrb.mxu1 %v355_v55  ;;  %v463_v51 = vld [vmem:[%s16377_s2 + $0x6e0] sm:$0xff] }
  0x32   :  { %651 = vmatmul.f32.gmra.mxu1 %v93_v61  ;;  %729 = vmatpush.msrb.mxu0 %v321_v46  ;;  %v455_v60 = vld [vmem:[%s16377_s2 + $0x6a0] sm:$0xff]  ;;  %v138_v61 = vld [vmem:[%s16378_s0 + $0xb7] sm:$0xff] }
  0x33   :  { %821 = vmatpush.msrb.mxu1 %v353_v57  ;;  %7632 = vmatpush.msra.mxu3 %v343_v4  ;;  %v108_v57 = vld [vmem:[%s16378_s0 + $0x8e] sm:$0xff] }
  0x34   :  { %730 = vmatpush.msrb.mxu0 %v319_v48  ;;  %v82_v48 = vld [vmem:[%s16378_s0 + $0x85] sm:$0xff]  ;;  %1089 = vmatpush.msrb.mxu2 %v465_v50 }
  0x35   :  { %822 = vmatpush.msrb.mxu1 %v351_v59  ;;  %7633 = vmatpush.msra.mxu3 %v341_v7  ;;  %v457_v59 = vld [vmem:[%s16377_s2 + $0x6b0] sm:$0xff] }
  0x36   :  { %731 = vmatpush.msrb.mxu0 %v317_v52  ;;  %v137_v52 = vld [vmem:[%s16378_s0 + $0xaf] sm:$0xff]  ;;  %1090 = vmatpush.msrb.mxu2 %v463_v51 }
  0x37   :  { %823 = vmatpush.msrb.mxu1 %v349_v63  ;;  %7634 = vmatpush.msra.mxu3 %v339_v8  ;;  %v8550_v51 = vld [vmem:[%s16378_s0 + $0x31] sm:$0xff] }
  0x38   :  { %732 = vmatpush.msrb.mxu0 %v315_v54  ;;  %761 = vmatmul.f32.gmra.mxu2 %v124_v9 }
  0x39   :  { %562 = vmatmul.f32.gmra.mxu0 %v69_v5  ;;  %850 = vmatmul.f32.vlgmr.msra.gmra.mxu3 %v124_v9  ;;  %v449_v5 = vld [vmem:[%s16377_s2 + $0x670] sm:$0xff] }
  0x3a   :  { %654 = vmatmul.f32.gmra.mxu1 %v94_v6  ;;  %733 = vmatpush.msrb.mxu0 %v313_v56  ;;  %v83_v56 = vld [vmem:[%s16378_s0 + $0x8d] sm:$0xff]  ;;  %v447_v6 = vld [vmem:[%s16377_s2 + $0x660] sm:$0xff] }
  0x3b   :  { %824 = vmatpush.msrb.mxu1 %v347_v1  ;;  %1091 = vmatpush.msrb.mxu2 %v461_v53  ;;  %v84_v1 = vld [vmem:[%s16378_s0 + $0x95] sm:$0xff] }
  0x3c   :  { %734 = vmatpush.msrb.mxu0 %v311_v58  ;;  %v459_v58 = vld [vmem:[%s16377_s2 + $0x6c0] sm:$0xff] }
  0x3d   :  { %825 = vmatpush.msrb.mxu1 %v345_v3  ;;  %1092 = vmatpush.msrb.mxu2 %v459_v58  ;;  %v109_v3 = vld [vmem:[%s16378_s0 + $0x96] sm:$0xff]  ;;  %v115_v58 = vld [vmem:[%s16378_s0 + $0xc6] sm:$0xff] }
  0x3e   :  { %735 = vmatpush.msrb.mxu0 %v309_v62  ;;  %v453_v62 = vld [vmem:[%s16377_s2 + $0x690] sm:$0xff] }
  0x3f   :  { %826 = vmatpush.msrb.mxu1 %v343_v4  ;;  %1093 = vmatpush.msrb.mxu2 %v457_v59  ;;  %v451_v4 = vld [vmem:[%s16377_s2 + $0x680] sm:$0xff] }
  0x40   :  { %736 = vmatpush.msrb.mxu0 %v307_v0  ;;  %764 = vmatmul.f32.gmra.mxu2 %v125_v12 }
  0x41   :  { %565 = vmatmul.f32.gmra.mxu0 %v70_v10  ;;  %827 = vmatpush.msrb.mxu1 %v341_v7  ;;  %v139_v7 = vld [vmem:[%s16378_s0 + $0xbf] sm:$0xff] }
  0x42   :  { %657 = vmatmul.f32.gmra.mxu1 %v95_v11  ;;  %853 = vmatmul.f32.gmra.mxu3 %v125_v12  ;;  %v85_v11 = vld [vmem:[%s16378_s0 + $0x9d] sm:$0xff] }
  0x43   :  { %828 = vmatpush.msrb.mxu1 %v339_v8  ;;  %1094 = vmatpush.msrb.mxu2 %v455_v60  ;;  %v445_v8 = vld [vmem:[%s16377_s2 + $0x650] sm:$0xff]  ;;  %v110_v12 = vld [vmem:[%s16378_s0 + $0x9e] sm:$0xff] }
  0x45   :  { %1095 = vmatpush.msrb.mxu2 %v453_v62 }
  0x47   :  { %1096 = vmatpush.msrb.mxu2 %v451_v4  ;;  %v497_v4 = vld [vmem:[%s16377_s2 + $0x7f0] sm:$0xff] }
  0x48   :  { %767 = vmatmul.f32.gmra.mxu2 %v126_v15  ;;  %1181 = vmatpush.msrb.mxu3 %v497_v4 }
  0x49   :  { %568 = vmatmul.f32.gmra.mxu0 %v71_v13  ;;  %1097 = vmatpush.msrb.mxu2 %v449_v5  ;;  %v443_v13 = vld [vmem:[%s16377_s2 + $0x640] sm:$0xff] }
  0x4a   :  { %660 = vmatmul.f32.gmra.mxu1 %v96_v14  ;;  %856 = vmatmul.f32.gmra.mxu3 %v126_v15  ;;  %v441_v15 = vld [vmem:[%s16377_s2 + $0x630] sm:$0xff]  ;;  %v8578_v5 = vld [vmem:[%s16378_s0 + $0x39] sm:$0xff] }
  0x4b   :  { %1098 = vmatpush.msrb.mxu2 %v447_v6 }
  0x4d   :  { %1099 = vmatpush.msrb.mxu2 %v445_v8  ;;  %v495_v8 = vld [vmem:[%s16377_s2 + $0x7e0] sm:$0xff] }
  0x4e   :  { %1182 = vmatpush.msrb.mxu3 %v495_v8  ;;  %v419_v8 = vld [vmem:[%s16377_s2 + $0x580] sm:$0xff] }
  0x4f   :  { %1100 = vmatpush.msrb.mxu2 %v443_v13  ;;  %v493_v13 = vld [vmem:[%s16377_s2 + $0x7d0] sm:$0xff] }
  0x50   :  { %770 = vmatmul.f32.gmra.mxu2 %v127_v18  ;;  %1183 = vmatpush.msrb.mxu3 %v493_v13 }
  0x51   :  { %571 = vmatmul.f32.gmra.mxu0 %v72_v16  ;;  %v140_v16 = vld [vmem:[%s16378_s0 + $0xc7] sm:$0xff]  ;;  %1101 = vmatpush.msrb.mxu2 %v441_v15 }
  0x52   :  { %663 = vmatmul.f32.gmra.mxu1 %v97_v17  ;;  %859 = vmatmul.f32.gmra.mxu3 %v127_v18  ;;  %v439_v17 = vld [vmem:[%s16377_s2 + $0x620] sm:$0xff]  ;;  %v437_v18 = vld [vmem:[%s16377_s2 + $0x610] sm:$0xff] }
  0x53   :  { %1102 = vmatpush.msrb.mxu2 %v439_v17  ;;  %v117_v17 = vld [vmem:[%s16378_s0 + $0xf] sm:$0xff] }
  0x55   :  { %1103 = vmatpush.msrb.mxu2 %v437_v18 }
  0x58   :  { %773 = vmatmul.f32.gmra.mxu2 %v128_v21 }
  0x59   :  { %574 = vmatmul.f32.gmra.mxu0 %v73_v19 }
  0x5a   :  { %666 = vmatmul.f32.gmra.mxu1 %v98_v20  ;;  %862 = vmatmul.f32.gmra.mxu3 %v128_v21  ;;  %v86_v21 = vld [vmem:[%s16378_s0 + $0xa5] sm:$0xff] }
  0x60   :  { %776 = vmatmul.f32.gmra.mxu2 %v129_v24 }
  0x61   :  { %577 = vmatmul.f32.gmra.mxu0 %v74_v22  ;;  %v111_v22 = vld [vmem:[%s16378_s0 + $0xa6] sm:$0xff] }
  0x62   :  { %669 = vmatmul.f32.gmra.mxu1 %v99_v23  ;;  %865 = vmatmul.f32.gmra.mxu3 %v129_v24  ;;  %v435_v23 = vld [vmem:[%s16377_s2 + $0x600] sm:$0xff] }
  0x63   :  { %1104 = vmatpush.msrb.mxu2 %v435_v23  ;;  %v491_v23 = vld [vmem:[%s16377_s2 + $0x7c0] sm:$0xff] }
  0x64   :  { %1184 = vmatpush.msrb.mxu3 %v491_v23 }
  0x68   :  { %779 = vmatmul.f32.gmra.mxu2 %v130_v27 }
  0x69   :  { %580 = vmatmul.f32.gmra.mxu0 %v75_v25  ;;  %v141_v25 = vld [vmem:[%s16378_s0 + $0xcf] sm:$0xff] }
  0x6a   :  { %672 = vmatmul.f32.gmra.mxu1 %v100_v26  ;;  %868 = vmatmul.f32.gmra.mxu3 %v130_v27  ;;  %v8492_v26 = vld [vmem:[%s16378_s0 + $0x19] sm:$0xff] }
  0x70   :  { %782 = vmatmul.f32.gmra.mxu2 %v131_v30 }
  0x71   :  { %583 = vmatmul.f32.gmra.mxu0 %v76_v28 }
  0x72   :  { %675 = vmatmul.f32.gmra.mxu1 %v101_v29  ;;  %871 = vmatmul.f32.gmra.mxu3 %v131_v30  ;;  %v87_v29 = vld [vmem:[%s16378_s0 + $0xad] sm:$0xff] }
  0x73   :  { %v112_v30 = vld [vmem:[%s16378_s0 + $0xae] sm:$0xff] }
  0x78   :  { %785 = vmatmul.f32.gmra.mxu2 %v132_v33 }
  0x79   :  { %586 = vmatmul.f32.gmra.mxu0 %v77_v31 }
  0x7a   :  { %678 = vmatmul.f32.gmra.mxu1 %v102_v32  ;;  %874 = vmatmul.f32.gmra.mxu3 %v132_v33  ;;  %v8510_v32 = vld [vmem:[%s16378_s0 + $0x21] sm:$0xff] }
  0x80   :  { %788 = vmatmul.f32.gmra.mxu2 %v133_v36 }
  0x81   :  { %589 = vmatmul.f32.gmra.mxu0 %v78_v34 }
  0x82   :  { %681 = vmatmul.f32.gmra.mxu1 %v103_v35  ;;  %877 = vmatmul.f32.gmra.mxu3 %v133_v36  ;;  %v88_v35 = vld [vmem:[%s16378_s0 + $0xb5] sm:$0xff] }
  0x83   :  { %v113_v36 = vld [vmem:[%s16378_s0 + $0xb6] sm:$0xff] }
  0x88   :  { %791 = vmatmul.f32.gmra.mxu2 %v134_v39 }
  0x89   :  { %592 = vmatmul.f32.gmra.mxu0 %v79_v37 }
  0x8a   :  { %684 = vmatmul.f32.gmra.mxu1 %v104_v38  ;;  %880 = vmatmul.f32.gmra.mxu3 %v134_v39  ;;  %v531_v38 = vld [vmem:[%s16379_s3] sm:$0x3]  ;;  %v8531_v39 = vld [vmem:[%s16378_s0 + $0x29] sm:$0xff] }
  0x90   :  { %794 = vmatmul.f32.gmra.mxu2 %v135_v42 }
  0x91   :  { %595 = vmatmul.f32.gmra.mxu0 %v80_v40  ;;  %v8533_v40 = vperm.slane %v531_v38, 0  ;;  %v8630_v38 = vld [vmem:[%s16378_s0 + $0x41] sm:$0xff] }
  0x92   :  { %687 = vmatmul.f32.gmra.mxu1 %v105_v41  ;;  %883 = vmatmul.f32.gmra.mxu3 %v135_v42 }
  0x98   :  { %797 = vmatmul.f32.gmra.mxu2 %v136_v45 }
  0x99   :  { %598 = vmatmul.f32.gmra.mxu0 %v81_v43 }
  0x9a   :  { %690 = vmatmul.f32.gmra.mxu1 %v106_v44  ;;  %886 = vmatmul.f32.gmra.mxu3 %v136_v45  ;;  %v89_v44 = vld [vmem:[%s16378_s0 + $0xbd] sm:$0xff] }
  0x9b   :  { %v114_v45 = vld [vmem:[%s16378_s0 + $0xbe] sm:$0xff] }
  0x9e   :  { %v8376_v46 = vpop.f32.mrf.mxu0 }
  0x9f   :  { %v8378_v47 = vpop.f32.mrf.mxu1 }
  0xa0   :  { %800 = vmatmul.f32.gmra.mxu2 %v137_v52 }
  0xa1   :  { %601 = vmatmul.f32.gmra.mxu0 %v82_v48 }
  0xa2   :  { %693 = vmatmul.f32.gmra.mxu1 %v107_v49  ;;  %889 = vmatmul.f32.gmra.mxu3 %v137_v52 }
  0xa6   :  { %v8398_v54 = vpop.f32.mrf.mxu0 }
  0xa7   :  { %v8400_v55 = vpop.f32.mrf.mxu1 }
  0xa8   :  { %803 = vmatmul.f32.gmra.mxu2 %v138_v61 }
  0xa9   :  { %604 = vmatmul.f32.gmra.mxu0 %v83_v56 }
  0xaa   :  { %696 = vmatmul.f32.gmra.mxu1 %v108_v57  ;;  %892 = vmatmul.f32.gmra.mxu3 %v138_v61  ;;  %v90_v57 = vld [vmem:[%s16378_s0 + $0xc5] sm:$0xff] }
  0xae   :  { %v8423_v63 = vpop.f32.mrf.mxu0 }
  0xaf   :  { %v8425_v0 = vpop.f32.mrf.mxu1 }
  0xb0   :  { %806 = vmatmul.f32.gmra.mxu2 %v139_v7 }
  0xb1   :  { %607 = vmatmul.f32.gmra.mxu0 %v84_v1  ;;  %v401_v1 = vld [vmem:[%s16377_s2 + $0x4f0] sm:$0xff] }
  0xb2   :  { %699 = vmatmul.f32.gmra.mxu1 %v109_v3  ;;  %895 = vmatmul.f32.gmra.mxu3 %v139_v7  ;;  %v759_v14 = vpop.f32.mrf.mxu2  ;;  %v433_v3 = vld [vmem:[%s16377_s2 + $0x5f0] sm:$0xff]  ;;  %v399_v7 = vld [vmem:[%s16377_s2 + $0x4e0] sm:$0xff] }
  0xb3   :  { %905 = vmatpush.msra.mxu0 %v401_v1  ;;  %997 = vmatpush.msra.mxu1 %v433_v3  ;;  %v483_v1 = vld [vmem:[%s16377_s2 + $0x780] sm:$0xff] }
  0xb5   :  { %906 = vmatpush.msra.mxu0 %v399_v7  ;;  %v385_v7 = vld [vmem:[%s16377_s2 + $0x470] sm:$0xff] }
  0xb6   :  { %v8448_v9 = vpop.f32.mrf.mxu0 }
  0xb7   :  { %v8450_v10 = vpop.f32.mrf.mxu1 }
  0xb8   :  { %809 = vmatmul.f32.gmra.mxu2 %v140_v16 }
  0xb9   :  { %610 = vmatmul.f32.gmra.mxu0 %v85_v11  ;;  %v397_v11 = vld [vmem:[%s16377_s2 + $0x4d0] sm:$0xff] }
  0xba   :  { %702 = vmatmul.f32.gmra.mxu1 %v110_v12  ;;  %898 = vmatmul.f32.gmra.mxu3 %v140_v16  ;;  %v431_v12 = vld [vmem:[%s16377_s2 + $0x5e0] sm:$0xff] }
  0xbb   :  { %v762_v24 = vpop.f32.mrf.mxu2  ;;  %v116_v16 = vld [vmem:[%s16378_s0 + $0x7] sm:$0xff]  ;;  %907 = vmatpush.msra.mxu0 %v397_v11  ;;  %998 = vmatpush.msra.mxu1 %v431_v12  ;;  %v481_v11 = vld [vmem:[%s16377_s2 + $0x770] sm:$0xff] }
  0xbc   :  { %v8535_v41 = vpop.f32.mrf.mxu3  ;;  %v8681_v12 = vld [vmem:[%s16378_s0 + $0x49] sm:$0xff] }
  0xbe   :  { %v8473_v19 = vpop.f32.mrf.mxu0 }
  0xbf   :  { %v8475_v20 = vpop.f32.mrf.mxu1 }
  0xc0   :  { %1105 = vmatmul.f32.vlgmr.msrb.gmra.mxu2 %v8492_v26 }
  0xc1   :  { %613 = vmatmul.f32.gmra.mxu0 %v86_v21  ;;  %v395_v21 = vld [vmem:[%s16377_s2 + $0x4c0] sm:$0xff] }
  0xc2   :  { %705 = vmatmul.f32.gmra.mxu1 %v111_v22  ;;  %901 = vmatmul.f32.gmra.mxu3 %v141_v25  ;;  %v429_v22 = vld [vmem:[%s16377_s2 + $0x5d0] sm:$0xff] }
  0xc3   :  { %v8505_v31 = vpop.f32.mrf.mxu2  ;;  %908 = vmatpush.msra.mxu0 %v395_v21  ;;  %999 = vmatpush.msra.mxu1 %v429_v22  ;;  %v477_v21 = vld [vmem:[%s16377_s2 + $0x750] sm:$0xff] }
  0xc5   :  { %v8562_v60 = vpop.f32.mrf.mxu3 }
  0xc6   :  { %v8495_v27 = vpop.f32.mrf.mxu0 }
  0xc7   :  { %v8497_v28 = vpop.f32.mrf.mxu1 }
  0xc8   :  { %1108 = vmatmul.f32.gmra.mxu2 %v8510_v32 }
  0xc9   :  { %616 = vmatmul.f32.gmra.mxu0 %v87_v29 }
  0xca   :  { %708 = vmatmul.f32.gmra.mxu1 %v112_v30  ;;  %v393_v30 = vld [vmem:[%s16377_s2 + $0x4b0] sm:$0xff] }
  0xcb   :  { %v8523_v37 = vpop.f32.mrf.mxu2  ;;  %909 = vmatpush.msra.mxu0 %v393_v30 }
  0xcd   :  { %v8616_v29 = vpop.f32.mrf.mxu3 }
  0xce   :  { %v8513_v33 = vpop.f32.mrf.mxu0 }
  0xcf   :  { %v8515_v34 = vpop.f32.mrf.mxu1 }
  0xd0   :  { %1111 = vmatmul.f32.gmra.mxu2 %v8531_v39 }
  0xd1   :  { %619 = vmatmul.f32.gmra.mxu0 %v88_v35  ;;  %v427_v35 = vld [vmem:[%s16377_s2 + $0x5c0] sm:$0xff] }
  0xd2   :  { %711 = vmatmul.f32.gmra.mxu1 %v113_v36  ;;  %v489_v36 = vld [vmem:[%s16377_s2 + $0x7b0] sm:$0xff] }
  0xd3   :  { %v8545_v49 = vpop.f32.mrf.mxu2  ;;  %1000 = vmatpush.msra.mxu1 %v427_v35  ;;  %1185 = vmatpush.msrb.mxu3 %v489_v36  ;;  %v379_v35 = vld [vmem:[%s16377_s2 + $0x440] sm:$0xff]  ;;  %v413_v36 = vld [vmem:[%s16377_s2 + $0x550] sm:$0xff] }
  0xd6   :  { %v575_v42 = vpop.f32.mrf.mxu0 }
  0xd7   :  { %v667_v43 = vpop.f32.mrf.mxu1  ;;  %v576_v48 = vadd.f32 %v575_v42, %v8533_v40 }
  0xd8   :  { %1114 = vmatmul.f32.gmra.mxu2 %v8550_v51 }
  0xd9   :  { %v668_v50 = vadd.f32 %v667_v43, %v576_v48  ;;  %622 = vmatmul.f32.gmra.mxu0 %v89_v44  ;;  %v391_v43 = vld [vmem:[%s16377_s2 + $0x4a0] sm:$0xff]  ;;  %v425_v44 = vld [vmem:[%s16377_s2 + $0x5b0] sm:$0xff] }
  0xda   :  { %714 = vmatmul.f32.gmra.mxu1 %v114_v45  ;;  %v487_v45 = vld [vmem:[%s16377_s2 + $0x7a0] sm:$0xff]  ;;  %910 = vmatpush.msra.mxu0 %v391_v43 }
  0xdb   :  { %v8552_v52 = vadd.f32 %v759_v14, %v668_v50  ;;  %v8564_v61 = vpop.f32.mrf.mxu2  ;;  %1001 = vmatpush.msra.mxu1 %v425_v44  ;;  %v423_v48 = vld [vmem:[%s16377_s2 + $0x5a0] sm:$0xff]  ;;  %v485_v50 = vld [vmem:[%s16377_s2 + $0x790] sm:$0xff]  ;;  %1186 = vmatpush.msrb.mxu3 %v487_v45 }
  0xdc   :  { %v475_v44 = vld [vmem:[%s16377_s2 + $0x740] sm:$0xff] }
  0xdd   :  { %1002 = vmatpush.msra.mxu1 %v423_v48  ;;  %1187 = vmatpush.msrb.mxu3 %v485_v50  ;;  %v411_v48 = vld [vmem:[%s16377_s2 + $0x540] sm:$0xff]  ;;  %v8731_v50 = vld [vmem:[%s16378_s0 + $0x51] sm:$0xff] }
  0xde   :  { %v578_v53 = vpop.f32.mrf.mxu0 }
  0xdf   :  { %v670_v56 = vpop.f32.mrf.mxu1  ;;  %v579_v59 = vadd.f32 %v578_v53, %v8533_v40  ;;  %1188 = vmatpush.msrb.mxu3 %v483_v1  ;;  %v407_v1 = vld [vmem:[%s16377_s2 + $0x520] sm:$0xff] }
  0xe0   :  { %1117 = vmatmul.f32.gmra.mxu2 %v8578_v5 }
  0xe1   :  { %v671_v62 = vadd.f32 %v670_v56, %v579_v59  ;;  %625 = vmatmul.f32.gmra.mxu0 %v90_v57  ;;  %v118_v57 = vld [vmem:[%s16378_s0 + $0x17] sm:$0xff]  ;;  %v387_v59 = vld [vmem:[%s16377_s2 + $0x480] sm:$0xff]  ;;  %1189 = vmatpush.msrb.mxu3 %v481_v11 }
  0xe2   :  { %717 = vmatmul.f32.gmra.mxu1 %v115_v58 }
  0xe3   :  { %v8580_v6 = vadd.f32 %v762_v24, %v671_v62  ;;  %v8614_v24 = vpop.f32.mrf.mxu2  ;;  %v421_v62 = vld [vmem:[%s16377_s2 + $0x590] sm:$0xff] }
  0xe4   :  { %1003 = vmatpush.msra.mxu1 %v421_v62 }
  0xe6   :  { %v581_v14 = vpop.f32.mrf.mxu0  ;;  %1004 = vmatpush.msra.mxu1 %v419_v8  ;;  %v120_v8 = vld [vmem:[%s16378_s0 + $0x27] sm:$0xff] }
  0xe7   :  { %v673_v15 = vpop.f32.mrf.mxu1  ;;  %v582_v18 = vadd.f32 %v581_v14, %v8533_v40  ;;  %v8686_v14 = vpop.f32.mrf.mxu3 }
  0xe8   :  { %1120 = vmatmul.f32.gmra.mxu2 %v8630_v38 }
  0xe9   :  { %v674_v25 = vadd.f32 %v673_v15, %v582_v18  ;;  %737 = vmatmul.f32.vlgmr.msrb.gmra.mxu0 %v116_v16  ;;  %v383_v15 = vld [vmem:[%s16377_s2 + $0x460] sm:$0xff]  ;;  %v417_v16 = vld [vmem:[%s16377_s2 + $0x570] sm:$0xff] }
  0xea   :  { %829 = vmatmul.f32.vlgmr.msrb.gmra.mxu1 %v117_v17  ;;  %v415_v18 = vld [vmem:[%s16377_s2 + $0x560] sm:$0xff] }
  0xeb   :  { %v8633_v42 = vadd.f32 %v8505_v31, %v674_v25  ;;  %v389_v31 = vld [vmem:[%s16377_s2 + $0x490] sm:$0xff]  ;;  %v8667_v3 = vpop.f32.mrf.mxu2  ;;  %v119_v25 = vld [vmem:[%s16378_s0 + $0x1f] sm:$0xff]  ;;  %1005 = vmatpush.msra.mxu1 %v417_v16 }
  0xec   :  { %911 = vmatpush.msra.mxu0 %v389_v31  ;;  %v377_v31 = vld [vmem:[%s16377_s2 + $0x430] sm:$0xff]  ;;  %v371_v16 = vld [vmem:[%s16377_s2 + $0x400] sm:$0xff] }
  0xed   :  { %1006 = vmatpush.msra.mxu1 %v415_v18 }
  0xee   :  { %v584_v53 = vpop.f32.mrf.mxu0  ;;  %912 = vmatpush.msra.mxu0 %v387_v59  ;;  %v471_v59 = vld [vmem:[%s16377_s2 + $0x720] sm:$0xff] }
  0xef   :  { %v676_v56 = vpop.f32.mrf.mxu1  ;;  %v585_v58 = vadd.f32 %v584_v53, %v8533_v40  ;;  %1007 = vmatpush.msra.mxu1 %v413_v36  ;;  %v473_v53 = vld [vmem:[%s16377_s2 + $0x730] sm:$0xff]  ;;  %v8748_v62 = vpop.f32.mrf.mxu3 }
  0xf0   :  { %913 = vmatpush.msra.mxu0 %v385_v7  ;;  %1123 = vmatmul.f32.gmra.mxu2 %v8681_v12 }
  0xf1   :  { %v677_v4 = vadd.f32 %v676_v56, %v585_v58  ;;  %740 = vmatmul.f32.gmra.mxu0 %v117_v17  ;;  %v479_v17 = vld [vmem:[%s16377_s2 + $0x760] sm:$0xff]  ;;  %v409_v58 = vld [vmem:[%s16377_s2 + $0x530] sm:$0xff]  ;;  %1008 = vmatpush.msra.mxu1 %v411_v48 }
  0xf2   :  { %832 = vmatmul.f32.gmra.mxu1 %v118_v57  ;;  %914 = vmatpush.msra.mxu0 %v383_v15  ;;  %v469_v15 = vld [vmem:[%s16377_s2 + $0x710] sm:$0xff] }
  0xf3   :  { %v8684_v13 = vadd.f32 %v8523_v37, %v677_v4  ;;  %v381_v37 = vld [vmem:[%s16377_s2 + $0x450] sm:$0xff]  ;;  %1190 = vmatpush.msrb.mxu3 %v479_v17  ;;  %v8717_v43 = vpop.f32.mrf.mxu2  ;;  %1009 = vmatpush.msra.mxu1 %v409_v58 }
  0xf4   :  { %915 = vmatpush.msra.mxu0 %v381_v37  ;;  %v405_v37 = vld [vmem:[%s16377_s2 + $0x510] sm:$0xff] }
  0xf5   :  { %1191 = vmatpush.msrb.mxu3 %v477_v21  ;;  %1010 = vmatpush.msra.mxu1 %v407_v1  ;;  %v467_v21 = vld [vmem:[%s16377_s2 + $0x700] sm:$0xff]  ;;  %v122_v1 = vld [vmem:[%s16378_s0 + $0x37] sm:$0xff] }
  0xf6   :  { %v587_v22 = vpop.f32.mrf.mxu0  ;;  %916 = vmatpush.msra.mxu0 %v379_v35 }
  0xf7   :  { %v679_v23 = vpop.f32.mrf.mxu1  ;;  %v588_v30 = vadd.f32 %v587_v22, %v8533_v40  ;;  %1192 = vmatpush.msrb.mxu3 %v475_v44  ;;  %v8778_v22 = vld [vmem:[%s16378_s0 + $0x59] sm:$0xff]  ;;  %1011 = vmatpush.msra.mxu1 %v405_v37  ;;  %v121_v44 = vld [vmem:[%s16378_s0 + $0x2f] sm:$0xff] }
  0xf8   :  { %917 = vmatpush.msra.mxu0 %v377_v31  ;;  %1126 = vmatmul.f32.gmra.mxu2 %v8731_v50 }
  0xf9   :  { %v680_v45 = vadd.f32 %v679_v23, %v588_v30  ;;  %743 = vmatmul.f32.gmra.mxu0 %v118_v57  ;;  %v375_v57 = vld [vmem:[%s16377_s2 + $0x420] sm:$0xff]  ;;  %1193 = vmatpush.msrb.mxu3 %v473_v53 }
  0xfa   :  { %835 = vmatmul.f32.gmra.mxu1 %v119_v25  ;;  %918 = vmatpush.msra.mxu0 %v375_v57  ;;  %v193_v23 = vld [vmem:[%s16378_s0 + $0x1a] sm:$0xff]  ;;  %v194_v57 = vld [vmem:[%s16378_s0 + $0x22] sm:$0xff] }
  0xfb   :  { %v8737_v56 = vadd.f32 %v8545_v49, %v680_v45  ;;  %v373_v49 = vld [vmem:[%s16377_s2 + $0x410] sm:$0xff]  ;;  %1194 = vmatpush.msrb.mxu3 %v471_v59  ;;  %v8767_v17 = vpop.f32.mrf.mxu2  ;;  %v8793_v45 = vpop.f32.mrf.mxu3  ;;  %v8801_v53 = vld [vmem:[%s16378_s0 + $0x61] sm:$0xff] }
  0xfc   :  { %919 = vmatpush.msra.mxu0 %v373_v49 }
  0xfd   :  { %1195 = vmatpush.msrb.mxu3 %v469_v15  ;;  %v195_v15 = vld [vmem:[%s16378_s0 + $0x2a] sm:$0xff] }
  0xfe   :  { %v590_v4 = vpop.f32.mrf.mxu0  ;;  %920 = vmatpush.msra.mxu0 %v371_v16 }
  0xff   :  { %v682_v7 = vpop.f32.mrf.mxu1  ;;  %v591_v11 = vadd.f32 %v590_v4, %v8533_v40  ;;  %1196 = vmatpush.msrb.mxu3 %v467_v21 }
 0x100   :  { %1129 = vmatmul.f32.gmra.mxu2 %v8778_v22  ;;  %1197 = vmatmul.f32.vlgmr.msrb.gmra.mxu3 %v193_v23 }
 0x101   :  { %v683_v18 = vadd.f32 %v682_v7, %v591_v11  ;;  %746 = vmatmul.f32.gmra.mxu0 %v119_v25  ;;  %v403_v25 = vld [vmem:[%s16377_s2 + $0x500] sm:$0xff] }
 0x102   :  { %838 = vmatmul.f32.gmra.mxu1 %v120_v8 }
 0x103   :  { %v8784_v30 = vadd.f32 %v8564_v61, %v683_v18  ;;  %1012 = vmatpush.msra.mxu1 %v403_v25  ;;  %v8796_v31 = vpop.f32.mrf.mxu2 }
 0x106   :  { %v593_v35 = vpop.f32.mrf.mxu0 }
 0x107   :  { %v685_v36 = vpop.f32.mrf.mxu1  ;;  %v594_v61 = vadd.f32 %v593_v35, %v8533_v40  ;;  %v529_v35 = vld [vmem:[%s16377_s2 + $0x8f0] sm:$0xff] }
 0x108   :  { %1132 = vmatmul.f32.gmra.mxu2 %v8801_v53  ;;  %1200 = vmatmul.f32.gmra.mxu3 %v194_v57 }
 0x109   :  { %v686_v48 = vadd.f32 %v685_v36, %v594_v61  ;;  %749 = vmatmul.f32.gmra.mxu0 %v120_v8  ;;  %v8816_v8 = vpop.f32.mrf.mxu3  ;;  %v8843_v36 = vld [vmem:[%s16378_s0 + $0x71] sm:$0xff] }
 0x10a   :  { %841 = vmatmul.f32.gmra.mxu1 %v121_v44  ;;  %1273 = vmatpush.msrb.mxu0 %v529_v35 }
 0x10b   :  { %v8807_v58 = vadd.f32 %v8614_v24, %v686_v48  ;;  %v8814_v7 = vpop.f32.mrf.mxu2  ;;  %v8821_v24 = vld [vmem:[%s16378_s0 + $0x69] sm:$0xff] }
 0x10e   :  { %v596_v59 = vpop.f32.mrf.mxu0 }
 0x10f   :  { %v688_v49 = vpop.f32.mrf.mxu1  ;;  %v597_v4 = vadd.f32 %v596_v59, %v8533_v40  ;;  %v142_v59 = vld [vmem:[%s16378_s0 + $0x10] sm:$0xff] }
 0x110   :  { %1135 = vmatmul.f32.gmra.mxu2 %v8821_v24  ;;  %1203 = vmatmul.f32.gmra.mxu3 %v195_v15  ;;  %v197_v15 = vld [vmem:[%s16378_s0 + $0x3a] sm:$0xff] }
 0x111   :  { %v689_v11 = vadd.f32 %v688_v49, %v597_v4  ;;  %752 = vmatmul.f32.gmra.mxu0 %v121_v44  ;;  %v196_v44 = vld [vmem:[%s16378_s0 + $0x32] sm:$0xff] }
 0x112   :  { %844 = vmatmul.f32.gmra.mxu1 %v122_v1  ;;  %v167_v49 = vld [vmem:[%s16378_s0 + $0x11] sm:$0xff] }
 0x113   :  { %v8827_v16 = vadd.f32 %v8667_v3, %v689_v11  ;;  %v8831_v23 = vpop.f32.mrf.mxu2  ;;  %v274_v3 = vld [vmem:[%s16377_s2 + $0xf8] sm:$0xff] }
 0x114   :  { %1365 = vmatpush.msrb.mxu1 %v274_v3  ;;  %v143_v3 = vld [vmem:[%s16378_s0 + $0x18] sm:$0xff] }
 0x116   :  { %v599_v37 = vpop.f32.mrf.mxu0 }
 0x117   :  { %v691_v18 = vpop.f32.mrf.mxu1  ;;  %v600_v21 = vadd.f32 %v599_v37, %v8533_v40 }
 0x118   :  { %1138 = vmatmul.f32.gmra.mxu2 %v8843_v36  ;;  %1206 = vmatmul.f32.gmra.mxu3 %v196_v44 }
 0x119   :  { %v692_v25 = vadd.f32 %v691_v18, %v600_v21  ;;  %755 = vmatmul.f32.gmra.mxu0 %v122_v1  ;;  %v527_v21 = vld [vmem:[%s16377_s2 + $0x8e0] sm:$0xff] }
 0x11a   :  { %847 = vmatmul.f32.gmra.mxu1 %v8244_v2  ;;  %v8848_v2 = vpop.f32.mrf.mxu3  ;;  %1274 = vmatpush.msrb.mxu0 %v527_v21 }
 0x11b   :  { %v8851_v61 = vadd.f32 %v8717_v43, %v692_v25  ;;  %v8861_v4 = vpop.f32.mrf.mxu2  ;;  %v8866_v43 = vld [vmem:[%s16378_s0 + $0x79] sm:$0xff] }
 0x11e   :  { %v602_v48 = vpop.f32.mrf.mxu0 }
 0x11f   :  { %v694_v57 = vpop.f32.mrf.mxu1  ;;  %v603_v1 = vadd.f32 %v602_v48, %v8533_v40 }
 0x120   :  { %1141 = vmatmul.f32.gmra.mxu2 %v8866_v43  ;;  %1209 = vmatmul.f32.gmra.mxu3 %v197_v15 }
 0x121   :  { %v695_v11 = vadd.f32 %v694_v57, %v603_v1  ;;  %921 = vmatmul.f32.vlgmr.msra.gmra.mxu0 %v142_v59  ;;  %v8893_v59 = vld [vmem:[%s16378_s0 + $0x81] sm:$0xff] }
 0x122   :  { %1013 = vmatmul.f32.vlgmr.msra.gmra.mxu1 %v167_v49  ;;  %v8874_v18 = vpop.f32.mrf.mxu3  ;;  %v198_v49 = vld [vmem:[%s16378_s0 + $0x42] sm:$0xff] }
 0x123   :  { %v8872_v37 = vadd.f32 %v8767_v17, %v695_v11  ;;  %v272_v17 = vld [vmem:[%s16377_s2 + $0xe8] sm:$0xff]  ;;  %v8887_v48 = vpop.f32.mrf.mxu2 }
 0x124   :  { %1366 = vmatpush.msrb.mxu1 %v272_v17  ;;  %v8920_v17 = vld [vmem:[%s16378_s0 + $0x89] sm:$0xff] }
 0x126   :  { %v605_v25 = vpop.f32.mrf.mxu0 }
 0x127   :  { %v697_v35 = vpop.f32.mrf.mxu1  ;;  %v606_v44 = vadd.f32 %v605_v25, %v8533_v40 }
 0x128   :  { %1144 = vmatmul.f32.gmra.mxu2 %v8893_v59  ;;  %1212 = vmatmul.f32.gmra.mxu3 %v198_v49 }
 0x129   :  { %v698_v57 = vadd.f32 %v697_v35, %v606_v44  ;;  %924 = vmatmul.f32.gmra.mxu0 %v143_v3  ;;  %v270_v44 = vld [vmem:[%s16377_s2 + $0xd8] sm:$0xff] }
 0x12a   :  { %1016 = vmatmul.f32.gmra.mxu1 %v8492_v26  ;;  %v144_v26 = vld [vmem:[%s16378_s0 + $0x20] sm:$0xff]  ;;  %v8905_v21 = vpop.f32.mrf.mxu3 }
 0x12b   :  { %v8899_v1 = vadd.f32 %v8796_v31, %v698_v57  ;;  %v8908_v35 = vpop.f32.mrf.mxu2  ;;  %v525_v31 = vld [vmem:[%s16377_s2 + $0x8d0] sm:$0xff]  ;;  %1367 = vmatpush.msrb.mxu1 %v270_v44 }
 0x12c   :  { %v199_v57 = vld [vmem:[%s16378_s0 + $0x4a] sm:$0xff]  ;;  %1275 = vmatpush.msrb.mxu0 %v525_v31 }
 0x12d   :  { %16546 = vst [vmem:[#allocation3_spill] sm:$0xff] %v8899_v1 }
 0x12e   :  { %v608_v11 = vpop.f32.mrf.mxu0 }
 0x12f   :  { %v700_v15 = vpop.f32.mrf.mxu1  ;;  %v609_v25 = vadd.f32 %v608_v11, %v8533_v40 }
 0x130   :  { %1147 = vmatmul.f32.gmra.mxu2 %v8920_v17  ;;  %1215 = vmatmul.f32.gmra.mxu3 %v199_v57 }
 0x131   :  { %v701_v3 = vadd.f32 %v700_v15, %v609_v25  ;;  %927 = vmatmul.f32.gmra.mxu0 %v144_v26  ;;  %v145_v15 = vld [vmem:[%s16378_s0 + $0x28] sm:$0xff] }
 0x132   :  { %1019 = vmatmul.f32.gmra.mxu1 %v8510_v32  ;;  %v8935_v1 = vpop.f32.mrf.mxu3 }
 0x133   :  { %v8926_v32 = vadd.f32 %v8814_v7, %v701_v3  ;;  %v8933_v25 = vpop.f32.mrf.mxu2  ;;  %16548 = vst [vmem:[#allocation5_spill] sm:$0xff] %v8935_v1  ;;  %v8941_v7 = vld [vmem:[%s16378_s0 + $0x91] sm:$0xff] }
 0x134   :  { %v200_v3 = vld [vmem:[%s16378_s0 + $0x52] sm:$0xff] }
 0x135   :  { %16547 = vst [vmem:[#allocation4_spill] sm:$0xff] %v8926_v32 }
 0x136   :  { %v611_v49 = vpop.f32.mrf.mxu0 }
 0x137   :  { %v703_v11 = vpop.f32.mrf.mxu1  ;;  %v612_v26 = vadd.f32 %v611_v49, %v8533_v40 }
 0x138   :  { %1150 = vmatmul.f32.gmra.mxu2 %v8941_v7  ;;  %1218 = vmatmul.f32.gmra.mxu3 %v200_v3  ;;  %v8966_v3 = vld [vmem:[%s16378_s0 + $0x99] sm:$0xff] }
 0x139   :  { %v704_v31 = vadd.f32 %v703_v11, %v612_v26  ;;  %930 = vmatmul.f32.gmra.mxu0 %v145_v15  ;;  %v523_v15 = vld [vmem:[%s16377_s2 + $0x8c0] sm:$0xff] }
 0x13a   :  { %1022 = vmatmul.f32.gmra.mxu1 %v8531_v39  ;;  %v146_v39 = vld [vmem:[%s16378_s0 + $0x30] sm:$0xff]  ;;  %1276 = vmatpush.msrb.mxu0 %v523_v15 }
 0x13b   :  { %v8947_v44 = vadd.f32 %v8831_v23, %v704_v31  ;;  %v8957_v26 = vpop.f32.mrf.mxu2  ;;  %v268_v31 = vld [vmem:[%s16377_s2 + $0xc8] sm:$0xff] }
 0x13c   :  { %1368 = vmatpush.msrb.mxu1 %v268_v31 }
 0x13d   :  { %16549 = vst [vmem:[#allocation6_spill] sm:$0xff] %v8947_v44  ;;  %v8971_v44 = vpop.f32.mrf.mxu3 }
 0x13e   :  { %v614_v57 = vpop.f32.mrf.mxu0  ;;  %16550 = vst [vmem:[#allocation7_spill] sm:$0xff] %v8971_v44 }
 0x13f   :  { %v706_v49 = vpop.f32.mrf.mxu1  ;;  %v615_v11 = vadd.f32 %v614_v57, %v8533_v40  ;;  %v201_v57 = vld [vmem:[%s16378_s0 + $0x5a] sm:$0xff] }
 0x140   :  { %1153 = vmatmul.f32.gmra.mxu2 %v8966_v3  ;;  %1221 = vmatmul.f32.gmra.mxu3 %v201_v57  ;;  %v8993_v57 = vld [vmem:[%s16378_s0 + $0xa1] sm:$0xff] }
 0x141   :  { %v707_v23 = vadd.f32 %v706_v49, %v615_v11  ;;  %933 = vmatmul.f32.gmra.mxu0 %v146_v39  ;;  %v147_v11 = vld [vmem:[%s16378_s0 + $0x38] sm:$0xff] }
 0x142   :  { %1025 = vmatmul.f32.gmra.mxu1 %v8550_v51 }
 0x143   :  { %v8974_v49 = vadd.f32 %v8861_v4, %v707_v23  ;;  %v8981_v31 = vpop.f32.mrf.mxu2  ;;  %v521_v4 = vld [vmem:[%s16377_s2 + $0x8b0] sm:$0xff]  ;;  %v266_v23 = vld [vmem:[%s16377_s2 + $0xb8] sm:$0xff] }
 0x144   :  { %1277 = vmatpush.msrb.mxu0 %v521_v4  ;;  %1369 = vmatpush.msrb.mxu1 %v266_v23 }
 0x145   :  { %16551 = vst [vmem:[#allocation8_spill] sm:$0xff] %v8974_v49  ;;  %v148_v49 = vld [vmem:[%s16378_s0 + $0x40] sm:$0xff] }
 0x146   :  { %v617_v51 = vpop.f32.mrf.mxu0 }
 0x147   :  { %v709_v39 = vpop.f32.mrf.mxu1  ;;  %v618_v15 = vadd.f32 %v617_v51, %v8533_v40  ;;  %v202_v51 = vld [vmem:[%s16378_s0 + $0x62] sm:$0xff] }
 0x148   :  { %1156 = vmatmul.f32.gmra.mxu2 %v8993_v57  ;;  %1224 = vmatmul.f32.gmra.mxu3 %v202_v51 }
 0x149   :  { %v710_v32 = vadd.f32 %v709_v39, %v618_v15  ;;  %936 = vmatmul.f32.gmra.mxu0 %v147_v11  ;;  %v9001_v39 = vpop.f32.mrf.mxu3 }
 0x14a   :  { %1028 = vmatmul.f32.gmra.mxu1 %v8578_v5  ;;  %16553 = vst [vmem:[#allocation10_spill] sm:$0xff] %v9001_v39 }
 0x14b   :  { %v8999_v5 = vadd.f32 %v8887_v48, %v710_v32  ;;  %v9008_v1 = vpop.f32.mrf.mxu2  ;;  %v9014_v48 = vld [vmem:[%s16378_s0 + $0xa9] sm:$0xff] }
 0x14c   :  { %v203_v32 = vld [vmem:[%s16378_s0 + $0x6a] sm:$0xff] }
 0x14d   :  { %16552 = vst [vmem:[#allocation9_spill] sm:$0xff] %v8999_v5 }
 0x14e   :  { %v620_v11 = vpop.f32.mrf.mxu0 }
 0x14f   :  { %v712_v15 = vpop.f32.mrf.mxu1  ;;  %v621_v44 = vadd.f32 %v620_v11, %v8533_v40 }
 0x150   :  { %1159 = vmatmul.f32.gmra.mxu2 %v9014_v48  ;;  %1227 = vmatmul.f32.gmra.mxu3 %v203_v32  ;;  %v9041_v32 = vld [vmem:[%s16378_s0 + $0xb1] sm:$0xff] }
 0x151   :  { %v713_v4 = vadd.f32 %v712_v15, %v621_v44  ;;  %939 = vmatmul.f32.gmra.mxu0 %v148_v49  ;;  %v9026_v49 = vpop.f32.mrf.mxu3  ;;  %v519_v15 = vld [vmem:[%s16377_s2 + $0x8a0] sm:$0xff] }
 0x152   :  { %1031 = vmatmul.f32.gmra.mxu1 %v8630_v38  ;;  %v149_v38 = vld [vmem:[%s16378_s0 + $0x48] sm:$0xff]  ;;  %16555 = vst [vmem:[#allocation12_spill] sm:$0xff] %v9026_v49  ;;  %1278 = vmatpush.msrb.mxu0 %v519_v15  ;;  %v555_v49 = vadd.f32 %v8376_v46, %v8533_v40  ;;  %v205_v46 = vld [vmem:[%s16378_s0 + $0x7a] sm:$0xff] }
 0x153   :  { %v9020_v23 = vadd.f32 %v8908_v35, %v713_v4  ;;  %v9032_v5 = vpop.f32.mrf.mxu2  ;;  %v264_v4 = vld [vmem:[%s16377_s2 + $0xa8] sm:$0xff] }
 0x154   :  { %1370 = vmatpush.msrb.mxu1 %v264_v4 }
 0x155   :  { %16554 = vst [vmem:[#allocation11_spill] sm:$0xff] %v9020_v23 }
 0x156   :  { %v623_v51 = vpop.f32.mrf.mxu0 }
 0x157   :  { %v715_v44 = vpop.f32.mrf.mxu1  ;;  %v624_v11 = vadd.f32 %v623_v51, %v8533_v40  ;;  %v204_v51 = vld [vmem:[%s16378_s0 + $0x72] sm:$0xff] }
 0x158   :  { %1162 = vmatmul.f32.gmra.mxu2 %v9041_v32  ;;  %1230 = vmatmul.f32.gmra.mxu3 %v204_v51  ;;  %v262_v51 = vld [vmem:[%s16377_s2 + $0x98] sm:$0xff] }
 0x159   :  { %v716_v35 = vadd.f32 %v715_v44, %v624_v11  ;;  %942 = vmatmul.f32.gmra.mxu0 %v149_v38  ;;  %v150_v38 = vld [vmem:[%s16378_s0 + $0x50] sm:$0xff]  ;;  %v9058_v4 = vpop.f32.mrf.mxu3  ;;  %1371 = vmatpush.msrb.mxu1 %v262_v51 }
 0x15a   :  { %1034 = vmatmul.f32.gmra.mxu1 %v8681_v12  ;;  %16557 = vst [vmem:[#allocation14_spill] sm:$0xff] %v9058_v4 }
 0x15b   :  { %v9047_v15 = vadd.f32 %v8933_v25, %v716_v35  ;;  %v9054_v23 = vpop.f32.mrf.mxu2  ;;  %v517_v35 = vld [vmem:[%s16377_s2 + $0x890] sm:$0xff] }
 0x15c   :  { %1279 = vmatpush.msrb.mxu0 %v517_v35  ;;  %v558_v35 = vadd.f32 %v8398_v54, %v8533_v40  ;;  %v206_v54 = vld [vmem:[%s16378_s0 + $0x82] sm:$0xff] }
 0x15d   :  { %16556 = vst [vmem:[#allocation13_spill] sm:$0xff] %v9047_v15  ;;  %v151_v15 = vld [vmem:[%s16378_s0 + $0x58] sm:$0xff] }
 0x15e   :  { %v626_v12 = vpop.f32.mrf.mxu0 }
 0x15f   :  { %v718_v44 = vpop.f32.mrf.mxu1  ;;  %v627_v11 = vadd.f32 %v626_v12, %v8533_v40  ;;  %v9070_v12 = vld [vmem:[%s16378_s0 + $0xb9] sm:$0xff] }
 0x160   :  { %1165 = vmatmul.f32.gmra.mxu2 %v9070_v12  ;;  %1233 = vmatmul.f32.gmra.mxu3 %v205_v46 }
 0x161   :  { %v719_v25 = vadd.f32 %v718_v44, %v627_v11  ;;  %945 = vmatmul.f32.gmra.mxu0 %v150_v38  ;;  %v647_v44 = vadd.f32 %v8378_v47, %v555_v49  ;;  %v306_v47 = vld [vmem:[%s16377_s2 + $0x1f8] sm:$0xff]  ;;  %v9099_v49 = vld [vmem:[%s16378_s0 + $0xc1] sm:$0xff] }
 0x162   :  { %1037 = vmatmul.f32.gmra.mxu1 %v8731_v50  ;;  %1457 = vmatpush.msra.mxu2 %v306_v47 }
 0x163   :  { %v9076_v50 = vadd.f32 %v8957_v26, %v719_v25  ;;  %v9083_v39 = vpop.f32.mrf.mxu2  ;;  %v304_v26 = vld [vmem:[%s16377_s2 + $0x1e8] sm:$0xff] }
 0x164   :  { %1458 = vmatpush.msra.mxu2 %v304_v26  ;;  %v515_v26 = vld [vmem:[%s16377_s2 + $0x880] sm:$0xff] }
 0x165   :  { %16558 = vst [vmem:[#allocation15_spill] sm:$0xff] %v9076_v50  ;;  %1280 = vmatpush.msrb.mxu0 %v515_v26  ;;  %v153_v26 = vld [vmem:[%s16378_s0 + $0x68] sm:$0xff]  ;;  %v567_v50 = vadd.f32 %v8473_v19, %v8533_v40 }
 0x166   :  { %v738_v38 = vpop.f32.mrf.mxu0  ;;  %v280_v19 = vld [vmem:[%s16377_s2 + $0x128] sm:$0xff] }
 0x167   :  { %v830_v11 = vpop.f32.mrf.mxu1  ;;  %v739_v4 = vadd.f32 %v738_v38, %v647_v44  ;;  %v152_v44 = vld [vmem:[%s16378_s0 + $0x60] sm:$0xff] }
 0x168   :  { %1168 = vmatmul.f32.gmra.mxu2 %v9099_v49  ;;  %1236 = vmatmul.f32.gmra.mxu3 %v206_v54  ;;  %v260_v54 = vld [vmem:[%s16377_s2 + $0x88] sm:$0xff] }
 0x169   :  { %v9087_v51 = vadd.f32 %v830_v11, %v739_v4  ;;  %948 = vmatmul.f32.gmra.mxu0 %v151_v15  ;;  %v9104_v15 = vpop.f32.mrf.mxu3  ;;  %v302_v4 = vld [vmem:[%s16377_s2 + $0x1d8] sm:$0xff]  ;;  %v300_v11 = vld [vmem:[%s16377_s2 + $0x1c8] sm:$0xff]  ;;  %1372 = vmatpush.msrb.mxu1 %v260_v54 }
 0x16a   :  { %1040 = vmatmul.f32.gmra.mxu1 %v8778_v22  ;;  %v650_v22 = vadd.f32 %v8400_v55, %v558_v35  ;;  %1459 = vmatpush.msra.mxu2 %v302_v4  ;;  %v561_v35 = vadd.f32 %v8423_v63, %v8533_v40  ;;  %v9136_v63 = vld [vmem:[%s16378_s0 + $0xc9] sm:$0xff] }
 0x16b   :  { %v9117_v55 = vpop.f32.mrf.mxu2  ;;  %v296_v4 = vld [vmem:[%s16377_s2 + $0x1a8] sm:$0xff] }
 0x16c   :  { %1460 = vmatpush.msra.mxu2 %v300_v11 }
 0x16e   :  { %v741_v25 = vpop.f32.mrf.mxu0 }
 0x16f   :  { %v833_v46 = vpop.f32.mrf.mxu1  ;;  %v742_v38 = vadd.f32 %v741_v25, %v650_v22  ;;  %v298_v22 = vld [vmem:[%s16377_s2 + $0x1b8] sm:$0xff]  ;;  %v653_v25 = vadd.f32 %v8425_v0, %v561_v35  ;;  %v292_v0 = vld [vmem:[%s16377_s2 + $0x188] sm:$0xff] }
 0x170   :  { %1461 = vmatpush.msra.mxu2 %v298_v22  ;;  %v564_v22 = vadd.f32 %v8448_v9, %v8533_v40  ;;  %v208_v9 = vld [vmem:[%s16378_s0 + $0x92] sm:$0xff] }
 0x171   :  { %v9121_v47 = vadd.f32 %v833_v46, %v742_v38  ;;  %951 = vmatmul.f32.gmra.mxu0 %v152_v44  ;;  %v9145_v46 = vpop.f32.mrf.mxu3  ;;  %1171 = vmatmul.f32.gmra.mxu2 %v9136_v63  ;;  %v294_v44 = vld [vmem:[%s16377_s2 + $0x198] sm:$0xff] }
 0x172   :  { %1043 = vmatmul.f32.gmra.mxu1 %v8801_v53  ;;  %v207_v53 = vld [vmem:[%s16378_s0 + $0x8a] sm:$0xff]  ;;  %16559 = vst [vmem:[#allocation16_spill] sm:$0xff] %v9145_v46  ;;  %1462 = vmatpush.msra.mxu2 %v296_v4  ;;  %v290_v4 = vld [vmem:[%s16377_s2 + $0x178] sm:$0xff] }
 0x173   :  { %1239 = vmatmul.f32.gmra.mxu3 %v207_v53  ;;  %v9157_v35 = vpop.f32.mrf.mxu2 }
 0x174   :  { %1463 = vmatpush.msra.mxu2 %v294_v44  ;;  %v9173_v44 = vld [vmem:[%s16378_s0 + $0xd1] sm:$0xff] }
 0x176   :  { %v744_v38 = vpop.f32.mrf.mxu0  ;;  %1464 = vmatpush.msra.mxu2 %v292_v0  ;;  %v154_v0 = vld [vmem:[%s16378_s0 + $0x70] sm:$0xff] }
 0x177   :  { %v836_v11 = vpop.f32.mrf.mxu1  ;;  %v745_v54 = vadd.f32 %v744_v38, %v653_v25  ;;  %v513_v25 = vld [vmem:[%s16377_s2 + $0x870] sm:$0xff]  ;;  %v656_v38 = vadd.f32 %v8450_v10, %v564_v22  ;;  %v284_v10 = vld [vmem:[%s16377_s2 + $0x148] sm:$0xff] }
 0x178   :  { %1281 = vmatpush.msrb.mxu0 %v513_v25  ;;  %1465 = vmatpush.msra.mxu2 %v290_v4  ;;  %v258_v4 = vld [vmem:[%s16377_s2 + $0x78] sm:$0xff] }
 0x179   :  { %v9161_v53 = vadd.f32 %v836_v11, %v745_v54  ;;  %954 = vmatmul.f32.gmra.mxu0 %v153_v26  ;;  %1174 = vmatmul.f32.gmra.mxu2 %v9173_v44  ;;  %v286_v11 = vld [vmem:[%s16377_s2 + $0x158] sm:$0xff]  ;;  %v9195_v22 = vpop.f32.mrf.mxu3 }
 0x17a   :  { %1046 = vmatmul.f32.gmra.mxu1 %v8821_v24  ;;  %v288_v24 = vld [vmem:[%s16377_s2 + $0x168] sm:$0xff] }
 0x17b   :  { %1242 = vmatmul.f32.gmra.mxu3 %v208_v9  ;;  %1466 = vmatpush.msra.mxu2 %v288_v24  ;;  %v9197_v9 = vpop.f32.mrf.mxu2  ;;  %v282_v24 = vld [vmem:[%s16377_s2 + $0x138] sm:$0xff] }
 0x17c   :  { %1373 = vmatpush.msrb.mxu1 %v258_v4 }
 0x17d   :  { %1467 = vmatpush.msra.mxu2 %v286_v11  ;;  %v209_v11 = vld [vmem:[%s16378_s0 + $0x9a] sm:$0xff] }
 0x17e   :  { %v747_v26 = vpop.f32.mrf.mxu0 }
 0x17f   :  { %v839_v54 = vpop.f32.mrf.mxu1  ;;  %v748_v25 = vadd.f32 %v747_v26, %v656_v38  ;;  %1468 = vmatpush.msra.mxu2 %v284_v10  ;;  %v192_v38 = vld [vmem:[%s16378_s0 + $0xd9] sm:$0xff]  ;;  %v276_v10 = vld [vmem:[%s16377_s2 + $0x108] sm:$0xff] }
 0x180   :  { %v278_v26 = vld [vmem:[%s16377_s2 + $0x118] sm:$0xff] }
 0x181   :  { %v9201_v46 = vadd.f32 %v839_v54, %v748_v25  ;;  %957 = vmatmul.f32.gmra.mxu0 %v154_v0  ;;  %1469 = vmatpush.msra.mxu2 %v282_v24  ;;  %v155_v25 = vld [vmem:[%s16378_s0 + $0x78] sm:$0xff] }
 0x182   :  { %1049 = vmatmul.f32.gmra.mxu1 %v8843_v36  ;;  %v659_v36 = vadd.f32 %v8475_v20, %v567_v50  ;;  %1177 = vmatmul.f32.gmra.mxu2 %v192_v38  ;;  %v570_v50 = vadd.f32 %v8495_v27, %v8533_v40 }
 0x183   :  { %1245 = vmatmul.f32.gmra.mxu3 %v209_v11  ;;  %1470 = vmatpush.msra.mxu2 %v280_v19  ;;  %v9226_v24 = vpop.f32.mrf.mxu2  ;;  %v1198_v20 = vpop.f32.mrf.mxu3  ;;  %v511_v11 = vld [vmem:[%s16377_s2 + $0x860] sm:$0xff]  ;;  %v256_v19 = vld [vmem:[%s16377_s2 + $0x68] sm:$0xff] }
 0x184   :  { %1282 = vmatpush.msrb.mxu0 %v511_v11  ;;  %1374 = vmatpush.msrb.mxu1 %v256_v19  ;;  %v662_v27 = vadd.f32 %v8497_v28, %v570_v50  ;;  %v573_v11 = vadd.f32 %v8513_v33, %v8533_v40  ;;  %v211_v50 = vld [vmem:[%s16378_s0 + $0xaa] sm:$0xff] }
 0x185   :  { %1471 = vmatpush.msra.mxu2 %v278_v26  ;;  %v509_v33 = vld [vmem:[%s16377_s2 + $0x850] sm:$0xff] }
 0x186   :  { %v750_v54 = vpop.f32.mrf.mxu0  ;;  %v665_v19 = vadd.f32 %v8515_v34, %v573_v11  ;;  %1283 = vmatpush.msrb.mxu0 %v509_v33  ;;  %v254_v34 = vld [vmem:[%s16377_s2 + $0x58] sm:$0xff] }
 0x187   :  { %v842_v0 = vpop.f32.mrf.mxu1  ;;  %v751_v4 = vadd.f32 %v750_v54, %v659_v36  ;;  %1472 = vmatpush.msra.mxu2 %v276_v10  ;;  %v210_v36 = vld [vmem:[%s16378_s0 + $0xa2] sm:$0xff]  ;;  %1375 = vmatpush.msrb.mxu1 %v254_v34  ;;  %v7649_v11 = vld [vmem:[%s16378_s0 + $0x16] sm:$0xff] }
 0x189   :  { %v9230_v38 = vadd.f32 %v842_v0, %v751_v4  ;;  %960 = vmatmul.f32.gmra.mxu0 %v155_v25  ;;  %v156_v0 = vld [vmem:[%s16378_s0 + $0x80] sm:$0xff] }
 0x18a   :  { %1052 = vmatmul.f32.gmra.mxu1 %v8866_v43  ;;  %v7647_v43 = vld [vmem:[%s16378_s0 + $0x6] sm:$0xff] }
 0x18b   :  { %1248 = vmatmul.f32.gmra.mxu3 %v210_v36  ;;  %1473 = vmatmul.f32.vlgmr.msra.gmra.mxu2 %v7647_v43  ;;  %v9249_v4 = vpop.f32.mrf.mxu2  ;;  %v1201_v10 = vpop.f32.mrf.mxu3  ;;  %v7648_v36 = vld [vmem:[%s16378_s0 + $0xe] sm:$0xff] }
 0x18e   :  { %v753_v26 = vpop.f32.mrf.mxu0 }
 0x18f   :  { %v845_v54 = vpop.f32.mrf.mxu1  ;;  %v754_v25 = vadd.f32 %v753_v26, %v662_v27 }
 0x191   :  { %v9253_v28 = vadd.f32 %v845_v54, %v754_v25  ;;  %963 = vmatmul.f32.gmra.mxu0 %v156_v0  ;;  %v212_v25 = vld [vmem:[%s16378_s0 + $0xb2] sm:$0xff] }
 0x192   :  { %1055 = vmatmul.f32.gmra.mxu1 %v8893_v59  ;;  %v157_v59 = vld [vmem:[%s16378_s0 + $0x88] sm:$0xff] }
 0x193   :  { %1251 = vmatmul.f32.gmra.mxu3 %v211_v50  ;;  %1476 = vmatmul.f32.gmra.mxu2 %v7648_v36  ;;  %v9272_v26 = vpop.f32.mrf.mxu2  ;;  %v9274_v54 = vpop.f32.mrf.mxu3  ;;  %v158_v36 = vld [vmem:[%s16378_s0 + $0x90] sm:$0xff] }
 0x196   :  { %v756_v40 = vpop.f32.mrf.mxu0 }
 0x197   :  { %v848_v27 = vpop.f32.mrf.mxu1  ;;  %v757_v43 = vadd.f32 %v756_v40, %v665_v19 }
 0x199   :  { %v9276_v0 = vadd.f32 %v848_v27, %v757_v43  ;;  %966 = vmatmul.f32.gmra.mxu0 %v157_v59  ;;  %v507_v59 = vld [vmem:[%s16377_s2 + $0x840] sm:$0xff] }
 0x19a   :  { %1058 = vmatmul.f32.gmra.mxu1 %v8920_v17  ;;  %v213_v43 = vld [vmem:[%s16378_s0 + $0xba] sm:$0xff]  ;;  %1284 = vmatpush.msrb.mxu0 %v507_v59  ;;  %v214_v59 = vld [vmem:[%s16378_s0 + $0xc2] sm:$0xff] }
 0x19b   :  { %1254 = vmatmul.f32.gmra.mxu3 %v212_v25  ;;  %1479 = vmatmul.f32.gmra.mxu2 %v7649_v11  ;;  %v9289_v40 = vpop.f32.mrf.mxu2  ;;  %v9291_v17 = vpop.f32.mrf.mxu3  ;;  %v7650_v25 = vld [vmem:[%s16378_s0 + $0x1e] sm:$0xff] }
 0x19e   :  { %v922_v50 = vpop.f32.mrf.mxu0 }
 0x19f   :  { %v1014_v19 = vpop.f32.mrf.mxu1  ;;  %v923_v33 = vadd.f32 %v922_v50, %v9087_v51 }
 0x1a1   :  { %v1015_v27 = vadd.f32 %v1014_v19, %v923_v33  ;;  %969 = vmatmul.f32.gmra.mxu0 %v158_v36  ;;  %v159_v19 = vld [vmem:[%s16378_s0 + $0x98] sm:$0xff] }
 0x1a2   :  { %1061 = vmatmul.f32.gmra.mxu1 %v8941_v7  ;;  %v252_v7 = vld [vmem:[%s16377_s2 + $0x48] sm:$0xff] }
 0x1a3   :  { %v1107_v34 = vadd.f32 %v8981_v31, %v1015_v27  ;;  %1257 = vmatmul.f32.gmra.mxu3 %v213_v43  ;;  %1482 = vmatmul.f32.gmra.mxu2 %v7650_v25  ;;  %v9315_v36 = vpop.f32.mrf.mxu3  ;;  %v338_v27 = vld [vmem:[%s16377_s2 + $0x2f8] sm:$0xff] }
 0x1a4   :  { %1376 = vmatpush.msrb.mxu1 %v252_v7  ;;  %1549 = vmatpush.msra.mxu3 %v338_v27  ;;  %v334_v25 = vld [vmem:[%s16377_s2 + $0x2d8] sm:$0xff] }
 0x1a5   :  { %v9301_v51 = vadd.f32 %v1198_v20, %v1107_v34  ;;  %v9313_v20 = vpop.f32.mrf.mxu2 }
 0x1a6   :  { %v925_v11 = vpop.f32.mrf.mxu0 }
 0x1a7   :  { %v1017_v50 = vpop.f32.mrf.mxu1  ;;  %v926_v31 = vadd.f32 %v925_v11, %v9121_v47  ;;  %v336_v47 = vld [vmem:[%s16377_s2 + $0x2e8] sm:$0xff] }
 0x1a8   :  { %1550 = vmatpush.msra.mxu3 %v336_v47 }
 0x1a9   :  { %v1018_v33 = vadd.f32 %v1017_v50, %v926_v31  ;;  %972 = vmatmul.f32.gmra.mxu0 %v159_v19  ;;  %v505_v50 = vld [vmem:[%s16377_s2 + $0x830] sm:$0xff]  ;;  %v332_v19 = vld [vmem:[%s16377_s2 + $0x2c8] sm:$0xff] }
 0x1aa   :  { %1064 = vmatmul.f32.gmra.mxu1 %v8966_v3  ;;  %v7651_v3 = vld [vmem:[%s16378_s0 + $0x26] sm:$0xff]  ;;  %1551 = vmatpush.msra.mxu3 %v334_v25  ;;  %v7652_v25 = vld [vmem:[%s16378_s0 + $0x2e] sm:$0xff] }
 0x1ab   :  { %v1110_v43 = vadd.f32 %v9008_v1, %v1018_v33  ;;  %1260 = vmatmul.f32.gmra.mxu3 %v214_v59  ;;  %1485 = vmatmul.f32.gmra.mxu2 %v7651_v3  ;;  %v160_v1 = vld [vmem:[%s16378_s0 + $0xa0] sm:$0xff]  ;;  %v9348_v33 = vpop.f32.mrf.mxu3  ;;  %v330_v59 = vld [vmem:[%s16377_s2 + $0x2b8] sm:$0xff] }
 0x1ac   :  { %1285 = vmatpush.msrb.mxu0 %v505_v50  ;;  %1552 = vmatpush.msra.mxu3 %v332_v19 }
 0x1ad   :  { %v9328_v34 = vadd.f32 %v1201_v10, %v1110_v43  ;;  %v9346_v31 = vpop.f32.mrf.mxu2  ;;  %v215_v43 = vld [vmem:[%s16378_s0 + $0xca] sm:$0xff] }
 0x1ae   :  { %v928_v7 = vpop.f32.mrf.mxu0  ;;  %1553 = vmatpush.msra.mxu3 %v330_v59  ;;  %v216_v59 = vld [vmem:[%s16378_s0 + $0xd2] sm:$0xff] }
 0x1af   :  { %v1020_v11 = vpop.f32.mrf.mxu1  ;;  %v929_v10 = vadd.f32 %v928_v7, %v9161_v53  ;;  %v250_v53 = vld [vmem:[%s16377_s2 + $0x38] sm:$0xff] }
 0x1b0   :  { %1377 = vmatpush.msrb.mxu1 %v250_v53  ;;  %v326_v7 = vld [vmem:[%s16377_s2 + $0x298] sm:$0xff] }
 0x1b1   :  { %v1021_v27 = vadd.f32 %v1020_v11, %v929_v10  ;;  %975 = vmatmul.f32.gmra.mxu0 %v160_v1  ;;  %v161_v1 = vld [vmem:[%s16378_s0 + $0xa8] sm:$0xff]  ;;  %v322_v53 = vld [vmem:[%s16377_s2 + $0x278] sm:$0xff] }
 0x1b2   :  { %1067 = vmatmul.f32.gmra.mxu1 %v8993_v57  ;;  %v328_v57 = vld [vmem:[%s16377_s2 + $0x2a8] sm:$0xff] }
 0x1b3   :  { %v1113_v47 = vadd.f32 %v9032_v5, %v1021_v27  ;;  %1554 = vmatpush.msra.mxu3 %v328_v57  ;;  %1488 = vmatmul.f32.gmra.mxu2 %v7652_v25  ;;  %v324_v10 = vld [vmem:[%s16377_s2 + $0x288] sm:$0xff]  ;;  %v9382_v19 = vpop.f32.mrf.mxu3  ;;  %v7653_v57 = vld [vmem:[%s16378_s0 + $0x36] sm:$0xff] }
 0x1b4   :  { %1263 = vmatmul.f32.gmra.mxu3 %v215_v43  ;;  %v248_v25 = vld [vmem:[%s16377_s2 + $0x28] sm:$0xff] }
 0x1b5   :  { %v9365_v3 = vadd.f32 %v9274_v54, %v1113_v47  ;;  %1555 = vmatpush.msra.mxu3 %v326_v7  ;;  %v9380_v50 = vpop.f32.mrf.mxu2  ;;  %1378 = vmatpush.msrb.mxu1 %v248_v25 }
 0x1b6   :  { %v931_v11 = vpop.f32.mrf.mxu0 }
 0x1b7   :  { %v1023_v5 = vpop.f32.mrf.mxu1  ;;  %v932_v54 = vadd.f32 %v931_v11, %v9201_v46  ;;  %1556 = vmatpush.msra.mxu3 %v324_v10  ;;  %v503_v46 = vld [vmem:[%s16377_s2 + $0x820] sm:$0xff] }
 0x1b8   :  { %1286 = vmatpush.msrb.mxu0 %v503_v46 }
 0x1b9   :  { %v1024_v27 = vadd.f32 %v1023_v5, %v932_v54  ;;  %978 = vmatmul.f32.gmra.mxu0 %v161_v1  ;;  %1557 = vmatpush.msra.mxu3 %v322_v53  ;;  %v316_v1 = vld [vmem:[%s16377_s2 + $0x248] sm:$0xff]  ;;  %v314_v53 = vld [vmem:[%s16377_s2 + $0x238] sm:$0xff] }
 0x1ba   :  { %1070 = vmatmul.f32.gmra.mxu1 %v9014_v48  ;;  %v320_v48 = vld [vmem:[%s16377_s2 + $0x268] sm:$0xff] }
 0x1bb   :  { %v1116_v43 = vadd.f32 %v9054_v23, %v1024_v27  ;;  %1558 = vmatpush.msra.mxu3 %v320_v48  ;;  %1491 = vmatmul.f32.gmra.mxu2 %v7653_v57  ;;  %v318_v23 = vld [vmem:[%s16377_s2 + $0x258] sm:$0xff]  ;;  %v9419_v10 = vpop.f32.mrf.mxu3  ;;  %v501_v48 = vld [vmem:[%s16377_s2 + $0x810] sm:$0xff] }
 0x1bc   :  { %1266 = vmatmul.f32.gmra.mxu3 %v216_v59  ;;  %v312_v59 = vld [vmem:[%s16377_s2 + $0x228] sm:$0xff]  ;;  %1287 = vmatpush.msrb.mxu0 %v501_v48  ;;  %v164_v48 = vld [vmem:[%s16378_s0 + $0xc0] sm:$0xff] }
 0x1bd   :  { %v9399_v47 = vadd.f32 %v9291_v17, %v1116_v43  ;;  %v162_v17 = vld [vmem:[%s16378_s0 + $0xb0] sm:$0xff]  ;;  %1559 = vmatpush.msra.mxu3 %v318_v23  ;;  %v9417_v54 = vpop.f32.mrf.mxu2 }
 0x1be   :  { %v934_v7 = vpop.f32.mrf.mxu0 }
 0x1bf   :  { %v1026_v11 = vpop.f32.mrf.mxu1  ;;  %v935_v5 = vadd.f32 %v934_v7, %v9230_v38  ;;  %1560 = vmatpush.msra.mxu3 %v316_v1  ;;  %v217_v38 = vld [vmem:[%s16378_s0 + $0xda] sm:$0xff] }
 0x1c0   :  { %v499_v7 = vld [vmem:[%s16377_s2 + $0x800] sm:$0xff] }
 0x1c1   :  { %v1027_v27 = vadd.f32 %v1026_v11, %v935_v5  ;;  %981 = vmatmul.f32.gmra.mxu0 %v162_v17  ;;  %1561 = vmatpush.msra.mxu3 %v314_v53  ;;  %v246_v11 = vld [vmem:[%s16377_s2 + $0x18] sm:$0xff]  ;;  %v308_v17 = vld [vmem:[%s16377_s2 + $0x208] sm:$0xff] }
 0x1c2   :  { %1073 = vmatmul.f32.gmra.mxu1 %v9041_v32  ;;  %v7654_v32 = vld [vmem:[%s16378_s0 + $0x3e] sm:$0xff]  ;;  %1288 = vmatpush.msrb.mxu0 %v499_v7  ;;  %v7658_v7 = vld [vmem:[%s16378_s0 + $0xf] sm:$0xff] }
 0x1c3   :  { %v1119_v46 = vadd.f32 %v9083_v39, %v1027_v27  ;;  %1562 = vmatpush.msra.mxu3 %v312_v59  ;;  %1494 = vmatmul.f32.gmra.mxu2 %v7654_v32  ;;  %v310_v39 = vld [vmem:[%s16377_s2 + $0x218] sm:$0xff]  ;;  %v9459_v1 = vpop.f32.mrf.mxu3 }
 0x1c4   :  { %1269 = vmatmul.f32.gmra.mxu3 %v217_v38  ;;  %1379 = vmatpush.msrb.mxu1 %v246_v11 }
 0x1c5   :  { %v9433_v43 = vadd.f32 %v9315_v36, %v1119_v46  ;;  %v163_v36 = vld [vmem:[%s16378_s0 + $0xb8] sm:$0xff]  ;;  %1563 = vmatpush.msra.mxu3 %v310_v39  ;;  %v9457_v5 = vpop.f32.mrf.mxu2  ;;  %v7655_v46 = vld [vmem:[%s16378_s0 + $0x46] sm:$0xff] }
 0x1c6   :  { %v937_v57 = vpop.f32.mrf.mxu0 }
 0x1c7   :  { %v1029_v25 = vpop.f32.mrf.mxu1  ;;  %v938_v23 = vadd.f32 %v937_v57, %v9253_v28  ;;  %v244_v28 = vld [vmem:[%s16377_s2 + $0x8] sm:$0xff]  ;;  %1564 = vmatpush.msra.mxu3 %v308_v17 }
 0x1c8   :  { %1380 = vmatpush.msrb.mxu1 %v244_v28 }
 0x1c9   :  { %v1030_v27 = vadd.f32 %v1029_v25, %v938_v23  ;;  %984 = vmatmul.f32.gmra.mxu0 %v163_v36  ;;  %v852_v36 = vadd.f32 %v8535_v41, %v8552_v52  ;;  %v165_v41 = vld [vmem:[%s16378_s0 + $0xc8] sm:$0xff]  ;;  %v7976_v52 = vmov 0  }
 0x1ca   :  { %1076 = vmatmul.f32.gmra.mxu1 %v9070_v12  ;;  %v7656_v12 = vld [vmem:[%s16378_s0 + $0x7] sm:$0xff]  ;;  %7637 = vset.pattern.permute.xlu0 %v7976_v52 }
 0x1cb   :  { %v1122_v53 = vadd.f32 %v9117_v55, %v1030_v27  ;;  %1497 = vmatmul.f32.gmra.mxu2 %v7655_v46  ;;  %v9481_v39 = vpop.f32.mrf.mxu3  ;;  %7638 = vset.pattern.permute.xlu1 %v7976_v52  ;;  %v855_v46 = vadd.f32 %v8562_v60, %v8580_v6 }
 0x1cc   :  { %1565 = vmatmul.f32.vlgmr.msra.gmra.mxu3 %v7656_v12  ;;  %7639 = vset.pattern.permute.xlu2 %v7976_v52 }
 0x1cd   :  { %v9467_v38 = vadd.f32 %v9348_v33, %v1122_v53  ;;  %v9479_v33 = vpop.f32.mrf.mxu2 }
 0x1ce   :  { %v940_v59 = vpop.f32.mrf.mxu0 }
 0x1cf   :  { %v1032_v32 = vpop.f32.mrf.mxu1  ;;  %v941_v55 = vadd.f32 %v940_v59, %v9276_v0  ;;  %v7657_v0 = vld [vmem:[%s16378_s0 + $0x4e] sm:$0xff]  ;;  %v7659_v59 = vld [vmem:[%s16378_s0 + $0x56] sm:$0xff] }
 0x1d1   :  { %v1033_v57 = vadd.f32 %v1032_v32, %v941_v55  ;;  %987 = vmatmul.f32.gmra.mxu0 %v164_v48  ;;  %v9519_v32 = vld [vmem:[%s16378_s0 + $0x17] sm:$0xff] }
 0x1d2   :  { %1079 = vmatmul.f32.gmra.mxu1 %v9099_v49  ;;  %v41_v49 = vld [vmem:[%s16380_s1] sm:$0xff] }
 0x1d3   :  { %v1125_v25 = vadd.f32 %v9157_v35, %v1033_v57  ;;  %1500 = vmatmul.f32.gmra.mxu2 %v7657_v0  ;;  %2195 = vperm.xlu0 %7637, %v41_v49   ;;  %v9504_v27 = vpop.f32.mrf.mxu3 }
 0x1d4   :  { %1568 = vmatmul.f32.gmra.mxu3 %v7658_v7  ;;  %v858_v7 = vadd.f32 %v8616_v29, %v8633_v42 }
 0x1d5   :  { %v9488_v23 = vadd.f32 %v9382_v19, %v1125_v25  ;;  %v9502_v17 = vpop.f32.mrf.mxu2  ;;  %v370_v25 = vld [vmem:[%s16377_s2 + $0x3f8] sm:$0xff] }
 0x1d6   :  { %v943_v35 = vpop.f32.mrf.mxu0  ;;  %1641 = vmatpush.msra.mxu0 %v370_v25 }
 0x1d7   :  { %v1035_v11 = vpop.f32.mrf.mxu1  ;;  %v944_v19 = vadd.f32 %v943_v35, %v852_v36  ;;  %v402_v36 = vld [vmem:[%s16377_s2 + $0x4f8] sm:$0xff] }
 0x1d8   :  { %1733 = vmatpush.msra.mxu1 %v402_v36  ;;  %v9551_v35 = vld [vmem:[%s16378_s0 + $0x1f] sm:$0xff]  ;;  %v7666_v36 = vld [vmem:[%s16378_s0 + $0xd] sm:$0xff] }
 0x1d9   :  { %v1036_v28 = vadd.f32 %v1035_v11, %v944_v19  ;;  %990 = vmatmul.f32.gmra.mxu0 %v165_v41  ;;  %v7663_v19 = vld [vmem:[%s16378_s0 + $0x5] sm:$0xff] }
 0x1da   :  { %1082 = vmatmul.f32.gmra.mxu1 %v9136_v63  ;;  %v42_v63 = vld [vmem:[%s16380_s1 + $0x8] sm:$0xff] }
 0x1db   :  { %v1128_v53 = vadd.f32 %v9197_v9, %v1036_v28  ;;  %1503 = vmatmul.f32.gmra.mxu2 %v7659_v59  ;;  %v166_v9 = vld [vmem:[%s16378_s0 + $0xd0] sm:$0xff]  ;;  %2200 = vperm.xlu0 %7637, %v42_v63   ;;  %v9530_v55 = vpop.f32.mrf.mxu3  ;;  %v7664_v63 = vld [vmem:[%s16378_s0 + $0x66] sm:$0xff] }
 0x1dc   :  { %1571 = vmatmul.f32.gmra.mxu3 %v9519_v32 }
 0x1dd   :  { %v9511_v12 = vadd.f32 %v9419_v10, %v1128_v53  ;;  %v9528_v48 = vpop.f32.mrf.mxu2 }
 0x1de   :  { %v946_v60 = vpop.f32.mrf.mxu0 }
 0x1df   :  { %v1038_v6 = vpop.f32.mrf.mxu1  ;;  %v947_v10 = vadd.f32 %v946_v60, %v855_v46  ;;  %v861_v46 = vadd.f32 %v8686_v14, %v8684_v13  ;;  %v9579_v60 = vld [vmem:[%s16378_s0 + $0x27] sm:$0xff]  ;;  %v44_v13 = vld [vmem:[%s16380_s1 + $0x18] sm:$0xff] }
 0x1e1   :  { %v1039_v57 = vadd.f32 %v1038_v6, %v947_v10  ;;  %993 = vmatmul.f32.gmra.mxu0 %v166_v9  ;;  %v219_v6 = vld [vmem:[%s16378_s0 + $0x23] sm:$0xff] }
 0x1e2   :  { %1085 = vmatmul.f32.gmra.mxu1 %v9173_v44  ;;  %v7661_v44 = vld [vmem:[%s16378_s0 + $0x5e] sm:$0xff]  ;;  %v400_v10 = vld [vmem:[%s16377_s2 + $0x4e8] sm:$0xff] }
 0x1e3   :  { %v1131_v0 = vadd.f32 %v9226_v24, %v1039_v57  ;;  %1506 = vmatmul.f32.gmra.mxu2 %v7661_v44  ;;  %v43_v24 = vld [vmem:[%s16380_s1 + $0x10] sm:$0xff]  ;;  %v9560_v41 = vpop.f32.mrf.mxu3  ;;  %1734 = vmatpush.msra.mxu1 %v400_v10  ;;  %v864_v44 = vadd.f32 %v8748_v62, %v8737_v56  ;;  %v7672_v10 = vld [vmem:[%s16378_s0 + $0x1d] sm:$0xff] }
 0x1e4   :  { %1574 = vmatmul.f32.gmra.mxu3 %v9551_v35  ;;  %2205 = vperm.xlu1 %7638, %v43_v24   ;;  %v220_v56 = vld [vmem:[%s16378_s0 + $0x2b] sm:$0xff] }
 0x1e5   :  { %v9543_v49 = vadd.f32 %v9459_v1, %v1131_v0  ;;  %v218_v1 = vld [vmem:[%s16378_s0 + $0x1b] sm:$0xff]  ;;  %v9565_v28 = vpop.f32.mrf.mxu2 }
 0x1e6   :  { %v949_v29 = vpop.f32.mrf.mxu0 }
 0x1e7   :  { %v1041_v42 = vpop.f32.mrf.mxu1  ;;  %v950_v11 = vadd.f32 %v949_v29, %v858_v7  ;;  %v7667_v29 = vld [vmem:[%s16378_s0 + $0x6e] sm:$0xff] }
 0x1e9   :  { %v1042_v52 = vadd.f32 %v1041_v42, %v950_v11  ;;  %1289 = vmatmul.f32.vlgmr.msrb.gmra.mxu0 %v218_v1  ;;  %v9613_v42 = vld [vmem:[%s16378_s0 + $0x2f] sm:$0xff] }
 0x1ea   :  { %1381 = vmatmul.f32.vlgmr.msrb.gmra.mxu1 %v7663_v19  ;;  %v366_v19 = vld [vmem:[%s16377_s2 + $0x3d8] sm:$0xff] }
 0x1eb   :  { %v1134_v53 = vadd.f32 %v9249_v4, %v1042_v52  ;;  %1509 = vmatmul.f32.gmra.mxu2 %v7664_v63  ;;  %v368_v4 = vld [vmem:[%s16377_s2 + $0x3e8] sm:$0xff]  ;;  %v9594_v57 = vpop.f32.mrf.mxu3  ;;  %v7669_v52 = vld [vmem:[%s16378_s0 + $0x15] sm:$0xff]  ;;  %v867_v63 = vadd.f32 %v8793_v45, %v8784_v30 }
 0x1ec   :  { %1577 = vmatmul.f32.gmra.mxu3 %v9579_v60  ;;  %1642 = vmatpush.msra.mxu0 %v368_v4  ;;  %v221_v30 = vld [vmem:[%s16378_s0 + $0x33] sm:$0xff] }
 0x1ed   :  { %v9571_v59 = vadd.f32 %v9481_v39, %v1134_v53  ;;  %2210 = vperm.xlu1 %7638, %v44_v13   ;;  %v9600_v7 = vpop.f32.mrf.mxu2  ;;  %v398_v53 = vld [vmem:[%s16377_s2 + $0x4d8] sm:$0xff] }
 0x1ee   :  { %v952_v14 = vpop.f32.mrf.mxu0  ;;  %1643 = vmatpush.msra.mxu0 %v366_v19  ;;  %1735 = vmatpush.msra.mxu1 %v398_v53  ;;  %v396_v19 = vld [vmem:[%s16377_s2 + $0x4c8] sm:$0xff] }
 0x1ef   :  { %v1044_v39 = vpop.f32.mrf.mxu1  ;;  %v953_v9 = vadd.f32 %v952_v14, %v861_v46  ;;  %v7670_v14 = vld [vmem:[%s16378_s0 + $0x76] sm:$0xff] }
 0x1f0   :  { %1736 = vmatpush.msra.mxu1 %v396_v19  ;;  %v7681_v19 = vld [vmem:[%s16378_s0 + $0x35] sm:$0xff] }
 0x1f1   :  { %v1045_v25 = vadd.f32 %v1044_v39, %v953_v9  ;;  %1292 = vmatmul.f32.gmra.mxu0 %v219_v6  ;;  %v9644_v39 = vld [vmem:[%s16378_s0 + $0x37] sm:$0xff] }
 0x1f2   :  { %1384 = vmatmul.f32.gmra.mxu1 %v7666_v36  ;;  %v870_v36 = vadd.f32 %v8816_v8, %v8807_v58 }
 0x1f3   :  { %v1137_v0 = vadd.f32 %v9272_v26, %v1045_v25  ;;  %1512 = vmatmul.f32.gmra.mxu2 %v7667_v29  ;;  %v9667_v29 = vld [vmem:[%s16378_s0 + $0x3f] sm:$0xff] }
 0x1f4   :  { %1580 = vmatmul.f32.gmra.mxu3 %v9613_v42 }
 0x1f5   :  { %v9605_v24 = vadd.f32 %v9504_v27, %v1137_v0  ;;  %v9636_v13 = vpop.f32.mrf.mxu2 }
 0x1f6   :  { %v955_v26 = vpop.f32.mrf.mxu0  ;;  %v9619_v27 = vpop.f32.mrf.mxu3 }
 0x1f7   :  { %v1047_v1 = vpop.f32.mrf.mxu1  ;;  %v956_v62 = vadd.f32 %v955_v26, %v864_v44  ;;  %v7673_v44 = vld [vmem:[%s16378_s0 + $0x7e] sm:$0xff] }
 0x1f9   :  { %v1048_v11 = vadd.f32 %v1047_v1, %v956_v62  ;;  %1295 = vmatmul.f32.gmra.mxu0 %v220_v56  ;;  %v364_v56 = vld [vmem:[%s16377_s2 + $0x3c8] sm:$0xff] }
 0x1fa   :  { %1387 = vmatmul.f32.gmra.mxu1 %v7669_v52  ;;  %1644 = vmatpush.msra.mxu0 %v364_v56  ;;  %v7675_v52 = vld [vmem:[%s16378_s0 + $0x25] sm:$0xff] }
 0x1fb   :  { %v1140_v46 = vadd.f32 %v9289_v40, %v1048_v11  ;;  %1515 = vmatmul.f32.gmra.mxu2 %v7670_v14  ;;  %v7676_v14 = vld [vmem:[%s16378_s0 + $0x86] sm:$0xff] }
 0x1fc   :  { %1583 = vmatmul.f32.gmra.mxu3 %v9644_v39 }
 0x1fd   :  { %v9634_v4 = vadd.f32 %v9530_v55, %v1140_v46  ;;  %v9676_v1 = vpop.f32.mrf.mxu2  ;;  %v873_v46 = vadd.f32 %v8848_v2, %v8827_v16  ;;  %v48_v16 = vld [vmem:[%s16380_s1 + $0x38] sm:$0xff] }
 0x1fe   :  { %v958_v40 = vpop.f32.mrf.mxu0  ;;  %v9650_v55 = vpop.f32.mrf.mxu3  ;;  %2230 = vperm.xlu1 %7638, %v48_v16   ;;  %v7682_v16 = vld [vmem:[%s16378_s0 + $0x96] sm:$0xff] }
 0x1ff   :  { %v1050_v6 = vpop.f32.mrf.mxu1  ;;  %v959_v45 = vadd.f32 %v958_v40, %v867_v63  ;;  %v9701_v40 = vld [vmem:[%s16378_s0 + $0x47] sm:$0xff] }
 0x201   :  { %v1051_v9 = vadd.f32 %v1050_v6, %v959_v45  ;;  %1298 = vmatmul.f32.gmra.mxu0 %v221_v30  ;;  %v223_v6 = vld [vmem:[%s16378_s0 + $0x43] sm:$0xff] }
 0x202   :  { %1390 = vmatmul.f32.gmra.mxu1 %v7672_v10  ;;  %v7678_v10 = vld [vmem:[%s16378_s0 + $0x2d] sm:$0xff] }
 0x203   :  { %v1143_v25 = vadd.f32 %v9313_v20, %v1051_v9  ;;  %1518 = vmatmul.f32.gmra.mxu2 %v7673_v44  ;;  %v47_v20 = vld [vmem:[%s16380_s1 + $0x30] sm:$0xff] }
 0x204   :  { %1586 = vmatmul.f32.gmra.mxu3 %v9667_v29  ;;  %2225 = vperm.xlu0 %7637, %v47_v20   ;;  %v876_v20 = vadd.f32 %v8874_v18, %v8851_v61  ;;  %v46_v61 = vld [vmem:[%s16380_s1 + $0x28] sm:$0xff] }
 0x205   :  { %v9659_v0 = vadd.f32 %v9560_v41, %v1143_v25  ;;  %v222_v41 = vld [vmem:[%s16378_s0 + $0x3b] sm:$0xff]  ;;  %v9718_v25 = vpop.f32.mrf.mxu2 }
 0x206   :  { %v961_v58 = vpop.f32.mrf.mxu0  ;;  %v9681_v62 = vpop.f32.mrf.mxu3 }
 0x207   :  { %v1053_v8 = vpop.f32.mrf.mxu1  ;;  %v962_v26 = vadd.f32 %v961_v58, %v870_v36  ;;  %v362_v36 = vld [vmem:[%s16377_s2 + $0x3b8] sm:$0xff] }
 0x208   :  { %1645 = vmatpush.msra.mxu0 %v362_v36  ;;  %v392_v36 = vld [vmem:[%s16377_s2 + $0x4a8] sm:$0xff] }
 0x209   :  { %v1054_v11 = vadd.f32 %v1053_v8, %v962_v26  ;;  %1301 = vmatmul.f32.gmra.mxu0 %v222_v41  ;;  %v7679_v8 = vld [vmem:[%s16378_s0 + $0x8e] sm:$0xff] }
 0x20a   :  { %1393 = vmatmul.f32.gmra.mxu1 %v7675_v52  ;;  %v9735_v41 = vld [vmem:[%s16378_s0 + $0x4f] sm:$0xff] }
 0x20b   :  { %v1146_v53 = vadd.f32 %v9346_v31, %v1054_v11  ;;  %1521 = vmatmul.f32.gmra.mxu2 %v7676_v14  ;;  %v45_v31 = vld [vmem:[%s16380_s1 + $0x20] sm:$0xff]  ;;  %v224_v26 = vld [vmem:[%s16378_s0 + $0x4b] sm:$0xff]  ;;  %v879_v14 = vadd.f32 %v8905_v21, %v8872_v37 }
 0x20c   :  { %1589 = vmatmul.f32.gmra.mxu3 %v9701_v40  ;;  %2215 = vperm.xlu2 %7639, %v45_v31  }
 0x20d   :  { %v9693_v63 = vadd.f32 %v9594_v57, %v1146_v53 }
 0x20e   :  { %v964_v2 = vpop.f32.mrf.mxu0  ;;  %v9713_v45 = vpop.f32.mrf.mxu3 }
 0x20f   :  { %v1056_v57 = vpop.f32.mrf.mxu1  ;;  %v965_v30 = vadd.f32 %v964_v2, %v873_v46  ;;  %v9753_v46 = vpop.f32.mrf.mxu2  ;;  %v9766_v2 = vld [vmem:[%s16378_s0 + $0x57] sm:$0xff] }
 0x210   :  { %16560 = vst [vmem:[#allocation17_spill] sm:$0xff] %v9753_v46  ;;  %v7751_v46 = vld [vmem:[%s16378_s0 + $0x50] sm:$0xff] }
 0x211   :  { %v1057_v9 = vadd.f32 %v1056_v57, %v965_v30  ;;  %1304 = vmatmul.f32.gmra.mxu0 %v223_v6  ;;  %v360_v6 = vld [vmem:[%s16377_s2 + $0x3a8] sm:$0xff] }
 0x212   :  { %1396 = vmatmul.f32.gmra.mxu1 %v7678_v10  ;;  %1646 = vmatpush.msra.mxu0 %v360_v6  ;;  %v7684_v10 = vld [vmem:[%s16378_s0 + $0x3d] sm:$0xff] }
 0x213   :  { %v1149_v44 = vadd.f32 %v9380_v50, %v1057_v9  ;;  %1524 = vmatmul.f32.gmra.mxu2 %v7679_v8  ;;  %v394_v50 = vld [vmem:[%s16377_s2 + $0x4b8] sm:$0xff]  ;;  %v16562_v8 = vld [vmem:[#allocation5_spill] sm:$0xff] }
 0x214   :  { %1592 = vmatmul.f32.gmra.mxu3 %v9735_v41  ;;  %1737 = vmatpush.msra.mxu1 %v394_v50 }
 0x215   :  { %v9727_v58 = vadd.f32 %v9619_v27, %v1149_v44  ;;  %2220 = vperm.xlu2 %7639, %v46_v61  }
 0x216   :  { %v967_v18 = vpop.f32.mrf.mxu0  ;;  %v9747_v11 = vpop.f32.mrf.mxu3  ;;  %1738 = vmatpush.msra.mxu1 %v392_v36  ;;  %v49_v36 = vld [vmem:[%s16380_s1 + $0x40] sm:$0xff] }
 0x217   :  { %v1059_v27 = vpop.f32.mrf.mxu1  ;;  %v968_v56 = vadd.f32 %v967_v18, %v876_v20  ;;  %v16561_v20 = vld [vmem:[#allocation3_spill] sm:$0xff]  ;;  %v9792_v18 = vpop.f32.mrf.mxu2 }
 0x218   :  { %v882_v50 = vadd.f32 %v16562_v8, %v16561_v20  ;;  %16563 = vst [vmem:[#allocation3_spill] sm:$0xff] %v9792_v18  ;;  %v227_v20 = vld [vmem:[%s16378_s0 + $0x63] sm:$0xff] }
 0x219   :  { %v1060_v52 = vadd.f32 %v1059_v27, %v968_v56  ;;  %1307 = vmatmul.f32.gmra.mxu0 %v224_v26  ;;  %v7685_v27 = vld [vmem:[%s16378_s0 + $0x9e] sm:$0xff]  ;;  %v436_v18 = vld [vmem:[%s16377_s2 + $0x608] sm:$0xff] }
 0x21a   :  { %1399 = vmatmul.f32.gmra.mxu1 %v7681_v19  ;;  %v9800_v26 = vld [vmem:[%s16378_s0 + $0x5f] sm:$0xff] }
 0x21b   :  { %v1152_v53 = vadd.f32 %v9417_v54, %v1060_v52  ;;  %1527 = vmatmul.f32.gmra.mxu2 %v7682_v16  ;;  %v50_v54 = vld [vmem:[%s16380_s1 + $0x48] sm:$0xff]  ;;  %v226_v52 = vld [vmem:[%s16378_s0 + $0x5b] sm:$0xff] }
 0x21c   :  { %1595 = vmatmul.f32.gmra.mxu3 %v9766_v2  ;;  %2240 = vperm.xlu0 %7637, %v50_v54   ;;  %v7687_v16 = vld [vmem:[%s16378_s0 + $0x45] sm:$0xff]  ;;  %v358_v54 = vld [vmem:[%s16377_s2 + $0x398] sm:$0xff] }
 0x21d   :  { %v9758_v31 = vadd.f32 %v9650_v55, %v1152_v53  ;;  %v225_v55 = vld [vmem:[%s16378_s0 + $0x53] sm:$0xff]  ;;  %1647 = vmatpush.msra.mxu0 %v358_v54  ;;  %2235 = vperm.xlu2 %7639, %v49_v36   ;;  %v428_v36 = vld [vmem:[%s16377_s2 + $0x5c8] sm:$0xff] }
 0x21e   :  { %v970_v37 = vpop.f32.mrf.mxu0  ;;  %v9778_v30 = vpop.f32.mrf.mxu3 }
 0x21f   :  { %v1062_v21 = vpop.f32.mrf.mxu1  ;;  %v971_v57 = vadd.f32 %v970_v37, %v879_v14 }
 0x221   :  { %v1063_v9 = vadd.f32 %v1062_v21, %v971_v57  ;;  %1310 = vmatmul.f32.gmra.mxu0 %v225_v55  ;;  %v16564_v21 = vld [vmem:[#allocation4_spill] sm:$0xff]  ;;  %v16565_v55 = vld [vmem:[#allocation7_spill] sm:$0xff] }
 0x222   :  { %1402 = vmatmul.f32.gmra.mxu1 %v7684_v10  ;;  %v885_v57 = vadd.f32 %v16565_v55, %v16564_v21  ;;  %v7689_v10 = vld [vmem:[%s16378_s0 + $0x67] sm:$0xff] }
 0x223   :  { %v1155_v44 = vadd.f32 %v9457_v5, %v1063_v9  ;;  %1530 = vmatmul.f32.gmra.mxu2 %v7685_v27  ;;  %v51_v5 = vld [vmem:[%s16380_s1 + $0x50] sm:$0xff]  ;;  %v7688_v9 = vld [vmem:[%s16378_s0 + $0xa6] sm:$0xff] }
 0x224   :  { %1598 = vmatmul.f32.gmra.mxu3 %v9800_v26  ;;  %2245 = vperm.xlu1 %7638, %v51_v5   ;;  %v7691_v21 = vld [vmem:[%s16378_s0 + $0xae] sm:$0xff]  ;;  %v53_v55 = vld [vmem:[%s16380_s1 + $0x60] sm:$0xff] }
 0x225   :  { %v9790_v61 = vadd.f32 %v9681_v62, %v1155_v44  ;;  %2255 = vperm.xlu0 %7637, %v53_v55   ;;  %v54_v55 = vld [vmem:[%s16380_s1 + $0x68] sm:$0xff] }
 0x226   :  { %v973_v62 = vpop.f32.mrf.mxu0  ;;  %v9809_v53 = vpop.f32.mrf.mxu3 }
 0x227   :  { %v1065_v56 = vpop.f32.mrf.mxu1  ;;  %v974_v19 = vadd.f32 %v973_v62, %v882_v50  ;;  %v9838_v50 = vpop.f32.mrf.mxu2  ;;  %v7690_v62 = vld [vmem:[%s16378_s0 + $0x4d] sm:$0xff] }
 0x228   :  { %16566 = vst [vmem:[#allocation5_spill] sm:$0xff] %v9838_v50  ;;  %v374_v50 = vld [vmem:[%s16377_s2 + $0x418] sm:$0xff] }
 0x229   :  { %v1066_v14 = vadd.f32 %v1065_v56, %v974_v19  ;;  %1313 = vmatmul.f32.gmra.mxu0 %v226_v52  ;;  %v434_v56 = vld [vmem:[%s16377_s2 + $0x5f8] sm:$0xff]  ;;  %v432_v19 = vld [vmem:[%s16377_s2 + $0x5e8] sm:$0xff] }
 0x22a   :  { %1405 = vmatmul.f32.gmra.mxu1 %v7687_v16  ;;  %1825 = vmatpush.msrb.mxu2 %v434_v56  ;;  %v16568_v16 = vld [vmem:[#allocation10_spill] sm:$0xff]  ;;  %v426_v56 = vld [vmem:[%s16377_s2 + $0x5b8] sm:$0xff] }
 0x22b   :  { %v1158_v37 = vadd.f32 %v9479_v33, %v1066_v14  ;;  %1533 = vmatmul.f32.gmra.mxu2 %v7688_v9  ;;  %v390_v33 = vld [vmem:[%s16377_s2 + $0x498] sm:$0xff]  ;;  %v16567_v14 = vld [vmem:[#allocation6_spill] sm:$0xff] }
 0x22c   :  { %1601 = vmatmul.f32.gmra.mxu3 %v7689_v10  ;;  %1739 = vmatpush.msra.mxu1 %v390_v33  ;;  %v888_v54 = vadd.f32 %v16568_v16, %v16567_v14  ;;  %v228_v10 = vld [vmem:[%s16378_s0 + $0x6b] sm:$0xff]  ;;  %v16570_v14 = vld [vmem:[#allocation8_spill] sm:$0xff] }
 0x22d   :  { %v9821_v6 = vadd.f32 %v9713_v45, %v1158_v37  ;;  %1826 = vmatpush.msrb.mxu2 %v432_v19  ;;  %v424_v19 = vld [vmem:[%s16377_s2 + $0x5a8] sm:$0xff]  ;;  %v16571_v16 = vld [vmem:[#allocation12_spill] sm:$0xff]  ;;  %2260 = vperm.xlu1 %7638, %v54_v55  }
 0x22e   :  { %v976_v45 = vpop.f32.mrf.mxu0  ;;  %v9840_v27 = vpop.f32.mrf.mxu3  ;;  %v52_v55 = vld [vmem:[%s16380_s1 + $0x58] sm:$0xff] }
 0x22f   :  { %v1068_v44 = vpop.f32.mrf.mxu1  ;;  %v977_v8 = vadd.f32 %v976_v45, %v885_v57  ;;  %v430_v57 = vld [vmem:[%s16377_s2 + $0x5d8] sm:$0xff]  ;;  %2250 = vperm.xlu2 %7639, %v52_v55   ;;  %v7701_v55 = vld [vmem:[%s16378_s0 + $0x87] sm:$0xff] }
 0x230   :  { %1827 = vmatpush.msrb.mxu2 %v430_v57  ;;  %v422_v57 = vld [vmem:[%s16377_s2 + $0x598] sm:$0xff] }
 0x231   :  { %v1069_v5 = vadd.f32 %v1068_v44, %v977_v8  ;;  %1316 = vmatmul.f32.gmra.mxu0 %v227_v20  ;;  %v7693_v20 = vld [vmem:[%s16378_s0 + $0x55] sm:$0xff]  ;;  %v9880_v8 = vpop.f32.mrf.mxu2 }
 0x232   :  { %1408 = vmatmul.f32.gmra.mxu1 %v7690_v62  ;;  %1828 = vmatpush.msrb.mxu2 %v428_v36  ;;  %16569 = vst [vmem:[#allocation4_spill] sm:$0xff] %v9880_v8  ;;  %v388_v62 = vld [vmem:[%s16377_s2 + $0x488] sm:$0xff] }
 0x233   :  { %v1161_v52 = vadd.f32 %v9502_v17, %v1069_v5  ;;  %1536 = vmatmul.f32.gmra.mxu2 %v7691_v21  ;;  %v7692_v17 = vld [vmem:[%s16378_s0 + $0x6f] sm:$0xff]  ;;  %1740 = vmatpush.msra.mxu1 %v388_v62 }
 0x234   :  { %1604 = vmatmul.f32.gmra.mxu3 %v7692_v17  ;;  %v356_v5 = vld [vmem:[%s16377_s2 + $0x388] sm:$0xff]  ;;  %1829 = vmatpush.msrb.mxu2 %v426_v56  ;;  %v7694_v17 = vld [vmem:[%s16378_s0 + $0xb6] sm:$0xff] }
 0x235   :  { %v9855_v37 = vadd.f32 %v9747_v11, %v1161_v52  ;;  %1648 = vmatpush.msra.mxu0 %v356_v5  ;;  %v418_v5 = vld [vmem:[%s16377_s2 + $0x578] sm:$0xff] }
 0x236   :  { %v979_v11 = vpop.f32.mrf.mxu0  ;;  %1830 = vmatpush.msrb.mxu2 %v424_v19  ;;  %v16573_v19 = vld [vmem:[#allocation9_spill] sm:$0xff] }
 0x237   :  { %v1071_v9 = vpop.f32.mrf.mxu1  ;;  %v980_v33 = vadd.f32 %v979_v11, %v888_v54  ;;  %v9875_v45 = vpop.f32.mrf.mxu3  ;;  %v891_v54 = vadd.f32 %v16571_v16, %v16570_v14  ;;  %v16574_v14 = vld [vmem:[#allocation14_spill] sm:$0xff] }
 0x238   :  { %1831 = vmatpush.msrb.mxu2 %v422_v57  ;;  %v894_v16 = vadd.f32 %v16574_v14, %v16573_v19  ;;  %v408_v19 = vld [vmem:[%s16377_s2 + $0x528] sm:$0xff]  ;;  %v56_v14 = vld [vmem:[%s16380_s1 + $0x78] sm:$0xff] }
 0x239   :  { %v1072_v44 = vadd.f32 %v1071_v9, %v980_v33  ;;  %1319 = vmatmul.f32.gmra.mxu0 %v228_v10  ;;  %v229_v9 = vld [vmem:[%s16378_s0 + $0x73] sm:$0xff]  ;;  %v420_v33 = vld [vmem:[%s16377_s2 + $0x588] sm:$0xff]  ;;  %v9927_v56 = vpop.f32.mrf.mxu2  ;;  %2270 = vperm.xlu0 %7637, %v56_v14  }
 0x23a   :  { %1411 = vmatmul.f32.gmra.mxu1 %v7693_v20  ;;  %v7696_v20 = vld [vmem:[%s16378_s0 + $0x5d] sm:$0xff]  ;;  %1832 = vmatpush.msrb.mxu2 %v420_v33  ;;  %16572 = vst [vmem:[#allocation7_spill] sm:$0xff] %v9927_v56  ;;  %v412_v33 = vld [vmem:[%s16377_s2 + $0x548] sm:$0xff] }
 0x23b   :  { %v1164_v52 = vadd.f32 %v9528_v48, %v1072_v44  ;;  %1539 = vmatmul.f32.gmra.mxu2 %v7694_v17  ;;  %v7695_v48 = vld [vmem:[%s16378_s0 + $0x77] sm:$0xff]  ;;  %v7703_v14 = vld [vmem:[%s16378_s0 + $0x8f] sm:$0xff] }
 0x23c   :  { %1607 = vmatmul.f32.gmra.mxu3 %v7695_v48  ;;  %1833 = vmatpush.msrb.mxu2 %v418_v5  ;;  %v7697_v17 = vld [vmem:[%s16378_s0 + $0xbe] sm:$0xff] }
 0x23d   :  { %v9898_v21 = vadd.f32 %v9778_v30, %v1164_v52  ;;  %v416_v52 = vld [vmem:[%s16377_s2 + $0x568] sm:$0xff]  ;;  %v354_v48 = vld [vmem:[%s16377_s2 + $0x378] sm:$0xff] }
 0x23e   :  { %v982_v30 = vpop.f32.mrf.mxu0  ;;  %1649 = vmatpush.msra.mxu0 %v354_v48  ;;  %1834 = vmatpush.msrb.mxu2 %v416_v52  ;;  %v7699_v5 = vld [vmem:[%s16378_s0 + $0x65] sm:$0xff] }
 0x23f   :  { %v1074_v11 = vpop.f32.mrf.mxu1  ;;  %v983_v10 = vadd.f32 %v982_v30, %v891_v54  ;;  %v9918_v36 = vpop.f32.mrf.mxu3 }
 0x241   :  { %v1075_v44 = vadd.f32 %v1074_v11, %v983_v10  ;;  %1322 = vmatmul.f32.gmra.mxu0 %v229_v9  ;;  %v230_v11 = vld [vmem:[%s16378_s0 + $0x7b] sm:$0xff]  ;;  %v9981_v48 = vpop.f32.mrf.mxu2 }
 0x242   :  { %1414 = vmatmul.f32.gmra.mxu1 %v7696_v20  ;;  %v386_v10 = vld [vmem:[%s16377_s2 + $0x478] sm:$0xff]  ;;  %16576 = vst [vmem:[#allocation6_spill] sm:$0xff] %v9981_v48  ;;  %v444_v48 = vld [vmem:[%s16377_s2 + $0x648] sm:$0xff] }
 0x243   :  { %v1167_v62 = vadd.f32 %v9565_v28, %v1075_v44  ;;  %1542 = vmatmul.f32.gmra.mxu2 %v7697_v17  ;;  %v7698_v28 = vld [vmem:[%s16378_s0 + $0x7f] sm:$0xff]  ;;  %1741 = vmatpush.msra.mxu1 %v386_v10 }
 0x244   :  { %1610 = vmatmul.f32.gmra.mxu3 %v7698_v28 }
 0x245   :  { %v9935_v54 = vadd.f32 %v9809_v53, %v1167_v62  ;;  %v414_v53 = vld [vmem:[%s16377_s2 + $0x558] sm:$0xff] }
 0x246   :  { %v985_v57 = vpop.f32.mrf.mxu0  ;;  %1835 = vmatpush.msrb.mxu2 %v414_v53  ;;  %v410_v62 = vld [vmem:[%s16377_s2 + $0x538] sm:$0xff] }
 0x247   :  { %v1077_v30 = vpop.f32.mrf.mxu1  ;;  %v986_v9 = vadd.f32 %v985_v57, %v894_v16  ;;  %v9961_v44 = vpop.f32.mrf.mxu3  ;;  %v16575_v16 = vld [vmem:[#allocation11_spill] sm:$0xff]  ;;  %v406_v53 = vld [vmem:[%s16377_s2 + $0x518] sm:$0xff] }
 0x248   :  { %1836 = vmatpush.msrb.mxu2 %v412_v33  ;;  %v897_v17 = vadd.f32 %v9104_v15, %v16575_v16  ;;  %v7702_v33 = vld [vmem:[%s16378_s0 + $0x6d] sm:$0xff] }
 0x249   :  { %v1078_v20 = vadd.f32 %v1077_v30, %v986_v9  ;;  %1325 = vmatmul.f32.gmra.mxu0 %v230_v11  ;;  %v404_v11 = vld [vmem:[%s16377_s2 + $0x508] sm:$0xff] }
 0x24a   :  { %1417 = vmatmul.f32.gmra.mxu1 %v7699_v5  ;;  %1837 = vmatpush.msrb.mxu2 %v410_v62  ;;  %v16578_v5 = vld [vmem:[#allocation13_spill] sm:$0xff]  ;;  %v16579_v62 = vld [vmem:[#allocation16_spill] sm:$0xff]  ;;  %v352_v16 = vld [vmem:[%s16377_s2 + $0x368] sm:$0xff] }
 0x24b   :  { %v1170_v52 = vadd.f32 %v9600_v7, %v1078_v20  ;;  %v7700_v7 = vld [vmem:[%s16378_s0 + $0xc6] sm:$0xff]  ;;  %1650 = vmatpush.msra.mxu0 %v352_v16  ;;  %v233_v16 = vld [vmem:[%s16378_s0 + $0x93] sm:$0xff] }
 0x24c   :  { %1545 = vmatmul.f32.gmra.mxu2 %v7700_v7  ;;  %1613 = vmatmul.f32.gmra.mxu3 %v7701_v55 }
 0x24d   :  { %v9979_v28 = vadd.f32 %v9840_v27, %v1170_v52  ;;  %v231_v27 = vld [vmem:[%s16378_s0 + $0x83] sm:$0xff]  ;;  %1838 = vmatpush.msrb.mxu2 %v408_v19  ;;  %v900_v52 = vadd.f32 %v16579_v62, %v16578_v5  ;;  %v7706_v62 = vld [vmem:[%s16378_s0 + $0x97] sm:$0xff] }
 0x24e   :  { %v988_v15 = vpop.f32.mrf.mxu0 }
 0x24f   :  { %v1080_v57 = vpop.f32.mrf.mxu1  ;;  %v989_v30 = vadd.f32 %v988_v15, %v897_v17  ;;  %v9998_v9 = vpop.f32.mrf.mxu3  ;;  %1839 = vmatpush.msrb.mxu2 %v406_v53  ;;  %v7704_v17 = vld [vmem:[%s16378_s0 + $0x11] sm:$0xff] }
 0x250   :  { %16577 = vst [vmem:[#allocation10_spill] sm:$0xff] %v9998_v9  ;;  %v232_v53 = vld [vmem:[%s16378_s0 + $0x8b] sm:$0xff] }
 0x251   :  { %v1081_v10 = vadd.f32 %v1080_v57, %v989_v30  ;;  %1328 = vmatmul.f32.gmra.mxu0 %v231_v27  ;;  %1840 = vmatpush.msrb.mxu2 %v404_v11  ;;  %v10027_v57 = vpop.f32.mrf.mxu2  ;;  %v7705_v11 = vld [vmem:[%s16378_s0 + $0x75] sm:$0xff] }
 0x252   :  { %1420 = vmatmul.f32.gmra.mxu1 %v7702_v33  ;;  %16580 = vst [vmem:[#allocation8_spill] sm:$0xff] %v10027_v57  ;;  %v16582_v33 = vld [vmem:[#allocation15_spill] sm:$0xff]  ;;  %v446_v57 = vld [vmem:[%s16377_s2 + $0x658] sm:$0xff] }
 0x253   :  { %v1173_v20 = vadd.f32 %v9636_v13, %v1081_v10  ;;  %v384_v13 = vld [vmem:[%s16377_s2 + $0x468] sm:$0xff] }
 0x254   :  { %1616 = vmatmul.f32.gmra.mxu3 %v7703_v14  ;;  %1841 = vmatmul.f32.vlgmr.msrb.gmra.mxu2 %v7704_v17 }
 0x255   :  { %v10007_v19 = vadd.f32 %v9875_v45, %v1173_v20  ;;  %v57_v45 = vld [vmem:[%s16380_s1 + $0x80] sm:$0xff]  ;;  %1742 = vmatpush.msra.mxu1 %v384_v13  ;;  %v903_v20 = vadd.f32 %v9195_v22, %v16582_v33  ;;  %v55_v22 = vld [vmem:[%s16380_s1 + $0x70] sm:$0xff]  ;;  %v382_v13 = vld [vmem:[%s16377_s2 + $0x458] sm:$0xff] }
 0x256   :  { %v991_v7 = vpop.f32.mrf.mxu0  ;;  %2275 = vperm.xlu1 %7638, %v57_v45   ;;  %2265 = vperm.xlu2 %7639, %v55_v22   ;;  %v59_v33 = vld [vmem:[%s16380_s1 + $0x90] sm:$0xff] }
 0x257   :  { %v1083_v55 = vpop.f32.mrf.mxu1  ;;  %v992_v15 = vadd.f32 %v991_v7, %v900_v52  ;;  %v10029_v27 = vpop.f32.mrf.mxu3  ;;  %v10046_v52 = vld [vmem:[%s16378_s0 + $0x19] sm:$0xff]  ;;  %1743 = vmatpush.msra.mxu1 %v382_v13  ;;  %2285 = vperm.xlu0 %7637, %v59_v33   ;;  %v7714_v33 = vld [vmem:[%s16378_s0 + $0x8d] sm:$0xff] }
 0x258   :  { %16581 = vst [vmem:[#allocation12_spill] sm:$0xff] %v10029_v27  ;;  %v60_v13 = vld [vmem:[%s16380_s1 + $0x98] sm:$0xff] }
 0x259   :  { %v1084_v30 = vadd.f32 %v1083_v55, %v992_v15  ;;  %1331 = vmatmul.f32.gmra.mxu0 %v232_v53  ;;  %v7708_v55 = vld [vmem:[%s16378_s0 + $0x7d] sm:$0xff]  ;;  %v10066_v53 = vpop.f32.mrf.mxu2 }
 0x25a   :  { %1423 = vmatmul.f32.gmra.mxu1 %v7705_v11  ;;  %16584 = vst [vmem:[#allocation14_spill] sm:$0xff] %v10066_v53  ;;  %v7709_v11 = vld [vmem:[%s16378_s0 + $0x9f] sm:$0xff]  ;;  %v452_v53 = vld [vmem:[%s16377_s2 + $0x688] sm:$0xff] }
 0x25b   :  { %v1176_v10 = vadd.f32 %v9676_v1, %v1084_v30  ;;  %v350_v1 = vld [vmem:[%s16377_s2 + $0x358] sm:$0xff] }
 0x25c   :  { %1619 = vmatmul.f32.gmra.mxu3 %v7706_v62  ;;  %1844 = vmatmul.f32.gmra.mxu2 %v10046_v52  ;;  %v7720_v27 = vld [vmem:[%s16378_s0 + $0x9d] sm:$0xff] }
 0x25d   :  { %v10038_v5 = vadd.f32 %v9918_v36, %v1176_v10  ;;  %1651 = vmatpush.msra.mxu0 %v350_v1  ;;  %v10078_v10 = vld [vmem:[%s16378_s0 + $0x21] sm:$0xff] }
 0x25e   :  { %v994_v36 = vpop.f32.mrf.mxu0  ;;  %v7711_v1 = vld [vmem:[%s16378_s0 + $0x85] sm:$0xff]  ;;  %2290 = vperm.xlu1 %7638, %v60_v13  }
 0x25f   :  { %v1086_v14 = vpop.f32.mrf.mxu1  ;;  %v995_v17 = vadd.f32 %v994_v36, %v903_v20  ;;  %v10061_v45 = vpop.f32.mrf.mxu3  ;;  %v234_v20 = vld [vmem:[%s16378_s0 + $0x9b] sm:$0xff]  ;;  %v7712_v36 = vld [vmem:[%s16378_s0 + $0xa7] sm:$0xff] }
 0x260   :  { %16583 = vst [vmem:[#allocation9_spill] sm:$0xff] %v10061_v45  ;;  %v58_v13 = vld [vmem:[%s16380_s1 + $0x88] sm:$0xff] }
 0x261   :  { %v1087_v7 = vadd.f32 %v1086_v14, %v995_v17  ;;  %1334 = vmatmul.f32.gmra.mxu0 %v233_v16  ;;  %v10096_v22 = vpop.f32.mrf.mxu2  ;;  %v10104_v14 = vld [vmem:[%s16378_s0 + $0x29] sm:$0xff]  ;;  %2280 = vperm.xlu2 %7639, %v58_v13   ;;  %v458_v13 = vld [vmem:[%s16377_s2 + $0x6b8] sm:$0xff] }
 0x262   :  { %1426 = vmatmul.f32.gmra.mxu1 %v7708_v55  ;;  %16588 = vst [vmem:[#allocation15_spill] sm:$0xff] %v10096_v22  ;;  %v348_v16 = vld [vmem:[%s16377_s2 + $0x348] sm:$0xff] }
 0x263   :  { %v1179_v15 = vadd.f32 %v9718_v25, %v1087_v7  ;;  %v380_v17 = vld [vmem:[%s16377_s2 + $0x448] sm:$0xff]  ;;  %1652 = vmatpush.msra.mxu0 %v348_v16 }
 0x264   :  { %1622 = vmatmul.f32.gmra.mxu3 %v7709_v11  ;;  %1847 = vmatmul.f32.gmra.mxu2 %v10078_v10  ;;  %v7715_v16 = vld [vmem:[%s16378_s0 + $0xaf] sm:$0xff] }
 0x265   :  { %v10070_v30 = vadd.f32 %v9961_v44, %v1179_v15  ;;  %v235_v15 = vld [vmem:[%s16378_s0 + $0xa3] sm:$0xff]  ;;  %1744 = vmatpush.msra.mxu1 %v380_v17  ;;  %v10142_v17 = vld [vmem:[%s16378_s0 + $0x31] sm:$0xff] }
 0x266   :  { %v10084_v25 = vpop.f32.mrf.mxu0 }
 0x267   :  { %16585 = vst [vmem:[#allocation11_spill] sm:$0xff] %v10070_v30  ;;  %v10086_v44 = vpop.f32.mrf.mxu1  ;;  %v10091_v62 = vpop.f32.mrf.mxu3 }
 0x268   :  { %16586 = vst [vmem:[#allocation13_spill] sm:$0xff] %v10086_v44 }
 0x269   :  { %16587 = vst [vmem:[#allocation16_spill] sm:$0xff] %v10091_v62  ;;  %1337 = vmatmul.f32.gmra.mxu0 %v234_v20  ;;  %v466_v20 = vld [vmem:[%s16377_s2 + $0x6f8] sm:$0xff] }
 0x26a   :  { %1429 = vmatmul.f32.gmra.mxu1 %v7711_v1  ;;  %1917 = vmatpush.msrb.mxu3 %v466_v20  ;;  %v464_v1 = vld [vmem:[%s16377_s2 + $0x6e8] sm:$0xff]  ;;  %v7717_v62 = vld [vmem:[%s16378_s0 + $0x95] sm:$0xff] }
 0x26c   :  { %1625 = vmatmul.f32.gmra.mxu3 %v7712_v36  ;;  %1850 = vmatmul.f32.gmra.mxu2 %v10104_v14  ;;  %v10134_v36 = vpop.f32.mrf.mxu2 }
 0x26d   :  { %1918 = vmatpush.msrb.mxu3 %v464_v1  ;;  %16591 = vst [vmem:[#allocation20_spill] sm:$0xff] %v10134_v36  ;;  %v236_v1 = vld [vmem:[%s16378_s0 + $0xab] sm:$0xff] }
 0x26e   :  { %v10116_v7 = vpop.f32.mrf.mxu0  ;;  %v460_v36 = vld [vmem:[%s16377_s2 + $0x6c8] sm:$0xff] }
 0x26f   :  { %v10118_v55 = vpop.f32.mrf.mxu1  ;;  %v10123_v11 = vpop.f32.mrf.mxu3 }
 0x270   :  { %16589 = vst [vmem:[#allocation18_spill] sm:$0xff] %v10118_v55 }
 0x271   :  { %16590 = vst [vmem:[#allocation19_spill] sm:$0xff] %v10123_v11  ;;  %1340 = vmatmul.f32.gmra.mxu0 %v235_v15  ;;  %v462_v15 = vld [vmem:[%s16377_s2 + $0x6d8] sm:$0xff] }
 0x272   :  { %1432 = vmatmul.f32.gmra.mxu1 %v7714_v33  ;;  %1919 = vmatpush.msrb.mxu3 %v462_v15  ;;  %v456_v15 = vld [vmem:[%s16377_s2 + $0x6a8] sm:$0xff] }
 0x274   :  { %1628 = vmatmul.f32.gmra.mxu3 %v7715_v16  ;;  %1853 = vmatmul.f32.gmra.mxu2 %v10142_v17  ;;  %v346_v16 = vld [vmem:[%s16377_s2 + $0x338] sm:$0xff]  ;;  %v10200_v22 = vpop.f32.mrf.mxu2 }
 0x275   :  { %1653 = vmatpush.msra.mxu0 %v346_v16  ;;  %1920 = vmatpush.msrb.mxu3 %v460_v36  ;;  %v378_v36 = vld [vmem:[%s16377_s2 + $0x438] sm:$0xff]  ;;  %v62_v16 = vld [vmem:[%s16380_s1 + $0xa8] sm:$0xff]  ;;  %16595 = vst [vmem:[#allocation24_spill] sm:$0xff] %v10200_v22 }
 0x276   :  { %v10151_v33 = vpop.f32.mrf.mxu0  ;;  %1745 = vmatpush.msra.mxu1 %v378_v36  ;;  %2300 = vperm.xlu0 %7637, %v62_v16   ;;  %v450_v36 = vld [vmem:[%s16377_s2 + $0x678] sm:$0xff]  ;;  %v448_v16 = vld [vmem:[%s16377_s2 + $0x668] sm:$0xff] }
 0x277   :  { %v10153_v20 = vpop.f32.mrf.mxu1  ;;  %v10164_v11 = vpop.f32.mrf.mxu3  ;;  %1921 = vmatpush.msrb.mxu3 %v458_v13  ;;  %v454_v13 = vld [vmem:[%s16377_s2 + $0x698] sm:$0xff] }
 0x278   :  { %16592 = vst [vmem:[#allocation21_spill] sm:$0xff] %v10153_v20 }
 0x279   :  { %16593 = vst [vmem:[#allocation22_spill] sm:$0xff] %v10164_v11  ;;  %1343 = vmatmul.f32.gmra.mxu0 %v236_v1  ;;  %1922 = vmatpush.msrb.mxu3 %v456_v15  ;;  %v7718_v1 = vld [vmem:[%s16378_s0 + $0xb7] sm:$0xff] }
 0x27a   :  { %1435 = vmatmul.f32.gmra.mxu1 %v7717_v62  ;;  %v10184_v62 = vld [vmem:[%s16378_s0 + $0x39] sm:$0xff] }
 0x27b   :  { %1923 = vmatpush.msrb.mxu3 %v454_v13  ;;  %v7721_v13 = vld [vmem:[%s16378_s0 + $0xbf] sm:$0xff] }
 0x27c   :  { %1631 = vmatmul.f32.gmra.mxu3 %v7718_v1  ;;  %1856 = vmatmul.f32.gmra.mxu2 %v10184_v62  ;;  %v237_v1 = vld [vmem:[%s16378_s0 + $0xb3] sm:$0xff]  ;;  %v10249_v8 = vpop.f32.mrf.mxu2 }
 0x27d   :  { %1924 = vmatpush.msrb.mxu3 %v452_v53  ;;  %v376_v53 = vld [vmem:[%s16377_s2 + $0x428] sm:$0xff]  ;;  %16599 = vst [vmem:[#allocation28_spill] sm:$0xff] %v10249_v8 }
 0x27e   :  { %v10193_v15 = vpop.f32.mrf.mxu0  ;;  %1746 = vmatpush.msra.mxu1 %v376_v53  ;;  %v440_v53 = vld [vmem:[%s16377_s2 + $0x628] sm:$0xff] }
 0x27f   :  { %v10195_v11 = vpop.f32.mrf.mxu1  ;;  %v10205_v45 = vpop.f32.mrf.mxu3  ;;  %1925 = vmatpush.msrb.mxu3 %v450_v36  ;;  %v63_v36 = vld [vmem:[%s16380_s1 + $0xb0] sm:$0xff]  ;;  %v239_v8 = vld [vmem:[%s16378_s0 + $0xc3] sm:$0xff] }
 0x280   :  { %16594 = vst [vmem:[#allocation23_spill] sm:$0xff] %v10195_v11  ;;  %2305 = vperm.xlu1 %7638, %v63_v36   ;;  %v342_v36 = vld [vmem:[%s16377_s2 + $0x318] sm:$0xff]  ;;  %1747 = vmatpush.msra.mxu1 %v374_v50  ;;  %v65_v50 = vld [vmem:[%s16380_s1 + $0xc0] sm:$0xff]  ;;  %v7734_v11 = vld [vmem:[%s16378_s0 + $0xf] sm:$0xff] }
 0x281   :  { %16596 = vst [vmem:[#allocation25_spill] sm:$0xff] %v10205_v45  ;;  %1346 = vmatmul.f32.gmra.mxu0 %v237_v1  ;;  %v10222_v1 = vld [vmem:[%s16378_s0 + $0x41] sm:$0xff]  ;;  %1926 = vmatpush.msrb.mxu3 %v448_v16 }
 0x282   :  { %1438 = vmatmul.f32.gmra.mxu1 %v7720_v27  ;;  %v344_v27 = vld [vmem:[%s16377_s2 + $0x328] sm:$0xff]  ;;  %v238_v45 = vld [vmem:[%s16378_s0 + $0xbb] sm:$0xff]  ;;  %2315 = vperm.xlu0 %7637, %v65_v50  }
 0x283   :  { %1654 = vmatpush.msra.mxu0 %v344_v27  ;;  %1927 = vmatpush.msrb.mxu3 %v446_v57  ;;  %v7723_v16 = vld [vmem:[%s16378_s0 + $0xa5] sm:$0xff]  ;;  %v442_v27 = vld [vmem:[%s16377_s2 + $0x638] sm:$0xff] }
 0x284   :  { %1634 = vmatmul.f32.gmra.mxu3 %v7721_v13  ;;  %1859 = vmatmul.f32.gmra.mxu2 %v10222_v1  ;;  %v7724_v57 = vld [vmem:[%s16378_s0 + $0xc7] sm:$0xff] }
 0x285   :  { %1928 = vmatpush.msrb.mxu3 %v444_v48  ;;  %v61_v48 = vld [vmem:[%s16380_s1 + $0xa0] sm:$0xff]  ;;  %1655 = vmatpush.msra.mxu0 %v342_v36  ;;  %v10302_v36 = vpop.f32.mrf.mxu2 }
 0x286   :  { %v10234_v13 = vpop.f32.mrf.mxu0  ;;  %2295 = vperm.xlu2 %7639, %v61_v48   ;;  %v372_v48 = vld [vmem:[%s16377_s2 + $0x408] sm:$0xff]  ;;  %16602 = vst [vmem:[#allocation31_spill] sm:$0xff] %v10302_v36  ;;  %v10331_v36 = vld [vmem:[%s16378_s0 + $0x59] sm:$0xff] }
 0x287   :  { %v10236_v22 = vpop.f32.mrf.mxu1  ;;  %v10247_v56 = vpop.f32.mrf.mxu3  ;;  %1929 = vmatpush.msrb.mxu3 %v442_v27  ;;  %1748 = vmatpush.msra.mxu1 %v372_v48 }
 0x288   :  { %16597 = vst [vmem:[#allocation26_spill] sm:$0xff] %v10236_v22  ;;  %v498_v22 = vld [vmem:[%s16377_s2 + $0x7f8] sm:$0xff] }
 0x289   :  { %16598 = vst [vmem:[#allocation27_spill] sm:$0xff] %v10247_v56  ;;  %1349 = vmatmul.f32.gmra.mxu0 %v238_v45  ;;  %v10266_v45 = vld [vmem:[%s16378_s0 + $0x49] sm:$0xff]  ;;  %1930 = vmatpush.msrb.mxu3 %v440_v53 }
 0x28a   :  { %1441 = vmatmul.f32.gmra.mxu1 %v7723_v16  ;;  %v438_v16 = vld [vmem:[%s16377_s2 + $0x618] sm:$0xff]  ;;  %v340_v56 = vld [vmem:[%s16377_s2 + $0x308] sm:$0xff] }
 0x28b   :  { %1931 = vmatpush.msrb.mxu3 %v438_v16  ;;  %v7726_v53 = vld [vmem:[%s16378_s0 + $0xad] sm:$0xff]  ;;  %1656 = vmatpush.msra.mxu0 %v340_v56 }
 0x28c   :  { %1637 = vmatmul.f32.gmra.mxu3 %v7724_v57  ;;  %1862 = vmatmul.f32.gmra.mxu2 %v10266_v45  ;;  %v10307_v16 = vld [vmem:[%s16378_s0 + $0x51] sm:$0xff] }
 0x28d   :  { %1932 = vmatpush.msrb.mxu3 %v436_v18  ;;  %v240_v18 = vld [vmem:[%s16378_s0 + $0xcb] sm:$0xff]  ;;  %v10326_v48 = vpop.f32.mrf.mxu2  ;;  %2009 = vmatpush.msrb.mxu0 %v498_v22 }
 0x28e   :  { %v10278_v27 = vpop.f32.mrf.mxu0  ;;  %16605 = vst [vmem:[#allocation34_spill] sm:$0xff] %v10326_v48  ;;  %v7730_v48 = vld [vmem:[%s16378_s0 + $0xbd] sm:$0xff]  ;;  %v496_v22 = vld [vmem:[%s16377_s2 + $0x7e8] sm:$0xff] }
 0x28f   :  { %v10280_v57 = vpop.f32.mrf.mxu1  ;;  %2010 = vmatpush.msrb.mxu0 %v496_v22  ;;  %v10426_v22 = vld [vmem:[%s16378_s0 + $0x79] sm:$0xff] }
 0x290   :  { %16600 = vst [vmem:[#allocation29_spill] sm:$0xff] %v10280_v57  ;;  %v10294_v57 = vpop.f32.mrf.mxu3 }
 0x291   :  { %16601 = vst [vmem:[#allocation30_spill] sm:$0xff] %v10294_v57  ;;  %1352 = vmatmul.f32.gmra.mxu0 %v239_v8  ;;  %v64_v57 = vld [vmem:[%s16380_s1 + $0xb8] sm:$0xff] }
 0x292   :  { %1444 = vmatmul.f32.gmra.mxu1 %v7726_v53  ;;  %2310 = vperm.xlu2 %7639, %v64_v57   ;;  %v530_v57 = vld [vmem:[%s16377_s2 + $0x8f8] sm:$0xff] }
 0x293   :  { %2101 = vmatpush.msrb.mxu1 %v530_v57 }
 0x294   :  { %1865 = vmatmul.f32.gmra.mxu2 %v10307_v16  ;;  %1933 = vmatmul.f32.vlgmr.msrb.gmra.mxu3 %v10046_v52  ;;  %v7728_v52 = vld [vmem:[%s16378_s0 + $0xb5] sm:$0xff] }
 0x296   :  { %v10314_v8 = vpop.f32.mrf.mxu0 }
 0x297   :  { %v10316_v56 = vpop.f32.mrf.mxu1 }
 0x298   :  { %16603 = vst [vmem:[#allocation32_spill] sm:$0xff] %v10316_v56  ;;  %v10321_v53 = vpop.f32.mrf.mxu3 }
 0x299   :  { %16604 = vst [vmem:[#allocation33_spill] sm:$0xff] %v10321_v53  ;;  %1355 = vmatmul.f32.gmra.mxu0 %v240_v18  ;;  %v241_v18 = vld [vmem:[%s16378_s0 + $0xd3] sm:$0xff] }
 0x29a   :  { %1447 = vmatmul.f32.gmra.mxu1 %v7728_v52 }
 0x29c   :  { %1868 = vmatmul.f32.gmra.mxu2 %v10331_v36  ;;  %1936 = vmatmul.f32.gmra.mxu3 %v10078_v10  ;;  %v10350_v10 = vld [vmem:[%s16378_s0 + $0x61] sm:$0xff] }
 0x29e   :  { %v10335_v50 = vpop.f32.mrf.mxu0 }
 0x29f   :  { %v10337_v53 = vpop.f32.mrf.mxu1 }
 0x2a0   :  { %16606 = vst [vmem:[#allocation35_spill] sm:$0xff] %v10337_v53  ;;  %v10342_v52 = vpop.f32.mrf.mxu3  ;;  %v10364_v53 = vpop.f32.mrf.mxu2 }
 0x2a1   :  { %16607 = vst [vmem:[#allocation36_spill] sm:$0xff] %v10342_v52  ;;  %1358 = vmatmul.f32.gmra.mxu0 %v241_v18 }
 0x2a2   :  { %1450 = vmatmul.f32.gmra.mxu1 %v7730_v48  ;;  %v242_v48 = vld [vmem:[%s16378_s0 + $0xdb] sm:$0xff]  ;;  %16609 = vst [vmem:[#allocation38_spill] sm:$0xff] %v10364_v53 }
 0x2a4   :  { %1871 = vmatmul.f32.gmra.mxu2 %v10350_v10  ;;  %1939 = vmatmul.f32.gmra.mxu3 %v10104_v14  ;;  %v7732_v14 = vld [vmem:[%s16378_s0 + $0xc5] sm:$0xff] }
 0x2a6   :  { %v10357_v52 = vpop.f32.mrf.mxu0 }
 0x2a7   :  { %v10359_v18 = vpop.f32.mrf.mxu1 }
 0x2a8   :  { %16608 = vst [vmem:[#allocation37_spill] sm:$0xff] %v10359_v18  ;;  %v10366_v56 = vpop.f32.mrf.mxu3  ;;  %v10377_v18 = vld [vmem:[%s16378_s0 + $0x69] sm:$0xff]  ;;  %v10390_v53 = vpop.f32.mrf.mxu2 }
 0x2a9   :  { %16610 = vst [vmem:[#allocation39_spill] sm:$0xff] %v10366_v56  ;;  %1361 = vmatmul.f32.gmra.mxu0 %v242_v48 }
 0x2aa   :  { %1453 = vmatmul.f32.gmra.mxu1 %v7732_v14  ;;  %16613 = vst [vmem:[#allocation42_spill] sm:$0xff] %v10390_v53 }
 0x2ac   :  { %1874 = vmatmul.f32.gmra.mxu2 %v10377_v18  ;;  %1942 = vmatmul.f32.gmra.mxu3 %v10142_v17  ;;  %v7735_v17 = vld [vmem:[%s16378_s0 + $0x10] sm:$0xff] }
 0x2ae   :  { %v10384_v48 = vpop.f32.mrf.mxu0 }
 0x2af   :  { %v10386_v14 = vpop.f32.mrf.mxu1 }
 0x2b0   :  { %16611 = vst [vmem:[#allocation40_spill] sm:$0xff] %v10386_v14  ;;  %v10388_v56 = vpop.f32.mrf.mxu3  ;;  %v10401_v14 = vld [vmem:[%s16378_s0 + $0x71] sm:$0xff]  ;;  %v10421_v53 = vpop.f32.mrf.mxu2 }
 0x2b1   :  { %16612 = vst [vmem:[#allocation41_spill] sm:$0xff] %v10388_v56  ;;  %1657 = vmatmul.f32.vlgmr.msra.gmra.mxu0 %v7734_v11 }
 0x2b2   :  { %1749 = vmatmul.f32.vlgmr.msra.gmra.mxu1 %v7735_v17  ;;  %v528_v17 = vld [vmem:[%s16377_s2 + $0x8e8] sm:$0xff]  ;;  %16616 = vst [vmem:[#allocation45_spill] sm:$0xff] %v10421_v53 }
 0x2b3   :  { %2102 = vmatpush.msrb.mxu1 %v528_v17 }
 0x2b4   :  { %1877 = vmatmul.f32.gmra.mxu2 %v10401_v14  ;;  %1945 = vmatmul.f32.gmra.mxu3 %v10184_v62  ;;  %v7737_v62 = vld [vmem:[%s16378_s0 + $0x18] sm:$0xff] }
 0x2b6   :  { %v10408_v57 = vpop.f32.mrf.mxu0 }
 0x2b7   :  { %v10410_v11 = vpop.f32.mrf.mxu1 }
 0x2b8   :  { %16614 = vst [vmem:[#allocation43_spill] sm:$0xff] %v10410_v11  ;;  %v10419_v56 = vpop.f32.mrf.mxu3  ;;  %v10440_v53 = vpop.f32.mrf.mxu2  ;;  %v10445_v11 = vld [vmem:[%s16378_s0 + $0x81] sm:$0xff] }
 0x2b9   :  { %1660 = vmatmul.f32.gmra.mxu0 %v9519_v32  ;;  %16615 = vst [vmem:[#allocation44_spill] sm:$0xff] %v10419_v56 }
 0x2ba   :  { %1752 = vmatmul.f32.gmra.mxu1 %v7737_v62  ;;  %v7739_v62 = vld [vmem:[%s16378_s0 + $0x20] sm:$0xff]  ;;  %16619 = vst [vmem:[#allocation48_spill] sm:$0xff] %v10440_v53 }
 0x2bc   :  { %1880 = vmatmul.f32.gmra.mxu2 %v10426_v22  ;;  %1948 = vmatmul.f32.gmra.mxu3 %v10222_v1  ;;  %v526_v1 = vld [vmem:[%s16377_s2 + $0x8d8] sm:$0xff] }
 0x2bd   :  { %2103 = vmatpush.msrb.mxu1 %v526_v1 }
 0x2be   :  { %v10430_v17 = vpop.f32.mrf.mxu0 }
 0x2bf   :  { %v10432_v32 = vpop.f32.mrf.mxu1 }
 0x2c0   :  { %16617 = vst [vmem:[#allocation46_spill] sm:$0xff] %v10432_v32  ;;  %v10438_v56 = vpop.f32.mrf.mxu3  ;;  %v10468_v32 = vld [vmem:[%s16378_s0 + $0x89] sm:$0xff] }
 0x2c1   :  { %1663 = vmatmul.f32.gmra.mxu0 %v9551_v35  ;;  %16618 = vst [vmem:[#allocation47_spill] sm:$0xff] %v10438_v56  ;;  %v494_v35 = vld [vmem:[%s16377_s2 + $0x7d8] sm:$0xff] }
 0x2c2   :  { %1755 = vmatmul.f32.gmra.mxu1 %v7739_v62  ;;  %2011 = vmatpush.msrb.mxu0 %v494_v35 }
 0x2c4   :  { %1883 = vmatmul.f32.gmra.mxu2 %v10445_v11  ;;  %1951 = vmatmul.f32.gmra.mxu3 %v10266_v45  ;;  %v7741_v45 = vld [vmem:[%s16378_s0 + $0x28] sm:$0xff] }
 0x2c6   :  { %v10455_v62 = vpop.f32.mrf.mxu0 }
 0x2c7   :  { %v10457_v56 = vpop.f32.mrf.mxu1 }
 0x2c8   :  { %16620 = vst [vmem:[#allocation49_spill] sm:$0xff] %v10457_v56  ;;  %v10463_v53 = vpop.f32.mrf.mxu3 }
 0x2c9   :  { %1666 = vmatmul.f32.gmra.mxu0 %v9579_v60  ;;  %16621 = vst [vmem:[#allocation50_spill] sm:$0xff] %v10463_v53  ;;  %v10474_v60 = vpop.f32.mrf.mxu2  ;;  %v7743_v53 = vld [vmem:[%s16378_s0 + $0x30] sm:$0xff] }
 0x2ca   :  { %1758 = vmatmul.f32.gmra.mxu1 %v7741_v45  ;;  %16623 = vst [vmem:[#allocation52_spill] sm:$0xff] %v10474_v60  ;;  %v492_v45 = vld [vmem:[%s16377_s2 + $0x7c8] sm:$0xff]  ;;  %v7745_v60 = vld [vmem:[%s16378_s0 + $0x38] sm:$0xff] }
 0x2cb   :  { %2012 = vmatpush.msrb.mxu0 %v492_v45 }
 0x2cc   :  { %1886 = vmatmul.f32.gmra.mxu2 %v10468_v32  ;;  %1954 = vmatmul.f32.gmra.mxu3 %v10307_v16  ;;  %v524_v16 = vld [vmem:[%s16377_s2 + $0x8c8] sm:$0xff] }
 0x2cd   :  { %2104 = vmatpush.msrb.mxu1 %v524_v16  ;;  %v10517_v16 = vld [vmem:[%s16381_s6 + $0xe0] sm:$0xff] }
 0x2ce   :  { %v1329_v35 = vpop.f32.mrf.mxu0  ;;  %16628 = vst [vmem:[#allocation57_spill] sm:$0xff] %v10517_v16 }
 0x2cf   :  { %v10472_v1 = vpop.f32.mrf.mxu1  ;;  %v10477_v56 = vadd.f32 %v1329_v35, %v9693_v63  ;;  %v10492_v63 = vld [vmem:[%s16378_s0 + $0x91] sm:$0xff] }
 0x2d0   :  { %16622 = vst [vmem:[#allocation51_spill] sm:$0xff] %v10472_v1  ;;  %v10500_v45 = vpop.f32.mrf.mxu3  ;;  %v7747_v1 = vld [vmem:[%s16378_s0 + $0x40] sm:$0xff] }
 0x2d1   :  { %1669 = vmatmul.f32.gmra.mxu0 %v9613_v42  ;;  %16625 = vst [vmem:[#allocation54_spill] sm:$0xff] %v10500_v45  ;;  %v522_v45 = vld [vmem:[%s16377_s2 + $0x8b8] sm:$0xff] }
 0x2d2   :  { %1761 = vmatmul.f32.gmra.mxu1 %v7743_v53  ;;  %v10502_v53 = vpop.f32.mrf.mxu2 }
 0x2d3   :  { %16626 = vst [vmem:[#allocation55_spill] sm:$0xff] %v10502_v53  ;;  %2105 = vmatpush.msrb.mxu1 %v522_v45  ;;  %v10551_v45 = vld [vmem:[%s16381_s6 + $0xc0] sm:$0xff] }
 0x2d4   :  { %1889 = vmatmul.f32.gmra.mxu2 %v10492_v63  ;;  %1957 = vmatmul.f32.gmra.mxu3 %v10331_v36  ;;  %v10511_v36 = vld [vmem:[%s16381_s6 + $0xf0] sm:$0xff]  ;;  %16632 = vst [vmem:[#allocation61_spill] sm:$0xff] %v10551_v45 }
 0x2d5   :  { %16627 = vst [vmem:[#allocation56_spill] sm:$0xff] %v10511_v36  ;;  %2492 = vmatpush.msra.mxu2 %v10511_v36 }
 0x2d6   :  { %v10496_v35 = vpop.f32.mrf.mxu0 }
 0x2d7   :  { %v10498_v42 = vpop.f32.mrf.mxu1  ;;  %2493 = vmatpush.msra.mxu2 %v10517_v16  ;;  %v10589_v16 = vld [vmem:[%s16381_s6 + $0x90] sm:$0xff] }
 0x2d8   :  { %16624 = vst [vmem:[#allocation53_spill] sm:$0xff] %v10498_v42  ;;  %v10546_v20 = vpop.f32.mrf.mxu3 }
 0x2d9   :  { %1672 = vmatmul.f32.gmra.mxu0 %v9644_v39  ;;  %v10522_v39 = vld [vmem:[%s16378_s0 + $0x99] sm:$0xff]  ;;  %16631 = vst [vmem:[#allocation60_spill] sm:$0xff] %v10546_v20  ;;  %v10569_v20 = vld [vmem:[%s16378_s0 + $0xa1] sm:$0xff] }
 0x2da   :  { %1764 = vmatmul.f32.gmra.mxu1 %v7745_v60  ;;  %v490_v60 = vld [vmem:[%s16377_s2 + $0x7b8] sm:$0xff]  ;;  %16639 = vst [vmem:[#allocation68_spill] sm:$0xff] %v10589_v16 }
 0x2db   :  { %2013 = vmatpush.msrb.mxu0 %v490_v60  ;;  %v10554_v60 = vpop.permute.xlu0 %2195 }
 0x2dc   :  { %1892 = vmatmul.f32.gmra.mxu2 %v10522_v39  ;;  %1960 = vmatmul.f32.gmra.mxu3 %v10350_v10  ;;  %v10540_v10 = vld [vmem:[%s16381_s6 + $0xd0] sm:$0xff]  ;;  %16633 = vst [vmem:[#allocation62_spill] sm:$0xff] %v10554_v60 }
 0x2dd   :  { %16630 = vst [vmem:[#allocation59_spill] sm:$0xff] %v10540_v10  ;;  %2494 = vmatpush.msra.mxu2 %v10540_v10 }
 0x2de   :  { %v10532_v53 = vpop.f32.mrf.mxu0 }
 0x2df   :  { %v10534_v42 = vpop.f32.mrf.mxu1  ;;  %2495 = vmatpush.msra.mxu2 %v10551_v45  ;;  %v488_v45 = vld [vmem:[%s16377_s2 + $0x7a8] sm:$0xff] }
 0x2e0   :  { %16629 = vst [vmem:[#allocation58_spill] sm:$0xff] %v10534_v42  ;;  %v10556_v42 = vpop.f32.mrf.mxu2  ;;  %2014 = vmatpush.msrb.mxu0 %v488_v45  ;;  %v10604_v36 = vpop.f32.mrf.mxu3  ;;  %v10609_v45 = vld [vmem:[%s16381_s6 + $0x70] sm:$0xff] }
 0x2e1   :  { %1675 = vmatmul.f32.gmra.mxu0 %v9667_v29  ;;  %16634 = vst [vmem:[#allocation63_spill] sm:$0xff] %v10556_v42  ;;  %v10561_v29 = vld [vmem:[%s16381_s6 + $0xb0] sm:$0xff]  ;;  %v10576_v42 = vld [vmem:[%s16381_s6 + $0xa0] sm:$0xff] }
 0x2e2   :  { %1767 = vmatmul.f32.gmra.mxu1 %v7747_v1  ;;  %16635 = vst [vmem:[#allocation64_spill] sm:$0xff] %v10561_v29  ;;  %v10564_v1 = vpop.permute.xlu1 %2205  ;;  %2496 = vmatpush.msra.mxu2 %v10561_v29  ;;  %v10601_v29 = vld [vmem:[%s16381_s6 + $0x80] sm:$0xff] }
 0x2e3   :  { %16636 = vst [vmem:[#allocation65_spill] sm:$0xff] %v10564_v1 }
 0x2e4   :  { %1895 = vmatmul.f32.gmra.mxu2 %v10569_v20  ;;  %1963 = vmatmul.f32.gmra.mxu3 %v10377_v18  ;;  %16637 = vst [vmem:[#allocation66_spill] sm:$0xff] %v10576_v42  ;;  %v10591_v18 = vpop.permute.xlu2 %2215 }
 0x2e5   :  { %16640 = vst [vmem:[#allocation69_spill] sm:$0xff] %v10591_v18  ;;  %2497 = vmatpush.msra.mxu2 %v10576_v42 }
 0x2e6   :  { %v10578_v55 = vpop.f32.mrf.mxu0  ;;  %16641 = vst [vmem:[#allocation70_spill] sm:$0xff] %v10601_v29 }
 0x2e7   :  { %v10580_v10 = vpop.f32.mrf.mxu1  ;;  %2498 = vmatpush.msra.mxu2 %v10589_v16  ;;  %16642 = vst [vmem:[#allocation71_spill] sm:$0xff] %v10604_v36  ;;  %v520_v36 = vld [vmem:[%s16377_s2 + $0x8a8] sm:$0xff] }
 0x2e8   :  { %16638 = vst [vmem:[#allocation67_spill] sm:$0xff] %v10580_v10  ;;  %v7749_v10 = vld [vmem:[%s16378_s0 + $0x48] sm:$0xff]  ;;  %v10614_v42 = vpop.f32.mrf.mxu2  ;;  %2106 = vmatpush.msrb.mxu1 %v520_v36  ;;  %v10651_v36 = vld [vmem:[%s16381_s6 + $0x40] sm:$0xff]  ;;  %v10672_v30 = vpop.f32.mrf.mxu3 }
 0x2e9   :  { %1678 = vmatmul.f32.gmra.mxu0 %v9701_v40  ;;  %16643 = vst [vmem:[#allocation72_spill] sm:$0xff] %v10609_v45  ;;  %2499 = vmatpush.msra.mxu2 %v10601_v29  ;;  %v10612_v40 = vpop.permute.xlu0 %2200  ;;  %v10629_v29 = vld [vmem:[%s16381_s6 + $0x60] sm:$0xff] }
 0x2ea   :  { %1770 = vmatmul.f32.gmra.mxu1 %v7749_v10  ;;  %16644 = vst [vmem:[#allocation73_spill] sm:$0xff] %v10612_v40  ;;  %v10619_v10 = vld [vmem:[%s16378_s0 + $0xa9] sm:$0xff]  ;;  %v10641_v9 = vpop.permute.xlu1 %2210 }
 0x2eb   :  { %16645 = vst [vmem:[#allocation74_spill] sm:$0xff] %v10614_v42  ;;  %2500 = vmatpush.msra.mxu2 %v10609_v45  ;;  %v1294_v45 = vadd.f32 %v10116_v7, %v9328_v34  ;;  %v1291_v7 = vadd.f32 %v10084_v25, %v9301_v51  ;;  %v1300_v51 = vadd.f32 %v10193_v15, %v9399_v47  ;;  %v10717_v25 = vld [vmem:[%s16381_s6] sm:$0xff]  ;;  %v10733_v15 = vld [vmem:[%s16381_s6 + $0xf8] sm:$0xff] }
 0x2ec   :  { %16646 = vst [vmem:[#allocation75_spill] sm:$0xff] %v10619_v10  ;;  %1898 = vmatmul.f32.gmra.mxu2 %v10619_v10  ;;  %1966 = vmatmul.f32.gmra.mxu3 %v10401_v14  ;;  %v10639_v14 = vld [vmem:[%s16381_s6 + $0x50] sm:$0xff] }
 0x2ed   :  { %16647 = vst [vmem:[#allocation76_spill] sm:$0xff] %v10629_v29  ;;  %2501 = vmatpush.msra.mxu2 %v10629_v29  ;;  %v486_v29 = vld [vmem:[%s16377_s2 + $0x798] sm:$0xff] }
 0x2ee   :  { %v10631_v16 = vpop.f32.mrf.mxu0  ;;  %16649 = vst [vmem:[#allocation78_spill] sm:$0xff] %v10639_v14  ;;  %2015 = vmatpush.msrb.mxu0 %v486_v29  ;;  %v10677_v10 = vld [vmem:[%s16378_s0 + $0xb1] sm:$0xff]  ;;  %v10684_v29 = vld [vmem:[%s16381_s6 + $0x20] sm:$0xff] }
 0x2ef   :  { %v10633_v42 = vpop.f32.mrf.mxu1  ;;  %16650 = vst [vmem:[#allocation79_spill] sm:$0xff] %v10641_v9  ;;  %2502 = vmatpush.msra.mxu2 %v10639_v14 }
 0x2f0   :  { %16648 = vst [vmem:[#allocation77_spill] sm:$0xff] %v10633_v42  ;;  %v10653_v42 = vpop.permute.xlu2 %2220 }
 0x2f1   :  { %1681 = vmatmul.f32.gmra.mxu0 %v9735_v41  ;;  %16651 = vst [vmem:[#allocation80_spill] sm:$0xff] %v10651_v36  ;;  %v10662_v41 = vld [vmem:[%s16381_s6 + $0x30] sm:$0xff]  ;;  %2503 = vmatpush.msra.mxu2 %v10651_v36  ;;  %v10670_v14 = vpop.permute.xlu0 %2225 }
 0x2f2   :  { %1773 = vmatmul.f32.gmra.mxu1 %v7751_v46  ;;  %16652 = vst [vmem:[#allocation81_spill] sm:$0xff] %v10653_v42  ;;  %v518_v46 = vld [vmem:[%s16377_s2 + $0x898] sm:$0xff]  ;;  %v10702_v44 = vpop.permute.xlu1 %2230 }
 0x2f3   :  { %16653 = vst [vmem:[#allocation82_spill] sm:$0xff] %v10670_v14  ;;  %2504 = vmatpush.msra.mxu2 %v10662_v41  ;;  %2107 = vmatpush.msrb.mxu1 %v518_v46 }
 0x2f4   :  { %16654 = vst [vmem:[#allocation83_spill] sm:$0xff] %v10672_v30  ;;  %1901 = vmatmul.f32.gmra.mxu2 %v10677_v10  ;;  %1969 = vmatmul.f32.gmra.mxu3 %v10426_v22  ;;  %v1297_v30 = vadd.f32 %v10151_v33, %v9365_v3  ;;  %v10700_v22 = vld [vmem:[%s16381_s6 + $0x10] sm:$0xff]  ;;  %v7753_v3 = vld [vmem:[%s16378_s0 + $0x58] sm:$0xff] }
 0x2f5   :  { %16655 = vst [vmem:[#allocation84_spill] sm:$0xff] %v10677_v10  ;;  %v10695_v10 = vpop.f32.mrf.mxu2  ;;  %2505 = vmatpush.msra.mxu2 %v10684_v29 }
 0x2f6   :  { %v10686_v36 = vpop.f32.mrf.mxu0  ;;  %16657 = vst [vmem:[#allocation86_spill] sm:$0xff] %v10695_v10  ;;  %v10726_v47 = vmul.f32 %v10564_v1, %v1297_v30  ;;  %v1306_v30 = vadd.f32 %v10278_v27, %v9467_v38  ;;  %v1309_v1 = vadd.f32 %v10314_v8, %v9488_v23  ;;  %v7755_v8 = vld [vmem:[%s16378_s0 + $0x60] sm:$0xff] }
 0x2f7   :  { %v10688_v34 = vpop.f32.mrf.mxu1  ;;  %16658 = vst [vmem:[#allocation87_spill] sm:$0xff] %v10702_v44  ;;  %2506 = vmatpush.msra.mxu2 %v10700_v22 }
 0x2f8   :  { %16656 = vst [vmem:[#allocation85_spill] sm:$0xff] %v10688_v34  ;;  %v10706_v34 = vmul.f32 %v10612_v40, %v1294_v45  ;;  %v10719_v33 = vpop.permute.xlu2 %2235  ;;  %v10723_v45 = vmul.f32 %v10554_v60, %v1291_v7  ;;  %v10773_v60 = vld [vmem:[%s16381_s6 + $0xd8] sm:$0xff] }
 0x2f9   :  { %1684 = vmatmul.f32.gmra.mxu0 %v9766_v2  ;;  %16660 = vst [vmem:[#allocation89_spill] sm:$0xff] %v10719_v33  ;;  %v1303_v2 = vadd.f32 %v10234_v13, %v9433_v43  ;;  %2507 = vmatpush.msra.mxu2 %v10717_v25  ;;  %v10743_v7 = vpop.permute.xlu0 %2240  ;;  %v10748_v43 = vld [vmem:[%s16378_s0 + $0xb9] sm:$0xff]  ;;  %v10755_v13 = vld [vmem:[%s16381_s6 + $0xe8] sm:$0xff] }
 0x2fa   :  { %16659 = vst [vmem:[#allocation88_spill] sm:$0xff] %v10706_v34  ;;  %1776 = vmatmul.f32.gmra.mxu1 %v7753_v3  ;;  %v2368_v46 = vadd.f32 %v10706_v34, %v10723_v45  ;;  %v10739_v3 = vmul.f32 %v10641_v9, %v1300_v51  ;;  %v10775_v40 = vpop.permute.xlu1 %2245 }
 0x2fb   :  { %16661 = vst [vmem:[#allocation90_spill] sm:$0xff] %v10723_v45  ;;  %2532 = vmatpush.msrb.mxu2 %v10733_v15  ;;  %v10764_v27 = vmul.f32 %v10591_v18, %v1303_v2  ;;  %v1312_v2 = vadd.f32 %v10335_v50, %v9511_v12  ;;  %v10793_v18 = vld [vmem:[%s16381_s6 + $0xc8] sm:$0xff]  ;;  %v10800_v50 = vmul.f32 %v10670_v14, %v1309_v1 }
 0x2fc   :  { %16662 = vst [vmem:[#allocation91_spill] sm:$0xff] %v10726_v47  ;;  %1904 = vmatmul.f32.gmra.mxu2 %v10748_v43  ;;  %1972 = vmatmul.f32.gmra.mxu3 %v10445_v11  ;;  %v2369_v38 = vadd.f32 %v2368_v46, %v10726_v47  ;;  %v10768_v11 = vpop.f32.mrf.mxu3  ;;  %v10780_v46 = vmul.f32 %v10653_v42, %v1306_v30  ;;  %v10808_v30 = vld [vmem:[%s16381_s6 + $0xb8] sm:$0xff] }
 0x2fd   :  { %16663 = vst [vmem:[#allocation92_spill] sm:$0xff] %v10739_v3  ;;  %2533 = vmatpush.msrb.mxu2 %v10755_v13  ;;  %v10784_v23 = vpop.f32.mrf.mxu2  ;;  %v10812_v42 = vmul.f32 %v10702_v44, %v1312_v2  ;;  %v516_v2 = vld [vmem:[%s16377_s2 + $0x888] sm:$0xff]  ;;  %v1321_v14 = vadd.f32 %v10408_v57, %v9605_v24 }
 0x2fe   :  { %16664 = vst [vmem:[#allocation93_spill] sm:$0xff] %v10743_v7  ;;  %v10757_v51 = vpop.f32.mrf.mxu0  ;;  %v2370_v10 = vadd.f32 %v2369_v38, %v10739_v3  ;;  %2108 = vmatpush.msrb.mxu1 %v516_v2  ;;  %v7757_v24 = vld [vmem:[%s16378_s0 + $0x67] sm:$0xff] }
 0x2ff   :  { %v10759_v9 = vpop.f32.mrf.mxu1  ;;  %16665 = vst [vmem:[#allocation94_spill] sm:$0xff] %v10764_v27  ;;  %2534 = vmatpush.msrb.mxu2 %v10773_v60  ;;  %v7758_v57 = vld [vmem:[%s16378_s0 + $0x68] sm:$0xff] }
 0x300   :  { %16666 = vst [vmem:[#allocation95_spill] sm:$0xff] %v10768_v11  ;;  %v10795_v38 = vpop.permute.xlu2 %2250  ;;  %v2371_v12 = vadd.f32 %v2370_v10, %v10764_v27  ;;  %v1318_v10 = vadd.f32 %v10384_v48, %v9571_v59  ;;  %v514_v11 = vld [vmem:[%s16377_s2 + $0x878] sm:$0xff] }
 0x301   :  { %16667 = vst [vmem:[#allocation96_spill] sm:$0xff] %v10775_v40  ;;  %1687 = vmatmul.f32.gmra.mxu0 %v9800_v26  ;;  %v1315_v26 = vadd.f32 %v10357_v52, %v9543_v49  ;;  %2535 = vmatpush.msrb.mxu2 %v10793_v18  ;;  %v10816_v1 = vpop.permute.xlu0 %2255  ;;  %v484_v49 = vld [vmem:[%s16377_s2 + $0x788] sm:$0xff] }
 0x302   :  { %16668 = vst [vmem:[#allocation97_spill] sm:$0xff] %v10780_v46  ;;  %1779 = vmatmul.f32.gmra.mxu1 %v7755_v8  ;;  %v2372_v8 = vadd.f32 %v2371_v12, %v10780_v46  ;;  %v10824_v52 = vld [vmem:[%s16378_s0 + $0xc1] sm:$0xff]  ;;  %2016 = vmatpush.msrb.mxu0 %v484_v49  ;;  %v10851_v2 = vmul.f32 %v10743_v7, %v1318_v10  ;;  %v10866_v10 = vld [vmem:[%s16381_s6 + $0x98] sm:$0xff] }
 0x303   :  { %16669 = vst [vmem:[#allocation98_spill] sm:$0xff] %v10784_v23  ;;  %v10837_v44 = vmul.f32 %v10719_v33, %v1315_v26  ;;  %2536 = vmatpush.msrb.mxu2 %v10808_v30  ;;  %v10847_v23 = vpop.permute.xlu1 %2260  ;;  %v1324_v26 = vadd.f32 %v10430_v17, %v9634_v4  ;;  %v10873_v17 = vmul.f32 %v10775_v40, %v1321_v14  ;;  %v10882_v7 = vld [vmem:[%s16381_s6 + $0x88] sm:$0xff] }
 0x304   :  { %16670 = vst [vmem:[#allocation99_spill] sm:$0xff] %v10795_v38  ;;  %1907 = vmatmul.f32.gmra.mxu2 %v10824_v52  ;;  %1975 = vmatmul.f32.gmra.mxu3 %v10468_v32  ;;  %v2373_v12 = vadd.f32 %v2372_v8, %v10800_v50  ;;  %v10845_v32 = vld [vmem:[%s16381_s6 + $0xa8] sm:$0xff]  ;;  %v10861_v8 = vpop.f32.mrf.mxu3  ;;  %v2574_v33 = vmul.f32 %v10706_v34, %v10706_v34 }
 0x305   :  { %16671 = vst [vmem:[#allocation100_spill] sm:$0xff] %v10800_v50  ;;  %2537 = vmatpush.msrb.mxu2 %v10845_v32  ;;  %v10889_v14 = vmul.f32 %v10795_v38, %v1324_v26  ;;  %v2572_v26 = vmul.f32 %v10723_v45, %v10723_v45  ;;  %v482_v45 = vld [vmem:[%s16377_s2 + $0x778] sm:$0xff]  ;;  %2109 = vmatpush.msrb.mxu1 %v514_v11 }
 0x306   :  { %16672 = vst [vmem:[#allocation101_spill] sm:$0xff] %v10812_v42  ;;  %v10831_v59 = vpop.f32.mrf.mxu0  ;;  %v2374_v49 = vadd.f32 %v2373_v12, %v10812_v42  ;;  %2017 = vmatpush.msrb.mxu0 %v482_v45  ;;  %v10952_v45 = vld [vmem:[%s16381_s6 + $0x58] sm:$0xff] }
 0x307   :  { %16673 = vst [vmem:[#allocation102_spill] sm:$0xff] %v10816_v1  ;;  %v10833_v48 = vpop.f32.mrf.mxu1  ;;  %2538 = vmatpush.msrb.mxu2 %v10866_v10 }
 0x308   :  { %16674 = vst [vmem:[#allocation103_spill] sm:$0xff] %v10837_v44  ;;  %v10868_v12 = vpop.permute.xlu2 %2265  ;;  %v2375_v4 = vadd.f32 %v2374_v49, %v10837_v44 }
 0x309   :  { %16675 = vst [vmem:[#allocation104_spill] sm:$0xff] %v10847_v23  ;;  %1690 = vmatmul.f32.gmra.mxu0 %v7757_v24  ;;  %v1327_v24 = vadd.f32 %v10455_v62, %v9659_v0  ;;  %v10891_v40 = vpop.permute.xlu0 %2270  ;;  %v10896_v0 = vld [vmem:[%s16378_s0 + $0xc9] sm:$0xff]  ;;  %v10903_v62 = vld [vmem:[%s16381_s6 + $0x78] sm:$0xff]  ;;  %2539 = vmatpush.msrb.mxu2 %v10882_v7 }
 0x30a   :  { %16676 = vst [vmem:[#allocation105_spill] sm:$0xff] %v10851_v2  ;;  %1782 = vmatmul.f32.gmra.mxu1 %v7758_v57  ;;  %v10877_v57 = vpop.f32.mrf.mxu2  ;;  %v2376_v49 = vadd.f32 %v2375_v4, %v10851_v2  ;;  %v2576_v4 = vmul.f32 %v10726_v47, %v10726_v47  ;;  %v10926_v47 = vld [vmem:[%s16381_s6 + $0x68] sm:$0xff] }
 0x30b   :  { %16677 = vst [vmem:[#allocation106_spill] sm:$0xff] %v10861_v8  ;;  %v1333_v8 = vadd.f32 %v10496_v35, %v9727_v58  ;;  %2540 = vmatpush.msrb.mxu2 %v10903_v62  ;;  %v10939_v35 = vmul.f32 %v10847_v23, %v10477_v56  ;;  %v7815_v23 = vld [vmem:[%s16378_s0 + $0x82] sm:$0xff] }
 0x30c   :  { %16678 = vst [vmem:[#allocation107_spill] sm:$0xff] %v10868_v12  ;;  %1910 = vmatmul.f32.gmra.mxu2 %v10896_v0  ;;  %1978 = vmatmul.f32.gmra.mxu3 %v10492_v63  ;;  %v10916_v63 = vmul.f32 %v10816_v1, %v1327_v24  ;;  %v2578_v24 = vmul.f32 %v10739_v3, %v10739_v3  ;;  %v10933_v1 = vpop.permute.xlu1 %2275  ;;  %v10965_v3 = vpop.f32.mrf.mxu3 }
 0x30d   :  { %16679 = vst [vmem:[#allocation108_spill] sm:$0xff] %v10873_v17  ;;  %2541 = vmatpush.msrb.mxu2 %v10926_v47 }
 0x30e   :  { %16680 = vst [vmem:[#allocation109_spill] sm:$0xff] %v10877_v57  ;;  %v10909_v34 = vpop.f32.mrf.mxu0  ;;  %v2377_v57 = vadd.f32 %v2376_v49, %v10873_v17  ;;  %v2622_v49 = vadd.f32 %v2574_v33, %v2572_v26  ;;  %v7760_v33 = vld [vmem:[%s16378_s0 + $0x6f] sm:$0xff] }
 0x30f   :  { %16681 = vst [vmem:[#allocation110_spill] sm:$0xff] %v10889_v14  ;;  %v10911_v38 = vpop.f32.mrf.mxu1  ;;  %v7761_v26 = vld [vmem:[%s16378_s0 + $0x70] sm:$0xff]  ;;  %2542 = vmatpush.msrb.mxu2 %v10952_v45 }
 0x310   :  { %16682 = vst [vmem:[#allocation111_spill] sm:$0xff] %v10891_v40  ;;  %v2378_v58 = vadd.f32 %v2377_v57, %v10889_v14  ;;  %v2623_v56 = vadd.f32 %v2622_v49, %v2576_v4  ;;  %v2580_v57 = vmul.f32 %v10764_v27, %v10764_v27  ;;  %v10970_v4 = vld [vmem:[%s16381_s6 + $0x48] sm:$0xff]  ;;  %v2582_v27 = vmul.f32 %v10780_v46, %v10780_v46 }
 0x311   :  { %16683 = vst [vmem:[#allocation112_spill] sm:$0xff] %v10911_v38  ;;  %v1336_v38 = vadd.f32 %v10532_v53, %v9758_v31  ;;  %1693 = vmatmul.f32.gmra.mxu0 %v7760_v33  ;;  %v10956_v31 = vpop.permute.xlu2 %2280  ;;  %v10961_v33 = vmul.f32 %v10868_v12, %v1333_v8  ;;  %2543 = vmatpush.msrb.mxu2 %v10970_v4 }
 0x312   :  { %16684 = vst [vmem:[#allocation113_spill] sm:$0xff] %v10916_v63  ;;  %1785 = vmatmul.f32.gmra.mxu1 %v7761_v26  ;;  %v2379_v53 = vadd.f32 %v2378_v58, %v10916_v63  ;;  %v1339_v26 = vadd.f32 %v10578_v55, %v9790_v61  ;;  %v2624_v49 = vadd.f32 %v2623_v56, %v2578_v24  ;;  %v10981_v55 = vpop.f32.mrf.mxu2  ;;  %v10983_v58 = vpop.permute.xlu0 %2285  ;;  %v10988_v24 = vld [vmem:[%s16378_s0 + $0xd1] sm:$0xff] }
 0x313   :  { %16685 = vst [vmem:[#allocation114_spill] sm:$0xff] %v10933_v1  ;;  %v10977_v8 = vmul.f32 %v10891_v40, %v1336_v38  ;;  %v1342_v61 = vadd.f32 %v10631_v16, %v9821_v6  ;;  %v10995_v38 = vld [vmem:[%s16381_s6 + $0x38] sm:$0xff]  ;;  %v2584_v6 = vmul.f32 %v10800_v50, %v10800_v50  ;;  %v2586_v50 = vmul.f32 %v10812_v42, %v10812_v42 }
 0x314   :  { %16686 = vst [vmem:[#allocation115_spill] sm:$0xff] %v10939_v35  ;;  %v2380_v11 = vadd.f32 %v2379_v53, %v10939_v35  ;;  %1913 = vmatmul.f32.gmra.mxu2 %v10988_v24  ;;  %1981 = vmatmul.f32.gmra.mxu3 %v10522_v39  ;;  %v2625_v56 = vadd.f32 %v2624_v49, %v2580_v57  ;;  %v11011_v57 = vld [vmem:[%s16381_s6 + $0x28] sm:$0xff]  ;;  %v11015_v12 = vpop.permute.xlu1 %2290 }
 0x315   :  { %16687 = vst [vmem:[#allocation116_spill] sm:$0xff] %v10956_v31  ;;  %v11004_v40 = vmul.f32 %v10933_v1, %v1339_v26  ;;  %v1345_v39 = vadd.f32 %v10686_v36, %v9855_v37  ;;  %2544 = vmatpush.msrb.mxu2 %v10995_v38  ;;  %v11020_v26 = vmul.f32 %v10956_v31, %v1342_v61  ;;  %v7763_v36 = vld [vmem:[%s16378_s0 + $0x77] sm:$0xff]  ;;  %v480_v61 = vld [vmem:[%s16377_s2 + $0x768] sm:$0xff] }
 0x316   :  { %16688 = vst [vmem:[#allocation117_spill] sm:$0xff] %v10961_v33  ;;  %v1356_v16 = vpop.f32.mrf.mxu0  ;;  %v2381_v46 = vadd.f32 %v2380_v11, %v10961_v33  ;;  %v2626_v49 = vadd.f32 %v2625_v56, %v2582_v27  ;;  %v1348_v37 = vadd.f32 %v10757_v51, %v9898_v21  ;;  %v7764_v27 = vld [vmem:[%s16378_s0 + $0x78] sm:$0xff]  ;;  %v2588_v51 = vmul.f32 %v10837_v44, %v10837_v44 }
 0x317   :  { %16689 = vst [vmem:[#allocation118_spill] sm:$0xff] %v10965_v3  ;;  %v10999_v53 = vpop.f32.mrf.mxu1  ;;  %2545 = vmatpush.msrb.mxu2 %v11011_v57  ;;  %2018 = vmatpush.msrb.mxu0 %v480_v61  ;;  %v11048_v42 = vmul.f32 %v10983_v58, %v1345_v39  ;;  %v2590_v61 = vmul.f32 %v10851_v2, %v10851_v2 }
 0x318   :  { %16690 = vst [vmem:[#allocation119_spill] sm:$0xff] %v10977_v8  ;;  %v2382_v11 = vadd.f32 %v2381_v46, %v10977_v8  ;;  %v11033_v46 = vld [vmem:[%s16381_s6 + $0x18] sm:$0xff]  ;;  %v2627_v21 = vadd.f32 %v2626_v49, %v2584_v6  ;;  %v1351_v6 = vadd.f32 %v10831_v59, %v9935_v54  ;;  %v11055_v49 = vld [vmem:[%s16381_s6 + $0x8] sm:$0xff]  ;;  %v11062_v39 = vmul.f32 %v11015_v12, %v1348_v37 }
 0x319   :  { %16691 = vst [vmem:[#allocation120_spill] sm:$0xff] %v10983_v58  ;;  %1696 = vmatmul.f32.gmra.mxu0 %v7763_v36  ;;  %v11040_v56 = vpop.permute.xlu2 %2295  ;;  %v512_v36 = vld [vmem:[%s16377_s2 + $0x868] sm:$0xff]  ;;  %2546 = vmatpush.msrb.mxu2 %v11033_v46  ;;  %v1354_v54 = vadd.f32 %v10909_v34, %v9979_v28  ;;  %v11068_v58 = vpop.f32.mrf.mxu3  ;;  %v1357_v28 = vadd.f32 %v1356_v16, %v10007_v19  ;;  %v7766_v19 = vld [vmem:[%s16378_s0 + $0x7f] sm:$0xff] }
 0x31a   :  { %16692 = vst [vmem:[#allocation121_spill] sm:$0xff] %v11004_v40  ;;  %1788 = vmatmul.f32.gmra.mxu1 %v7764_v27  ;;  %v2383_v27 = vadd.f32 %v2382_v11, %v11004_v40  ;;  %v2628_v44 = vadd.f32 %v2627_v21, %v2586_v50  ;;  %v11066_v59 = vpop.permute.xlu0 %2300  ;;  %v2592_v21 = vmul.f32 %v10873_v17, %v10873_v17  ;;  %v7767_v16 = vld [vmem:[%s16378_s0 + $0x80] sm:$0xff] }
 0x31b   :  { %16693 = vst [vmem:[#allocation122_spill] sm:$0xff] %v11015_v12  ;;  %2110 = vmatpush.msrb.mxu1 %v512_v36  ;;  %2547 = vmatpush.msrb.mxu2 %v11055_v49 }
 0x31c   :  { %16694 = vst [vmem:[#allocation123_spill] sm:$0xff] %v11020_v26  ;;  %v2384_v11 = vadd.f32 %v2383_v27, %v11020_v26  ;;  %1984 = vmatmul.f32.gmra.mxu3 %v10569_v20  ;;  %v2629_v50 = vadd.f32 %v2628_v44, %v2588_v51  ;;  %v11078_v27 = vmul.f32 %v11040_v56, %v1351_v6  ;;  %v7765_v20 = vld [vmem:[%s16379_s3] sm:$0x3]  ;;  %v11088_v17 = vpop.permute.xlu1 %2305 }
 0x31d   :  { %16695 = vst [vmem:[#allocation124_spill] sm:$0xff] %v11040_v56  ;;  %v11084_v44 = vperm.slane %v7765_v20, 1  ;;  %v2594_v51 = vmul.f32 %v10889_v14, %v10889_v14  ;;  %v2598_v14 = vmul.f32 %v10939_v35, %v10939_v35  ;;  %v16710_v35 = vld [vmem:[#allocation17_spill] sm:$0xff] }
 0x31e   :  { %16696 = vst [vmem:[#allocation125_spill] sm:$0xff] %v11048_v42  ;;  %v1359_v36 = vpop.f32.mrf.mxu0  ;;  %v2385_v37 = vadd.f32 %v2384_v11, %v11048_v42  ;;  %v2630_v34 = vadd.f32 %v2629_v50, %v2590_v61  ;;  %v11092_v11 = vmul.f32 %v11066_v59, %v1354_v54  ;;  %v2596_v50 = vmul.f32 %v10916_v63, %v10916_v63  ;;  %v16708_v63 = vld [vmem:[#allocation75_spill] sm:$0xff] }
 0x31f   :  { %16697 = vst [vmem:[#allocation126_spill] sm:$0xff] %v11062_v39  ;;  %v11073_v2 = vpop.f32.mrf.mxu1  ;;  %v1360_v6 = vadd.f32 %v1359_v36, %v10038_v5  ;;  %v11107_v5 = vmul.f32 %v11088_v17, %v1357_v28  ;;  %v16705_v36 = vld [vmem:[#allocation13_spill] sm:$0xff] }
 0x320   :  { %16698 = vst [vmem:[#allocation127_spill] sm:$0xff] %v11066_v59  ;;  %v2386_v12 = vadd.f32 %v2385_v37, %v11062_v39  ;;  %v2631_v61 = vadd.f32 %v2630_v34, %v2592_v21  ;;  %v1383_v20 = vadd.f32 %v16705_v36, %v11084_v44 }
 0x321   :  { %16699 = vst [vmem:[#allocation128_spill] sm:$0xff] %v11068_v58  ;;  %1699 = vmatmul.f32.gmra.mxu0 %v7766_v19  ;;  %v11103_v37 = vpop.permute.xlu2 %2310  ;;  %v11133_v56 = vpop.f32.mrf.mxu3 }
 0x322   :  { %16700 = vst [vmem:[#allocation129_spill] sm:$0xff] %v11078_v27  ;;  %1791 = vmatmul.f32.gmra.mxu1 %v7767_v16  ;;  %v2387_v54 = vadd.f32 %v2386_v12, %v11078_v27  ;;  %v2632_v19 = vadd.f32 %v2631_v61, %v2594_v51  ;;  %v11115_v21 = vmul.f32 %v11103_v37, %v1360_v6  ;;  %v11117_v34 = vpop.permute.xlu0 %2315  ;;  %v478_v12 = vld [vmem:[%s16377_s2 + $0x758] sm:$0xff]  ;;  %v16709_v6 = vld [vmem:[#allocation11_spill] sm:$0xff] }
 0x323   :  { %16701 = vst [vmem:[#allocation130_spill] sm:$0xff] %v11088_v17  ;;  %2019 = vmatpush.msrb.mxu0 %v478_v12  ;;  %v2600_v51 = vmul.f32 %v10961_v33, %v10961_v33 }
 0x324   :  { %16702 = vst [vmem:[#allocation131_spill] sm:$0xff] %v11092_v11  ;;  %v2388_v16 = vadd.f32 %v2387_v54, %v11092_v11  ;;  %1987 = vmatmul.f32.gmra.mxu3 %v16708_v63  ;;  %v2633_v28 = vadd.f32 %v2632_v19, %v2596_v50  ;;  %v510_v63 = vld [vmem:[%s16377_s2 + $0x858] sm:$0xff]  ;;  %v2602_v50 = vmul.f32 %v10977_v8, %v10977_v8 }
 0x325   :  { %16703 = vst [vmem:[#allocation132_spill] sm:$0xff] %v11103_v37  ;;  %v1475_v37 = vadd.f32 %v16710_v35, %v1383_v20  ;;  %2111 = vmatpush.msrb.mxu1 %v510_v63  ;;  %v2604_v20 = vmul.f32 %v11004_v40, %v11004_v40  ;;  %v16714_v8 = vld [vmem:[#allocation84_spill] sm:$0xff] }
 0x326   :  { %16704 = vst [vmem:[#allocation133_spill] sm:$0xff] %v11107_v5  ;;  %v1362_v17 = vpop.f32.mrf.mxu0  ;;  %v2389_v61 = vadd.f32 %v2388_v16, %v11107_v5  ;;  %v2634_v59 = vadd.f32 %v2633_v28, %v2598_v14  ;;  %v7769_v14 = vld [vmem:[%s16378_s0 + $0x88] sm:$0xff] }
 0x327   :  { %16706 = vst [vmem:[#allocation13_spill] sm:$0xff] %v11115_v21  ;;  %v11123_v36 = vpop.f32.mrf.mxu1  ;;  %v1363_v54 = vadd.f32 %v1362_v17, %v16709_v6  ;;  %v7768_v17 = vld [vmem:[%s16378_s0 + $0x87] sm:$0xff] }
 0x328   :  { %16707 = vst [vmem:[#allocation134_spill] sm:$0xff] %v11117_v34  ;;  %v2390_v19 = vadd.f32 %v2389_v61, %v11115_v21  ;;  %v2635_v35 = vadd.f32 %v2634_v59, %v2600_v51  ;;  %v16713_v28 = vld [vmem:[#allocation10_spill] sm:$0xff]  ;;  %v2608_v59 = vmul.f32 %v11048_v42, %v11048_v42 }
 0x329   :  { %16711 = vst [vmem:[#allocation75_spill] sm:$0xff] %v11133_v56  ;;  %v11139_v12 = vmul.f32 %v11117_v34, %v1363_v54  ;;  %1702 = vmatmul.f32.gmra.mxu0 %v7768_v17  ;;  %v1567_v61 = vadd.f32 %v16713_v28, %v1475_v37  ;;  %v2606_v54 = vmul.f32 %v11020_v26, %v11020_v26  ;;  %v7813_v26 = vld [vmem:[%s16378_s0 + $0x7a] sm:$0xff] }
 0x32a   :  { %1794 = vmatmul.f32.gmra.mxu1 %v7769_v14  ;;  %v2636_v6 = vadd.f32 %v2635_v35, %v2602_v50  ;;  %v7770_v50 = vld [vmem:[%s16378_s0 + $0x8f] sm:$0xff]  ;;  %v11695_v56 = vld [vmem:[%s16381_s6 + $0x180] sm:$0xff] }
 0x32b   :  { %16712 = vst [vmem:[#allocation11_spill] sm:$0xff] %v11139_v12  ;;  %v2391_v16 = vadd.f32 %v2390_v19, %v11139_v12  ;;  %v2610_v19 = vmul.f32 %v11062_v39, %v11062_v39 }
 0x32c   :  { %1990 = vmatmul.f32.gmra.mxu3 %v16714_v8  ;;  %v2637_v34 = vadd.f32 %v2636_v6, %v2604_v20  ;;  %v7771_v8 = vld [vmem:[%s16378_s0 + $0x90] sm:$0xff]  ;;  %v1934_v20 = vpop.f32.mrf.mxu3  ;;  %16813 = vst [vmem:[#allocation206_spill] sm:$0xff] %v11695_v56 }
 0x32d   :  { %v2392_v63 = vrot.slane %v2391_v16, 4 }
 0x32e   :  { %v1658_v17 = vpop.f32.mrf.mxu0  ;;  %v2638_v40 = vadd.f32 %v2637_v34, %v2606_v54  ;;  %v476_v34 = vld [vmem:[%s16377_s2 + $0x748] sm:$0xff]  ;;  %v2614_v54 = vmul.f32 %v11092_v11, %v11092_v11 }
 0x32f   :  { %v1750_v33 = vpop.f32.mrf.mxu1  ;;  %v2393_v51 = vadd.f32 %v2392_v63, %v2391_v16  ;;  %v1659_v14 = vadd.f32 %v1658_v17, %v1567_v61  ;;  %2020 = vmatpush.msrb.mxu0 %v476_v34 }
 0x330   :  { %v2639_v16 = vadd.f32 %v2638_v40, %v2608_v59  ;;  %v508_v40 = vld [vmem:[%s16377_s2 + $0x848] sm:$0xff] }
 0x331   :  { %v1751_v37 = vadd.f32 %v1750_v33, %v1659_v14  ;;  %1705 = vmatmul.f32.gmra.mxu0 %v7770_v50  ;;  %v2394_v35 = vrot.slane %v2393_v51, 2  ;;  %v2612_v33 = vmul.f32 %v11078_v27, %v11078_v27  ;;  %2112 = vmatpush.msrb.mxu1 %v508_v40  ;;  %v474_v40 = vld [vmem:[%s16377_s2 + $0x738] sm:$0xff] }
 0x332   :  { %1797 = vmatmul.f32.gmra.mxu1 %v7771_v8  ;;  %v2640_v6 = vadd.f32 %v2639_v16, %v2610_v19  ;;  %v2616_v19 = vmul.f32 %v11107_v5, %v11107_v5  ;;  %v7772_v8 = vld [vmem:[%s16378_s0 + $0x97] sm:$0xff]  ;;  %v2620_v16 = vmul.f32 %v11139_v12, %v11139_v12  ;;  %2021 = vmatpush.msrb.mxu0 %v474_v40  ;;  %v7808_v12 = vld [vmem:[%s16378_s0 + $0x63] sm:$0xff]  ;;  %v7810_v5 = vld [vmem:[%s16378_s0 + $0x6b] sm:$0xff] }
 0x333   :  { %v1843_v28 = vadd.f32 %v10981_v55, %v1751_v37  ;;  %v2395_v61 = vadd.f32 %v2394_v35, %v2393_v51  ;;  %v11182_v55 = vpop.f32.mrf.mxu2  ;;  %v16716_v35 = vld [vmem:[#allocation56_spill] sm:$0xff] }
 0x334   :  { %1993 = vmatmul.f32.gmra.mxu3 %v10748_v43  ;;  %v2641_v51 = vadd.f32 %v2640_v6, %v2612_v33  ;;  %v2618_v43 = vmul.f32 %v11115_v21, %v11115_v21  ;;  %v16717_v33 = vld [vmem:[#allocation57_spill] sm:$0xff]  ;;  %v16724_v40 = vld [vmem:[#allocation72_spill] sm:$0xff] }
 0x335   :  { %v11172_v63 = vadd.f32 %v1934_v20, %v1843_v28  ;;  %v2396_v17 = vrot.slane %v2395_v61, 1  ;;  %v7773_v20 = vld [vmem:[%s16378_s0 + $0x98] sm:$0xff] }
 0x336   :  { %v11178_v59 = vpop.f32.mrf.mxu0  ;;  %v2642_v50 = vadd.f32 %v2641_v51, %v2614_v54  ;;  %v16719_v51 = vld [vmem:[#allocation61_spill] sm:$0xff] }
 0x337   :  { %16715 = vst [vmem:[#allocation17_spill] sm:$0xff] %v11172_v63  ;;  %v11180_v14 = vpop.f32.mrf.mxu1  ;;  %v2397_v37 = vadd.f32 %v2396_v17, %v2395_v61  ;;  %v16718_v61 = vld [vmem:[#allocation59_spill] sm:$0xff] }
 0x338   :  { %v2643_v34 = vadd.f32 %v2642_v50, %v2616_v19  ;;  %v506_v50 = vld [vmem:[%s16377_s2 + $0x838] sm:$0xff] }
 0x339   :  { %1708 = vmatmul.f32.gmra.mxu0 %v7772_v8  ;;  %2508 = vmatmul.f32.vlgmr.msra.gmra.mxu2 %v2397_v37  ;;  %v7775_v8 = vld [vmem:[%s16378_s0 + $0xa0] sm:$0xff] }
 0x33a   :  { %2682 = vmatpush.msra.mxu2 %v16716_v35  ;;  %1800 = vmatmul.f32.gmra.mxu1 %v7773_v20  ;;  %v2644_v28 = vadd.f32 %v2643_v34, %v2618_v43  ;;  %v16720_v43 = vld [vmem:[#allocation64_spill] sm:$0xff]  ;;  %v16721_v20 = vld [vmem:[#allocation66_spill] sm:$0xff] }
 0x33b   :  { %v11208_v19 = vpop.f32.mrf.mxu2  ;;  %2113 = vmatpush.msrb.mxu1 %v506_v50  ;;  %v16722_v34 = vld [vmem:[#allocation68_spill] sm:$0xff]  ;;  %v16726_v50 = vld [vmem:[#allocation78_spill] sm:$0xff] }
 0x33c   :  { %2683 = vmatpush.msra.mxu2 %v16717_v33  ;;  %1996 = vmatmul.f32.gmra.mxu3 %v10824_v52  ;;  %v2645_v17 = vadd.f32 %v2644_v28, %v2620_v16  ;;  %v7774_v52 = vld [vmem:[%s16378_s0 + $0x9f] sm:$0xff]  ;;  %v16723_v28 = vld [vmem:[#allocation70_spill] sm:$0xff] }
 0x33e   :  { %2684 = vmatpush.msra.mxu2 %v16718_v61  ;;  %v11200_v6 = vpop.f32.mrf.mxu0  ;;  %v2646_v35 = vrot.slane %v2645_v17, 4  ;;  %v7776_v61 = vld [vmem:[%s16378_s0 + $0xa7] sm:$0xff] }
 0x33f   :  { %v11202_v54 = vpop.f32.mrf.mxu1 }
 0x340   :  { %2685 = vmatpush.msra.mxu2 %v16719_v51  ;;  %v2647_v33 = vadd.f32 %v2646_v35, %v2645_v17  ;;  %v472_v17 = vld [vmem:[%s16377_s2 + $0x728] sm:$0xff] }
 0x341   :  { %1711 = vmatmul.f32.gmra.mxu0 %v7774_v52  ;;  %2548 = vmatmul.f32.vlgmr.msrb.gmra.mxu2 %v2397_v37  ;;  %v16725_v52 = vld [vmem:[#allocation76_spill] sm:$0xff]  ;;  %v504_v35 = vld [vmem:[%s16377_s2 + $0x828] sm:$0xff] }
 0x342   :  { %2686 = vmatpush.msra.mxu2 %v16720_v43  ;;  %1803 = vmatmul.f32.gmra.mxu1 %v7775_v8  ;;  %v2648_v51 = vrot.slane %v2647_v33, 2 }
 0x343   :  { %2022 = vmatpush.msrb.mxu0 %v472_v17  ;;  %2114 = vmatpush.msrb.mxu1 %v504_v35  ;;  %v502_v17 = vld [vmem:[%s16377_s2 + $0x818] sm:$0xff] }
 0x344   :  { %2687 = vmatpush.msra.mxu2 %v16721_v20  ;;  %1999 = vmatmul.f32.gmra.mxu3 %v10896_v0  ;;  %v7777_v0 = vld [vmem:[%s16378_s0 + $0xa8] sm:$0xff]  ;;  %v2649_v20 = vadd.f32 %v2648_v51, %v2647_v33  ;;  %v7780_v33 = vld [vmem:[%s16378_s0 + $0xd9] sm:$0xff] }
 0x345   :  { %v470_v51 = vld [vmem:[%s16377_s2 + $0x718] sm:$0xff]  ;;  %2115 = vmatpush.msrb.mxu1 %v502_v17 }
 0x346   :  { %2688 = vmatpush.msra.mxu2 %v16722_v34  ;;  %v11223_v37 = vpop.f32.mrf.mxu0  ;;  %v16727_v34 = vld [vmem:[#allocation80_spill] sm:$0xff]  ;;  %2023 = vmatpush.msrb.mxu0 %v470_v51  ;;  %v7794_v51 = vld [vmem:[%s16378_s0 + $0x2b] sm:$0xff] }
 0x347   :  { %v11225_v16 = vpop.f32.mrf.mxu1  ;;  %v7795_v17 = vld [vmem:[%s16378_s0 + $0x32] sm:$0xff] }
 0x348   :  { %2689 = vmatpush.msra.mxu2 %v16723_v28  ;;  %v7778_v28 = vld [vmem:[%s16378_s0 + $0xaf] sm:$0xff] }
 0x349   :  { %1714 = vmatmul.f32.gmra.mxu0 %v7776_v61  ;;  %v2650_v61 = vrot.slane %v2649_v20, 1 }
 0x34a   :  { %2690 = vmatpush.msra.mxu2 %v16724_v40  ;;  %1806 = vmatmul.f32.gmra.mxu1 %v7777_v0 }
 0x34c   :  { %2691 = vmatpush.msra.mxu2 %v16725_v52  ;;  %2002 = vmatmul.f32.gmra.mxu3 %v10988_v24  ;;  %v7779_v24 = vld [vmem:[%s16378_s0 + $0xb0] sm:$0xff] }
 0x34d   :  { %v7781_v52 = vld [vmem:[%s16378_s0 + $0xb7] sm:$0xff] }
 0x34e   :  { %2692 = vmatpush.msra.mxu2 %v16726_v50  ;;  %v11241_v43 = vpop.f32.mrf.mxu0  ;;  %v500_v50 = vld [vmem:[%s16377_s2 + $0x808] sm:$0xff] }
 0x34f   :  { %v11243_v8 = vpop.f32.mrf.mxu1  ;;  %2116 = vmatpush.msrb.mxu1 %v500_v50 }
 0x350   :  { %2693 = vmatpush.msra.mxu2 %v16727_v34 }
 0x351   :  { %1717 = vmatmul.f32.gmra.mxu0 %v7778_v28 }
 0x352   :  { %2694 = vmatpush.msra.mxu2 %v10662_v41  ;;  %1809 = vmatmul.f32.gmra.mxu1 %v7779_v24  ;;  %v2651_v41 = vadd.f32 %v2650_v61, %v2649_v20  ;;  %v7792_v24 = vld [vmem:[%s16378_s0 + $0x23] sm:$0xff] }
 0x354   :  { %2695 = vmatpush.msra.mxu2 %v10684_v29  ;;  %2005 = vmatmul.f32.gmra.mxu3 %v7780_v33  ;;  %v11269_v29 = vpop.f32.mrf.mxu2 }
 0x356   :  { %2696 = vmatpush.msra.mxu2 %v10700_v22  ;;  %v11261_v40 = vpop.f32.mrf.mxu0  ;;  %v468_v22 = vld [vmem:[%s16377_s2 + $0x708] sm:$0xff] }
 0x357   :  { %v11263_v0 = vpop.f32.mrf.mxu1  ;;  %2024 = vmatpush.msrb.mxu0 %v468_v22 }
 0x358   :  { %2697 = vmatpush.msra.mxu2 %v10717_v25  ;;  %v7782_v25 = vld [vmem:[%s16378_s0 + $0xb8] sm:$0xff] }
 0x359   :  { %2698 = vmatmul.f32.vlgmr.msra.gmra.mxu2 %v2651_v41  ;;  %1720 = vmatmul.f32.gmra.mxu0 %v7781_v52 }
 0x35a   :  { %2722 = vmatpush.msrb.mxu2 %v10733_v15  ;;  %1812 = vmatmul.f32.gmra.mxu1 %v7782_v25  ;;  %v7783_v15 = vld [vmem:[%s16378_s0 + $0xbf] sm:$0xff]  ;;  %v7796_v25 = vld [vmem:[%s16378_s0 + $0x33] sm:$0xff] }
 0x35c   :  { %2723 = vmatpush.msrb.mxu2 %v10755_v13  ;;  %v7784_v13 = vld [vmem:[%s16378_s0 + $0xc0] sm:$0xff] }
 0x35e   :  { %2724 = vmatpush.msrb.mxu2 %v10773_v60  ;;  %v11289_v35 = vpop.f32.mrf.mxu0 }
 0x35f   :  { %v11291_v20 = vpop.f32.mrf.mxu1 }
 0x360   :  { %2725 = vmatpush.msrb.mxu2 %v10793_v18  ;;  %v7785_v18 = vld [vmem:[%s16378_s0 + $0xc7] sm:$0xff] }
 0x361   :  { %1723 = vmatmul.f32.gmra.mxu0 %v7783_v15 }
 0x362   :  { %2726 = vmatpush.msrb.mxu2 %v10808_v30  ;;  %1815 = vmatmul.f32.gmra.mxu1 %v7784_v13  ;;  %v7786_v30 = vld [vmem:[%s16378_s0 + $0xc8] sm:$0xff]  ;;  %v7797_v13 = vld [vmem:[%s16378_s0 + $0x3a] sm:$0xff] }
 0x364   :  { %2727 = vmatpush.msrb.mxu2 %v10845_v32 }
 0x366   :  { %2728 = vmatpush.msrb.mxu2 %v10866_v10  ;;  %v11303_v60 = vpop.f32.mrf.mxu0 }
 0x367   :  { %v11305_v34 = vpop.f32.mrf.mxu1 }
 0x368   :  { %2729 = vmatpush.msrb.mxu2 %v10882_v7  ;;  %v7787_v7 = vld [vmem:[%s16378_s0 + $0xcf] sm:$0xff] }
 0x369   :  { %1726 = vmatmul.f32.gmra.mxu0 %v7785_v18  ;;  %v7798_v18 = vld [vmem:[%s16378_s0 + $0x3b] sm:$0xff] }
 0x36a   :  { %2730 = vmatpush.msrb.mxu2 %v10903_v62  ;;  %1818 = vmatmul.f32.gmra.mxu1 %v7786_v30  ;;  %v7788_v62 = vld [vmem:[%s16378_s0 + $0xd0] sm:$0xff] }
 0x36c   :  { %2731 = vmatpush.msrb.mxu2 %v10926_v47 }
 0x36e   :  { %2732 = vmatpush.msrb.mxu2 %v10952_v45  ;;  %v11317_v32 = vpop.f32.mrf.mxu0 }
 0x36f   :  { %v11319_v10 = vpop.f32.mrf.mxu1 }
 0x370   :  { %16728 = vst [vmem:[#allocation10_spill] sm:$0xff] %v11319_v10  ;;  %2733 = vmatpush.msrb.mxu2 %v10970_v4  ;;  %v11336_v4 = vpop.f32.mrf.mxu2  ;;  %v16866_v10 = vld [vmem:[#allocation85_spill] sm:$0xff] }
 0x371   :  { %1729 = vmatmul.f32.gmra.mxu0 %v7787_v7 }
 0x372   :  { %2734 = vmatpush.msrb.mxu2 %v10995_v38  ;;  %1821 = vmatmul.f32.gmra.mxu1 %v7788_v62  ;;  %v7789_v38 = vld [vmem:[%s16378_s0 + $0x1a] sm:$0xff]  ;;  %v7799_v62 = vld [vmem:[%s16378_s0 + $0x42] sm:$0xff] }
 0x374   :  { %2735 = vmatpush.msrb.mxu2 %v11011_v57  ;;  %v7790_v57 = vld [vmem:[%s16378_s0 + $0x1b] sm:$0xff] }
 0x376   :  { %2736 = vmatpush.msrb.mxu2 %v11033_v46  ;;  %v11331_v47 = vpop.f32.mrf.mxu0 }
 0x377   :  { %v11333_v45 = vpop.f32.mrf.mxu1 }
 0x378   :  { %16729 = vst [vmem:[#allocation84_spill] sm:$0xff] %v11333_v45  ;;  %2737 = vmatpush.msrb.mxu2 %v11055_v49  ;;  %v7791_v49 = vld [vmem:[%s16378_s0 + $0x22] sm:$0xff] }
 0x379   :  { %2738 = vmatmul.f32.vlgmr.msrb.gmra.mxu2 %v2651_v41  ;;  %2025 = vmatmul.f32.vlgmr.msrb.gmra.mxu0 %v7789_v38  ;;  %v7793_v41 = vld [vmem:[%s16378_s0 + $0x2a] sm:$0xff] }
 0x37a   :  { %2117 = vmatmul.f32.vlgmr.msrb.gmra.mxu1 %v7790_v57  ;;  %v7800_v38 = vld [vmem:[%s16378_s0 + $0x43] sm:$0xff] }
 0x37b   :  { %v16865_v45 = vld [vmem:[#allocation34_spill] sm:$0xff] }
 0x37e   :  { %v11344_v46 = vpop.f32.mrf.mxu0 }
 0x37f   :  { %v11346_v28 = vpop.f32.mrf.mxu1 }
 0x380   :  { %16730 = vst [vmem:[#allocation56_spill] sm:$0xff] %v11346_v28 }
 0x381   :  { %2028 = vmatmul.f32.gmra.mxu0 %v7791_v49 }
 0x382   :  { %2120 = vmatmul.f32.gmra.mxu1 %v7792_v24  ;;  %v7801_v24 = vld [vmem:[%s16378_s0 + $0x4a] sm:$0xff] }
 0x386   :  { %v11354_v61 = vpop.f32.mrf.mxu0 }
 0x387   :  { %v11356_v33 = vpop.f32.mrf.mxu1 }
 0x388   :  { %16731 = vst [vmem:[#allocation57_spill] sm:$0xff] %v11356_v33  ;;  %v16837_v33 = vld [vmem:[#allocation6_spill] sm:$0xff] }
 0x389   :  { %2031 = vmatmul.f32.gmra.mxu0 %v7793_v41  ;;  %v7802_v41 = vld [vmem:[%s16378_s0 + $0x4b] sm:$0xff] }
 0x38a   :  { %2123 = vmatmul.f32.gmra.mxu1 %v7794_v51 }
 0x38e   :  { %v11364_v52 = vpop.f32.mrf.mxu0 }
 0x38f   :  { %16732 = vst [vmem:[#allocation59_spill] sm:$0xff] %v11364_v52  ;;  %v11366_v22 = vpop.f32.mrf.mxu1  ;;  %v16829_v52 = vld [vmem:[#allocation3_spill] sm:$0xff] }
 0x390   :  { %16733 = vst [vmem:[#allocation61_spill] sm:$0xff] %v11366_v22 }
 0x391   :  { %2034 = vmatmul.f32.gmra.mxu0 %v7795_v17 }
 0x392   :  { %2126 = vmatmul.f32.gmra.mxu1 %v7796_v25  ;;  %v7803_v25 = vld [vmem:[%s16378_s0 + $0x52] sm:$0xff] }
 0x396   :  { %v11374_v50 = vpop.f32.mrf.mxu0 }
 0x397   :  { %16734 = vst [vmem:[#allocation64_spill] sm:$0xff] %v11374_v50  ;;  %v11376_v15 = vpop.f32.mrf.mxu1 }
 0x398   :  { %16735 = vst [vmem:[#allocation66_spill] sm:$0xff] %v11376_v15  ;;  %v11577_v15 = vld [vmem:[%s16381_s6 + $0x1d0] sm:$0xff] }
 0x399   :  { %2037 = vmatmul.f32.gmra.mxu0 %v7797_v13  ;;  %v7804_v13 = vld [vmem:[%s16378_s0 + $0x53] sm:$0xff]  ;;  %16779 = vst [vmem:[#allocation172_spill] sm:$0xff] %v11577_v15 }
 0x39a   :  { %2129 = vmatmul.f32.gmra.mxu1 %v7798_v18 }
 0x39e   :  { %v11384_v30 = vpop.f32.mrf.mxu0 }
 0x39f   :  { %16736 = vst [vmem:[#allocation68_spill] sm:$0xff] %v11384_v30  ;;  %v11386_v7 = vpop.f32.mrf.mxu1 }
 0x3a0   :  { %16737 = vst [vmem:[#allocation70_spill] sm:$0xff] %v11386_v7 }
 0x3a1   :  { %2040 = vmatmul.f32.gmra.mxu0 %v7799_v62 }
 0x3a2   :  { %2132 = vmatmul.f32.gmra.mxu1 %v7800_v38  ;;  %v7805_v38 = vld [vmem:[%s16378_s0 + $0x5a] sm:$0xff] }
 0x3a6   :  { %v11394_v57 = vpop.f32.mrf.mxu0 }
 0x3a7   :  { %16738 = vst [vmem:[#allocation72_spill] sm:$0xff] %v11394_v57  ;;  %v11396_v49 = vpop.f32.mrf.mxu1 }
 0x3a8   :  { %16739 = vst [vmem:[#allocation76_spill] sm:$0xff] %v11396_v49 }
 0x3a9   :  { %2043 = vmatmul.f32.gmra.mxu0 %v7801_v24  ;;  %v7806_v24 = vld [vmem:[%s16378_s0 + $0x5b] sm:$0xff] }
 0x3aa   :  { %2135 = vmatmul.f32.gmra.mxu1 %v7802_v41 }
 0x3ae   :  { %v11404_v51 = vpop.f32.mrf.mxu0 }
 0x3af   :  { %16740 = vst [vmem:[#allocation78_spill] sm:$0xff] %v11404_v51  ;;  %v11406_v17 = vpop.f32.mrf.mxu1 }
 0x3b0   :  { %16741 = vst [vmem:[#allocation80_spill] sm:$0xff] %v11406_v17 }
 0x3b1   :  { %2046 = vmatmul.f32.gmra.mxu0 %v7803_v25 }
 0x3b2   :  { %2138 = vmatmul.f32.gmra.mxu1 %v7804_v13  ;;  %v7807_v13 = vld [vmem:[%s16378_s0 + $0x62] sm:$0xff] }
 0x3b6   :  { %v11414_v18 = vpop.f32.mrf.mxu0 }
 0x3b7   :  { %16742 = vst [vmem:[#allocation135_spill] sm:$0xff] %v11414_v18  ;;  %v11416_v62 = vpop.f32.mrf.mxu1 }
 0x3b8   :  { %16743 = vst [vmem:[#allocation136_spill] sm:$0xff] %v11416_v62  ;;  %v11527_v62 = vld [vmem:[%s16381_s6 + $0x1f0] sm:$0xff] }
 0x3b9   :  { %2049 = vmatmul.f32.gmra.mxu0 %v7805_v38  ;;  %16767 = vst [vmem:[#allocation160_spill] sm:$0xff] %v11527_v62  ;;  %2512 = vmatpush.msra.mxu3 %v11527_v62  ;;  %v11545_v62 = vld [vmem:[%s16381_s6 + $0x1e0] sm:$0xff] }
 0x3ba   :  { %2141 = vmatmul.f32.gmra.mxu1 %v7806_v24  ;;  %v7809_v24 = vld [vmem:[%s16378_s0 + $0x6a] sm:$0xff]  ;;  %16771 = vst [vmem:[#allocation164_spill] sm:$0xff] %v11545_v62 }
 0x3bb   :  { %2513 = vmatpush.msra.mxu3 %v11545_v62  ;;  %v7827_v62 = vld [vmem:[%s16378_s0 + $0xb2] sm:$0xff] }
 0x3bd   :  { %2514 = vmatpush.msra.mxu3 %v11577_v15  ;;  %v7831_v15 = vld [vmem:[%s16378_s0 + $0xc2] sm:$0xff] }
 0x3be   :  { %v11424_v41 = vpop.f32.mrf.mxu0 }
 0x3bf   :  { %16744 = vst [vmem:[#allocation137_spill] sm:$0xff] %v11424_v41  ;;  %v11426_v25 = vpop.f32.mrf.mxu1 }
 0x3c0   :  { %16745 = vst [vmem:[#allocation138_spill] sm:$0xff] %v11426_v25 }
 0x3c1   :  { %2052 = vmatmul.f32.gmra.mxu0 %v7807_v13  ;;  %v11444_v13 = vpop.f32.mrf.mxu3 }
 0x3c2   :  { %2144 = vmatmul.f32.gmra.mxu1 %v7808_v12  ;;  %v7811_v12 = vld [vmem:[%s16378_s0 + $0x72] sm:$0xff] }
 0x3c6   :  { %v11434_v38 = vpop.f32.mrf.mxu0 }
 0x3c7   :  { %16746 = vst [vmem:[#allocation139_spill] sm:$0xff] %v11434_v38  ;;  %v11436_v21 = vpop.f32.mrf.mxu1 }
 0x3c8   :  { %16747 = vst [vmem:[#allocation140_spill] sm:$0xff] %v11436_v21 }
 0x3c9   :  { %2055 = vmatmul.f32.gmra.mxu0 %v7809_v24  ;;  %v7812_v24 = vld [vmem:[%s16378_s0 + $0x73] sm:$0xff]  ;;  %v11456_v39 = vpop.f32.mrf.mxu3 }
 0x3ca   :  { %2147 = vmatmul.f32.gmra.mxu1 %v7810_v5 }
 0x3ce   :  { %v11446_v11 = vpop.f32.mrf.mxu0 }
 0x3cf   :  { %16748 = vst [vmem:[#allocation141_spill] sm:$0xff] %v11446_v11  ;;  %v11448_v27 = vpop.f32.mrf.mxu1 }
 0x3d0   :  { %16749 = vst [vmem:[#allocation142_spill] sm:$0xff] %v11448_v27 }
 0x3d1   :  { %2058 = vmatmul.f32.gmra.mxu0 %v7811_v12  ;;  %v7814_v12 = vld [vmem:[%s16378_s0 + $0x7b] sm:$0xff] }
 0x3d2   :  { %2150 = vmatmul.f32.gmra.mxu1 %v7812_v24  ;;  %v11472_v24 = vpop.f32.mrf.mxu3 }
 0x3d3   :  { %16754 = vst [vmem:[#allocation147_spill] sm:$0xff] %v11472_v24 }
 0x3d6   :  { %v11458_v42 = vpop.f32.mrf.mxu0 }
 0x3d7   :  { %16750 = vst [vmem:[#allocation143_spill] sm:$0xff] %v11458_v42  ;;  %v11460_v5 = vpop.f32.mrf.mxu1 }
 0x3d8   :  { %16751 = vst [vmem:[#allocation144_spill] sm:$0xff] %v11460_v5 }
 0x3d9   :  { %2061 = vmatmul.f32.gmra.mxu0 %v7813_v26  ;;  %v7816_v26 = vld [vmem:[%s16378_s0 + $0x83] sm:$0xff] }
 0x3da   :  { %2153 = vmatmul.f32.gmra.mxu1 %v7814_v12  ;;  %v7817_v12 = vld [vmem:[%s16378_s0 + $0x8a] sm:$0xff] }
 0x3de   :  { %v11468_v31 = vpop.f32.mrf.mxu0 }
 0x3df   :  { %16752 = vst [vmem:[#allocation145_spill] sm:$0xff] %v11468_v31  ;;  %v11470_v1 = vpop.f32.mrf.mxu1 }
 0x3e0   :  { %16753 = vst [vmem:[#allocation146_spill] sm:$0xff] %v11470_v1  ;;  %v11487_v1 = vpop.f32.mrf.mxu3 }
 0x3e1   :  { %2064 = vmatmul.f32.gmra.mxu0 %v7815_v23  ;;  %16757 = vst [vmem:[#allocation150_spill] sm:$0xff] %v11487_v1  ;;  %v7818_v23 = vld [vmem:[%s16378_s0 + $0x8b] sm:$0xff] }
 0x3e2   :  { %2156 = vmatmul.f32.gmra.mxu1 %v7816_v26  ;;  %v7819_v26 = vld [vmem:[%s16378_s0 + $0x92] sm:$0xff] }
 0x3e6   :  { %v11480_v5 = vpop.f32.mrf.mxu0 }
 0x3e7   :  { %16755 = vst [vmem:[#allocation148_spill] sm:$0xff] %v11480_v5  ;;  %v11482_v27 = vpop.f32.mrf.mxu1 }
 0x3e8   :  { %16756 = vst [vmem:[#allocation149_spill] sm:$0xff] %v11482_v27  ;;  %v11499_v27 = vpop.f32.mrf.mxu2  ;;  %v11504_v5 = vpop.f32.mrf.mxu3 }
 0x3e9   :  { %2067 = vmatmul.f32.gmra.mxu0 %v7817_v12  ;;  %16760 = vst [vmem:[#allocation153_spill] sm:$0xff] %v11499_v27  ;;  %v7820_v12 = vld [vmem:[%s16378_s0 + $0x93] sm:$0xff] }
 0x3ea   :  { %2159 = vmatmul.f32.gmra.mxu1 %v7818_v23  ;;  %16761 = vst [vmem:[#allocation154_spill] sm:$0xff] %v11504_v5 }
 0x3ee   :  { %v11492_v31 = vpop.f32.mrf.mxu0 }
 0x3ef   :  { %16758 = vst [vmem:[#allocation151_spill] sm:$0xff] %v11492_v31  ;;  %v11494_v42 = vpop.f32.mrf.mxu1 }
 0x3f0   :  { %16759 = vst [vmem:[#allocation152_spill] sm:$0xff] %v11494_v42  ;;  %v7821_v42 = vld [vmem:[%s16378_s0 + $0x9a] sm:$0xff]  ;;  %v11516_v31 = vpop.f32.mrf.mxu2  ;;  %v11518_v21 = vpop.f32.mrf.mxu3 }
 0x3f1   :  { %2070 = vmatmul.f32.gmra.mxu0 %v7819_v26  ;;  %v7822_v26 = vld [vmem:[%s16378_s0 + $0x9b] sm:$0xff]  ;;  %16764 = vst [vmem:[#allocation157_spill] sm:$0xff] %v11516_v31 }
 0x3f2   :  { %2162 = vmatmul.f32.gmra.mxu1 %v7820_v12  ;;  %16765 = vst [vmem:[#allocation158_spill] sm:$0xff] %v11518_v21  ;;  %v16838_v31 = vld [vmem:[#allocation8_spill] sm:$0xff] }
 0x3f6   :  { %v11506_v11 = vpop.f32.mrf.mxu0 }
 0x3f7   :  { %16762 = vst [vmem:[#allocation155_spill] sm:$0xff] %v11506_v11  ;;  %v11508_v23 = vpop.f32.mrf.mxu1 }
 0x3f8   :  { %16763 = vst [vmem:[#allocation156_spill] sm:$0xff] %v11508_v23  ;;  %v11536_v17 = vpop.f32.mrf.mxu2  ;;  %v11547_v7 = vpop.f32.mrf.mxu3  ;;  %v16825_v23 = vld [vmem:[#allocation26_spill] sm:$0xff] }
 0x3f9   :  { %2073 = vmatmul.f32.gmra.mxu0 %v7821_v42  ;;  %v7823_v42 = vld [vmem:[%s16378_s0 + $0xa2] sm:$0xff]  ;;  %16768 = vst [vmem:[#allocation161_spill] sm:$0xff] %v11536_v17  ;;  %v16835_v17 = vld [vmem:[#allocation7_spill] sm:$0xff] }
 0x3fa   :  { %2165 = vmatmul.f32.gmra.mxu1 %v7822_v26  ;;  %v7824_v26 = vld [vmem:[%s16378_s0 + $0xa3] sm:$0xff]  ;;  %16772 = vst [vmem:[#allocation165_spill] sm:$0xff] %v11547_v7 }
 0x3fe   :  { %v11520_v12 = vpop.f32.mrf.mxu0 }
 0x3ff   :  { %v11522_v25 = vpop.f32.mrf.mxu1 }
 0x400   :  { %16766 = vst [vmem:[#allocation159_spill] sm:$0xff] %v11522_v25  ;;  %v11560_v51 = vpop.f32.mrf.mxu2  ;;  %v11565_v57 = vpop.f32.mrf.mxu3  ;;  %v16834_v25 = vld [vmem:[#allocation4_spill] sm:$0xff] }
 0x401   :  { %2076 = vmatmul.f32.gmra.mxu0 %v7823_v42  ;;  %v7825_v42 = vld [vmem:[%s16378_s0 + $0xaa] sm:$0xff]  ;;  %16775 = vst [vmem:[#allocation168_spill] sm:$0xff] %v11560_v51 }
 0x402   :  { %2168 = vmatmul.f32.gmra.mxu1 %v7824_v26  ;;  %v7826_v26 = vld [vmem:[%s16378_s0 + $0xab] sm:$0xff]  ;;  %16776 = vst [vmem:[#allocation169_spill] sm:$0xff] %v11565_v57 }
 0x403   :  { %v16832_v51 = vld [vmem:[#allocation35_spill] sm:$0xff] }
 0x406   :  { %v11538_v38 = vpop.f32.mrf.mxu0 }
 0x407   :  { %16769 = vst [vmem:[#allocation162_spill] sm:$0xff] %v11538_v38  ;;  %v11540_v49 = vpop.f32.mrf.mxu1  ;;  %v16849_v38 = vld [vmem:[#allocation19_spill] sm:$0xff] }
 0x408   :  { %16770 = vst [vmem:[#allocation163_spill] sm:$0xff] %v11540_v49  ;;  %v11583_v22 = vpop.f32.mrf.mxu2 }
 0x409   :  { %2079 = vmatmul.f32.gmra.mxu0 %v7825_v42  ;;  %v7828_v42 = vld [vmem:[%s16378_s0 + $0xb3] sm:$0xff]  ;;  %16780 = vst [vmem:[#allocation173_spill] sm:$0xff] %v11583_v22  ;;  %v16831_v22 = vld [vmem:[#allocation5_spill] sm:$0xff] }
 0x40a   :  { %2171 = vmatmul.f32.gmra.mxu1 %v7826_v26 }
 0x40e   :  { %v11556_v41 = vpop.f32.mrf.mxu0 }
 0x40f   :  { %16773 = vst [vmem:[#allocation166_spill] sm:$0xff] %v11556_v41  ;;  %v11558_v18 = vpop.f32.mrf.mxu1  ;;  %v16833_v41 = vld [vmem:[#allocation37_spill] sm:$0xff] }
 0x410   :  { %16774 = vst [vmem:[#allocation167_spill] sm:$0xff] %v11558_v18  ;;  %v11600_v7 = vpop.f32.mrf.mxu2 }
 0x411   :  { %2082 = vmatmul.f32.gmra.mxu0 %v7827_v62  ;;  %v7829_v62 = vld [vmem:[%s16378_s0 + $0xba] sm:$0xff]  ;;  %16784 = vst [vmem:[#allocation177_spill] sm:$0xff] %v11600_v7 }
 0x412   :  { %2174 = vmatmul.f32.gmra.mxu1 %v7828_v42  ;;  %v7830_v42 = vld [vmem:[%s16378_s0 + $0xbb] sm:$0xff] }
 0x416   :  { %v11570_v30 = vpop.f32.mrf.mxu0 }
 0x417   :  { %16777 = vst [vmem:[#allocation170_spill] sm:$0xff] %v11570_v30  ;;  %v11572_v26 = vpop.f32.mrf.mxu1  ;;  %v16824_v30 = vld [vmem:[#allocation23_spill] sm:$0xff] }
 0x418   :  { %16778 = vst [vmem:[#allocation171_spill] sm:$0xff] %v11572_v26  ;;  %v11588_v26 = vpop.f32.mrf.mxu3  ;;  %v1392_v49 = vadd.f32 %v16824_v30, %v11084_v44  ;;  %v1404_v30 = vadd.f32 %v16832_v51, %v11084_v44  ;;  %v11753_v51 = vld [vmem:[%s16381_s6 + $0x160] sm:$0xff] }
 0x419   :  { %2085 = vmatmul.f32.gmra.mxu0 %v7829_v62  ;;  %16781 = vst [vmem:[#allocation174_spill] sm:$0xff] %v11588_v26  ;;  %v7832_v62 = vld [vmem:[%s16378_s0 + $0xc3] sm:$0xff] }
 0x41a   :  { %2177 = vmatmul.f32.gmra.mxu1 %v7830_v42 }
 0x41e   :  { %v11590_v57 = vpop.f32.mrf.mxu0 }
 0x41f   :  { %16782 = vst [vmem:[#allocation175_spill] sm:$0xff] %v11590_v57  ;;  %v11592_v18 = vpop.f32.mrf.mxu1 }
 0x420   :  { %16783 = vst [vmem:[#allocation176_spill] sm:$0xff] %v11592_v18  ;;  %v11602_v50 = vpop.f32.mrf.mxu3  ;;  %v11611_v18 = vld [vmem:[%s16381_s6 + $0x1c0] sm:$0xff] }
 0x421   :  { %2088 = vmatmul.f32.gmra.mxu0 %v7831_v15  ;;  %16785 = vst [vmem:[#allocation178_spill] sm:$0xff] %v11602_v50  ;;  %2515 = vmatpush.msra.mxu3 %v11611_v18  ;;  %v7833_v15 = vld [vmem:[%s16378_s0 + $0xca] sm:$0xff] }
 0x422   :  { %2180 = vmatmul.f32.gmra.mxu1 %v7832_v62  ;;  %16788 = vst [vmem:[#allocation181_spill] sm:$0xff] %v11611_v18  ;;  %v7834_v62 = vld [vmem:[%s16378_s0 + $0xcb] sm:$0xff] }
 0x423   :  { %v11629_v18 = vld [vmem:[%s16381_s6 + $0x1b0] sm:$0xff] }
 0x424   :  { %16792 = vst [vmem:[#allocation185_spill] sm:$0xff] %v11629_v18  ;;  %2516 = vmatpush.msra.mxu3 %v11629_v18  ;;  %v7837_v18 = vld [vmem:[%s16378_s0 + $0xda] sm:$0xff] }
 0x426   :  { %v11604_v42 = vpop.f32.mrf.mxu0 }
 0x427   :  { %16786 = vst [vmem:[#allocation179_spill] sm:$0xff] %v11604_v42  ;;  %v11606_v26 = vpop.f32.mrf.mxu1  ;;  %v11620_v42 = vpop.f32.mrf.mxu2 }
 0x428   :  { %16787 = vst [vmem:[#allocation180_spill] sm:$0xff] %v11606_v26  ;;  %v11631_v57 = vpop.f32.mrf.mxu3 }
 0x429   :  { %2091 = vmatmul.f32.gmra.mxu0 %v7833_v15  ;;  %16789 = vst [vmem:[#allocation182_spill] sm:$0xff] %v11620_v42  ;;  %v7835_v15 = vld [vmem:[%s16378_s0 + $0xd2] sm:$0xff] }
 0x42a   :  { %2183 = vmatmul.f32.gmra.mxu1 %v7834_v62  ;;  %16793 = vst [vmem:[#allocation186_spill] sm:$0xff] %v11631_v57  ;;  %v7836_v62 = vld [vmem:[%s16378_s0 + $0xd3] sm:$0xff] }
 0x42e   :  { %v11622_v26 = vpop.f32.mrf.mxu0 }
 0x42f   :  { %16790 = vst [vmem:[#allocation183_spill] sm:$0xff] %v11622_v26  ;;  %v11624_v50 = vpop.f32.mrf.mxu1  ;;  %v11644_v42 = vpop.f32.mrf.mxu2 }
 0x430   :  { %16791 = vst [vmem:[#allocation184_spill] sm:$0xff] %v11624_v50  ;;  %v11649_v57 = vpop.f32.mrf.mxu3 }
 0x431   :  { %2094 = vmatmul.f32.gmra.mxu0 %v7835_v15  ;;  %16796 = vst [vmem:[#allocation189_spill] sm:$0xff] %v11644_v42  ;;  %v7838_v15 = vld [vmem:[%s16378_s0 + $0xdb] sm:$0xff] }
 0x432   :  { %2186 = vmatmul.f32.gmra.mxu1 %v7836_v62  ;;  %16797 = vst [vmem:[#allocation190_spill] sm:$0xff] %v11649_v57 }
 0x436   :  { %v11640_v50 = vpop.f32.mrf.mxu0 }
 0x437   :  { %16794 = vst [vmem:[#allocation187_spill] sm:$0xff] %v11640_v50  ;;  %v11642_v26 = vpop.f32.mrf.mxu1  ;;  %v11664_v50 = vpop.f32.mrf.mxu2 }
 0x438   :  { %16795 = vst [vmem:[#allocation188_spill] sm:$0xff] %v11642_v26  ;;  %v11661_v26 = vld [vmem:[%s16381_s6 + $0x1a0] sm:$0xff] }
 0x439   :  { %2097 = vmatmul.f32.gmra.mxu0 %v7837_v18  ;;  %16800 = vst [vmem:[#allocation193_spill] sm:$0xff] %v11661_v26  ;;  %2517 = vmatpush.msra.mxu3 %v11661_v26  ;;  %v11666_v18 = vpop.f32.mrf.mxu3 }
 0x43a   :  { %2189 = vmatmul.f32.gmra.mxu1 %v7838_v15  ;;  %16801 = vst [vmem:[#allocation194_spill] sm:$0xff] %v11664_v50  ;;  %v11675_v15 = vld [vmem:[%s16381_s6 + $0x190] sm:$0xff] }
 0x43b   :  { %16802 = vst [vmem:[#allocation195_spill] sm:$0xff] %v11666_v18  ;;  %2518 = vmatpush.msra.mxu3 %v11675_v15 }
 0x43c   :  { %16805 = vst [vmem:[#allocation198_spill] sm:$0xff] %v11675_v15 }
 0x43d   :  { %2519 = vmatpush.msra.mxu3 %v11695_v56  ;;  %v16822_v56 = vld [vmem:[#allocation18_spill] sm:$0xff] }
 0x43e   :  { %v11654_v21 = vpop.f32.mrf.mxu0 }
 0x43f   :  { %16798 = vst [vmem:[#allocation191_spill] sm:$0xff] %v11654_v21  ;;  %v11656_v62 = vpop.f32.mrf.mxu1 }
 0x440   :  { %16799 = vst [vmem:[#allocation192_spill] sm:$0xff] %v11656_v62  ;;  %v11678_v62 = vpop.f32.mrf.mxu2 }
 0x441   :  { %16806 = vst [vmem:[#allocation199_spill] sm:$0xff] %v11678_v62  ;;  %v11680_v21 = vpop.f32.mrf.mxu3 }
 0x442   :  { %16807 = vst [vmem:[#allocation200_spill] sm:$0xff] %v11680_v21 }
 0x446   :  { %v11668_v57 = vpop.f32.mrf.mxu0 }
 0x447   :  { %16803 = vst [vmem:[#allocation196_spill] sm:$0xff] %v11668_v57  ;;  %v11670_v42 = vpop.f32.mrf.mxu1 }
 0x448   :  { %16804 = vst [vmem:[#allocation197_spill] sm:$0xff] %v11670_v42  ;;  %v11686_v18 = vpop.f32.mrf.mxu2 }
 0x449   :  { %16810 = vst [vmem:[#allocation203_spill] sm:$0xff] %v11686_v18  ;;  %v11697_v15 = vpop.f32.mrf.mxu3 }
 0x44a   :  { %16814 = vst [vmem:[#allocation207_spill] sm:$0xff] %v11697_v15 }
 0x44e   :  { %v11682_v26 = vpop.f32.mrf.mxu0 }
 0x44f   :  { %16808 = vst [vmem:[#allocation201_spill] sm:$0xff] %v11682_v26  ;;  %v11684_v50 = vpop.f32.mrf.mxu1 }
 0x450   :  { %16809 = vst [vmem:[#allocation202_spill] sm:$0xff] %v11684_v50  ;;  %v11707_v50 = vld [vmem:[%s16381_s6 + $0x170] sm:$0xff] }
 0x451   :  { %16817 = vst [vmem:[#allocation210_spill] sm:$0xff] %v11707_v50  ;;  %2520 = vmatpush.msra.mxu3 %v11707_v50  ;;  %v16827_v50 = vld [vmem:[#allocation29_spill] sm:$0xff] }
 0x452   :  { %16841 = vst [vmem:[#allocation29_spill] sm:$0xff] %v11753_v51 }
 0x453   :  { %2521 = vmatpush.msra.mxu3 %v11753_v51  ;;  %v16852_v51 = vld [vmem:[#allocation22_spill] sm:$0xff] }
 0x456   :  { %v11688_v57 = vpop.f32.mrf.mxu0 }
 0x457   :  { %16811 = vst [vmem:[#allocation204_spill] sm:$0xff] %v11688_v57  ;;  %v11690_v42 = vpop.f32.mrf.mxu1  ;;  %v11709_v57 = vpop.f32.mrf.mxu2 }
 0x458   :  { %16812 = vst [vmem:[#allocation205_spill] sm:$0xff] %v11690_v42  ;;  %v11712_v42 = vpop.f32.mrf.mxu3 }
 0x459   :  { %16818 = vst [vmem:[#allocation211_spill] sm:$0xff] %v11709_v57  ;;  %v1395_v57 = vadd.f32 %v16825_v23, %v11084_v44  ;;  %v1407_v23 = vadd.f32 %v16833_v41, %v11084_v44  ;;  %v16842_v41 = vld [vmem:[#allocation12_spill] sm:$0xff] }
 0x45a   :  { %16819 = vst [vmem:[#allocation212_spill] sm:$0xff] %v11712_v42  ;;  %v1398_v42 = vadd.f32 %v16827_v50, %v11084_v44 }
 0x45b   :  { %v1487_v1 = vadd.f32 %v16835_v17, %v1395_v57  ;;  %v16843_v57 = vld [vmem:[#allocation43_spill] sm:$0xff] }
 0x45c   :  { %v1413_v17 = vadd.f32 %v16843_v57, %v11084_v44  ;;  %v16851_v57 = vld [vmem:[#allocation51_spill] sm:$0xff] }
 0x45d   :  { %v1579_v11 = vadd.f32 %v16849_v38, %v1487_v1  ;;  %v1422_v63 = vadd.f32 %v16851_v57, %v11084_v44  ;;  %v16858_v38 = vld [vmem:[#allocation67_spill] sm:$0xff] }
 0x45e   :  { %v11700_v21 = vpop.f32.mrf.mxu0 }
 0x45f   :  { %16815 = vst [vmem:[#allocation208_spill] sm:$0xff] %v11700_v21  ;;  %v11702_v26 = vpop.f32.mrf.mxu1  ;;  %v1386_v21 = vadd.f32 %v16822_v56, %v11084_v44  ;;  %v11726_v5 = vpop.f32.mrf.mxu2 }
 0x460   :  { %16816 = vst [vmem:[#allocation209_spill] sm:$0xff] %v11702_v26  ;;  %v16823_v26 = vld [vmem:[#allocation21_spill] sm:$0xff]  ;;  %v11733_v56 = vpop.f32.mrf.mxu3 }
 0x461   :  { %v1389_v62 = vadd.f32 %v16823_v26, %v11084_v44  ;;  %16826 = vst [vmem:[#allocation18_spill] sm:$0xff] %v11726_v5  ;;  %v1478_v7 = vadd.f32 %v16829_v52, %v1386_v21  ;;  %v1484_v5 = vadd.f32 %v16834_v25, %v1392_v49  ;;  %v16839_v52 = vld [vmem:[#allocation40_spill] sm:$0xff] }
 0x462   :  { %16830 = vst [vmem:[#allocation21_spill] sm:$0xff] %v11733_v56  ;;  %v1410_v56 = vadd.f32 %v16839_v52, %v11084_v44  ;;  %v16847_v52 = vld [vmem:[#allocation46_spill] sm:$0xff] }
 0x463   :  { %v1481_v26 = vadd.f32 %v16831_v22, %v1389_v62  ;;  %v1570_v49 = vadd.f32 %v16842_v41, %v1478_v7  ;;  %v16846_v62 = vld [vmem:[#allocation15_spill] sm:$0xff]  ;;  %v16850_v7 = vld [vmem:[#allocation49_spill] sm:$0xff] }
 0x464   :  { %v1419_v41 = vadd.f32 %v16850_v7, %v11084_v44  ;;  %v16859_v7 = vld [vmem:[#allocation77_spill] sm:$0xff] }
 0x465   :  { %v1434_v57 = vadd.f32 %v16859_v7, %v11084_v44  ;;  %v1440_v7 = vadd.f32 %v10759_v9, %v11084_v44  ;;  %v16872_v9 = vld [vmem:[#allocation36_spill] sm:$0xff] }
 0x466   :  { %v11714_v18 = vpop.f32.mrf.mxu0 }
 0x467   :  { %16820 = vst [vmem:[#allocation213_spill] sm:$0xff] %v11714_v18  ;;  %v11716_v15 = vpop.f32.mrf.mxu1  ;;  %v16828_v18 = vld [vmem:[#allocation32_spill] sm:$0xff]  ;;  %v11782_v28 = vpop.f32.mrf.mxu2 }
 0x468   :  { %16821 = vst [vmem:[#allocation214_spill] sm:$0xff] %v11716_v15  ;;  %v1401_v15 = vadd.f32 %v16828_v18, %v11084_v44  ;;  %v1490_v18 = vadd.f32 %v16837_v33, %v1398_v42  ;;  %v16844_v33 = vld [vmem:[#allocation9_spill] sm:$0xff]  ;;  %v11794_v3 = vpop.f32.mrf.mxu3 }
 0x469   :  { %v1573_v25 = vadd.f32 %v16844_v33, %v1481_v26  ;;  %v16853_v26 = vld [vmem:[#allocation25_spill] sm:$0xff]  ;;  %16860 = vst [vmem:[#allocation32_spill] sm:$0xff] %v11782_v28 }
 0x46a   :  { %v1493_v21 = vadd.f32 %v16838_v31, %v1401_v15  ;;  %v16845_v31 = vld [vmem:[#allocation14_spill] sm:$0xff]  ;;  %v1499_v15 = vadd.f32 %v16846_v62, %v1407_v23  ;;  %v1582_v27 = vadd.f32 %v16852_v51, %v1490_v18  ;;  %v16855_v23 = vld [vmem:[#allocation53_spill] sm:$0xff]  ;;  %v16861_v18 = vld [vmem:[#allocation27_spill] sm:$0xff]  ;;  %16867 = vst [vmem:[#allocation3_spill] sm:$0xff] %v11794_v3 }
 0x46b   :  { %v1496_v42 = vadd.f32 %v16845_v31, %v1404_v30  ;;  %v16854_v30 = vld [vmem:[#allocation20_spill] sm:$0xff]  ;;  %v1425_v62 = vadd.f32 %v16855_v23, %v11084_v44  ;;  %v16862_v51 = vld [vmem:[#allocation30_spill] sm:$0xff]  ;;  %v1662_v23 = vadd.f32 %v11178_v59, %v1570_v49  ;;  %v1443_v59 = vadd.f32 %v10833_v48, %v11084_v44  ;;  %v16876_v48 = vld [vmem:[#allocation39_spill] sm:$0xff] }
 0x46c   :  { %v1585_v33 = vadd.f32 %v16853_v26, %v1493_v21  ;;  %v1502_v31 = vadd.f32 %v16854_v30, %v1410_v56  ;;  %v1591_v56 = vadd.f32 %v16862_v51, %v1499_v15  ;;  %v16863_v26 = vld [vmem:[#allocation28_spill] sm:$0xff]  ;;  %v1665_v49 = vadd.f32 %v11200_v6, %v1573_v25 }
 0x46d   :  { %v1588_v21 = vadd.f32 %v16861_v18, %v1496_v42  ;;  %v16869_v42 = vld [vmem:[#allocation33_spill] sm:$0xff]  ;;  %v16870_v18 = vld [vmem:[#allocation38_spill] sm:$0xff]  ;;  %v16877_v6 = vld [vmem:[#allocation112_spill] sm:$0xff] }
 0x46e   :  { %v11742_v50 = vpop.f32.mrf.mxu0  ;;  %v1594_v15 = vadd.f32 %v16869_v42, %v1502_v31  ;;  %v1446_v25 = vadd.f32 %v16877_v6, %v11084_v44  ;;  %v1757_v6 = vadd.f32 %v11202_v54, %v1665_v49 }
 0x46f   :  { %16836 = vst [vmem:[#allocation23_spill] sm:$0xff] %v11742_v50  ;;  %v11748_v22 = vpop.f32.mrf.mxu1  ;;  %v16848_v50 = vld [vmem:[#allocation16_spill] sm:$0xff] }
 0x470   :  { %16840 = vst [vmem:[#allocation26_spill] sm:$0xff] %v11748_v22  ;;  %v1416_v22 = vadd.f32 %v16847_v52, %v11084_v44  ;;  %v1576_v58 = vadd.f32 %v16848_v50, %v1484_v5  ;;  %v16856_v52 = vld [vmem:[#allocation24_spill] sm:$0xff]  ;;  %v16857_v5 = vld [vmem:[#allocation58_spill] sm:$0xff]  ;;  %v1431_v50 = vadd.f32 %v16858_v38, %v11084_v44  ;;  %v1437_v38 = vadd.f32 %v16866_v10, %v11084_v44  ;;  %v11808_v10 = vld [vmem:[%s16381_s6 + $0x150] sm:$0xff] }
 0x471   :  { %v1505_v24 = vadd.f32 %v16856_v52, %v1413_v17  ;;  %v1428_v1 = vadd.f32 %v16857_v5, %v11084_v44  ;;  %v16864_v17 = vld [vmem:[#allocation31_spill] sm:$0xff]  ;;  %v1514_v5 = vadd.f32 %v16865_v45, %v1422_v63  ;;  %2522 = vmatpush.msra.mxu3 %v11808_v10 }
 0x472   :  { %v1508_v30 = vadd.f32 %v16863_v26, %v1416_v22  ;;  %v1511_v52 = vadd.f32 %v16864_v17, %v1419_v41  ;;  %v1517_v22 = vadd.f32 %v16870_v18, %v1425_v62  ;;  %v16873_v41 = vld [vmem:[#allocation42_spill] sm:$0xff]  ;;  %v16874_v26 = vld [vmem:[#allocation45_spill] sm:$0xff]  ;;  %v16875_v17 = vld [vmem:[#allocation48_spill] sm:$0xff]  ;;  %v1754_v18 = vadd.f32 %v11180_v14, %v1662_v23 }
 0x473   :  { %v1597_v45 = vadd.f32 %v16872_v9, %v1505_v24  ;;  %v1520_v51 = vadd.f32 %v16873_v41, %v1428_v1  ;;  %v1523_v31 = vadd.f32 %v16874_v26, %v1431_v50  ;;  %v1526_v62 = vadd.f32 %v16875_v17, %v1434_v57  ;;  %v16879_v24 = vld [vmem:[#allocation44_spill] sm:$0xff]  ;;  %v16881_v57 = vld [vmem:[#allocation55_spill] sm:$0xff] }
 0x474   :  { %v1600_v42 = vadd.f32 %v16876_v48, %v1508_v30  ;;  %v11824_v1 = vadd.f32 %v16879_v24, %v1514_v5  ;;  %v16880_v50 = vld [vmem:[#allocation52_spill] sm:$0xff]  ;;  %v1532_v41 = vadd.f32 %v16881_v57, %v1440_v7  ;;  %v16882_v26 = vld [vmem:[#allocation47_spill] sm:$0xff]  ;;  %v1671_v14 = vadd.f32 %v11241_v43, %v1579_v11  ;;  %v16887_v7 = vld [vmem:[#allocation74_spill] sm:$0xff]  ;;  %v11874_v57 = vpop.f32.mrf.mxu3 }
 0x475   :  { %v1529_v9 = vadd.f32 %v16880_v50, %v1437_v38  ;;  %v11829_v17 = vadd.f32 %v16882_v26, %v1517_v22  ;;  %v16883_v30 = vld [vmem:[#allocation63_spill] sm:$0xff]  ;;  %v1449_v38 = vadd.f32 %v10999_v53, %v11084_v44  ;;  %v1538_v22 = vadd.f32 %v16887_v7, %v1446_v25  ;;  %v11858_v53 = vpop.f32.mrf.mxu2  ;;  %v16891_v50 = vld [vmem:[#allocation86_spill] sm:$0xff]  ;;  %v16903_v7 = vld [vmem:[#allocation128_spill] sm:$0xff] }
 0x476   :  { %v11796_v28 = vpop.f32.mrf.mxu0  ;;  %v1535_v48 = vadd.f32 %v16883_v30, %v1443_v59  ;;  %v1846_v59 = vadd.f32 %v11182_v55, %v1754_v18  ;;  %v1674_v11 = vadd.f32 %v11261_v40, %v1582_v27  ;;  %v16888_v43 = vld [vmem:[#allocation71_spill] sm:$0xff]  ;;  %v1677_v24 = vadd.f32 %v11289_v35, %v1585_v33 }
 0x477   :  { %16868 = vst [vmem:[#allocation5_spill] sm:$0xff] %v11796_v28  ;;  %v11803_v63 = vpop.f32.mrf.mxu1  ;;  %v16878_v28 = vld [vmem:[#allocation41_spill] sm:$0xff]  ;;  %v11850_v49 = vadd.f32 %v16888_v43, %v1529_v9  ;;  %v16890_v55 = vld [vmem:[#allocation95_spill] sm:$0xff]  ;;  %v1849_v27 = vadd.f32 %v11208_v19, %v1757_v6  ;;  %v1680_v40 = vadd.f32 %v11303_v60, %v1588_v21  ;;  %v1541_v9 = vadd.f32 %v16891_v50, %v1449_v38  ;;  %v16893_v21 = vld [vmem:[#allocation98_spill] sm:$0xff] }
 0x478   :  { %16871 = vst [vmem:[#allocation35_spill] sm:$0xff] %v11803_v63  ;;  %v1668_v63 = vadd.f32 %v11223_v37, %v1576_v58  ;;  %v11821_v3 = vadd.f32 %v16878_v28, %v1511_v52  ;;  %v16884_v58 = vld [vmem:[#allocation50_spill] sm:$0xff]  ;;  %v16886_v52 = vld [vmem:[#allocation60_spill] sm:$0xff]  ;;  %v11863_v18 = vadd.f32 %v16890_v55, %v1535_v48  ;;  %v1686_v35 = vadd.f32 %v11331_v47, %v1594_v15  ;;  %v11919_v55 = vld [vmem:[%s16381_s6 + $0x130] sm:$0xff] }
 0x479   :  { %v11835_v37 = vadd.f32 %v16884_v58, %v1520_v51  ;;  %v16885_v28 = vld [vmem:[#allocation54_spill] sm:$0xff]  ;;  %v11841_v5 = vadd.f32 %v16886_v52, %v1526_v62  ;;  %v16889_v51 = vld [vmem:[#allocation83_spill] sm:$0xff]  ;;  %v1452_v62 = vadd.f32 %v11073_v2, %v11084_v44  ;;  %v1683_v2 = vadd.f32 %v11317_v32, %v1591_v56 }
 0x47a   :  { %v11838_v23 = vadd.f32 %v16885_v28, %v1523_v31  ;;  %v1760_v54 = vadd.f32 %v11225_v16, %v1668_v63  ;;  %v11853_v31 = vadd.f32 %v16889_v51, %v1532_v41  ;;  %v1763_v16 = vadd.f32 %v11243_v8, %v1671_v14  ;;  %v16892_v41 = vld [vmem:[#allocation106_spill] sm:$0xff]  ;;  %v16896_v14 = vld [vmem:[#allocation84_spill] sm:$0xff]  ;;  %v16906_v51 = vld [vmem:[#allocation57_spill] sm:$0xff] }
 0x47b   :  { %v1689_v33 = vadd.f32 %v11344_v46, %v1597_v45  ;;  %v11877_v26 = vadd.f32 %v16892_v41, %v1538_v22  ;;  %v1938_v19 = vadd.f32 %v11444_v13, %v1846_v59  ;;  %v1766_v60 = vadd.f32 %v11263_v0, %v1674_v11  ;;  %v16895_v0 = vld [vmem:[#allocation10_spill] sm:$0xff]  ;;  %v16904_v59 = vld [vmem:[#allocation109_spill] sm:$0xff] }
 0x47c   :  { %v1852_v8 = vadd.f32 %v11269_v29, %v1760_v54  ;;  %v1544_v30 = vadd.f32 %v16893_v21, %v1452_v62  ;;  %v1455_v32 = vadd.f32 %v11123_v36, %v11084_v44  ;;  %v1769_v47 = vadd.f32 %v11291_v20, %v1677_v24  ;;  %v16894_v29 = vld [vmem:[#allocation118_spill] sm:$0xff]  ;;  %v16897_v44 = vld [vmem:[#allocation56_spill] sm:$0xff]  ;;  %v11900_v20 = vld [vmem:[%s16381_s6 + $0x140] sm:$0xff] }
 0x47d   :  { %v1692_v46 = vadd.f32 %v11354_v61, %v1600_v42  ;;  %v1941_v56 = vadd.f32 %v11456_v39, %v1849_v27  ;;  %v1855_v15 = vadd.f32 %v11336_v4, %v1763_v16  ;;  %v1772_v45 = vadd.f32 %v11305_v34, %v1680_v40  ;;  %v16898_v39 = vld [vmem:[#allocation147_spill] sm:$0xff]  ;;  %v16899_v61 = vld [vmem:[#allocation153_spill] sm:$0xff]  ;;  %v16902_v52 = vld [vmem:[#allocation162_spill] sm:$0xff]  ;;  %2523 = vmatpush.msra.mxu3 %v11900_v20 }
 0x47e   :  { %v11860_v25 = vpop.f32.mrf.mxu0  ;;  %v2030_v13 = vadd.f32 %v11520_v12, %v1938_v19  ;;  %v11892_v48 = vadd.f32 %v16894_v29, %v1541_v9  ;;  %v1775_v6 = vadd.f32 %v16895_v0, %v1683_v2  ;;  %v1778_v58 = vadd.f32 %v16896_v14, %v1686_v35  ;;  %v16900_v42 = vld [vmem:[#allocation17_spill] sm:$0xff]  ;;  %v16901_v12 = vld [vmem:[#allocation155_spill] sm:$0xff]  ;;  %v16907_v27 = vld [vmem:[#allocation150_spill] sm:$0xff] }
 0x47f   :  { %v11868_v63 = vpop.f32.mrf.mxu1  ;;  %v1781_v36 = vadd.f32 %v16897_v44, %v1689_v33  ;;  %v1944_v4 = vadd.f32 %v16898_v39, %v1852_v8  ;;  %v1858_v34 = vadd.f32 %v16899_v61, %v1766_v60  ;;  %v2027_v28 = vadd.f32 %v16901_v12, %v16900_v42  ;;  %v16905_v11 = vld [vmem:[#allocation157_spill] sm:$0xff]  ;;  %v16909_v9 = vld [vmem:[#allocation159_spill] sm:$0xff]  ;;  %v16910_v35 = vld [vmem:[#allocation166_spill] sm:$0xff]  ;;  %2524 = vmatpush.msra.mxu3 %v11919_v55 }
 0x480   :  { %v2033_v38 = vadd.f32 %v16902_v52, %v1941_v56  ;;  %v11909_v22 = vadd.f32 %v16903_v7, %v1544_v30  ;;  %v1547_v54 = vadd.f32 %v16904_v59, %v1455_v32  ;;  %v1861_v43 = vadd.f32 %v16905_v11, %v1769_v47  ;;  %v16908_v40 = vld [vmem:[#allocation161_spill] sm:$0xff]  ;;  %v16911_v8 = vld [vmem:[#allocation168_spill] sm:$0xff]  ;;  %v16917_v14 = vld [vmem:[#allocation163_spill] sm:$0xff]  ;;  %v11952_v7 = vpop.f32.mrf.mxu3 }
 0x481   :  { %v1784_v62 = vadd.f32 %v16906_v51, %v1692_v46  ;;  %v1947_v16 = vadd.f32 %v16907_v27, %v1855_v15  ;;  %v1864_v50 = vadd.f32 %v16908_v40, %v1772_v45  ;;  %v2122_v2 = vadd.f32 %v16909_v9, %v2030_v13  ;;  %v11931_v19 = vld [vmem:[%s16381_s6 + $0x120] sm:$0xff]  ;;  %v16914_v46 = vld [vmem:[#allocation59_spill] sm:$0xff]  ;;  %v11938_v15 = vpop.f32.mrf.mxu2  ;;  %v16915_v45 = vld [vmem:[#allocation154_spill] sm:$0xff] }
 0x482   :  { %v2036_v33 = vadd.f32 %v16910_v35, %v1944_v4  ;;  %v1867_v60 = vadd.f32 %v16911_v8, %v1775_v6  ;;  %v16912_v21 = vld [vmem:[#allocation173_spill] sm:$0xff]  ;;  %v1695_v56 = vadd.f32 %v16914_v46, %v11821_v3  ;;  %v1950_v13 = vadd.f32 %v16915_v45, %v1858_v34  ;;  %v16916_v29 = vld [vmem:[#allocation156_spill] sm:$0xff]  ;;  %v16918_v39 = vld [vmem:[#allocation170_spill] sm:$0xff]  ;;  %2525 = vmatpush.msra.mxu3 %v11931_v19 }
 0x483   :  { %v1870_v30 = vadd.f32 %v16912_v21, %v1778_v58  ;;  %v16913_v32 = vld [vmem:[#allocation177_spill] sm:$0xff]  ;;  %v2119_v0 = vadd.f32 %v16916_v29, %v2027_v28  ;;  %v2125_v44 = vadd.f32 %v16917_v14, %v2033_v38  ;;  %v2039_v4 = vadd.f32 %v16918_v39, %v1947_v16  ;;  %v16919_v6 = vld [vmem:[#allocation75_spill] sm:$0xff]  ;;  %v16920_v58 = vld [vmem:[#allocation158_spill] sm:$0xff] }
 0x484   :  { %v1873_v47 = vadd.f32 %v16913_v32, %v1781_v36  ;;  %v11946_v61 = vadd.f32 %v16919_v6, %v1547_v54  ;;  %v1953_v36 = vadd.f32 %v16920_v58, %v1861_v43  ;;  %v16921_v42 = vld [vmem:[#allocation182_spill] sm:$0xff]  ;;  %v16922_v3 = vld [vmem:[#allocation64_spill] sm:$0xff]  ;;  %v11957_v34 = vld [vmem:[%s16381_s6 + $0x110] sm:$0xff] }
 0x485   :  { %v1876_v12 = vadd.f32 %v16921_v42, %v1784_v62  ;;  %v1698_v52 = vadd.f32 %v16922_v3, %v11824_v1  ;;  %v16923_v28 = vld [vmem:[#allocation165_spill] sm:$0xff]  ;;  %v16926_v54 = vld [vmem:[#allocation167_spill] sm:$0xff]  ;;  %2526 = vmatpush.msra.mxu3 %v11957_v34  ;;  %v16929_v16 = vld [vmem:[#allocation174_spill] sm:$0xff] }
 0x486   :  { %v11914_v24 = vpop.f32.mrf.mxu0  ;;  %v1956_v38 = vadd.f32 %v16923_v28, %v1864_v50  ;;  %v16924_v59 = vld [vmem:[#allocation73_spill] sm:$0xff]  ;;  %v2128_v51 = vadd.f32 %v16926_v54, %v2036_v33  ;;  %v16927_v43 = vld [vmem:[#allocation175_spill] sm:$0xff]  ;;  %v1962_v40 = vadd.f32 %v16929_v16, %v1870_v30  ;;  %v16930_v9 = vld [vmem:[#allocation178_spill] sm:$0xff] }
 0x487   :  { %v11925_v41 = vpop.f32.mrf.mxu1  ;;  %v11961_v11 = vmul.f32 %v16924_v59, %v2122_v2  ;;  %v2042_v27 = vadd.f32 %v16927_v43, %v1950_v13  ;;  %v16928_v62 = vld [vmem:[#allocation169_spill] sm:$0xff]  ;;  %v1965_v35 = vadd.f32 %v16930_v9, %v1873_v47  ;;  %v16932_v2 = vld [vmem:[#allocation62_spill] sm:$0xff]  ;;  %v16936_v45 = vld [vmem:[#allocation171_spill] sm:$0xff] }
 0x488   :  { %v1959_v1 = vadd.f32 %v16928_v62, %v1867_v60  ;;  %v16931_v8 = vld [vmem:[#allocation61_spill] sm:$0xff]  ;;  %v11976_v32 = vmul.f32 %v16932_v2, %v2119_v0  ;;  %v2131_v13 = vadd.f32 %v16936_v45, %v2039_v4  ;;  %v16937_v60 = vld [vmem:[#allocation179_spill] sm:$0xff]  ;;  %v11987_v30 = vld [vmem:[%s16381_s6 + $0x1f8] sm:$0xff] }
 0x489   :  { %16925 = vst [vmem:[#allocation37_spill] sm:$0xff] %v11961_v11  ;;  %v1787_v21 = vadd.f32 %v16931_v8, %v1695_v56  ;;  %v11973_v50 = vld [vmem:[%s16381_s6 + $0x100] sm:$0xff]  ;;  %v2045_v29 = vadd.f32 %v16937_v60, %v1953_v36  ;;  %v16938_v47 = vld [vmem:[#allocation186_spill] sm:$0xff]  ;;  %v16940_v0 = vld [vmem:[#allocation68_spill] sm:$0xff] }
 0x48a   :  { %16933 = vst [vmem:[#allocation4_spill] sm:$0xff] %v11976_v32  ;;  %v16934_v33 = vld [vmem:[#allocation65_spill] sm:$0xff]  ;;  %2527 = vmatpush.msra.mxu3 %v11973_v50  ;;  %v1968_v56 = vadd.f32 %v16938_v47, %v1876_v12  ;;  %v16939_v14 = vld [vmem:[#allocation66_spill] sm:$0xff]  ;;  %v1701_v6 = vadd.f32 %v16940_v0, %v11829_v17  ;;  %v2398_v36 = vadd.f32 %v11961_v11, %v11976_v32  ;;  %v16942_v42 = vld [vmem:[#allocation79_spill] sm:$0xff] }
 0x48b   :  { %v11979_v46 = vmul.f32 %v16934_v33, %v2125_v44  ;;  %v1790_v39 = vadd.f32 %v16939_v14, %v1698_v52  ;;  %v16941_v44 = vld [vmem:[#allocation72_spill] sm:$0xff]  ;;  %v12001_v3 = vmul.f32 %v16942_v42, %v2128_v51  ;;  %v16944_v54 = vld [vmem:[#allocation183_spill] sm:$0xff]  ;;  %v12010_v17 = vld [vmem:[%s16381_s6 + $0x1e8] sm:$0xff]  ;;  %v12054_v33 = vpop.f32.mrf.mxu3 }
 0x48c   :  { %v1704_v58 = vadd.f32 %v16941_v44, %v11835_v37  ;;  %2552 = vmatpush.msrb.mxu3 %v11987_v30  ;;  %v16943_v28 = vld [vmem:[#allocation176_spill] sm:$0xff]  ;;  %v2048_v52 = vadd.f32 %v16944_v54, %v1956_v38  ;;  %v16945_v37 = vld [vmem:[#allocation189_spill] sm:$0xff]  ;;  %v16946_v16 = vld [vmem:[#allocation78_spill] sm:$0xff] }
 0x48d   :  { %16935 = vst [vmem:[#allocation7_spill] sm:$0xff] %v11979_v46  ;;  %v2134_v12 = vadd.f32 %v16943_v28, %v2042_v27  ;;  %v1879_v62 = vadd.f32 %v16945_v37, %v1787_v21  ;;  %v1707_v9 = vadd.f32 %v16946_v16, %v11838_v23  ;;  %v16947_v8 = vld [vmem:[#allocation135_spill] sm:$0xff]  ;;  %v16948_v45 = vld [vmem:[#allocation137_spill] sm:$0xff]  ;;  %v2399_v38 = vadd.f32 %v2398_v36, %v11979_v46  ;;  %v16950_v14 = vld [vmem:[#allocation180_spill] sm:$0xff] }
 0x48e   :  { %v11995_v4 = vpop.f32.mrf.mxu0  ;;  %v1710_v51 = vadd.f32 %v16947_v8, %v11841_v5  ;;  %v1713_v27 = vadd.f32 %v16948_v45, %v11850_v49  ;;  %2553 = vmatpush.msrb.mxu3 %v12010_v17  ;;  %v16949_v60 = vld [vmem:[#allocation69_spill] sm:$0xff]  ;;  %v2137_v0 = vadd.f32 %v16950_v14, %v2045_v29  ;;  %v16951_v44 = vld [vmem:[#allocation187_spill] sm:$0xff]  ;;  %v12029_v23 = vld [vmem:[%s16381_s6 + $0x1d8] sm:$0xff]  ;;  %v12031_v5 = vpop.f32.mrf.mxu2 }
 0x48f   :  { %v12005_v43 = vpop.f32.mrf.mxu1  ;;  %v12022_v47 = vmul.f32 %v16949_v60, %v2131_v13  ;;  %v2051_v21 = vadd.f32 %v16951_v44, %v1959_v1  ;;  %16952 = vst [vmem:[#allocation6_spill] sm:$0xff] %v12029_v23  ;;  %v16953_v28 = vld [vmem:[#allocation194_spill] sm:$0xff]  ;;  %v16955_v16 = vld [vmem:[#allocation76_spill] sm:$0xff]  ;;  %v16956_v13 = vld [vmem:[#allocation139_spill] sm:$0xff]  ;;  %v2400_v1 = vadd.f32 %v2399_v38, %v12001_v3 }
 0x490   :  { %v1882_v49 = vadd.f32 %v16953_v28, %v1790_v39  ;;  %v16954_v54 = vld [vmem:[#allocation70_spill] sm:$0xff]  ;;  %v1796_v36 = vadd.f32 %v16955_v16, %v1704_v58  ;;  %v1716_v8 = vadd.f32 %v16956_v13, %v11853_v31  ;;  %2554 = vmatpush.msrb.mxu3 %v12029_v23  ;;  %v16957_v29 = vld [vmem:[#allocation81_spill] sm:$0xff]  ;;  %v16958_v14 = vld [vmem:[#allocation184_spill] sm:$0xff] }
 0x491   :  { %v1793_v37 = vadd.f32 %v16954_v54, %v1701_v6  ;;  %v12041_v45 = vmul.f32 %v16957_v29, %v2134_v12  ;;  %v2140_v44 = vadd.f32 %v16958_v14, %v2048_v52  ;;  %v16959_v60 = vld [vmem:[#allocation191_spill] sm:$0xff]  ;;  %v12048_v39 = vld [vmem:[%s16381_s6 + $0x1c8] sm:$0xff]  ;;  %v16962_v28 = vld [vmem:[#allocation80_spill] sm:$0xff]  ;;  %v2401_v12 = vadd.f32 %v2400_v1, %v12022_v47 }
 0x492   :  { %v2054_v42 = vadd.f32 %v16959_v60, %v1962_v40  ;;  %16960 = vst [vmem:[#allocation8_spill] sm:$0xff] %v12048_v39  ;;  %v16961_v6 = vld [vmem:[#allocation190_spill] sm:$0xff]  ;;  %v1799_v31 = vadd.f32 %v16962_v28, %v1707_v9  ;;  %v16963_v54 = vld [vmem:[#allocation136_spill] sm:$0xff]  ;;  %2555 = vmatpush.msrb.mxu3 %v12048_v39  ;;  %v16969_v9 = vld [vmem:[#allocation195_spill] sm:$0xff] }
 0x493   :  { %v1971_v58 = vadd.f32 %v16961_v6, %v1879_v62  ;;  %v1802_v16 = vadd.f32 %v16963_v54, %v1710_v51  ;;  %v16964_v13 = vld [vmem:[#allocation138_spill] sm:$0xff]  ;;  %v16966_v60 = vld [vmem:[#allocation188_spill] sm:$0xff]  ;;  %v1974_v51 = vadd.f32 %v16969_v9, %v1882_v49  ;;  %v16971_v28 = vld [vmem:[#allocation203_spill] sm:$0xff] }
 0x494   :  { %v1805_v38 = vadd.f32 %v16964_v13, %v1713_v27  ;;  %v16965_v40 = vld [vmem:[#allocation82_spill] sm:$0xff]  ;;  %v2143_v14 = vadd.f32 %v16966_v60, %v2051_v21  ;;  %v16967_v29 = vld [vmem:[#allocation196_spill] sm:$0xff]  ;;  %v16970_v27 = vld [vmem:[#allocation199_spill] sm:$0xff]  ;;  %v1888_v54 = vadd.f32 %v16971_v28, %v1796_v36 }
 0x495   :  { %v12059_v52 = vmul.f32 %v16965_v40, %v2137_v0  ;;  %v2057_v59 = vadd.f32 %v16967_v29, %v1965_v35  ;;  %v12066_v62 = vld [vmem:[%s16381_s6 + $0x1b8] sm:$0xff]  ;;  %v1885_v6 = vadd.f32 %v16970_v27, %v1793_v37  ;;  %v2402_v0 = vadd.f32 %v2401_v12, %v12041_v45  ;;  %v16973_v35 = vld [vmem:[#allocation87_spill] sm:$0xff]  ;;  %v16975_v40 = vld [vmem:[#allocation201_spill] sm:$0xff] }
 0x496   :  { %16968 = vst [vmem:[#allocation40_spill] sm:$0xff] %v12066_v62  ;;  %v16972_v13 = vld [vmem:[#allocation140_spill] sm:$0xff]  ;;  %v12072_v2 = vpop.f32.mrf.mxu0  ;;  %2556 = vmatpush.msrb.mxu3 %v12066_v62  ;;  %v12077_v21 = vmul.f32 %v16973_v35, %v2140_v44  ;;  %v2060_v39 = vadd.f32 %v16975_v40, %v1968_v56  ;;  %v12086_v37 = vld [vmem:[%s16381_s6 + $0x1a8] sm:$0xff]  ;;  %v16977_v36 = vld [vmem:[#allocation211_spill] sm:$0xff] }
 0x497   :  { %v1808_v1 = vadd.f32 %v16972_v13, %v1716_v8  ;;  %v16974_v29 = vld [vmem:[#allocation192_spill] sm:$0xff]  ;;  %v12081_v49 = vpop.f32.mrf.mxu1  ;;  %16976 = vst [vmem:[#allocation12_spill] sm:$0xff] %v12086_v37  ;;  %v1891_v8 = vadd.f32 %v16977_v36, %v1799_v31  ;;  %v16978_v9 = vld [vmem:[#allocation18_spill] sm:$0xff]  ;;  %v16980_v44 = vld [vmem:[#allocation141_spill] sm:$0xff]  ;;  %v2403_v56 = vadd.f32 %v2402_v0, %v12059_v52 }
 0x498   :  { %v2146_v60 = vadd.f32 %v16974_v29, %v2054_v42  ;;  %v1894_v27 = vadd.f32 %v16978_v9, %v1802_v16  ;;  %v16979_v28 = vld [vmem:[#allocation32_spill] sm:$0xff]  ;;  %v1719_v13 = vadd.f32 %v16980_v44, %v11863_v18  ;;  %2557 = vmatpush.msrb.mxu3 %v12086_v37  ;;  %v16981_v42 = vld [vmem:[#allocation89_spill] sm:$0xff]  ;;  %v16986_v36 = vld [vmem:[#allocation207_spill] sm:$0xff] }
 0x499   :  { %v1897_v12 = vadd.f32 %v16979_v28, %v1805_v38  ;;  %v12096_v40 = vmul.f32 %v16981_v42, %v2143_v14  ;;  %v16982_v29 = vld [vmem:[#allocation197_spill] sm:$0xff]  ;;  %v16983_v62 = vld [vmem:[#allocation204_spill] sm:$0xff]  ;;  %v1980_v18 = vadd.f32 %v16986_v36, %v1888_v54  ;;  %v1900_v9 = vadd.f32 %v11858_v53, %v1808_v1  ;;  %v16987_v0 = vld [vmem:[#allocation143_spill] sm:$0xff]  ;;  %v1908_v53 = vpop.f32.mrf.mxu2 }
 0x49a   :  { %v2149_v35 = vadd.f32 %v16982_v29, %v2057_v59  ;;  %v2063_v23 = vadd.f32 %v16983_v62, %v1971_v58  ;;  %v12103_v31 = vld [vmem:[%s16381_s6 + $0x198] sm:$0xff]  ;;  %v1722_v28 = vadd.f32 %v16987_v0, %v11877_v26  ;;  %v2404_v59 = vadd.f32 %v2403_v56, %v12077_v21  ;;  %v16988_v14 = vld [vmem:[#allocation93_spill] sm:$0xff]  ;;  %v16989_v62 = vld [vmem:[#allocation202_spill] sm:$0xff] }
 0x49b   :  { %16984 = vst [vmem:[#allocation43_spill] sm:$0xff] %v12103_v31  ;;  %v16985_v16 = vld [vmem:[#allocation200_spill] sm:$0xff]  ;;  %2558 = vmatpush.msrb.mxu3 %v12103_v31  ;;  %v12113_v58 = vmul.f32 %v16988_v14, %v2146_v60  ;;  %v2152_v44 = vadd.f32 %v16989_v62, %v2060_v39  ;;  %v16992_v26 = vld [vmem:[#allocation21_spill] sm:$0xff]  ;;  %v16993_v36 = vld [vmem:[#allocation3_spill] sm:$0xff] }
 0x49c   :  { %v1977_v38 = vadd.f32 %v16985_v16, %v1885_v6  ;;  %v16990_v29 = vld [vmem:[#allocation208_spill] sm:$0xff]  ;;  %v12120_v6 = vld [vmem:[%s16381_s6 + $0x188] sm:$0xff]  ;;  %v1986_v16 = vadd.f32 %v16992_v26, %v1894_v27  ;;  %v1989_v0 = vadd.f32 %v16993_v36, %v1897_v12  ;;  %v2405_v39 = vadd.f32 %v2404_v59, %v12096_v40  ;;  %v16996_v62 = vld [vmem:[#allocation205_spill] sm:$0xff]  ;;  %v12142_v59 = vpop.f32.mrf.mxu3 }
 0x49d   :  { %v2066_v42 = vadd.f32 %v16990_v29, %v1974_v51  ;;  %v16991_v54 = vld [vmem:[#allocation212_spill] sm:$0xff]  ;;  %v16994_v56 = vld [vmem:[#allocation142_spill] sm:$0xff]  ;;  %2559 = vmatpush.msrb.mxu3 %v12120_v6  ;;  %v2155_v29 = vadd.f32 %v16996_v62, %v2063_v23  ;;  %v16997_v14 = vld [vmem:[#allocation213_spill] sm:$0xff]  ;;  %v1992_v27 = vadd.f32 %v11874_v57, %v1900_v9 }
 0x49e   :  { %v1983_v1 = vadd.f32 %v16991_v54, %v1891_v8  ;;  %v1811_v31 = vadd.f32 %v16994_v56, %v1719_v13  ;;  %v16995_v60 = vld [vmem:[#allocation96_spill] sm:$0xff]  ;;  %v2069_v37 = vadd.f32 %v16997_v14, %v1977_v38  ;;  %v16999_v54 = vld [vmem:[#allocation145_spill] sm:$0xff]  ;;  %v12146_v23 = vpop.f32.mrf.mxu0  ;;  %v2406_v38 = vadd.f32 %v2405_v39, %v12113_v58  ;;  %v17000_v14 = vld [vmem:[#allocation99_spill] sm:$0xff] }
 0x49f   :  { %v12129_v51 = vmul.f32 %v16995_v60, %v2149_v35  ;;  %v12136_v8 = vld [vmem:[%s16381_s6 + $0x178] sm:$0xff]  ;;  %v1725_v26 = vadd.f32 %v16999_v54, %v11892_v48  ;;  %v2575_v35 = vmul.f32 %v11961_v11, %v11961_v11  ;;  %v12151_v36 = vmul.f32 %v17000_v14, %v2152_v44  ;;  %v17001_v57 = vld [vmem:[#allocation209_spill] sm:$0xff]  ;;  %v12155_v62 = vpop.f32.mrf.mxu1  ;;  %v12160_v48 = vld [vmem:[%s16381_s6 + $0x168] sm:$0xff] }
 0x4a0   :  { %v16998_v12 = vld [vmem:[#allocation144_spill] sm:$0xff]  ;;  %2560 = vmatpush.msrb.mxu3 %v12136_v8  ;;  %v2158_v9 = vadd.f32 %v17001_v57, %v2066_v42  ;;  %v2573_v44 = vmul.f32 %v11976_v32, %v11976_v32  ;;  %v2577_v42 = vmul.f32 %v11979_v46, %v11979_v46  ;;  %v17004_v39 = vld [vmem:[#allocation102_spill] sm:$0xff]  ;;  %v17006_v11 = vld [vmem:[#allocation5_spill] sm:$0xff] }
 0x4a1   :  { %v1814_v13 = vadd.f32 %v16998_v12, %v1722_v28  ;;  %v17002_v28 = vld [vmem:[#allocation23_spill] sm:$0xff]  ;;  %v1903_v12 = vadd.f32 %v11938_v15, %v1811_v31  ;;  %v17003_v54 = vld [vmem:[#allocation148_spill] sm:$0xff]  ;;  %v12172_v57 = vmul.f32 %v17004_v39, %v2155_v29  ;;  %v2075_v15 = vadd.f32 %v17006_v11, %v1983_v1  ;;  %v17009_v11 = vld [vmem:[#allocation26_spill] sm:$0xff] }
 0x4a2   :  { %v2072_v56 = vadd.f32 %v17002_v28, %v1980_v18  ;;  %v1728_v60 = vadd.f32 %v17003_v54, %v11909_v22  ;;  %2561 = vmatpush.msrb.mxu3 %v12160_v48  ;;  %v2407_v18 = vadd.f32 %v2406_v38, %v12129_v51  ;;  %v17005_v28 = vld [vmem:[#allocation214_spill] sm:$0xff]  ;;  %v12179_v22 = vld [vmem:[%s16381_s6 + $0x158] sm:$0xff]  ;;  %v2652_v32 = vadd.f32 %v2575_v35, %v2573_v44 }
 0x4a3   :  { %v2161_v14 = vadd.f32 %v17005_v28, %v2069_v37  ;;  %v1906_v31 = vadd.f32 %v12031_v5, %v1814_v13  ;;  %v17007_v54 = vld [vmem:[#allocation146_spill] sm:$0xff]  ;;  %v2579_v38 = vmul.f32 %v12001_v3, %v12001_v3  ;;  %v17008_v37 = vld [vmem:[#allocation104_spill] sm:$0xff]  ;;  %v2078_v39 = vadd.f32 %v11860_v25, %v1986_v16  ;;  %v17012_v25 = vld [vmem:[#allocation35_spill] sm:$0xff] }
 0x4a4   :  { %v1817_v46 = vadd.f32 %v17007_v54, %v1725_v26  ;;  %2562 = vmatpush.msrb.mxu3 %v12179_v22  ;;  %v2408_v29 = vadd.f32 %v2407_v18, %v12151_v36  ;;  %v12188_v28 = vmul.f32 %v17008_v37, %v2158_v9  ;;  %v2164_v1 = vadd.f32 %v17009_v11, %v2072_v56  ;;  %v12195_v5 = vld [vmem:[%s16381_s6 + $0x148] sm:$0xff]  ;;  %v17010_v26 = vld [vmem:[#allocation149_spill] sm:$0xff]  ;;  %v17011_v56 = vld [vmem:[#allocation107_spill] sm:$0xff] }
 0x4a5   :  { %v1995_v13 = vadd.f32 %v11952_v7, %v1903_v12  ;;  %v1820_v35 = vadd.f32 %v17010_v26, %v1728_v60  ;;  %v2653_v44 = vadd.f32 %v2652_v32, %v2577_v42  ;;  %v2581_v18 = vmul.f32 %v12022_v47, %v12022_v47  ;;  %v12211_v7 = vld [vmem:[%s16381_s6 + $0x138] sm:$0xff]  ;;  %v12216_v32 = vld [vmem:[%s16381_s6 + $0x128] sm:$0xff]  ;;  %v1911_v60 = vpop.f32.mrf.mxu2 }
 0x4a6   :  { %2563 = vmatpush.msrb.mxu3 %v12195_v5  ;;  %v2409_v9 = vadd.f32 %v2408_v29, %v12172_v57  ;;  %v12204_v54 = vmul.f32 %v17011_v56, %v2161_v14  ;;  %v2167_v16 = vadd.f32 %v17012_v25, %v2075_v15  ;;  %v2081_v11 = vadd.f32 %v11914_v24, %v1989_v0  ;;  %v2092_v29 = vpop.f32.mrf.mxu0  ;;  %v17013_v0 = vld [vmem:[#allocation111_spill] sm:$0xff] }
 0x4a7   :  { %v1998_v12 = vadd.f32 %v12054_v33, %v1906_v31  ;;  %v1909_v42 = vadd.f32 %v1908_v53, %v1817_v46  ;;  %v2654_v14 = vadd.f32 %v2653_v44, %v2579_v38  ;;  %v2583_v15 = vmul.f32 %v12041_v45, %v12041_v45  ;;  %v2184_v37 = vpop.f32.mrf.mxu1  ;;  %v12231_v33 = vld [vmem:[%s16381_s6 + $0x118] sm:$0xff]  ;;  %v2003_v53 = vpop.f32.mrf.mxu3  ;;  %v17014_v31 = vld [vmem:[#allocation151_spill] sm:$0xff] }
 0x4a8   :  { %2564 = vmatpush.msrb.mxu3 %v12211_v7  ;;  %v2410_v24 = vadd.f32 %v2409_v9, %v12188_v28  ;;  %v12224_v26 = vmul.f32 %v17013_v0, %v2164_v1  ;;  %v2170_v25 = vadd.f32 %v11868_v63, %v2078_v39  ;;  %v2084_v56 = vadd.f32 %v11995_v4, %v1992_v27  ;;  %v17015_v4 = vld [vmem:[#allocation114_spill] sm:$0xff] }
 0x4a9   :  { %v1912_v46 = vadd.f32 %v1911_v60, %v1820_v35  ;;  %v1731_v38 = vadd.f32 %v17014_v31, %v11946_v61  ;;  %v2655_v44 = vadd.f32 %v2654_v14, %v2581_v18  ;;  %v2585_v1 = vmul.f32 %v12059_v52, %v12059_v52  ;;  %v12247_v35 = vld [vmem:[%s16381_s6 + $0x108] sm:$0xff]  ;;  %v17016_v14 = vld [vmem:[#allocation116_spill] sm:$0xff] }
 0x4aa   :  { %2565 = vmatpush.msrb.mxu3 %v12216_v32  ;;  %v2411_v63 = vadd.f32 %v2410_v24, %v12204_v54  ;;  %v12240_v27 = vmul.f32 %v17015_v4, %v2167_v16  ;;  %v2173_v39 = vadd.f32 %v11925_v41, %v2081_v11  ;;  %v2087_v9 = vadd.f32 %v12072_v2, %v1995_v13  ;;  %v17017_v11 = vld [vmem:[#allocation152_spill] sm:$0xff] }
 0x4ab   :  { %v2001_v61 = vadd.f32 %v12142_v59, %v1909_v42  ;;  %v2656_v18 = vadd.f32 %v2655_v44, %v2583_v15  ;;  %v2587_v60 = vmul.f32 %v12077_v21, %v12077_v21  ;;  %v12255_v24 = vmul.f32 %v17016_v14, %v2170_v25  ;;  %v17018_v15 = vld [vmem:[#allocation120_spill] sm:$0xff] }
 0x4ac   :  { %2566 = vmatpush.msrb.mxu3 %v12231_v33  ;;  %v2412_v16 = vadd.f32 %v2411_v63, %v12224_v26  ;;  %v2176_v41 = vadd.f32 %v12005_v43, %v2084_v56  ;;  %v2090_v2 = vadd.f32 %v12146_v23, %v1998_v12  ;;  %v2004_v13 = vadd.f32 %v2003_v53, %v1912_v46  ;;  %v17019_v46 = vld [vmem:[#allocation122_spill] sm:$0xff] }
 0x4ad   :  { %v1823_v31 = vadd.f32 %v17017_v11, %v1731_v38  ;;  %v2657_v4 = vadd.f32 %v2656_v18, %v2585_v1  ;;  %v2589_v59 = vmul.f32 %v12096_v40, %v12096_v40  ;;  %v12265_v44 = vmul.f32 %v17018_v15, %v2173_v39 }
 0x4ae   :  { %2567 = vmatpush.msrb.mxu3 %v12247_v35  ;;  %v2413_v42 = vadd.f32 %v2412_v16, %v12240_v27  ;;  %v2179_v25 = vadd.f32 %v12081_v49, %v2087_v9  ;;  %v2093_v63 = vadd.f32 %v2092_v29, %v2001_v61  ;;  %v2591_v23 = vmul.f32 %v12113_v58, %v12113_v58  ;;  %v2095_v56 = vpop.f32.mrf.mxu0  ;;  %v1914_v16 = vpop.f32.mrf.mxu2  ;;  %v17020_v9 = vld [vmem:[#allocation124_spill] sm:$0xff] }
 0x4af   :  { %v2658_v43 = vadd.f32 %v2657_v4, %v2587_v60  ;;  %v12272_v53 = vmul.f32 %v17019_v46, %v2176_v41  ;;  %v2182_v38 = vadd.f32 %v12155_v62, %v2090_v2  ;;  %v2096_v1 = vadd.f32 %v2095_v56, %v2004_v13  ;;  %v2187_v18 = vpop.f32.mrf.mxu1  ;;  %v2006_v11 = vpop.f32.mrf.mxu3  ;;  %v17021_v2 = vld [vmem:[#allocation127_spill] sm:$0xff] }
 0x4b0   :  { %v2414_v12 = vadd.f32 %v2413_v42, %v12255_v24  ;;  %v2593_v49 = vmul.f32 %v12129_v51, %v12129_v51  ;;  %v1915_v29 = vadd.f32 %v1914_v16, %v1823_v31  ;;  %v12279_v61 = vmul.f32 %v17020_v9, %v2179_v25 }
 0x4b1   :  { %v2659_v39 = vadd.f32 %v2658_v43, %v2589_v59  ;;  %v2185_v60 = vadd.f32 %v2184_v37, %v2093_v63  ;;  %v2595_v41 = vmul.f32 %v12151_v36, %v12151_v36  ;;  %v12285_v13 = vmul.f32 %v17021_v2, %v2182_v38  ;;  %v17023_v38 = vld [vmem:[#allocation132_spill] sm:$0xff] }
 0x4b2   :  { %v2415_v4 = vadd.f32 %v2414_v12, %v12265_v44  ;;  %v2188_v59 = vadd.f32 %v2187_v18, %v2096_v1  ;;  %v2007_v56 = vadd.f32 %v2006_v11, %v1915_v29  ;;  %v2597_v31 = vmul.f32 %v12172_v57, %v12172_v57  ;;  %v17022_v12 = vld [vmem:[#allocation130_spill] sm:$0xff] }
 0x4b3   :  { %v2660_v42 = vadd.f32 %v2659_v39, %v2591_v23  ;;  %v12291_v37 = vmul.f32 %v17022_v12, %v2185_v60  ;;  %v2599_v16 = vmul.f32 %v12188_v28, %v12188_v28  ;;  %v2601_v29 = vmul.f32 %v12204_v54, %v12204_v54 }
 0x4b4   :  { %v2416_v62 = vadd.f32 %v2415_v4, %v12272_v53  ;;  %v12297_v4 = vmul.f32 %v17023_v38, %v2188_v59 }
 0x4b5   :  { %v2661_v43 = vadd.f32 %v2660_v42, %v2593_v49 }
 0x4b6   :  { %v2417_v25 = vadd.f32 %v2416_v62, %v12279_v61  ;;  %v2098_v23 = vpop.f32.mrf.mxu0 }
 0x4b7   :  { %v2662_v63 = vadd.f32 %v2661_v43, %v2595_v41  ;;  %v2099_v1 = vadd.f32 %v2098_v23, %v2007_v56  ;;  %v2190_v18 = vpop.f32.mrf.mxu1  ;;  %v2603_v41 = vmul.f32 %v12224_v26, %v12224_v26  ;;  %v17024_v43 = vld [vmem:[#allocation134_spill] sm:$0xff]  ;;  %v2605_v56 = vmul.f32 %v12240_v27, %v12240_v27 }
 0x4b8   :  { %v2418_v39 = vadd.f32 %v2417_v25, %v12285_v13  ;;  %v2607_v23 = vmul.f32 %v12255_v24, %v12255_v24 }
 0x4b9   :  { %v2663_v49 = vadd.f32 %v2662_v63, %v2597_v31  ;;  %v2191_v60 = vadd.f32 %v2190_v18, %v2099_v1  ;;  %v2609_v1 = vmul.f32 %v12265_v44, %v12265_v44 }
 0x4ba   :  { %v2419_v11 = vadd.f32 %v2418_v39, %v12291_v37 }
 0x4bb   :  { %v2664_v42 = vadd.f32 %v2663_v49, %v2599_v16  ;;  %v12306_v25 = vmul.f32 %v17024_v43, %v2191_v60 }
 0x4bc   :  { %v2420_v62 = vadd.f32 %v2419_v11, %v12297_v4  ;;  %v2611_v11 = vmul.f32 %v12272_v53, %v12272_v53 }
 0x4bd   :  { %v2665_v59 = vadd.f32 %v2664_v42, %v2601_v29  ;;  %v2613_v42 = vmul.f32 %v12279_v61, %v12279_v61 }
 0x4be   :  { %v2421_v31 = vadd.f32 %v2420_v62, %v12306_v25 }
 0x4bf   :  { %v2666_v63 = vadd.f32 %v2665_v59, %v2603_v41  ;;  %v2615_v59 = vmul.f32 %v12285_v13, %v12285_v13 }
 0x4c0   :  { %v2422_v39 = vrot.slane %v2421_v31, 4 }
 0x4c1   :  { %v2667_v16 = vadd.f32 %v2666_v63, %v2605_v56  ;;  %v2617_v63 = vmul.f32 %v12291_v37, %v12291_v37 }
 0x4c2   :  { %v2423_v18 = vadd.f32 %v2422_v39, %v2421_v31  ;;  %v2619_v39 = vmul.f32 %v12297_v4, %v12297_v4 }
 0x4c3   :  { %v2668_v49 = vadd.f32 %v2667_v16, %v2607_v23  ;;  %v17025_v16 = vld [vmem:[#allocation160_spill] sm:$0xff] }
 0x4c4   :  { %v2424_v29 = vrot.slane %v2423_v18, 2 }
 0x4c5   :  { %v2669_v60 = vadd.f32 %v2668_v49, %v2609_v1  ;;  %v17026_v49 = vld [vmem:[#allocation164_spill] sm:$0xff] }
 0x4c6   :  { %v2425_v62 = vadd.f32 %v2424_v29, %v2423_v18  ;;  %v2621_v18 = vmul.f32 %v12306_v25, %v12306_v25  ;;  %v17027_v29 = vld [vmem:[#allocation172_spill] sm:$0xff] }
 0x4c7   :  { %v2670_v41 = vadd.f32 %v2669_v60, %v2611_v11 }
 0x4c8   :  { %v2426_v43 = vrot.slane %v2425_v62, 1 }
 0x4c9   :  { %v2671_v56 = vadd.f32 %v2670_v41, %v2613_v42  ;;  %v17028_v42 = vld [vmem:[#allocation181_spill] sm:$0xff] }
 0x4ca   :  { %v2427_v31 = vadd.f32 %v2426_v43, %v2425_v62  ;;  %v17029_v43 = vld [vmem:[#allocation185_spill] sm:$0xff] }
 0x4cb   :  { %v2672_v23 = vadd.f32 %v2671_v56, %v2615_v59  ;;  %v17030_v41 = vld [vmem:[#allocation193_spill] sm:$0xff]  ;;  %v17031_v59 = vld [vmem:[#allocation198_spill] sm:$0xff] }
 0x4cc   :  { %2528 = vmatmul.f32.vlgmr.msra.gmra.mxu3 %v2427_v31 }
 0x4cd   :  { %2702 = vmatpush.msra.mxu3 %v17025_v16  ;;  %v2673_v1 = vadd.f32 %v2672_v23, %v2617_v63  ;;  %v17032_v63 = vld [vmem:[#allocation206_spill] sm:$0xff] }
 0x4ce   :  { %v17033_v23 = vld [vmem:[#allocation210_spill] sm:$0xff] }
 0x4cf   :  { %2703 = vmatpush.msra.mxu3 %v17026_v49  ;;  %v2674_v11 = vadd.f32 %v2673_v1, %v2619_v39  ;;  %v17034_v39 = vld [vmem:[#allocation29_spill] sm:$0xff]  ;;  %v17035_v49 = vld [vmem:[#allocation6_spill] sm:$0xff] }
 0x4d1   :  { %2704 = vmatpush.msra.mxu3 %v17027_v29  ;;  %v2675_v60 = vadd.f32 %v2674_v11, %v2621_v18  ;;  %v17039_v11 = vld [vmem:[#allocation43_spill] sm:$0xff] }
 0x4d3   :  { %2705 = vmatpush.msra.mxu3 %v17028_v42  ;;  %v2676_v62 = vrot.slane %v2675_v60, 4  ;;  %v4093_v42 = vld [vmem:[%s16382_s7 + $0xe0] sm:$0xff] }
 0x4d4   :  { %2568 = vmatmul.f32.vlgmr.msrb.gmra.mxu3 %v2427_v31 }
 0x4d5   :  { %2706 = vmatpush.msra.mxu3 %v17029_v43  ;;  %v2677_v56 = vadd.f32 %v2676_v62, %v2675_v60  ;;  %v4077_v60 = vld [vmem:[%s16382_s7 + $0x60] sm:$0xff]  ;;  %v4076_v62 = vld [vmem:[%s16382_s7 + $0x58] sm:$0xff] }
 0x4d7   :  { %2707 = vmatpush.msra.mxu3 %v17030_v41  ;;  %v2678_v16 = vrot.slane %v2677_v56, 2  ;;  %v4092_v41 = vld [vmem:[%s16382_s7 + $0xd8] sm:$0xff] }
 0x4d9   :  { %2708 = vmatpush.msra.mxu3 %v17031_v59  ;;  %v2679_v1 = vadd.f32 %v2678_v16, %v2677_v56  ;;  %v4075_v56 = vld [vmem:[%s16382_s7 + $0x50] sm:$0xff]  ;;  %v4112_v16 = vld [vmem:[%s16382_s7 + $0x178] sm:$0xff] }
 0x4da   :  { %5785 = vmatpush.msra.mxu0 %v4112_v16  ;;  %v4106_v16 = vld [vmem:[%s16382_s7 + $0x148] sm:$0xff] }
 0x4db   :  { %2709 = vmatpush.msra.mxu3 %v17032_v63  ;;  %v2680_v31 = vrot.slane %v2679_v1, 1  ;;  %v4091_v63 = vld [vmem:[%s16382_s7 + $0xd0] sm:$0xff] }
 0x4dd   :  { %2710 = vmatpush.msra.mxu3 %v17033_v23  ;;  %v2681_v18 = vadd.f32 %v2680_v31, %v2679_v1  ;;  %v4074_v1 = vld [vmem:[%s16382_s7 + $0x48] sm:$0xff] }
 0x4de   :  { %v4090_v31 = vld [vmem:[%s16382_s7 + $0xc8] sm:$0xff] }
 0x4df   :  { %2711 = vmatpush.msra.mxu3 %v17034_v39  ;;  %v4128_v39 = vld [vmem:[%s16382_s7 + $0x1f8] sm:$0xff] }
 0x4e0   :  { %5877 = vmatpush.msra.mxu1 %v4128_v39  ;;  %v4122_v39 = vld [vmem:[%s16382_s7 + $0x1c8] sm:$0xff] }
 0x4e1   :  { %2712 = vmatpush.msra.mxu3 %v11808_v10  ;;  %v17036_v10 = vld [vmem:[#allocation8_spill] sm:$0xff] }
 0x4e3   :  { %2713 = vmatpush.msra.mxu3 %v11900_v20  ;;  %v17037_v20 = vld [vmem:[#allocation40_spill] sm:$0xff] }
 0x4e5   :  { %2714 = vmatpush.msra.mxu3 %v11919_v55  ;;  %v17038_v55 = vld [vmem:[#allocation12_spill] sm:$0xff] }
 0x4e7   :  { %2715 = vmatpush.msra.mxu3 %v11931_v19 }
 0x4e9   :  { %2716 = vmatpush.msra.mxu3 %v11957_v34  ;;  %v2509_v34 = vpop.f32.mrf.mxu2 }
 0x4eb   :  { %2717 = vmatpush.msra.mxu3 %v11973_v50 }
 0x4ec   :  { %2718 = vmatmul.f32.vlgmr.msra.gmra.mxu3 %v2681_v18 }
 0x4ed   :  { %2742 = vmatpush.msrb.mxu3 %v11987_v30 }
 0x4ef   :  { %2743 = vmatpush.msrb.mxu3 %v12010_v17 }
 0x4f1   :  { %2744 = vmatpush.msrb.mxu3 %v17035_v49  ;;  %v2549_v30 = vpop.f32.mrf.mxu2  ;;  %v4127_v49 = vld [vmem:[%s16382_s7 + $0x1f0] sm:$0xff] }
 0x4f2   :  { %5878 = vmatpush.msra.mxu1 %v4127_v49 }
 0x4f3   :  { %2745 = vmatpush.msrb.mxu3 %v17036_v10  ;;  %v4073_v10 = vld [vmem:[%s16382_s7 + $0x40] sm:$0xff] }
 0x4f5   :  { %2746 = vmatpush.msrb.mxu3 %v17037_v20  ;;  %v4089_v20 = vld [vmem:[%s16382_s7 + $0xc0] sm:$0xff] }
 0x4f7   :  { %2747 = vmatpush.msrb.mxu3 %v17038_v55 }
 0x4f9   :  { %2748 = vmatpush.msrb.mxu3 %v17039_v11 }
 0x4fb   :  { %2749 = vmatpush.msrb.mxu3 %v12120_v6  ;;  %v4080_v6 = vld [vmem:[%s16382_s7 + $0x78] sm:$0xff] }
 0x4fc   :  { %5601 = vmatpush.msra.mxu2 %v4080_v6  ;;  %v4125_v6 = vld [vmem:[%s16382_s7 + $0x1e0] sm:$0xff] }
 0x4fd   :  { %2750 = vmatpush.msrb.mxu3 %v12136_v8  ;;  %v4096_v8 = vld [vmem:[%s16382_s7 + $0xf8] sm:$0xff] }
 0x4ff   :  { %2751 = vmatpush.msrb.mxu3 %v12160_v48 }
 0x501   :  { %2752 = vmatpush.msrb.mxu3 %v12179_v22  ;;  %v2699_v22 = vpop.f32.mrf.mxu2 }
 0x503   :  { %2753 = vmatpush.msrb.mxu3 %v12195_v5  ;;  %v4079_v5 = vld [vmem:[%s16382_s7 + $0x70] sm:$0xff] }
 0x504   :  { %5602 = vmatpush.msra.mxu2 %v4079_v5  ;;  %v4108_v5 = vld [vmem:[%s16382_s7 + $0x158] sm:$0xff] }
 0x505   :  { %2754 = vmatpush.msrb.mxu3 %v12211_v7  ;;  %v4095_v7 = vld [vmem:[%s16382_s7 + $0xf0] sm:$0xff] }
 0x507   :  { %2755 = vmatpush.msrb.mxu3 %v12216_v32 }
 0x509   :  { %2756 = vmatpush.msrb.mxu3 %v12231_v33  ;;  %v4078_v33 = vld [vmem:[%s16382_s7 + $0x68] sm:$0xff] }
 0x50a   :  { %5603 = vmatpush.msra.mxu2 %v4078_v33 }
 0x50b   :  { %2757 = vmatpush.msrb.mxu3 %v12247_v35  ;;  %v4094_v35 = vld [vmem:[%s16382_s7 + $0xe8] sm:$0xff] }
 0x50c   :  { %2758 = vmatmul.f32.vlgmr.msrb.gmra.mxu3 %v2681_v18  ;;  %5604 = vmatpush.msra.mxu2 %v4077_v60  ;;  %v4111_v18 = vld [vmem:[%s16382_s7 + $0x170] sm:$0xff]  ;;  %v4086_v60 = vld [vmem:[%s16382_s7 + $0xa8] sm:$0xff] }
 0x50d   :  { %5693 = vmatpush.msra.mxu3 %v4096_v8  ;;  %5786 = vmatpush.msra.mxu0 %v4111_v18  ;;  %v4071_v8 = vld [vmem:[%s16382_s7 + $0x30] sm:$0xff] }
 0x50e   :  { %5605 = vmatpush.msra.mxu2 %v4076_v62  ;;  %v4123_v62 = vld [vmem:[%s16382_s7 + $0x1d0] sm:$0xff] }
 0x50f   :  { %5694 = vmatpush.msra.mxu3 %v4095_v7  ;;  %v4124_v7 = vld [vmem:[%s16382_s7 + $0x1d8] sm:$0xff] }
 0x510   :  { %5606 = vmatpush.msra.mxu2 %v4075_v56  ;;  %v4085_v56 = vld [vmem:[%s16382_s7 + $0xa0] sm:$0xff] }
 0x511   :  { %5695 = vmatpush.msra.mxu3 %v4094_v35  ;;  %v4070_v35 = vld [vmem:[%s16382_s7 + $0x28] sm:$0xff] }
 0x512   :  { %5607 = vmatpush.msra.mxu2 %v4074_v1  ;;  %v4068_v1 = vld [vmem:[%s16382_s7 + $0x18] sm:$0xff] }
 0x513   :  { %5696 = vmatpush.msra.mxu3 %v4093_v42 }
 0x514   :  { %5608 = vmatpush.msra.mxu2 %v4073_v10  ;;  %v4105_v10 = vld [vmem:[%s16382_s7 + $0x140] sm:$0xff] }
 0x515   :  { %5697 = vmatpush.msra.mxu3 %v4092_v41  ;;  %v7977_v41 = vmov 0.0  }
 0x516   :  { %3019 = vst [vmem:[#allocation2 + $0x90] sm:$0xff] %v7977_v41 }
 0x517   :  { %5698 = vmatpush.msra.mxu3 %v4091_v63  ;;  %3021 = vst [vmem:[#allocation2 + $0xb8] sm:$0xff] %v7977_v41 }
 0x518   :  { %3020 = vst [vmem:[#allocation2 + $0x190] sm:$0xff] %v7977_v41 }
 0x519   :  { %5699 = vmatpush.msra.mxu3 %v4090_v31  ;;  %v4084_v31 = vld [vmem:[%s16382_s7 + $0x98] sm:$0xff]  ;;  %3022 = vst [vmem:[#allocation2 + $0x18] sm:$0xff] %v7977_v41 }
 0x51a   :  { %3023 = vst [vmem:[#allocation2 + $0x30] sm:$0xff] %v7977_v41 }
 0x51b   :  { %5700 = vmatpush.msra.mxu3 %v4089_v20  ;;  %v4121_v20 = vld [vmem:[%s16382_s7 + $0x1c0] sm:$0xff]  ;;  %3024 = vst [vmem:[#allocation2 + $0x148] sm:$0xff] %v7977_v41 }
 0x51c   :  { %3025 = vst [vmem:[#allocation2 + $0x110] sm:$0xff] %v7977_v41 }
 0x51d   :  { %3026 = vst [vmem:[#allocation2 + $0x28] sm:$0xff] %v7977_v41 }
 0x54f   :  { %v2529_v19 = vpop.f32.mrf.mxu3 }
 0x550   :  { %v2530_v48 = vadd.f32 %v2529_v19, %v2509_v34  ;;  %v4110_v19 = vld [vmem:[%s16382_s7 + $0x168] sm:$0xff] }
 0x551   :  { %v4126_v34 = vld [vmem:[%s16382_s7 + $0x1e8] sm:$0xff]  ;;  %5787 = vmatpush.msra.mxu0 %v4110_v19  ;;  %v4083_v19 = vld [vmem:[%s16382_s7 + $0x90] sm:$0xff] }
 0x552   :  { %v12377_v29 = vmul.f32 0.0009765625, %v2530_v48  ;;  %5879 = vmatpush.msra.mxu1 %v4126_v34  ;;  %v4087_v48 = vld [vmem:[%s16382_s7 + $0xb0] sm:$0xff] }
 0x554   :  { %v2766_v59 = vmul.f32 %v12377_v29, %v12377_v29  ;;  %5880 = vmatpush.msra.mxu1 %v4125_v6  ;;  %v4066_v6 = vld [vmem:[%s16382_s7 + $0x8] sm:$0xff] }
 0x556   :  { %5881 = vmatpush.msra.mxu1 %v4124_v7  ;;  %v4119_v7 = vld [vmem:[%s16382_s7 + $0x1b0] sm:$0xff] }
 0x557   :  { %v2569_v50 = vpop.f32.mrf.mxu3 }
 0x558   :  { %v2570_v55 = vadd.f32 %v2569_v50, %v2549_v30  ;;  %v4088_v50 = vld [vmem:[%s16382_s7 + $0xb8] sm:$0xff]  ;;  %v4109_v30 = vld [vmem:[%s16382_s7 + $0x160] sm:$0xff]  ;;  %5882 = vmatpush.msra.mxu1 %v4123_v62  ;;  %v4102_v62 = vld [vmem:[%s16382_s7 + $0x128] sm:$0xff] }
 0x559   :  { %5701 = vmatpush.msra.mxu3 %v4088_v50  ;;  %5788 = vmatpush.msra.mxu0 %v4109_v30  ;;  %v4120_v50 = vld [vmem:[%s16382_s7 + $0x1b8] sm:$0xff] }
 0x55a   :  { %5883 = vmatpush.msra.mxu1 %v4122_v39  ;;  %v4117_v39 = vld [vmem:[%s16382_s7 + $0x1a0] sm:$0xff] }
 0x55b   :  { %5702 = vmatpush.msra.mxu3 %v4087_v48  ;;  %5789 = vmatpush.msra.mxu0 %v4108_v5  ;;  %v3077_v48 = vld [vmem:[#allocation2 + $0x90] sm:$0xe0] }
 0x55c   :  { %5884 = vmatpush.msra.mxu1 %v4121_v20  ;;  %v4103_v5 = vld [vmem:[%s16382_s7 + $0x130] sm:$0xff] }
 0x55d   :  { %5703 = vmatpush.msra.mxu3 %v4086_v60  ;;  %v12542_v60 = vrot.slane %v7977_v41, 5 }
 0x55e   :  { %5885 = vmatpush.msra.mxu1 %v4120_v50  ;;  %v4115_v50 = vld [vmem:[%s16382_s7 + $0x190] sm:$0xff] }
 0x55f   :  { %5704 = vmatpush.msra.mxu3 %v4085_v56  ;;  %v4144_v56 = vld [vmem:[%s16382_s7 + $0x278] sm:$0xff] }
 0x560   :  { %5886 = vmatpush.msra.mxu1 %v4119_v7  ;;  %v4097_v7 = vld [vmem:[%s16382_s7 + $0x100] sm:$0xff] }
 0x561   :  { %5705 = vmatpush.msra.mxu3 %v4084_v31 }
 0x563   :  { %5706 = vmatpush.msra.mxu3 %v4083_v19 }
 0x56f   :  { %v2719_v17 = vpop.f32.mrf.mxu3 }
 0x570   :  { %v2720_v32 = vadd.f32 %v2719_v17, %v2699_v22  ;;  %v4072_v17 = vld [vmem:[%s16382_s7 + $0x38] sm:$0xff]  ;;  %v12449_v22 = vmul.f32 0.0009765625, %v2570_v55  ;;  %v4067_v55 = vld [vmem:[%s16382_s7 + $0x10] sm:$0xff] }
 0x571   :  { %5609 = vmatpush.msra.mxu2 %v4072_v17  ;;  %v4104_v17 = vld [vmem:[%s16382_s7 + $0x138] sm:$0xff] }
 0x572   :  { %v2764_v43 = vmul.f32 0.0009765625, %v2720_v32  ;;  %v2739_v32 = vpop.f32.mrf.mxu2  ;;  %v2767_v63 = vmul.f32 %v12449_v22, %v12449_v22 }
 0x573   :  { %5610 = vmatpush.msra.mxu2 %v4071_v8  ;;  %v4082_v8 = vld [vmem:[%s16382_s7 + $0x88] sm:$0xff] }
 0x574   :  { %v2768_v23 = vsub.f32 %v2764_v43, %v2766_v59  ;;  %v4107_v43 = vld [vmem:[%s16382_s7 + $0x150] sm:$0xff]  ;;  %v4069_v59 = vld [vmem:[%s16382_s7 + $0x20] sm:$0xff]  ;;  %5707 = vmatpush.msra.mxu3 %v4082_v8 }
 0x575   :  { %5611 = vmatpush.msra.mxu2 %v4070_v35  ;;  %5790 = vmatpush.msra.mxu0 %v4107_v43  ;;  %v4361_v35 = vrot.slane %v3077_v48, 5  ;;  %v4098_v48 = vld [vmem:[%s16382_s7 + $0x108] sm:$0xff] }
 0x576   :  { %v12423_v11 = vadd.f32 1e-05, %v2768_v23 }
 0x577   :  { %5612 = vmatpush.msra.mxu2 %v4069_v59  ;;  %5791 = vmatpush.msra.mxu0 %v4106_v16  ;;  %v4118_v59 = vld [vmem:[%s16382_s7 + $0x1a8] sm:$0xff]  ;;  %v4101_v16 = vld [vmem:[%s16382_s7 + $0x120] sm:$0xff] }
 0x578   :  { %7641 = vrsqrt.f32 %v12423_v11  ;;  %5887 = vmatpush.msra.mxu1 %v4118_v59  ;;  %vm2779_vm5 = vweird.f32 %v12423_v11 }
 0x579   :  { %5613 = vmatpush.msra.mxu2 %v4068_v1  ;;  %5792 = vmatpush.msra.mxu0 %v4105_v10  ;;  %v4160_v1 = vld [vmem:[%s16382_s7 + $0x2f8] sm:$0xff] }
 0x57a   :  { %v4116_v10 = vld [vmem:[%s16382_s7 + $0x198] sm:$0xff]  ;;  %5888 = vmatpush.msra.mxu1 %v4117_v39 }
 0x57b   :  { %5614 = vmatpush.msra.mxu2 %v4067_v55  ;;  %5793 = vmatpush.msra.mxu0 %v4104_v17  ;;  %v4099_v17 = vld [vmem:[%s16382_s7 + $0x110] sm:$0xff] }
 0x57c   :  { %5889 = vmatpush.msra.mxu1 %v4116_v10 }
 0x57d   :  { %5615 = vmatpush.msra.mxu2 %v4066_v6  ;;  %5794 = vmatpush.msra.mxu0 %v4103_v5  ;;  %v4114_v5 = vld [vmem:[%s16382_s7 + $0x188] sm:$0xff] }
 0x57e   :  { %v12494_v18 = vpop.eup %7641  ;;  %5890 = vmatpush.msra.mxu1 %v4115_v50 }
 0x57f   :  { %v2774_v30 = vmul.f32 %v12494_v18, %v12423_v11  ;;  %5795 = vmatpush.msra.mxu0 %v4102_v62  ;;  %vm2780_vm2 = vweird.f32 %v12494_v18 }
 0x580   :  { %5891 = vmatpush.msra.mxu1 %v4114_v5  ;;  %vm2781_vm7 = vmor %vm2779_vm5, %vm2780_vm2 }
 0x581   :  { %5796 = vmatpush.msra.mxu0 %v4101_v16 }
 0x58f   :  { %v2759_v33 = vpop.f32.mrf.mxu3 }
 0x590   :  { %v2760_v42 = vadd.f32 %v2759_v33, %v2739_v32  ;;  %v4065_v32 = vld [vmem:[%s16382_s7] sm:$0xff] }
 0x591   :  { %v4081_v33 = vld [vmem:[%s16382_s7 + $0x80] sm:$0xff]  ;;  %5616 = vmatpush.msra.mxu2 %v4065_v32 }
 0x592   :  { %v2765_v23 = vmul.f32 0.0009765625, %v2760_v42  ;;  %v3078_v42 = vld [vmem:[#allocation2 + $0x190] sm:$0xe0]  ;;  %5708 = vmatpush.msra.mxu3 %v4081_v33  ;;  %v4113_v32 = vld [vmem:[%s16382_s7 + $0x180] sm:$0xff] }
 0x593   :  { %v4364_v43 = vrot.slane %v3078_v42, 5  ;;  %5969 = vmatpush.msrb.mxu2 %v4144_v56  ;;  %5892 = vmatpush.msra.mxu1 %v4113_v32  ;;  %v4159_v42 = vld [vmem:[%s16382_s7 + $0x2f0] sm:$0xff]  ;;  %v2770_v56 = vld [vmem:[%s16383_s4] sm:$0x3] }
 0x594   :  { %v2769_v49 = vsub.f32 %v2765_v23, %v2767_v63  ;;  %v2775_v63 = vmul.f32 %v12494_v18, %v2774_v30  ;;  %v4363_v23 = vsel %vm3855_vm0, %v4361_v35, %v12542_v60  ;;  %6061 = vmatpush.msrb.mxu3 %v4160_v1  ;;  %v4143_v35 = vld [vmem:[%s16382_s7 + $0x270] sm:$0xff] }
 0x595   :  { %5617 = vmatmul.f32.vlgmr.msra.gmra.mxu2 %v4363_v23  ;;  %v4366_v31 = vsel %vm3855_vm0, %v4364_v43, %v12542_v60 }
 0x596   :  { %v12510_v34 = vadd.f32 1e-05, %v2769_v49  ;;  %5709 = vmatmul.f32.vlgmr.msra.gmra.mxu3 %v4366_v31  ;;  %v4100_v49 = vld [vmem:[%s16382_s7 + $0x118] sm:$0xff]  ;;  %v2776_v55 = vmul.f32 0.5, %v2775_v63  ;;  %5970 = vmatpush.msrb.mxu2 %v4143_v35  ;;  %v3129_v31 = vld [vmem:[#allocation2 + $0x90] sm:$0xc0] }
 0x597   :  { %5797 = vmatpush.msra.mxu0 %v4100_v49  ;;  %6062 = vmatpush.msrb.mxu3 %v4159_v42  ;;  %v2800_v49 = vld [vmem:[%s16384_s5] sm:$0x3] }
 0x598   :  { %7643 = vrsqrt.f32 %v12510_v34  ;;  %v2777_v6 = vsub.f32 1.5, %v2776_v55  ;;  %vm2789_vm3 = vweird.f32 %v12510_v34  ;;  %v3262_v55 = vrot.slane %v3129_v31, 1  ;;  %v17043_v42 = vld [vmem:[#allocation37_spill] sm:$0xff] }
 0x599   :  { %5798 = vmatpush.msra.mxu0 %v4099_v17  ;;  %v4142_v17 = vld [vmem:[%s16382_s7 + $0x268] sm:$0xff] }
 0x59a   :  { %v2778_v43 = vmul.f32 %v12494_v18, %v2777_v6  ;;  %5971 = vmatpush.msrb.mxu2 %v4142_v17  ;;  %v17040_v6 = vld [vmem:[#allocation90_spill] sm:$0xff] }
 0x59b   :  { %5799 = vmatpush.msra.mxu0 %v4098_v48 }
 0x59c   :  { %v2782_v23 = vsel %vm2781_vm7, %v12494_v18, %v2778_v43  ;;  %v3263_v18 = vrot.slane %v7977_v41, 1 }
 0x59d   :  { %5800 = vmatpush.msra.mxu0 %v4097_v7 }
 0x59e   :  { %v7644_v20 = vpop.eup %7643  ;;  %v12631_v48 = vsel %vm3261_vm8, %v3262_v55, %v3263_v18 }
 0x59f   :  { %v2784_v19 = vmul.f32 %v7644_v20, %v12510_v34  ;;  %vm2790_vm1 = vweird.f32 %v7644_v20 }
 0x5a0   :  { %vm2791_vm4 = vmor %vm2789_vm3, %vm2790_vm1 }
 0x5a1   :  { %v2785_v30 = vmul.f32 %v7644_v20, %v2784_v19  ;;  %v3130_v19 = vld [vmem:[#allocation2 + $0x190] sm:$0xc0] }
 0x5a2   :  { %v3265_v5 = vrot.slane %v3130_v19, 1 }
 0x5a3   :  { %v2786_v8 = vmul.f32 0.5, %v2785_v30  ;;  %v4158_v30 = vld [vmem:[%s16382_s7 + $0x2e8] sm:$0xff] }
 0x5a4   :  { %6063 = vmatpush.msrb.mxu3 %v4158_v30 }
 0x5a5   :  { %v2787_v33 = vsub.f32 1.5, %v2786_v8  ;;  %v17041_v8 = vld [vmem:[#allocation4_spill] sm:$0xff] }
 0x5a7   :  { %v2788_v62 = vmul.f32 %v7644_v20, %v2787_v33  ;;  %v17042_v33 = vld [vmem:[#allocation88_spill] sm:$0xff] }
 0x5a9   :  { %v2792_v59 = vsel %vm2791_vm4, %v7644_v20, %v2788_v62  ;;  %v17044_v62 = vld [vmem:[#allocation91_spill] sm:$0xff] }
 0x5aa   :  { %v2795_v63 = vrot.slane %v2792_v59, 7 }
 0x5ac   :  { %v2797_v16 = vsel %vm2796_vm6, %v2782_v23, %v2795_v63  ;;  %v17046_v23 = vld [vmem:[#allocation92_spill] sm:$0xff] }
 0x5ad   :  { %v2799_v39 = vmul.f32 %v2797_v16, %v2770_v56  ;;  %v17045_v56 = vld [vmem:[#allocation7_spill] sm:$0xff] }
 0x5af   :  { %v12607_v1 = vperm.slane %v2799_v39, 0  ;;  %v12609_v34 = vperm.slane %v2799_v39, 1 }
 0x5b1   :  { %v2807_v11 = vmul.f32 %v12609_v34, %v12449_v22  ;;  %v2806_v10 = vmul.f32 %v12607_v1, %v12377_v29  ;;  %v2814_v29 = vmul.f32 %v12607_v1, %v17040_v6  ;;  %v2815_v41 = vmul.f32 %v12609_v34, %v17041_v8 }
 0x5b2   :  { %v2816_v35 = vmul.f32 %v12607_v1, %v17042_v33  ;;  %v2817_v43 = vmul.f32 %v12609_v34, %v17043_v42  ;;  %v2818_v59 = vmul.f32 %v12607_v1, %v17044_v62  ;;  %v2819_v63 = vmul.f32 %v12609_v34, %v17045_v56 }
 0x5b3   :  { %v2810_v20 = vrot.slane %v2807_v11, 7  ;;  %v2820_v16 = vmul.f32 %v12607_v1, %v17046_v23  ;;  %v2821_v39 = vmul.f32 %v12609_v34, %v12001_v3  ;;  %v3267_v42 = vsel %vm3261_vm8, %v3265_v5, %v3263_v18 }
 0x5b4   :  { %v4367_v56 = vrot.slane %v12631_v48, 5 }
 0x5b5   :  { %v2811_v50 = vsel %vm2796_vm6, %v2806_v10, %v2810_v20 }
 0x5b6   :  { %v2813_v22 = vsub.f32 %v2800_v49, %v2811_v50 }
 0x5b8   :  { %v12633_v7 = vperm.slane %v2813_v22, 0  ;;  %v12635_v32 = vperm.slane %v2813_v22, 1 }
 0x5ba   :  { %v2869_v31 = vadd.f32 %v12633_v7, %v2814_v29  ;;  %v2870_v11 = vadd.f32 %v12635_v32, %v2815_v41  ;;  %v2871_v49 = vadd.f32 %v12633_v7, %v2816_v35  ;;  %v2872_v10 = vadd.f32 %v12635_v32, %v2817_v43  ;;  %v17047_v41 = vld [vmem:[#allocation62_spill] sm:$0xff]  ;;  %v17048_v43 = vld [vmem:[#allocation73_spill] sm:$0xff] }
 0x5bb   :  { %v2873_v20 = vadd.f32 %v12633_v7, %v2818_v59  ;;  %v2874_v55 = vadd.f32 %v12635_v32, %v2819_v63  ;;  %v2875_v19 = vadd.f32 %v12633_v7, %v2820_v16  ;;  %v2876_v17 = vadd.f32 %v12635_v32, %v2821_v39  ;;  %v4141_v59 = vld [vmem:[%s16382_s7 + $0x260] sm:$0xff] }
 0x5bc   :  { %v2919_v50 = vmax.f32 %v2869_v31, 0.0  ;;  %v2920_v22 = vmax.f32 %v2870_v11, 0.0  ;;  %v2921_v30 = vmax.f32 %v2871_v49, 0.0  ;;  %v2922_v3 = vmax.f32 %v2872_v10, 0.0  ;;  %5972 = vmatpush.msrb.mxu2 %v4141_v59  ;;  %v17049_v11 = vld [vmem:[#allocation65_spill] sm:$0xff] }
 0x5bd   :  { %v2923_v6 = vmax.f32 %v2873_v20, 0.0  ;;  %v2924_v29 = vmax.f32 %v2874_v55, 0.0  ;;  %v2925_v8 = vmax.f32 %v2875_v19, 0.0  ;;  %v2926_v23 = vmax.f32 %v2876_v17, 0.0  ;;  %v17050_v55 = vld [vmem:[#allocation79_spill] sm:$0xff] }
 0x5be   :  { %v2969_v33 = vmul.f32 %v2919_v50, %v17047_v41  ;;  %v2970_v35 = vmul.f32 %v2920_v22, %v17047_v41  ;;  %v12661_v62 = vmul.f32 %v2921_v30, %v17048_v43  ;;  %v12668_v63 = vmul.f32 %v2922_v3, %v17048_v43 }
 0x5bf   :  { %v12671_v5 = vmul.f32 %v2923_v6, %v17049_v11  ;;  %v4370_v10 = vrot.slane %v3267_v42, 5  ;;  %v12674_v20 = vmul.f32 %v2924_v29, %v17049_v11  ;;  %v12677_v48 = vmul.f32 %v2925_v8, %v17050_v55 }
 0x5c0   :  { %3027 = vst [vmem:[#allocation2 + $0x160] sm:$0xff] %v2969_v33  ;;  %v3268_v16 = vrot.slane %v2969_v33, 1  ;;  %v4415_v39 = vrot.slane %v2969_v33, 5  ;;  %v3270_v31 = vrot.slane %v2970_v35, 1  ;;  %v4417_v49 = vrot.slane %v2970_v35, 5  ;;  %v4157_v33 = vld [vmem:[%s16382_s7 + $0x2e0] sm:$0xff] }
 0x5c1   :  { %3028 = vst [vmem:[#allocation2 + $0xf0] sm:$0xff] %v2970_v35  ;;  %v3272_v22 = vrot.slane %v12661_v62, 1  ;;  %v12689_v29 = vmul.f32 %v2926_v23, %v17050_v55  ;;  %6064 = vmatpush.msrb.mxu3 %v4157_v33  ;;  %v4449_v42 = vrot.slane %v12661_v62, 5  ;;  %v4451_v23 = vrot.slane %v12668_v63, 5 }
 0x5c2   :  { %v4416_v19 = vsel %vm3855_vm0, %v12542_v60, %v4415_v39  ;;  %v3269_v17 = vsel %vm3261_vm8, %v3263_v18, %v3268_v16  ;;  %v3271_v50 = vsel %vm3261_vm8, %v3263_v18, %v3270_v31  ;;  %3029 = vst [vmem:[#allocation2 + $0xf8] sm:$0xff] %v12661_v62  ;;  %v4418_v30 = vsel %vm3855_vm0, %v12542_v60, %v4417_v49 }
 0x5c3   :  { %5620 = vmatmul.f32.gmra.mxu2 %v4416_v19  ;;  %v4368_v3 = vrot.slane %v3269_v17, 5  ;;  %v4371_v6 = vrot.slane %v3271_v50, 5  ;;  %3030 = vst [vmem:[#allocation2 + $0x78] sm:$0xff] %v12668_v63  ;;  %5712 = vmatmul.f32.gmra.mxu3 %v4418_v30  ;;  %v12692_v8 = vsel %vm3261_vm8, %v3268_v16, %v3272_v22  ;;  %v3274_v18 = vrot.slane %v12668_v63, 1  ;;  %v17052_v50 = vld [vmem:[#allocation97_spill] sm:$0xff] }
 0x5c4   :  { %3031 = vst [vmem:[#allocation2 + $0x100] sm:$0xff] %v12671_v5  ;;  %v4419_v16 = vrot.slane %v12692_v8, 5  ;;  %v2823_v17 = vmul.f32 %v12609_v34, %v12022_v47  ;;  %v2824_v30 = vmul.f32 %v12607_v1, %v17052_v50  ;;  %v2825_v63 = vmul.f32 %v12609_v34, %v12041_v45 }
 0x5c5   :  { %v4369_v60 = vsel %vm3855_vm0, %v4367_v56, %v4368_v3  ;;  %v4372_v35 = vsel %vm3855_vm0, %v4370_v10, %v4371_v6  ;;  %3032 = vst [vmem:[#allocation2 + $0x130] sm:$0xff] %v12674_v20  ;;  %v12704_v59 = vsel %vm3261_vm8, %v3270_v31, %v3274_v18  ;;  %v3276_v56 = vrot.slane %v12671_v5, 1  ;;  %v17051_v10 = vld [vmem:[#allocation94_spill] sm:$0xff] }
 0x5c6   :  { %5801 = vmatmul.f32.vlgmr.msra.gmra.mxu0 %v4369_v60  ;;  %5893 = vmatmul.f32.vlgmr.msra.gmra.mxu1 %v4372_v35  ;;  %3033 = vst [vmem:[#allocation2 + $0xe8] sm:$0xff] %v12677_v48  ;;  %v2822_v19 = vmul.f32 %v12607_v1, %v17051_v10  ;;  %v4421_v62 = vrot.slane %v12704_v59, 5  ;;  %v3278_v31 = vrot.slane %v12674_v20, 1  ;;  %v4450_v8 = vsel %vm3855_vm0, %v4415_v39, %v4449_v42  ;;  %v17053_v60 = vld [vmem:[#allocation100_spill] sm:$0xff] }
 0x5c7   :  { %3034 = vst [vmem:[#allocation2 + $0x40] sm:$0xff] %v12689_v29  ;;  %v2826_v35 = vmul.f32 %v12607_v1, %v17053_v60  ;;  %v2827_v47 = vmul.f32 %v12609_v34, %v12059_v52  ;;  %v4452_v59 = vsel %vm3855_vm0, %v4417_v49, %v4451_v23  ;;  %v4420_v10 = vsel %vm3855_vm0, %v4368_v3, %v4419_v16  ;;  %v4140_v52 = vld [vmem:[%s16382_s7 + $0x258] sm:$0xff] }
 0x5c8   :  { %v2877_v33 = vadd.f32 %v12633_v7, %v2822_v19  ;;  %v4481_v50 = vrot.slane %v12671_v5, 5  ;;  %v2878_v55 = vadd.f32 %v12635_v32, %v2823_v17  ;;  %v12732_v45 = vsel %vm3261_vm8, %v3272_v22, %v3276_v56  ;;  %5973 = vmatpush.msrb.mxu2 %v4140_v52  ;;  %v17054_v22 = vld [vmem:[#allocation69_spill] sm:$0xff] }
 0x5c9   :  { %v2879_v19 = vadd.f32 %v12633_v7, %v2824_v30  ;;  %v2880_v60 = vadd.f32 %v12635_v32, %v2825_v63  ;;  %v4422_v49 = vsel %vm3855_vm0, %v4371_v6, %v4421_v62  ;;  %v12741_v3 = vsel %vm3261_vm8, %v3274_v18, %v3278_v31 }
 0x5ca   :  { %v2927_v39 = vmax.f32 %v2877_v33, 0.0  ;;  %v2881_v17 = vadd.f32 %v12633_v7, %v2826_v35  ;;  %v2882_v6 = vadd.f32 %v12635_v32, %v2827_v47  ;;  %v4483_v18 = vrot.slane %v12674_v20, 5 }
 0x5cb   :  { %5623 = vmatmul.f32.gmra.mxu2 %v4450_v8  ;;  %5715 = vmatmul.f32.gmra.mxu3 %v4452_v59  ;;  %v2928_v8 = vmax.f32 %v2878_v55, 0.0  ;;  %v2929_v30 = vmax.f32 %v2879_v19, 0.0  ;;  %v2930_v63 = vmax.f32 %v2880_v60, 0.0  ;;  %v4156_v59 = vld [vmem:[%s16382_s7 + $0x2d8] sm:$0xff]  ;;  %v17055_v19 = vld [vmem:[#allocation81_spill] sm:$0xff]  ;;  %v4455_v47 = vrot.slane %v12741_v3, 5 }
 0x5cc   :  { %v12745_v33 = vmul.f32 %v2927_v39, %v17054_v22  ;;  %6065 = vmatpush.msrb.mxu3 %v4156_v59  ;;  %v2931_v35 = vmax.f32 %v2881_v17, 0.0  ;;  %v16498_v39 = vrot.slane %v12677_v48, 1  ;;  %v3282_v20 = vrot.slane %v12689_v29, 1 }
 0x5cd   :  { %v12753_v55 = vmul.f32 %v2928_v8, %v17054_v22  ;;  %v12759_v60 = vmul.f32 %v2929_v30, %v17055_v19  ;;  %v12762_v52 = vmul.f32 %v2930_v63, %v17055_v19  ;;  %v4482_v17 = vsel %vm3855_vm0, %v4449_v42, %v4481_v50  ;;  %v17057_v30 = vld [vmem:[#allocation101_spill] sm:$0xff] }
 0x5ce   :  { %5804 = vmatmul.f32.gmra.mxu0 %v4420_v10  ;;  %5896 = vmatmul.f32.gmra.mxu1 %v4422_v49  ;;  %v4453_v10 = vrot.slane %v12732_v45, 5  ;;  %3035 = vst [vmem:[#allocation2 + $0xc0] sm:$0xff] %v12745_v33  ;;  %v17056_v49 = vld [vmem:[#allocation82_spill] sm:$0xff]  ;;  %v2932_v45 = vmax.f32 %v2882_v6, 0.0  ;;  %v2828_v63 = vmul.f32 %v12607_v1, %v17057_v30  ;;  %v4484_v3 = vsel %vm3855_vm0, %v4451_v23, %v4483_v18 }
 0x5cf   :  { %3036 = vst [vmem:[#allocation2 + $0x168] sm:$0xff] %v12753_v55  ;;  %v12768_v8 = vmul.f32 %v2931_v35, %v17056_v49  ;;  %v16500_v59 = vrot.slane %v12677_v48, 5  ;;  %v12782_v6 = vsel %vm3261_vm8, %v3276_v56, %v16498_v39  ;;  %v12789_v23 = vsel %vm3261_vm8, %v3278_v31, %v3282_v20  ;;  %v4139_v56 = vld [vmem:[%s16382_s7 + $0x250] sm:$0xff] }
 0x5d0   :  { %3037 = vst [vmem:[#allocation2 + $0x118] sm:$0xff] %v12759_v60  ;;  %v2883_v42 = vadd.f32 %v12633_v7, %v2828_v63  ;;  %v4454_v35 = vsel %vm3855_vm0, %v4419_v16, %v4453_v10  ;;  %v12792_v30 = vmul.f32 %v2932_v45, %v17056_v49  ;;  %v4515_v63 = vrot.slane %v12689_v29, 5  ;;  %5974 = vmatpush.msrb.mxu2 %v4139_v56  ;;  %v17058_v16 = vld [vmem:[#allocation103_spill] sm:$0xff]  ;;  %v17059_v56 = vld [vmem:[#allocation105_spill] sm:$0xff] }
 0x5d1   :  { %3038 = vst [vmem:[#allocation2 + $0x120] sm:$0xff] %v12762_v52  ;;  %v2831_v31 = vmul.f32 %v12609_v34, %v12096_v40  ;;  %v4485_v45 = vrot.slane %v12782_v6, 5  ;;  %v3284_v29 = vrot.slane %v12745_v33, 1  ;;  %v2833_v40 = vmul.f32 %v12609_v34, %v12113_v58 }
 0x5d2   :  { %3039 = vst [vmem:[#allocation2 + $0x60] sm:$0xff] %v12768_v8  ;;  %v3286_v6 = vrot.slane %v12753_v55, 1  ;;  %v4516_v5 = vsel %vm3855_vm0, %v4483_v18, %v4515_v63  ;;  %v4155_v18 = vld [vmem:[%s16382_s7 + $0x2d0] sm:$0xff] }
 0x5d3   :  { %5626 = vmatmul.f32.gmra.mxu2 %v4482_v17  ;;  %5718 = vmatmul.f32.gmra.mxu3 %v4484_v3  ;;  %v4456_v17 = vsel %vm3855_vm0, %v4421_v62, %v4455_v47  ;;  %v2829_v3 = vmul.f32 %v12609_v34, %v12077_v21  ;;  %3040 = vst [vmem:[#allocation2 + $0x188] sm:$0xff] %v12792_v30 }
 0x5d4   :  { %v2830_v62 = vmul.f32 %v12607_v1, %v17058_v16  ;;  %v4514_v21 = vsel %vm3855_vm0, %v4481_v50, %v16500_v59  ;;  %v2832_v16 = vmul.f32 %v12607_v1, %v17059_v56  ;;  %v2886_v50 = vadd.f32 %v12635_v32, %v2831_v31  ;;  %6066 = vmatpush.msrb.mxu3 %v4155_v18 }
 0x5d5   :  { %v2884_v39 = vadd.f32 %v12635_v32, %v2829_v3  ;;  %v2888_v56 = vadd.f32 %v12635_v32, %v2833_v40  ;;  %v4486_v58 = vsel %vm3855_vm0, %v4453_v10, %v4485_v45  ;;  %v4545_v10 = vrot.slane %v12745_v33, 5 }
 0x5d6   :  { %5807 = vmatmul.f32.gmra.mxu0 %v4454_v35  ;;  %5899 = vmatmul.f32.gmra.mxu1 %v4456_v17  ;;  %v4487_v35 = vrot.slane %v12789_v23, 5  ;;  %v2933_v17 = vmax.f32 %v2883_v42, 0.0  ;;  %v17060_v23 = vld [vmem:[#allocation87_spill] sm:$0xff]  ;;  %v2885_v49 = vadd.f32 %v12633_v7, %v2830_v62  ;;  %v2887_v59 = vadd.f32 %v12633_v7, %v2832_v16 }
 0x5d7   :  { %v2934_v3 = vmax.f32 %v2884_v39, 0.0  ;;  %v2936_v31 = vmax.f32 %v2886_v50, 0.0  ;;  %v3287_v40 = vsel %vm3261_vm8, %v3282_v20, %v3286_v6  ;;  %v3288_v33 = vrot.slane %v12759_v60, 1 }
 0x5d8   :  { %v12820_v42 = vmul.f32 %v2933_v17, %v17060_v23  ;;  %v4488_v19 = vsel %vm3855_vm0, %v4455_v47, %v4487_v35  ;;  %v2935_v62 = vmax.f32 %v2885_v49, 0.0  ;;  %v2937_v17 = vmax.f32 %v2887_v59, 0.0  ;;  %v17063_v59 = vld [vmem:[#allocation93_spill] sm:$0xff] }
 0x5d9   :  { %v12831_v39 = vmul.f32 %v2934_v3, %v17060_v23  ;;  %v17061_v47 = vrot.slane %v12677_v48, 1  ;;  %v4547_v3 = vrot.slane %v12753_v55, 5  ;;  %v3290_v55 = vrot.slane %v12762_v52, 1 }
 0x5da   :  { %3041 = vst [vmem:[#allocation2 + $0x198] sm:$0xff] %v12820_v42 }
 0x5db   :  { %5629 = vmatmul.f32.gmra.mxu2 %v4514_v21  ;;  %5721 = vmatmul.f32.gmra.mxu3 %v4516_v5  ;;  %v2938_v21 = vmax.f32 %v2888_v56, 0.0  ;;  %v3285_v16 = vsel %vm3261_vm8, %v17061_v47, %v3284_v29  ;;  %3042 = vst [vmem:[#allocation2 + $0x1b8] sm:$0xff] %v12831_v39  ;;  %v17062_v5 = vld [vmem:[#allocation89_spill] sm:$0xff]  ;;  %v17064_v56 = vld [vmem:[#allocation108_spill] sm:$0xff]  ;;  %v4519_v47 = vrot.slane %v3287_v40, 5 }
 0x5dc   :  { %v12844_v18 = vmul.f32 %v2935_v62, %v17062_v5  ;;  %v12847_v49 = vmul.f32 %v2936_v31, %v17062_v5  ;;  %v2834_v20 = vmul.f32 %v12607_v1, %v17064_v56  ;;  %v17065_v62 = vrot.slane %v12677_v48, 5  ;;  %v17068_v5 = vld [vmem:[#allocation113_spill] sm:$0xff] }
 0x5dd   :  { %v12854_v50 = vmul.f32 %v2938_v21, %v17063_v59  ;;  %v4548_v21 = vsel %vm3855_vm0, %v4515_v63, %v4547_v3  ;;  %v4520_v48 = vsel %vm3855_vm0, %v4487_v35, %v4519_v47  ;;  %v12874_v56 = vsel %vm3261_vm8, %v3286_v6, %v3290_v55  ;;  %v4138_v63 = vld [vmem:[%s16382_s7 + $0x248] sm:$0xff] }
 0x5de   :  { %5810 = vmatmul.f32.gmra.mxu0 %v4486_v58  ;;  %5902 = vmatmul.f32.gmra.mxu1 %v4488_v19  ;;  %v12850_v19 = vmul.f32 %v2937_v17, %v17063_v59  ;;  %v4517_v58 = vrot.slane %v3285_v16, 5  ;;  %3043 = vst [vmem:[#allocation2 + $0xd0] sm:$0xff] %v12844_v18  ;;  %v4546_v31 = vsel %vm3855_vm0, %v17065_v62, %v4545_v10  ;;  %v4579_v35 = vrot.slane %v12762_v52, 5 }
 0x5df   :  { %3044 = vst [vmem:[#allocation2 + $0x138] sm:$0xff] %v12847_v49  ;;  %v2889_v17 = vadd.f32 %v12633_v7, %v2834_v20  ;;  %v12868_v16 = vsel %vm3261_vm8, %v3284_v29, %v3288_v33  ;;  %v4577_v20 = vrot.slane %v12759_v60, 5  ;;  %v4154_v29 = vld [vmem:[%s16382_s7 + $0x2c8] sm:$0xff]  ;;  %5975 = vmatpush.msrb.mxu2 %v4138_v63  ;;  %v3294_v52 = vrot.slane %v12792_v30, 1 }
 0x5e0   :  { %3045 = vst [vmem:[#allocation2 + $0x108] sm:$0xff] %v12850_v19  ;;  %v4518_v40 = vsel %vm3855_vm0, %v4485_v45, %v4517_v58  ;;  %v2835_v45 = vmul.f32 %v12609_v34, %v12129_v51  ;;  %v4549_v6 = vrot.slane %v12868_v16, 5  ;;  %6067 = vmatpush.msrb.mxu3 %v4154_v29  ;;  %v17066_v60 = vld [vmem:[#allocation110_spill] sm:$0xff]  ;;  %v2837_v51 = vmul.f32 %v12609_v34, %v12151_v36 }
 0x5e1   :  { %3046 = vst [vmem:[#allocation2 + $0x10] sm:$0xff] %v12854_v50  ;;  %v2939_v62 = vmax.f32 %v2889_v17, 0.0  ;;  %v2838_v63 = vmul.f32 %v12607_v1, %v17068_v5  ;;  %v2839_v29 = vmul.f32 %v12609_v34, %v12172_v57  ;;  %v4580_v36 = vsel %vm3855_vm0, %v4547_v3, %v4579_v35  ;;  %v17069_v3 = vld [vmem:[#allocation99_spill] sm:$0xff] }
 0x5e2   :  { %v2890_v17 = vadd.f32 %v12635_v32, %v2835_v45  ;;  %v2892_v45 = vadd.f32 %v12635_v32, %v2837_v51  ;;  %v4550_v5 = vsel %vm3855_vm0, %v4517_v58, %v4549_v6  ;;  %v4609_v58 = vrot.slane %v12768_v8, 5 }
 0x5e3   :  { %5632 = vmatmul.f32.gmra.mxu2 %v4546_v31  ;;  %5724 = vmatmul.f32.gmra.mxu3 %v4548_v21  ;;  %v3292_v31 = vrot.slane %v12768_v8, 1  ;;  %v2836_v21 = vmul.f32 %v12607_v1, %v17066_v60  ;;  %v2893_v23 = vadd.f32 %v12633_v7, %v2838_v63 }
 0x5e5   :  { %v2891_v16 = vadd.f32 %v12633_v7, %v2836_v21  ;;  %v2894_v21 = vadd.f32 %v12635_v32, %v2839_v29  ;;  %v12911_v57 = vsel %vm3261_vm8, %v3288_v33, %v3292_v31  ;;  %v2943_v63 = vmax.f32 %v2893_v23, 0.0 }
 0x5e6   :  { %5813 = vmatmul.f32.gmra.mxu0 %v4518_v40  ;;  %5905 = vmatmul.f32.gmra.mxu1 %v4520_v48  ;;  %v4551_v40 = vrot.slane %v12874_v56, 5  ;;  %v17067_v48 = vld [vmem:[#allocation96_spill] sm:$0xff]  ;;  %v4578_v56 = vsel %vm3855_vm0, %v4545_v10, %v4577_v20  ;;  %v4581_v23 = vrot.slane %v12911_v57, 5 }
 0x5e7   :  { %v12892_v59 = vmul.f32 %v2939_v62, %v17067_v48  ;;  %v2940_v62 = vmax.f32 %v2890_v17, 0.0  ;;  %v2941_v60 = vmax.f32 %v2891_v16, 0.0  ;;  %v2942_v17 = vmax.f32 %v2892_v45, 0.0  ;;  %v17071_v45 = vld [vmem:[#allocation102_spill] sm:$0xff] }
 0x5e8   :  { %v4552_v51 = vsel %vm3855_vm0, %v4519_v47, %v4551_v40  ;;  %v2944_v29 = vmax.f32 %v2894_v21, 0.0  ;;  %v3296_v21 = vrot.slane %v12820_v42, 1 }
 0x5e9   :  { %3047 = vst [vmem:[#allocation2 + $0x8] sm:$0xff] %v12892_v59  ;;  %v12914_v10 = vmul.f32 %v2940_v62, %v17067_v48  ;;  %v12921_v16 = vmul.f32 %v2941_v60, %v17069_v3  ;;  %v12926_v33 = vmul.f32 %v2942_v17, %v17069_v3  ;;  %v17070_v62 = vld [vmem:[#allocation115_spill] sm:$0xff] }
 0x5ea   :  { %v2840_v47 = vmul.f32 %v12607_v1, %v17070_v62  ;;  %v12944_v17 = vmul.f32 %v2944_v29, %v17071_v45  ;;  %v4153_v62 = vld [vmem:[%s16382_s7 + $0x2c0] sm:$0xff]  ;;  %v12957_v29 = vsel %vm3261_vm8, %v3292_v31, %v3296_v21 }
 0x5eb   :  { %5635 = vmatmul.f32.gmra.mxu2 %v4578_v56  ;;  %5727 = vmatmul.f32.gmra.mxu3 %v4580_v36  ;;  %v12918_v56 = vsel %vm3261_vm8, %v3290_v55, %v3294_v52  ;;  %3048 = vst [vmem:[#allocation2 + $0x150] sm:$0xff] %v12914_v10  ;;  %v4611_v55 = vrot.slane %v12792_v30, 5  ;;  %v12933_v36 = vmul.f32 %v2943_v63, %v17071_v45  ;;  %v4137_v63 = vld [vmem:[%s16382_s7 + $0x240] sm:$0xff] }
 0x5ec   :  { %3049 = vst [vmem:[#allocation2 + $0xa0] sm:$0xff] %v12921_v16  ;;  %v4583_v8 = vrot.slane %v12918_v56, 5  ;;  %v2895_v60 = vadd.f32 %v12633_v7, %v2840_v47  ;;  %v4610_v30 = vsel %vm3855_vm0, %v4577_v20, %v4609_v58  ;;  %5976 = vmatpush.msrb.mxu2 %v4137_v63  ;;  %6068 = vmatpush.msrb.mxu3 %v4153_v62  ;;  %v17072_v47 = vld [vmem:[#allocation104_spill] sm:$0xff]  ;;  %v4613_v62 = vrot.slane %v12957_v29, 5 }
 0x5ed   :  { %3050 = vst [vmem:[#allocation2 + $0x80] sm:$0xff] %v12926_v33  ;;  %v4612_v57 = vsel %vm3855_vm0, %v4579_v35, %v4611_v55  ;;  %v2843_v63 = vmul.f32 %v12609_v34, %v12204_v54 }
 0x5ee   :  { %5816 = vmatmul.f32.gmra.mxu0 %v4550_v5  ;;  %5908 = vmatmul.f32.gmra.mxu1 %v4552_v51  ;;  %v3298_v5 = vrot.slane %v12831_v39, 1  ;;  %3051 = vst [vmem:[#allocation2 + $0x128] sm:$0xff] %v12933_v36  ;;  %v4582_v51 = vsel %vm3855_vm0, %v4549_v6, %v4581_v23  ;;  %v4584_v56 = vsel %vm3855_vm0, %v4551_v40, %v4583_v8  ;;  %v2945_v20 = vmax.f32 %v2895_v60, 0.0 }
 0x5ef   :  { %3052 = vst [vmem:[#allocation2 + $0x38] sm:$0xff] %v12944_v17  ;;  %v2841_v6 = vmul.f32 %v12609_v34, %v12188_v28  ;;  %v4641_v40 = vrot.slane %v12820_v42, 5  ;;  %v4643_v60 = vrot.slane %v12831_v39, 5  ;;  %v17074_v42 = vld [vmem:[#allocation119_spill] sm:$0xff]  ;;  %v3302_v39 = vrot.slane %v12847_v49, 1 }
 0x5f0   :  { %v12960_v35 = vsel %vm3261_vm8, %v3294_v52, %v3298_v5 }
 0x5f1   :  { %v2896_v31 = vadd.f32 %v12635_v32, %v2841_v6  ;;  %v4615_v28 = vrot.slane %v12960_v35, 5  ;;  %v4642_v54 = vsel %vm3855_vm0, %v4609_v58, %v4641_v40  ;;  %v2845_v35 = vmul.f32 %v12609_v34, %v12224_v26 }
 0x5f2   :  { %v4644_v45 = vsel %vm3855_vm0, %v4611_v55, %v4643_v60  ;;  %v12999_v55 = vsel %vm3261_vm8, %v3298_v5, %v3302_v39  ;;  %v17076_v5 = vld [vmem:[#allocation121_spill] sm:$0xff] }
 0x5f3   :  { %5638 = vmatmul.f32.gmra.mxu2 %v4610_v30  ;;  %5730 = vmatmul.f32.gmra.mxu3 %v4612_v57  ;;  %v12966_v30 = vmul.f32 %v2945_v20, %v17072_v47  ;;  %v17073_v57 = vld [vmem:[#allocation117_spill] sm:$0xff]  ;;  %v2946_v20 = vmax.f32 %v2896_v31, 0.0  ;;  %v4614_v31 = vsel %vm3855_vm0, %v4581_v23, %v4613_v62  ;;  %v2900_v58 = vadd.f32 %v12635_v32, %v2845_v35 }
 0x5f4   :  { %v2842_v52 = vmul.f32 %v12607_v1, %v17073_v57  ;;  %v2898_v57 = vadd.f32 %v12635_v32, %v2843_v63  ;;  %v3306_v35 = vrot.slane %v12854_v50, 1 }
 0x5f5   :  { %3053 = vst [vmem:[#allocation2 + $0x88] sm:$0xff] %v12966_v30  ;;  %v12989_v3 = vmul.f32 %v2946_v20, %v17072_v47  ;;  %v17075_v20 = vld [vmem:[#allocation107_spill] sm:$0xff] }
 0x5f6   :  { %5819 = vmatmul.f32.gmra.mxu0 %v4582_v51  ;;  %5911 = vmatmul.f32.gmra.mxu1 %v4584_v56  ;;  %v3300_v51 = vrot.slane %v12844_v18, 1  ;;  %v2844_v56 = vmul.f32 %v12607_v1, %v17074_v42  ;;  %v2897_v6 = vadd.f32 %v12633_v7, %v2842_v52  ;;  %v2948_v48 = vmax.f32 %v2898_v57, 0.0 }
 0x5f7   :  { %v4673_v52 = vrot.slane %v12844_v18, 5  ;;  %3054 = vst [vmem:[#allocation2 + $0x158] sm:$0xff] %v12989_v3  ;;  %v4136_v18 = vld [vmem:[%s16382_s7 + $0x238] sm:$0xff]  ;;  %v2846_v57 = vmul.f32 %v12607_v1, %v17076_v5 }
 0x5f8   :  { %v2899_v29 = vadd.f32 %v12633_v7, %v2844_v56  ;;  %v2947_v42 = vmax.f32 %v2897_v6, 0.0  ;;  %v4616_v56 = vsel %vm3855_vm0, %v4583_v8, %v4615_v28  ;;  %v12996_v26 = vsel %vm3261_vm8, %v3296_v21, %v3300_v51  ;;  %5977 = vmatpush.msrb.mxu2 %v4136_v18 }
 0x5f9   :  { %v13012_v23 = vmul.f32 %v2948_v48, %v17075_v20  ;;  %v2950_v21 = vmax.f32 %v2900_v58, 0.0  ;;  %v2901_v48 = vadd.f32 %v12633_v7, %v2846_v57  ;;  %v17078_v57 = vld [vmem:[#allocation114_spill] sm:$0xff] }
 0x5fa   :  { %v2949_v63 = vmax.f32 %v2899_v29, 0.0  ;;  %v13003_v6 = vmul.f32 %v2947_v42, %v17075_v20  ;;  %v3304_v29 = vrot.slane %v12850_v19, 1  ;;  %v4645_v42 = vrot.slane %v12996_v26, 5 }
 0x5fb   :  { %5641 = vmatmul.f32.gmra.mxu2 %v4642_v54  ;;  %5733 = vmatmul.f32.gmra.mxu3 %v4644_v45  ;;  %v4152_v45 = vld [vmem:[%s16382_s7 + $0x2b8] sm:$0xff]  ;;  %v4675_v54 = vrot.slane %v12847_v49, 5  ;;  %3056 = vst [vmem:[#allocation2 + $0x68] sm:$0xff] %v13012_v23  ;;  %v13029_v49 = vmul.f32 %v2950_v21, %v17013_v0  ;;  %v2951_v18 = vmax.f32 %v2901_v48, 0.0 }
 0x5fc   :  { %v13015_v8 = vmul.f32 %v2949_v63, %v17013_v0  ;;  %6069 = vmatpush.msrb.mxu3 %v4152_v45  ;;  %3055 = vst [vmem:[#allocation2 + $0x180] sm:$0xff] %v13003_v6  ;;  %v4674_v63 = vsel %vm3855_vm0, %v4641_v40, %v4673_v52  ;;  %v13037_v26 = vsel %vm3261_vm8, %v3300_v51, %v3304_v29 }
 0x5fd   :  { %v4676_v58 = vsel %vm3855_vm0, %v4643_v60, %v4675_v54  ;;  %3058 = vst [vmem:[#allocation2 + $0x140] sm:$0xff] %v13029_v49  ;;  %v4646_v45 = vsel %vm3855_vm0, %v4613_v62, %v4645_v42  ;;  %v17077_v60 = vld [vmem:[#allocation123_spill] sm:$0xff]  ;;  %v13049_v51 = vmul.f32 %v2951_v18, %v17078_v57  ;;  %v2849_v62 = vmul.f32 %v12609_v34, %v12255_v24 }
 0x5fe   :  { %5822 = vmatmul.f32.gmra.mxu0 %v4614_v31  ;;  %5914 = vmatmul.f32.gmra.mxu1 %v4616_v56  ;;  %v4647_v31 = vrot.slane %v12999_v55, 5  ;;  %3057 = vst [vmem:[#allocation2 + $0x178] sm:$0xff] %v13015_v8  ;;  %v2847_v56 = vmul.f32 %v12609_v34, %v12240_v27  ;;  %v13040_v55 = vsel %vm3261_vm8, %v3302_v39, %v3306_v35  ;;  %v4705_v27 = vrot.slane %v12850_v19, 5 }
 0x5ff   :  { %v2848_v5 = vmul.f32 %v12607_v1, %v17077_v60  ;;  %v4707_v39 = vrot.slane %v12854_v50, 5  ;;  %3059 = vst [vmem:[#allocation2 + $0xd8] sm:$0xff] %v13049_v51  ;;  %v2851_v18 = vmul.f32 %v12609_v34, %v12265_v44  ;;  %v3308_v50 = vrot.slane %v12892_v59, 1 }
 0x600   :  { %v4648_v40 = vsel %vm3855_vm0, %v4615_v28, %v4647_v31  ;;  %v2902_v21 = vadd.f32 %v12635_v32, %v2847_v56  ;;  %v4677_v28 = vrot.slane %v13037_v26, 5  ;;  %v17079_v56 = vld [vmem:[#allocation125_spill] sm:$0xff]  ;;  %v2904_v24 = vadd.f32 %v12635_v32, %v2849_v62 }
 0x601   :  { %v2903_v48 = vadd.f32 %v12633_v7, %v2848_v5  ;;  %v2850_v19 = vmul.f32 %v12607_v1, %v17079_v56  ;;  %v4706_v26 = vsel %vm3855_vm0, %v4673_v52, %v4705_v27  ;;  %v2906_v60 = vadd.f32 %v12635_v32, %v2851_v18  ;;  %v4135_v52 = vld [vmem:[%s16382_s7 + $0x230] sm:$0xff] }
 0x602   :  { %v4708_v5 = vsel %vm3855_vm0, %v4675_v54, %v4707_v39  ;;  %v13082_v18 = vsel %vm3261_vm8, %v3304_v29, %v3308_v50  ;;  %5978 = vmatpush.msrb.mxu2 %v4135_v52  ;;  %v17080_v54 = vld [vmem:[#allocation126_spill] sm:$0xff] }
 0x603   :  { %5644 = vmatmul.f32.gmra.mxu2 %v4674_v63  ;;  %5736 = vmatmul.f32.gmra.mxu3 %v4676_v58  ;;  %v2952_v63 = vmax.f32 %v2902_v21, 0.0  ;;  %v4679_v58 = vrot.slane %v13040_v55, 5  ;;  %v3310_v55 = vrot.slane %v12914_v10, 1  ;;  %v2905_v21 = vadd.f32 %v12633_v7, %v2850_v19 }
 0x604   :  { %v2956_v56 = vmax.f32 %v2906_v60, 0.0 }
 0x605   :  { %v2955_v62 = vmax.f32 %v2905_v21, 0.0  ;;  %v4680_v19 = vsel %vm3855_vm0, %v4647_v31, %v4679_v58  ;;  %v4151_v31 = vld [vmem:[%s16382_s7 + $0x2b0] sm:$0xff]  ;;  %v4739_v21 = vrot.slane %v12914_v10, 5  ;;  %v3314_v10 = vrot.slane %v12926_v33, 1 }
 0x606   :  { %5825 = vmatmul.f32.gmra.mxu0 %v4646_v45  ;;  %5917 = vmatmul.f32.gmra.mxu1 %v4648_v40  ;;  %v13064_v45 = vmul.f32 %v2952_v63, %v17078_v57  ;;  %v2953_v40 = vmax.f32 %v2903_v48, 0.0  ;;  %v4678_v63 = vsel %vm3855_vm0, %v4645_v42, %v4677_v28  ;;  %v2954_v48 = vmax.f32 %v2904_v24, 0.0 }
 0x607   :  { %v4737_v42 = vrot.slane %v12892_v59, 5  ;;  %v13098_v24 = vmul.f32 %v2955_v62, %v17018_v15  ;;  %6070 = vmatpush.msrb.mxu3 %v4151_v31  ;;  %v13102_v60 = vmul.f32 %v2956_v56, %v17018_v15  ;;  %v2853_v62 = vmul.f32 %v12609_v34, %v12272_v53  ;;  %v17081_v31 = vld [vmem:[#allocation129_spill] sm:$0xff] }
 0x608   :  { %3060 = vst [vmem:[#allocation2 + $0x50] sm:$0xff] %v13064_v45  ;;  %v13074_v44 = vmul.f32 %v2953_v40, %v17016_v14  ;;  %v2852_v40 = vmul.f32 %v12607_v1, %v17080_v54  ;;  %v13095_v29 = vmul.f32 %v2954_v48, %v17016_v14  ;;  %v4740_v56 = vsel %vm3855_vm0, %v4707_v39, %v4739_v21 }
 0x609   :  { %3063 = vst [vmem:[#allocation2 + $0x1b0] sm:$0xff] %v13098_v24  ;;  %v4738_v52 = vsel %vm3855_vm0, %v4705_v27, %v4737_v42  ;;  %v2908_v54 = vadd.f32 %v12635_v32, %v2853_v62  ;;  %v2854_v53 = vmul.f32 %v12607_v1, %v17081_v31  ;;  %v13129_v39 = vsel %vm3261_vm8, %v3310_v55, %v3314_v10 }
 0x60a   :  { %3061 = vst [vmem:[#allocation2 + $0x1c8] sm:$0xff] %v13074_v44  ;;  %v2907_v59 = vadd.f32 %v12633_v7, %v2852_v40  ;;  %v3316_v31 = vrot.slane %v12933_v36, 1 }
 0x60b   :  { %5647 = vmatmul.f32.gmra.mxu2 %v4706_v26  ;;  %5739 = vmatmul.f32.gmra.mxu3 %v4708_v5  ;;  %v13089_v26 = vsel %vm3261_vm8, %v3306_v35, %v3310_v55  ;;  %3062 = vst [vmem:[#allocation2 + $0xa8] sm:$0xff] %v13095_v29  ;;  %v4709_v35 = vrot.slane %v13082_v18, 5  ;;  %v2909_v55 = vadd.f32 %v12633_v7, %v2854_v53  ;;  %v17083_v53 = vld [vmem:[#allocation133_spill] sm:$0xff] }
 0x60c   :  { %v4711_v5 = vrot.slane %v13089_v26, 5  ;;  %3064 = vst [vmem:[#allocation2 + $0x1c0] sm:$0xff] %v13102_v60  ;;  %v2957_v48 = vmax.f32 %v2907_v59, 0.0  ;;  %v4771_v59 = vrot.slane %v12926_v33, 5  ;;  %v2857_v33 = vmul.f32 %v12609_v34, %v12285_v13 }
 0x60d   :  { %v4710_v27 = vsel %vm3855_vm0, %v4677_v28, %v4709_v35  ;;  %v4150_v28 = vld [vmem:[%s16382_s7 + $0x2a8] sm:$0xff] }
 0x60e   :  { %5828 = vmatmul.f32.gmra.mxu0 %v4678_v63  ;;  %5920 = vmatmul.f32.gmra.mxu1 %v4680_v19  ;;  %v3312_v63 = vrot.slane %v12921_v16, 1  ;;  %v4769_v19 = vrot.slane %v12921_v16, 5  ;;  %v13118_v18 = vmul.f32 %v2957_v48, %v17019_v46  ;;  %v4712_v40 = vsel %vm3855_vm0, %v4679_v58, %v4711_v5  ;;  %v4134_v16 = vld [vmem:[%s16382_s7 + $0x228] sm:$0xff] }
 0x60f   :  { %v2958_v58 = vmax.f32 %v2908_v54, 0.0  ;;  %5979 = vmatpush.msrb.mxu2 %v4134_v16  ;;  %6071 = vmatpush.msrb.mxu3 %v4150_v28  ;;  %v4743_v54 = vrot.slane %v13129_v39, 5  ;;  %v2858_v16 = vmul.f32 %v12607_v1, %v17083_v53  ;;  %v4772_v39 = vsel %vm3855_vm0, %v4739_v21, %v4771_v59 }
 0x610   :  { %v13124_v26 = vsel %vm3261_vm8, %v3308_v50, %v3312_v63  ;;  %3065 = vst [vmem:[#allocation2 + $0x48] sm:$0xff] %v13118_v18  ;;  %v2855_v50 = vmul.f32 %v12609_v34, %v12279_v61  ;;  %v2912_v13 = vadd.f32 %v12635_v32, %v2857_v33  ;;  %v4803_v53 = vrot.slane %v12944_v17, 5 }
 0x611   :  { %v4741_v48 = vrot.slane %v13124_v26, 5  ;;  %v13145_v62 = vmul.f32 %v2958_v58, %v17019_v46 }
 0x612   :  { %v2962_v33 = vmax.f32 %v2912_v13, 0.0 }
 0x613   :  { %5650 = vmatmul.f32.gmra.mxu2 %v4738_v52  ;;  %5742 = vmatmul.f32.gmra.mxu3 %v4740_v56  ;;  %v4770_v52 = vsel %vm3855_vm0, %v4737_v42, %v4769_v19  ;;  %v2910_v56 = vadd.f32 %v12635_v32, %v2855_v50  ;;  %v3318_v42 = vrot.slane %v12944_v17, 1  ;;  %3066 = vst [vmem:[#allocation2 + $0x58] sm:$0xff] %v13145_v62 }
 0x614   :  { %v2859_v17 = vmul.f32 %v12609_v34, %v12291_v37  ;;  %v2861_v37 = vmul.f32 %v12609_v34, %v12297_v4 }
 0x615   :  { %v2960_v26 = vmax.f32 %v2910_v56, 0.0  ;;  %v4742_v56 = vsel %vm3855_vm0, %v4709_v35, %v4741_v48 }
 0x616   :  { %5831 = vmatmul.f32.gmra.mxu0 %v4710_v27  ;;  %5923 = vmatmul.f32.gmra.mxu1 %v4712_v40  ;;  %v2959_v27 = vmax.f32 %v2909_v55, 0.0  ;;  %v17082_v40 = vld [vmem:[#allocation131_spill] sm:$0xff]  ;;  %v2913_v55 = vadd.f32 %v12633_v7, %v2858_v16  ;;  %v2914_v13 = vadd.f32 %v12635_v32, %v2859_v17  ;;  %v2916_v4 = vadd.f32 %v12635_v32, %v2861_v37 }
 0x617   :  { %v2856_v61 = vmul.f32 %v12607_v1, %v17082_v40  ;;  %v13165_v50 = vmul.f32 %v2960_v26, %v17020_v9  ;;  %v4744_v40 = vsel %vm3855_vm0, %v4711_v5, %v4743_v54 }
 0x618   :  { %v13160_v28 = vmul.f32 %v2959_v27, %v17020_v9  ;;  %v3317_v27 = vsel %vm3261_vm8, %v3312_v63, %v3316_v31  ;;  %v2963_v26 = vmax.f32 %v2913_v55, 0.0  ;;  %v3320_v63 = vrot.slane %v12966_v30, 1 }
 0x619   :  { %v2911_v58 = vadd.f32 %v12633_v7, %v2856_v61  ;;  %v3319_v61 = vsel %vm3261_vm8, %v3314_v10, %v3318_v42  ;;  %3068 = vst [vmem:[#allocation2 + $0x70] sm:$0xff] %v13165_v50  ;;  %v4773_v5 = vrot.slane %v3317_v27, 5  ;;  %v3322_v10 = vrot.slane %v12989_v3, 1 }
 0x61a   :  { %3067 = vst [vmem:[#allocation2 + $0xb0] sm:$0xff] %v13160_v28  ;;  %v4775_v16 = vrot.slane %v3319_v61, 5  ;;  %v3321_v27 = vsel %vm3261_vm8, %v3316_v31, %v3320_v63  ;;  %v4149_v31 = vld [vmem:[%s16382_s7 + $0x2a0] sm:$0xff] }
 0x61b   :  { %5653 = vmatmul.f32.gmra.mxu2 %v4770_v52  ;;  %5745 = vmatmul.f32.gmra.mxu3 %v4772_v39  ;;  %v4801_v52 = vrot.slane %v12933_v36, 5  ;;  %v2961_v21 = vmax.f32 %v2911_v58, 0.0  ;;  %v13182_v39 = vmul.f32 %v2962_v33, %v17021_v2  ;;  %v13187_v58 = vmul.f32 %v2963_v26, %v17022_v12 }
 0x61c   :  { %v4774_v55 = vsel %vm3855_vm0, %v4741_v48, %v4773_v5  ;;  %v3323_v61 = vsel %vm3261_vm8, %v3318_v42, %v3322_v10  ;;  %v4133_v48 = vld [vmem:[%s16382_s7 + $0x220] sm:$0xff]  ;;  %v2964_v33 = vmax.f32 %v2914_v13, 0.0  ;;  %6072 = vmatpush.msrb.mxu3 %v4149_v31  ;;  %v3330_v31 = vrot.slane %v13029_v49, 1 }
 0x61d   :  { %v13177_v35 = vmul.f32 %v2961_v21, %v17021_v2  ;;  %v4802_v36 = vsel %vm3855_vm0, %v4769_v19, %v4801_v52  ;;  %v4804_v19 = vsel %vm3855_vm0, %v4771_v59, %v4803_v53  ;;  %3070 = vst [vmem:[#allocation2 + $0x1a0] sm:$0xff] %v13182_v39  ;;  %v4833_v59 = vrot.slane %v12966_v30, 5  ;;  %5980 = vmatpush.msrb.mxu2 %v4133_v48 }
 0x61e   :  { %5834 = vmatmul.f32.gmra.mxu0 %v4742_v56  ;;  %5926 = vmatmul.f32.gmra.mxu1 %v4744_v40  ;;  %3071 = vst [vmem:[#allocation2] sm:$0xff] %v13187_v58  ;;  %v4776_v56 = vsel %vm3855_vm0, %v4743_v54, %v4775_v16  ;;  %v17084_v40 = vld [vmem:[#allocation13_spill] sm:$0xff]  ;;  %v4835_v54 = vrot.slane %v12989_v3, 5  ;;  %v4805_v30 = vrot.slane %v3321_v27, 5  ;;  %v4807_v17 = vrot.slane %v3323_v61, 5 }
 0x61f   :  { %3069 = vst [vmem:[#allocation2 + $0x98] sm:$0xff] %v13177_v35  ;;  %v2860_v21 = vmul.f32 %v12607_v1, %v17084_v40  ;;  %v4834_v13 = vsel %vm3855_vm0, %v4801_v52, %v4833_v59  ;;  %v3324_v3 = vrot.slane %v13003_v6, 1  ;;  %v4865_v52 = vrot.slane %v13003_v6, 5 }
 0x620   :  { %v4806_v37 = vsel %vm3855_vm0, %v4773_v5, %v4805_v30  ;;  %v4808_v27 = vsel %vm3855_vm0, %v4775_v16, %v4807_v17  ;;  %v4132_v5 = vld [vmem:[%s16382_s7 + $0x218] sm:$0xff] }
 0x621   :  { %v2915_v26 = vadd.f32 %v12633_v7, %v2860_v21  ;;  %v3325_v61 = vsel %vm3261_vm8, %v3320_v63, %v3324_v3  ;;  %v4866_v16 = vsel %vm3855_vm0, %v4833_v59, %v4865_v52  ;;  %5981 = vmatpush.msrb.mxu2 %v4132_v5  ;;  %v4131_v5 = vld [vmem:[%s16382_s7 + $0x210] sm:$0xff] }
 0x623   :  { %5656 = vmatmul.f32.gmra.mxu2 %v4802_v36  ;;  %5748 = vmatmul.f32.gmra.mxu3 %v4804_v19  ;;  %v13211_v36 = vmul.f32 %v2964_v33, %v17022_v12  ;;  %v2965_v42 = vmax.f32 %v2915_v26, 0.0  ;;  %v2966_v19 = vmax.f32 %v2916_v4, 0.0  ;;  %v4837_v33 = vrot.slane %v3325_v61, 5 }
 0x624   :  { %v3328_v4 = vrot.slane %v13015_v8, 1  ;;  %v4931_v61 = vrot.slane %v13064_v45, 5  ;;  %5982 = vmatpush.msrb.mxu2 %v4131_v5 }
 0x625   :  { %3072 = vst [vmem:[#allocation2 + $0x170] sm:$0xff] %v13211_v36  ;;  %v3015_v40 = vmul.f32 %v2965_v42, %v17023_v38  ;;  %v3016_v21 = vmul.f32 %v2966_v19, %v17023_v38  ;;  %v4838_v63 = vsel %vm3855_vm0, %v4805_v30, %v4837_v33  ;;  %v4148_v19 = vld [vmem:[%s16382_s7 + $0x298] sm:$0xff]  ;;  %v7874_v38 = vld [vmem:[#allocation2 + $0x50] sm:$0xff] }
 0x626   :  { %5837 = vmatmul.f32.gmra.mxu0 %v4774_v55  ;;  %5929 = vmatmul.f32.gmra.mxu1 %v4776_v56  ;;  %v3326_v55 = vrot.slane %v13012_v23, 1  ;;  %v4836_v56 = vsel %vm3855_vm0, %v4803_v53, %v4835_v54  ;;  %v4867_v53 = vrot.slane %v13012_v23, 5  ;;  %v3329_v42 = vsel %vm3261_vm8, %v3324_v3, %v3328_v4  ;;  %v13249_v3 = vpop.f32.mrf.mxu2 }
 0x627   :  { %3073 = vst [vmem:[#allocation2 + $0x1a8] sm:$0xff] %v3015_v40  ;;  %6073 = vmatpush.msrb.mxu3 %v4148_v19  ;;  %v3334_v40 = vrot.slane %v13064_v45, 1 }
 0x628   :  { %v3327_v48 = vsel %vm3261_vm8, %v3322_v10, %v3326_v55  ;;  %3074 = vst [vmem:[#allocation2 + $0x20] sm:$0xff] %v3016_v21  ;;  %v4868_v6 = vsel %vm3855_vm0, %v4835_v54, %v4867_v53  ;;  %v4897_v10 = vrot.slane %v13015_v8, 5  ;;  %v3331_v59 = vsel %vm3261_vm8, %v3326_v55, %v3330_v31  ;;  %v13251_v55 = vpop.f32.mrf.mxu3 }
 0x629   :  { %v4839_v26 = vrot.slane %v3327_v48, 5  ;;  %v4869_v54 = vrot.slane %v3329_v42, 5  ;;  %v4961_v42 = vrot.slane %v13074_v44, 5 }
 0x62a   :  { %v4898_v30 = vsel %vm3855_vm0, %v4865_v52, %v4897_v10  ;;  %v3335_v52 = vsel %vm3261_vm8, %v3330_v31, %v3334_v40 }
 0x62b   :  { %5659 = vmatmul.f32.gmra.mxu2 %v4834_v13  ;;  %5751 = vmatmul.f32.gmra.mxu3 %v4836_v56  ;;  %v4840_v23 = vsel %vm3855_vm0, %v4807_v17, %v4839_v26  ;;  %v4899_v13 = vrot.slane %v13029_v49, 5  ;;  %v4871_v56 = vrot.slane %v3331_v59, 5  ;;  %v3332_v17 = vrot.slane %v13049_v51, 1 }
 0x62c   :  { %v4870_v21 = vsel %vm3855_vm0, %v4837_v33, %v4869_v54  ;;  %v4147_v33 = vld [vmem:[%s16382_s7 + $0x290] sm:$0xff] }
 0x62d   :  { %v4900_v8 = vsel %vm3855_vm0, %v4867_v53, %v4899_v13  ;;  %v4872_v49 = vsel %vm3855_vm0, %v4839_v26, %v4871_v56  ;;  %v4903_v53 = vrot.slane %v3335_v52, 5  ;;  %6074 = vmatpush.msrb.mxu3 %v4147_v33  ;;  %v4932_v45 = vsel %vm3855_vm0, %v4899_v13, %v4931_v61 }
 0x62e   :  { %5840 = vmatmul.f32.gmra.mxu0 %v4806_v37  ;;  %5932 = vmatmul.f32.gmra.mxu1 %v4808_v27  ;;  %v4929_v37 = vrot.slane %v13049_v51, 5  ;;  %v3333_v27 = vsel %vm3261_vm8, %v3328_v4, %v3332_v17  ;;  %v3336_v51 = vrot.slane %v13074_v44, 1  ;;  %v3340_v44 = vrot.slane %v13098_v24, 1 }
 0x62f   :  { %v4901_v48 = vrot.slane %v3333_v27, 5 }
 0x630   :  { %v4930_v26 = vsel %vm3855_vm0, %v4897_v10, %v4929_v37  ;;  %v3337_v59 = vsel %vm3261_vm8, %v3332_v17, %v3336_v51  ;;  %v3342_v17 = vrot.slane %v13102_v60, 1 }
 0x633   :  { %5662 = vmatmul.f32.gmra.mxu2 %v4866_v16  ;;  %5754 = vmatmul.f32.gmra.mxu3 %v4868_v6  ;;  %v3338_v16 = vrot.slane %v13095_v29, 1  ;;  %v13276_v6 = vld [vmem:[%s16385_s8] ss:$0 sm:$0xff] }
 0x635   :  { %v3339_v19 = vsel %vm3261_vm8, %v3334_v40, %v3338_v16 }
 0x636   :  { %5843 = vmatmul.f32.gmra.mxu0 %v4838_v63  ;;  %5935 = vmatmul.f32.gmra.mxu1 %v4840_v23  ;;  %v4902_v63 = vsel %vm3855_vm0, %v4869_v54, %v4901_v48  ;;  %v4904_v23 = vsel %vm3855_vm0, %v4871_v56, %v4903_v53  ;;  %v4935_v27 = vrot.slane %v3339_v19, 5  ;;  %v4130_v54 = vld [vmem:[%s16382_s7 + $0x208] sm:$0xff]  ;;  %v4962_v56 = vsel %vm3855_vm0, %v4929_v37, %v4961_v42 }
 0x637   :  { %5983 = vmatpush.msrb.mxu2 %v4130_v54  ;;  %v4993_v37 = vrot.slane %v13098_v24, 5  ;;  %v3346_v54 = vrot.slane %v13145_v62, 1 }
 0x63b   :  { %5665 = vmatmul.f32.gmra.mxu2 %v4898_v30  ;;  %5757 = vmatmul.f32.gmra.mxu3 %v4900_v8  ;;  %v4963_v8 = vrot.slane %v13095_v29, 5 }
 0x63d   :  { %v4964_v40 = vsel %vm3855_vm0, %v4931_v61, %v4963_v8  ;;  %v13301_v61 = vsel %vm3261_vm8, %v3338_v16, %v3342_v17  ;;  %v4192_v16 = vld [vmem:[%s16382_s7 + $0x3f8] sm:$0xff] }
 0x63e   :  { %5846 = vmatmul.f32.gmra.mxu0 %v4870_v21  ;;  %5938 = vmatmul.f32.gmra.mxu1 %v4872_v49  ;;  %v4933_v49 = vrot.slane %v3337_v59, 5  ;;  %v4995_v59 = vrot.slane %v13102_v60, 5  ;;  %v4967_v24 = vrot.slane %v13301_v61, 5  ;;  %v4994_v60 = vsel %vm3855_vm0, %v4961_v42, %v4993_v37 }
 0x63f   :  { %6245 = vmatpush.msrb.mxu1 %v4192_v16  ;;  %v13339_v61 = vsel %vm3261_vm8, %v3342_v17, %v3346_v54  ;;  %v4189_v17 = vld [vmem:[%s16382_s7 + $0x3e0] sm:$0xff] }
 0x640   :  { %v4934_v33 = vsel %vm3855_vm0, %v4901_v48, %v4933_v49  ;;  %v4999_v16 = vrot.slane %v13339_v61, 5 }
 0x643   :  { %5668 = vmatmul.f32.gmra.mxu2 %v4930_v26  ;;  %v13269_v4 = vpop.f32.mrf.mxu0  ;;  %v13271_v31 = vpop.f32.mrf.mxu1  ;;  %5760 = vmatmul.f32.gmra.mxu3 %v4932_v45  ;;  %v4936_v26 = vsel %vm3855_vm0, %v4903_v53, %v4935_v27 }
 0x646   :  { %v5621_v10 = vpop.f32.mrf.mxu2  ;;  %5849 = vmatmul.f32.gmra.mxu0 %v4902_v63  ;;  %5941 = vmatmul.f32.gmra.mxu1 %v4904_v23  ;;  %v5713_v30 = vpop.f32.mrf.mxu3  ;;  %v13298_v23 = vsel %vm3261_vm8, %v3336_v51, %v3340_v44  ;;  %v4176_v51 = vld [vmem:[%s16382_s7 + $0x378] sm:$0xff] }
 0x647   :  { %v5622_v13 = vadd.f32 %v13276_v6, %v5621_v10  ;;  %v4146_v10 = vld [vmem:[%s16382_s7 + $0x288] sm:$0xff]  ;;  %6153 = vmatpush.msrb.mxu0 %v4176_v51 }
 0x648   :  { %6075 = vmatpush.msrb.mxu3 %v4146_v10  ;;  %v4173_v10 = vld [vmem:[%s16382_s7 + $0x360] sm:$0xff] }
 0x649   :  { %v5714_v21 = vadd.f32 %v5713_v30, %v5622_v13  ;;  %v4965_v13 = vrot.slane %v13298_v23, 5  ;;  %v4175_v30 = vld [vmem:[%s16382_s7 + $0x370] sm:$0xff]  ;;  %v5025_v23 = vrot.slane %v13118_v18, 5 }
 0x64a   :  { %6154 = vmatpush.msrb.mxu0 %v4175_v30  ;;  %v4129_v30 = vld [vmem:[%s16382_s7 + $0x200] sm:$0xff] }
 0x64b   :  { %5671 = vmatmul.f32.gmra.mxu2 %v4962_v56  ;;  %v5805_v52 = vpop.f32.mrf.mxu0  ;;  %v5897_v5 = vpop.f32.mrf.mxu1  ;;  %5763 = vmatmul.f32.gmra.mxu3 %v4964_v40  ;;  %v4191_v56 = vld [vmem:[%s16382_s7 + $0x3f0] sm:$0xff]  ;;  %v4996_v40 = vsel %vm3855_vm0, %v4963_v8, %v4995_v59  ;;  %v4966_v42 = vsel %vm3855_vm0, %v4933_v49, %v4965_v13  ;;  %v4174_v49 = vld [vmem:[%s16382_s7 + $0x368] sm:$0xff] }
 0x64c   :  { %v5806_v29 = vadd.f32 %v5805_v52, %v5714_v21  ;;  %v3344_v21 = vrot.slane %v13118_v18, 1  ;;  %6246 = vmatpush.msrb.mxu1 %v4191_v56  ;;  %6155 = vmatpush.msrb.mxu0 %v4174_v49  ;;  %v4188_v56 = vld [vmem:[%s16382_s7 + $0x3d8] sm:$0xff]  ;;  %v4169_v18 = vld [vmem:[%s16382_s7 + $0x340] sm:$0xff] }
 0x64d   :  { %5984 = vmatpush.msrb.mxu2 %v4129_v30  ;;  %v4186_v30 = vld [vmem:[%s16382_s7 + $0x3c8] sm:$0xff] }
 0x64e   :  { %v13294_v45 = vadd.f32 %v5897_v5, %v5806_v29  ;;  %v5624_v63 = vpop.f32.mrf.mxu2  ;;  %5852 = vmatmul.f32.gmra.mxu0 %v4934_v33  ;;  %5944 = vmatmul.f32.gmra.mxu1 %v4936_v26  ;;  %v5716_v53 = vpop.f32.mrf.mxu3  ;;  %v4968_v33 = vsel %vm3855_vm0, %v4935_v27, %v4967_v24  ;;  %v13334_v8 = vsel %vm3261_vm8, %v3340_v44, %v3344_v21  ;;  %v4190_v27 = vld [vmem:[%s16382_s7 + $0x3e8] sm:$0xff] }
 0x64f   :  { %v5625_v48 = vadd.f32 %v13276_v6, %v5624_v63  ;;  %6247 = vmatpush.msrb.mxu1 %v4190_v27  ;;  %v4997_v51 = vrot.slane %v13334_v8, 5  ;;  %6156 = vmatpush.msrb.mxu0 %v4173_v10  ;;  %v4187_v27 = vld [vmem:[%s16382_s7 + $0x3d0] sm:$0xff] }
 0x651   :  { %v5717_v19 = vadd.f32 %v5716_v53, %v5625_v48  ;;  %v5027_v53 = vrot.slane %v13145_v62, 5  ;;  %6248 = vmatpush.msrb.mxu1 %v4189_v17  ;;  %v4998_v10 = vsel %vm3855_vm0, %v4965_v13, %v4997_v51  ;;  %v5057_v17 = vrot.slane %v13160_v28, 5 }
 0x652   :  { %v5059_v62 = vrot.slane %v13165_v50, 5 }
 0x653   :  { %5674 = vmatmul.f32.gmra.mxu2 %v4994_v60  ;;  %v5808_v52 = vpop.f32.mrf.mxu0  ;;  %v5900_v5 = vpop.f32.mrf.mxu1  ;;  %5766 = vmatmul.f32.gmra.mxu3 %v4996_v40  ;;  %v4172_v60 = vld [vmem:[%s16382_s7 + $0x358] sm:$0xff]  ;;  %v5026_v40 = vsel %vm3855_vm0, %v4993_v37, %v5025_v23 }
 0x654   :  { %v5809_v29 = vadd.f32 %v5808_v52, %v5717_v19  ;;  %v3348_v52 = vrot.slane %v13160_v28, 1  ;;  %6157 = vmatpush.msrb.mxu0 %v4172_v60  ;;  %6249 = vmatpush.msrb.mxu1 %v4188_v56 }
 0x656   :  { %v13328_v26 = vadd.f32 %v5900_v5, %v5809_v29  ;;  %v5627_v63 = vpop.f32.mrf.mxu2  ;;  %5855 = vmatmul.f32.gmra.mxu0 %v4966_v42  ;;  %5947 = vmatmul.f32.gmra.mxu1 %v4968_v33  ;;  %v5719_v48 = vpop.f32.mrf.mxu3  ;;  %v3350_v5 = vrot.slane %v13165_v50, 1  ;;  %v4145_v29 = vld [vmem:[%s16382_s7 + $0x280] sm:$0xff]  ;;  %v4171_v42 = vld [vmem:[%s16382_s7 + $0x350] sm:$0xff]  ;;  %v5028_v33 = vsel %vm3855_vm0, %v4995_v59, %v5027_v53  ;;  %v5091_v50 = vrot.slane %v13182_v39, 5 }
 0x657   :  { %v5628_v44 = vadd.f32 %v13276_v6, %v5627_v63  ;;  %6076 = vmatpush.msrb.mxu3 %v4145_v29  ;;  %6158 = vmatpush.msrb.mxu0 %v4171_v42  ;;  %v4168_v42 = vld [vmem:[%s16382_s7 + $0x338] sm:$0xff] }
 0x658   :  { %v13400_v13 = vsel %vm3261_vm8, %v3346_v54, %v3350_v5  ;;  %6250 = vmatpush.msrb.mxu1 %v4187_v27  ;;  %v4185_v54 = vld [vmem:[%s16382_s7 + $0x3c0] sm:$0xff]  ;;  %v5060_v27 = vsel %vm3855_vm0, %v5027_v53, %v5059_v62 }
 0x659   :  { %v5720_v19 = vadd.f32 %v5719_v48, %v5628_v44  ;;  %v5000_v44 = vsel %vm3855_vm0, %v4967_v24, %v4999_v16  ;;  %v4170_v24 = vld [vmem:[%s16382_s7 + $0x348] sm:$0xff]  ;;  %v5031_v29 = vrot.slane %v13400_v13, 5 }
 0x65a   :  { %6159 = vmatpush.msrb.mxu0 %v4170_v24  ;;  %6251 = vmatpush.msrb.mxu1 %v4186_v30  ;;  %v4183_v24 = vld [vmem:[%s16382_s7 + $0x3b0] sm:$0xff] }
 0x65b   :  { %5677 = vmatmul.f32.gmra.mxu2 %v5026_v40  ;;  %v5811_v63 = vpop.f32.mrf.mxu0  ;;  %v5903_v49 = vpop.f32.mrf.mxu1  ;;  %5769 = vmatmul.f32.gmra.mxu3 %v5028_v33  ;;  %v5058_v33 = vsel %vm3855_vm0, %v5025_v23, %v5057_v17  ;;  %v4167_v23 = vld [vmem:[%s16382_s7 + $0x330] sm:$0xff]  ;;  %v5032_v30 = vsel %vm3855_vm0, %v4999_v16, %v5031_v29  ;;  %v4182_v16 = vld [vmem:[%s16382_s7 + $0x3a8] sm:$0xff] }
 0x65c   :  { %v5812_v37 = vadd.f32 %v5811_v63, %v5720_v19  ;;  %v13393_v19 = vsel %vm3261_vm8, %v3344_v21, %v3348_v52  ;;  %6160 = vmatpush.msrb.mxu0 %v4169_v18  ;;  %v3352_v63 = vrot.slane %v13177_v35, 1  ;;  %6252 = vmatpush.msrb.mxu1 %v4185_v54 }
 0x65d   :  { %v5029_v40 = vrot.slane %v13393_v19, 5 }
 0x65e   :  { %v13385_v59 = vadd.f32 %v5903_v49, %v5812_v37  ;;  %v5630_v48 = vpop.f32.mrf.mxu2  ;;  %5858 = vmatmul.f32.gmra.mxu0 %v4998_v10  ;;  %5950 = vmatmul.f32.gmra.mxu1 %v5000_v44  ;;  %v5722_v60 = vpop.f32.mrf.mxu3  ;;  %v3354_v49 = vrot.slane %v13182_v39, 1  ;;  %v4184_v37 = vld [vmem:[%s16382_s7 + $0x3b8] sm:$0xff]  ;;  %v13454_v8 = vsel %vm3261_vm8, %v3348_v52, %v3352_v63 }
 0x65f   :  { %v5631_v21 = vadd.f32 %v13276_v6, %v5630_v48  ;;  %6161 = vmatpush.msrb.mxu0 %v4168_v42  ;;  %v5030_v53 = vsel %vm3855_vm0, %v4997_v51, %v5029_v40  ;;  %6253 = vmatpush.msrb.mxu1 %v4184_v37  ;;  %v4166_v51 = vld [vmem:[%s16382_s7 + $0x328] sm:$0xff]  ;;  %v4208_v52 = vld [vmem:[%s16382_s7 + $0x478] sm:$0xff]  ;;  %v4165_v42 = vld [vmem:[%s16382_s7 + $0x320] sm:$0xff] }
 0x660   :  { %v13461_v61 = vsel %vm3261_vm8, %v3350_v5, %v3354_v49  ;;  %v4224_v5 = vld [vmem:[%s16382_s7 + $0x4f8] sm:$0xff]  ;;  %6337 = vmatpush.msra.mxu2 %v4208_v52 }
 0x661   :  { %v5723_v56 = vadd.f32 %v5722_v60, %v5631_v21  ;;  %v5089_v60 = vrot.slane %v13177_v35, 5  ;;  %6162 = vmatpush.msrb.mxu0 %v4167_v23  ;;  %6254 = vmatpush.msrb.mxu1 %v4183_v24  ;;  %v4181_v23 = vld [vmem:[%s16382_s7 + $0x3a0] sm:$0xff]  ;;  %v4180_v52 = vld [vmem:[%s16382_s7 + $0x398] sm:$0xff] }
 0x662   :  { %6429 = vmatpush.msra.mxu3 %v4224_v5 }
 0x663   :  { %5680 = vmatmul.f32.gmra.mxu2 %v5058_v33  ;;  %v5814_v10 = vpop.f32.mrf.mxu0  ;;  %v5906_v44 = vpop.f32.mrf.mxu1  ;;  %5772 = vmatmul.f32.gmra.mxu3 %v5060_v27  ;;  %v17085_v33 = vld [vmem:[#allocation11_spill] sm:$0xff]  ;;  %v5090_v24 = vsel %vm3855_vm0, %v5057_v17, %v5089_v60 }
 0x664   :  { %v5815_v48 = vadd.f32 %v5814_v10, %v5723_v56  ;;  %v2862_v37 = vmul.f32 %v12607_v1, %v17085_v33  ;;  %v5061_v10 = vrot.slane %v13454_v8, 5  ;;  %6163 = vmatpush.msrb.mxu0 %v4166_v51  ;;  %6255 = vmatpush.msrb.mxu1 %v4182_v16  ;;  %v3358_v1 = vrot.slane %v13211_v36, 1 }
 0x665   :  { %v5092_v51 = vsel %vm3855_vm0, %v5059_v62, %v5091_v50 }
 0x666   :  { %v13446_v18 = vadd.f32 %v5906_v44, %v5815_v48  ;;  %v5633_v21 = vpop.f32.mrf.mxu2  ;;  %5861 = vmatmul.f32.gmra.mxu0 %v5030_v53  ;;  %5953 = vmatmul.f32.gmra.mxu1 %v5032_v30  ;;  %v5725_v56 = vpop.f32.mrf.mxu3  ;;  %v5063_v44 = vrot.slane %v13461_v61, 5  ;;  %v3356_v48 = vrot.slane %v13187_v58, 1  ;;  %v4164_v53 = vld [vmem:[%s16382_s7 + $0x318] sm:$0xff]  ;;  %v2917_v30 = vadd.f32 %v12633_v7, %v2862_v37  ;;  %v4163_v7 = vld [vmem:[%s16382_s7 + $0x310] sm:$0xff] }
 0x667   :  { %v5634_v54 = vadd.f32 %v13276_v6, %v5633_v21  ;;  %v2863_v21 = vmul.f32 %v12609_v34, %v12306_v25  ;;  %6164 = vmatpush.msrb.mxu0 %v4165_v42  ;;  %6256 = vmatpush.msrb.mxu1 %v4181_v23  ;;  %v5062_v62 = vsel %vm3855_vm0, %v5029_v40, %v5061_v10  ;;  %v4179_v40 = vld [vmem:[%s16382_s7 + $0x390] sm:$0xff]  ;;  %v5123_v23 = vrot.slane %v13211_v36, 5 }
 0x668   :  { %v2967_v25 = vmax.f32 %v2917_v30, 0.0  ;;  %v13535_v13 = vsel %vm3261_vm8, %v3354_v49, %v3358_v1  ;;  %v13548_v49 = vld [vmem:[#allocation2 + $0x20] sm:$0x3f] }
 0x669   :  { %v5726_v27 = vadd.f32 %v5725_v56, %v5634_v54  ;;  %v2918_v34 = vadd.f32 %v12635_v32, %v2863_v21  ;;  %v5064_v54 = vsel %vm3855_vm0, %v5031_v29, %v5063_v44  ;;  %v5121_v56 = vrot.slane %v13187_v58, 5  ;;  %6165 = vmatpush.msrb.mxu0 %v4164_v53  ;;  %v4162_v29 = vld [vmem:[%s16382_s7 + $0x308] sm:$0xff]  ;;  %6257 = vmatpush.msrb.mxu1 %v4180_v52  ;;  %v4223_v52 = vld [vmem:[%s16382_s7 + $0x4f0] sm:$0xff] }
 0x66a   :  { %v13526_v32 = vsel %vm3261_vm8, %v3352_v63, %v3356_v48  ;;  %v17086_v63 = vld [vmem:[#allocation134_spill] sm:$0xff]  ;;  %6430 = vmatpush.msra.mxu3 %v4223_v52  ;;  %v5124_v35 = vsel %vm3855_vm0, %v5091_v50, %v5123_v23  ;;  %v3134_v50 = vld [vmem:[#allocation2 + $0x190] sm:$0x80] }
 0x66b   :  { %5683 = vmatmul.f32.gmra.mxu2 %v5090_v24  ;;  %v5817_v16 = vpop.f32.mrf.mxu0  ;;  %v5909_v28 = vpop.f32.mrf.mxu1  ;;  %5775 = vmatmul.f32.gmra.mxu3 %v5092_v51  ;;  %v3017_v42 = vmul.f32 %v2967_v25, %v17086_v63  ;;  %v2968_v33 = vmax.f32 %v2918_v34, 0.0  ;;  %v13546_v24 = vld [vmem:[#allocation2 + $0x1a8] sm:$0x3f]  ;;  %v5093_v51 = vrot.slane %v13526_v32, 5  ;;  %v3362_v34 = vrot.slane %v13548_v49, 1 }
 0x66c   :  { %v5818_v17 = vadd.f32 %v5817_v16, %v5726_v27  ;;  %6166 = vmatpush.msrb.mxu0 %v4163_v7  ;;  %v4178_v53 = vld [vmem:[%s16382_s7 + $0x388] sm:$0xff]  ;;  %v5095_v16 = vrot.slane %v13535_v13, 5  ;;  %6258 = vmatpush.msrb.mxu1 %v4179_v40  ;;  %v5122_v7 = vsel %vm3855_vm0, %v5089_v60, %v5121_v56  ;;  %v3360_v25 = vrot.slane %v13546_v24, 1 }
 0x66d   :  { %3075 = vst [vmem:[#allocation2 + $0xc8] sm:$0xff] %v3017_v42  ;;  %v3018_v30 = vmul.f32 %v2968_v33, %v17086_v63  ;;  %v3133_v42 = vld [vmem:[#allocation2 + $0x90] sm:$0x80]  ;;  %v13604_v61 = vsel %vm3261_vm8, %v3358_v1, %v3362_v34 }
 0x66e   :  { %v13528_v5 = vadd.f32 %v5909_v28, %v5818_v17  ;;  %v5636_v19 = vpop.f32.mrf.mxu2  ;;  %5864 = vmatmul.f32.gmra.mxu0 %v5062_v62  ;;  %5956 = vmatmul.f32.gmra.mxu1 %v5064_v54  ;;  %v5728_v27 = vpop.f32.mrf.mxu3  ;;  %v4161_v28 = vld [vmem:[%s16382_s7 + $0x300] sm:$0xff]  ;;  %v4207_v17 = vld [vmem:[%s16382_s7 + $0x470] sm:$0xff]  ;;  %v5096_v39 = vsel %vm3855_vm0, %v5063_v44, %v5095_v16  ;;  %v13597_v8 = vsel %vm3261_vm8, %v3356_v48, %v3360_v25  ;;  %v3372_v48 = vrot.slane %v3134_v50, 2 }
 0x66f   :  { %v5637_v37 = vadd.f32 %v13276_v6, %v5636_v19  ;;  %6167 = vmatpush.msrb.mxu0 %v4162_v29  ;;  %v4177_v62 = vld [vmem:[%s16382_s7 + $0x380] sm:$0xff]  ;;  %6338 = vmatpush.msra.mxu2 %v4207_v17  ;;  %3076 = vst [vmem:[#allocation2 + $0xe0] sm:$0xff] %v3018_v30  ;;  %v3127_v19 = vld [vmem:[#allocation2 + $0x1a8] sm:$0x1f]  ;;  %v7839_v33 = vld [vmem:[#allocation2 + $0x90] sm:$0xff] }
 0x670   :  { %6259 = vmatpush.msrb.mxu1 %v4178_v53  ;;  %v3128_v29 = vld [vmem:[#allocation2 + $0x20] sm:$0x1f] }
 0x671   :  { %v5729_v21 = vadd.f32 %v5728_v27, %v5637_v37  ;;  %6168 = vmatpush.msrb.mxu0 %v4161_v28  ;;  %v3370_v37 = vrot.slane %v7839_v33, 2  ;;  %v5094_v27 = vsel %vm3855_vm0, %v5061_v10, %v5093_v51  ;;  %v7840_v10 = vld [vmem:[#allocation2 + $0x160] sm:$0xff]  ;;  %v5159_v52 = vrot.slane %v3128_v29, 5 }
 0x672   :  { %6260 = vmatpush.msrb.mxu1 %v4177_v62  ;;  %v13606_v44 = vrot.slane %v7840_v10, 2  ;;  %v7841_v62 = vld [vmem:[#allocation2 + $0xf0] sm:$0xff] }
 0x673   :  { %5686 = vmatmul.f32.gmra.mxu2 %v5122_v7  ;;  %v5820_v54 = vpop.f32.mrf.mxu0  ;;  %v5912_v60 = vpop.f32.mrf.mxu1  ;;  %5778 = vmatmul.f32.gmra.mxu3 %v5124_v35  ;;  %v3369_v7 = vrot.slane %v3133_v42, 2  ;;  %v3377_v35 = vrot.slane %v7841_v62, 2  ;;  %v3374_v50 = vsel %vm3368_vm9, %v3372_v48, %v3370_v37  ;;  %v5161_v48 = vrot.slane %v3360_v25, 5 }
 0x674   :  { %v5821_v40 = vadd.f32 %v5820_v54, %v5729_v21  ;;  %v5157_v21 = vrot.slane %v3127_v19, 5  ;;  %v5127_v19 = vrot.slane %v13604_v61, 5  ;;  %v3137_v61 = vld [vmem:[#allocation2 + $0xb8] sm:$0x80]  ;;  %v4376_v10 = vrot.slane %v3374_v50, 5 }
 0x675   :  { %v3371_v33 = vsel %vm3368_vm9, %v3369_v7, %v3370_v37  ;;  %v13624_v58 = vsel %vm3368_vm9, %v3370_v37, %v3377_v35 }
 0x676   :  { %v13590_v53 = vadd.f32 %v5912_v60, %v5821_v40  ;;  %v5639_v30 = vpop.f32.mrf.mxu2  ;;  %5867 = vmatmul.f32.gmra.mxu0 %v5094_v27  ;;  %5959 = vmatmul.f32.gmra.mxu1 %v5096_v39  ;;  %v5731_v17 = vpop.f32.mrf.mxu3  ;;  %v5125_v60 = vrot.slane %v13597_v8, 5  ;;  %v5158_v1 = vsel %vm3855_vm0, %v5121_v56, %v5157_v21  ;;  %v5160_v40 = vsel %vm3855_vm0, %v5123_v23, %v5159_v52  ;;  %v7843_v52 = vld [vmem:[#allocation2 + $0x78] sm:$0xff]  ;;  %v15542_v20 = vld [vmem:[#allocation2 + $0xe0] sm:$0xff] }
 0x677   :  { %v5640_v28 = vadd.f32 %v13276_v6, %v5639_v30  ;;  %v13620_v27 = vsel %vm3368_vm9, %v3370_v37, %v13606_v44  ;;  %v5128_v56 = vsel %vm3855_vm0, %v5095_v16, %v5127_v19  ;;  %v4373_v21 = vrot.slane %v3371_v33, 5  ;;  %v4206_v37 = vld [vmem:[%s16382_s7 + $0x468] sm:$0xff]  ;;  %v7842_v16 = vld [vmem:[#allocation2 + $0xf8] sm:$0xff] }
 0x678   :  { %v5126_v36 = vsel %vm3855_vm0, %v5093_v51, %v5125_v60  ;;  %v4374_v8 = vrot.slane %v13620_v27, 5  ;;  %v4377_v13 = vrot.slane %v13624_v58, 5  ;;  %6339 = vmatpush.msra.mxu2 %v4206_v37  ;;  %v3381_v7 = vrot.slane %v7843_v52, 2 }
 0x679   :  { %v5732_v54 = vadd.f32 %v5731_v17, %v5640_v28  ;;  %v3379_v28 = vrot.slane %v7842_v16, 2  ;;  %v3138_v17 = vld [vmem:[#allocation2 + $0x18] sm:$0x80] }
 0x67a   :  { %v3382_v49 = vsel %vm3368_vm9, %v3377_v35, %v3381_v7 }
 0x67b   :  { %5689 = vmatmul.f32.gmra.mxu2 %v5158_v1  ;;  %v5823_v29 = vpop.f32.mrf.mxu0  ;;  %v5915_v42 = vpop.f32.mrf.mxu1  ;;  %5781 = vmatmul.f32.gmra.mxu3 %v5160_v40  ;;  %v4222_v1 = vld [vmem:[%s16382_s7 + $0x4e8] sm:$0xff]  ;;  %v4375_v40 = vsel %vm3855_vm0, %v4373_v21, %v4374_v8  ;;  %v3380_v24 = vsel %vm3368_vm9, %v13606_v44, %v3379_v28 }
 0x67c   :  { %v5824_v39 = vadd.f32 %v5823_v29, %v5732_v54  ;;  %v5163_v54 = vrot.slane %v3362_v34, 5  ;;  %v3477_v29 = vrot.slane %v3137_v61, 2  ;;  %6431 = vmatpush.msra.mxu3 %v4222_v1  ;;  %v5162_v34 = vsel %vm3855_vm0, %v5125_v60, %v5161_v48  ;;  %v7845_v60 = vld [vmem:[#allocation2 + $0x130] sm:$0xff] }
 0x67d   :  { %v3385_v16 = vrot.slane %v7845_v60, 2 }
 0x67e   :  { %v13632_v23 = vadd.f32 %v5915_v42, %v5824_v39  ;;  %v5642_v30 = vpop.f32.mrf.mxu2  ;;  %5870 = vmatmul.f32.gmra.mxu0 %v5126_v36  ;;  %5962 = vmatmul.f32.gmra.mxu1 %v5128_v56  ;;  %v5734_v51 = vpop.f32.mrf.mxu3  ;;  %v3479_v42 = vrot.slane %v3138_v17, 2  ;;  %v4378_v39 = vsel %vm3855_vm0, %v4376_v10, %v4377_v13  ;;  %v5164_v50 = vsel %vm3855_vm0, %v5127_v19, %v5163_v54 }
 0x67f   :  { %v5643_v32 = vadd.f32 %v13276_v6, %v5642_v30  ;;  %v4380_v56 = vrot.slane %v3380_v24, 5  ;;  %v3478_v30 = vsel %vm3368_vm9, %v3477_v29, %v13606_v44  ;;  %v3386_v29 = vsel %vm3368_vm9, %v3381_v7, %v3385_v16 }
 0x680   :  { %v3480_v21 = vsel %vm3368_vm9, %v3479_v42, %v3377_v35  ;;  %v4379_v17 = vrot.slane %v3478_v30, 5 }
 0x681   :  { %v5735_v62 = vadd.f32 %v5734_v51, %v5643_v32  ;;  %v4383_v32 = vrot.slane %v3382_v49, 5  ;;  %v7844_v51 = vld [vmem:[#allocation2 + $0x100] sm:$0xff]  ;;  %v4382_v52 = vrot.slane %v3480_v21, 5  ;;  %v4423_v48 = vsel %vm3855_vm0, %v4374_v8, %v4380_v56  ;;  %v7846_v49 = vld [vmem:[#allocation2 + $0xe8] sm:$0xff] }
 0x682   :  { %v3383_v10 = vrot.slane %v7844_v51, 2  ;;  %v4381_v42 = vsel %vm3855_vm0, %v4379_v17, %v4380_v56  ;;  %v3387_v7 = vrot.slane %v7846_v49, 2 }
 0x683   :  { %v5826_v33 = vpop.f32.mrf.mxu0  ;;  %v5918_v27 = vpop.f32.mrf.mxu1  ;;  %5985 = vmatmul.f32.vlgmr.msrb.gmra.mxu2 %v4375_v40  ;;  %6077 = vmatmul.f32.vlgmr.msrb.gmra.mxu3 %v4378_v39  ;;  %v4424_v54 = vsel %vm3855_vm0, %v4377_v13, %v4383_v32  ;;  %v4221_v13 = vld [vmem:[%s16382_s7 + $0x4e0] sm:$0xff] }
 0x684   :  { %v5827_v25 = vadd.f32 %v5826_v33, %v5735_v62  ;;  %v4205_v62 = vld [vmem:[%s16382_s7 + $0x460] sm:$0xff]  ;;  %v3384_v1 = vsel %vm3368_vm9, %v3379_v28, %v3383_v10  ;;  %v4384_v33 = vsel %vm3855_vm0, %v4382_v52, %v4383_v32  ;;  %6432 = vmatpush.msra.mxu3 %v4221_v13  ;;  %v3388_v51 = vsel %vm3368_vm9, %v3383_v10, %v3387_v7 }
 0x685   :  { %6340 = vmatpush.msra.mxu2 %v4205_v62  ;;  %v4425_v8 = vrot.slane %v3384_v1, 5  ;;  %v4457_v62 = vrot.slane %v3388_v51, 5  ;;  %v7851_v51 = vld [vmem:[#allocation2 + $0x120] sm:$0xff] }
 0x686   :  { %v13654_v58 = vadd.f32 %v5918_v27, %v5827_v25  ;;  %v5645_v36 = vpop.f32.mrf.mxu2  ;;  %5873 = vmatmul.f32.gmra.mxu0 %v5162_v34  ;;  %5965 = vmatmul.f32.gmra.mxu1 %v5164_v50  ;;  %v5737_v37 = vpop.f32.mrf.mxu3  ;;  %v4427_v25 = vrot.slane %v3386_v29, 5  ;;  %v7847_v34 = vld [vmem:[#allocation2 + $0x40] sm:$0xff] }
 0x687   :  { %v5646_v61 = vadd.f32 %v13276_v6, %v5645_v36  ;;  %v3389_v50 = vrot.slane %v7847_v34, 2  ;;  %v4426_v30 = vsel %vm3855_vm0, %v4380_v56, %v4425_v8  ;;  %v4204_v56 = vld [vmem:[%s16382_s7 + $0x458] sm:$0xff]  ;;  %v4458_v29 = vsel %vm3855_vm0, %v4425_v8, %v4457_v62 }
 0x688   :  { %6341 = vmatpush.msra.mxu2 %v4204_v56 }
 0x689   :  { %v5738_v19 = vadd.f32 %v5737_v37, %v5646_v61  ;;  %v4428_v37 = vsel %vm3855_vm0, %v4383_v32, %v4427_v25 }
 0x68b   :  { %v5829_v44 = vpop.f32.mrf.mxu0  ;;  %v5921_v35 = vpop.f32.mrf.mxu1  ;;  %5988 = vmatmul.f32.gmra.mxu2 %v4423_v48  ;;  %6080 = vmatmul.f32.gmra.mxu3 %v4424_v54  ;;  %v7849_v54 = vld [vmem:[#allocation2 + $0x168] sm:$0xff] }
 0x68c   :  { %v5830_v40 = vadd.f32 %v5829_v44, %v5738_v19  ;;  %v3390_v19 = vsel %vm3368_vm9, %v3385_v16, %v3389_v50  ;;  %v3393_v1 = vrot.slane %v7849_v54, 2 }
 0x68d   :  { %v4459_v32 = vrot.slane %v3390_v19, 5 }
 0x68e   :  { %v13669_v27 = vadd.f32 %v5921_v35, %v5830_v40  ;;  %v5648_v39 = vpop.f32.mrf.mxu2  ;;  %6169 = vmatmul.f32.vlgmr.msrb.gmra.mxu0 %v4381_v42  ;;  %6261 = vmatmul.f32.vlgmr.msrb.gmra.mxu1 %v4384_v33  ;;  %v5740_v24 = vpop.f32.mrf.mxu3  ;;  %v7848_v35 = vld [vmem:[#allocation2 + $0xc0] sm:$0xff]  ;;  %v4220_v40 = vld [vmem:[%s16382_s7 + $0x4d8] sm:$0xff] }
 0x68f   :  { %v5649_v28 = vadd.f32 %v13276_v6, %v5648_v39  ;;  %v3391_v10 = vrot.slane %v7848_v35, 2  ;;  %6433 = vmatpush.msra.mxu3 %v4220_v40  ;;  %v4460_v39 = vsel %vm3855_vm0, %v4427_v25, %v4459_v32  ;;  %v3397_v25 = vrot.slane %v7851_v51, 2 }
 0x691   :  { %v5741_v36 = vadd.f32 %v5740_v24, %v5649_v28  ;;  %v3392_v13 = vsel %vm3368_vm9, %v3387_v7, %v3391_v10  ;;  %v3394_v24 = vsel %vm3368_vm9, %v3389_v50, %v3393_v1  ;;  %v4203_v7 = vld [vmem:[%s16382_s7 + $0x450] sm:$0xff]  ;;  %v3398_v35 = vsel %vm3368_vm9, %v3393_v1, %v3397_v25 }
 0x692   :  { %6342 = vmatpush.msra.mxu2 %v4203_v7 }
 0x693   :  { %v5832_v21 = vpop.f32.mrf.mxu0  ;;  %v5924_v61 = vpop.f32.mrf.mxu1  ;;  %5991 = vmatmul.f32.gmra.mxu2 %v4426_v30  ;;  %6083 = vmatmul.f32.gmra.mxu3 %v4428_v37 }
 0x694   :  { %v5833_v60 = vadd.f32 %v5832_v21, %v5741_v36  ;;  %v4489_v36 = vrot.slane %v3392_v13, 5  ;;  %v4491_v21 = vrot.slane %v3394_v24, 5 }
 0x696   :  { %v13679_v17 = vadd.f32 %v5924_v61, %v5833_v60  ;;  %v5651_v52 = vpop.f32.mrf.mxu2  ;;  %6172 = vmatmul.f32.gmra.mxu0 %v4426_v30  ;;  %6264 = vmatmul.f32.gmra.mxu1 %v4428_v37  ;;  %v5743_v44 = vpop.f32.mrf.mxu3  ;;  %v7850_v61 = vld [vmem:[#allocation2 + $0x118] sm:$0xff]  ;;  %v4490_v50 = vsel %vm3855_vm0, %v4457_v62, %v4489_v36  ;;  %v4492_v56 = vsel %vm3855_vm0, %v4459_v32, %v4491_v21  ;;  %v4219_v62 = vld [vmem:[%s16382_s7 + $0x4d0] sm:$0xff]  ;;  %v4523_v32 = vrot.slane %v3398_v35, 5 }
 0x697   :  { %v5652_v48 = vadd.f32 %v13276_v6, %v5651_v52  ;;  %v3395_v37 = vrot.slane %v7850_v61, 2  ;;  %6434 = vmatpush.msra.mxu3 %v4219_v62 }
 0x699   :  { %v5744_v16 = vadd.f32 %v5743_v44, %v5652_v48  ;;  %v3396_v48 = vsel %vm3368_vm9, %v3391_v10, %v3395_v37 }
 0x69a   :  { %v4521_v40 = vrot.slane %v3396_v48, 5 }
 0x69b   :  { %v5835_v42 = vpop.f32.mrf.mxu0  ;;  %v5927_v33 = vpop.f32.mrf.mxu1  ;;  %5994 = vmatmul.f32.gmra.mxu2 %v4458_v29  ;;  %6086 = vmatmul.f32.gmra.mxu3 %v4460_v39 }
 0x69c   :  { %v5836_v28 = vadd.f32 %v5835_v42, %v5744_v16 }
 0x69e   :  { %v13692_v49 = vadd.f32 %v5927_v33, %v5836_v28  ;;  %v5654_v34 = vpop.f32.mrf.mxu2  ;;  %6175 = vmatmul.f32.gmra.mxu0 %v4458_v29  ;;  %6267 = vmatmul.f32.gmra.mxu1 %v4460_v39  ;;  %v5746_v30 = vpop.f32.mrf.mxu3  ;;  %v7852_v33 = vld [vmem:[#allocation2 + $0x60] sm:$0xff]  ;;  %v7853_v39 = vld [vmem:[#allocation2 + $0x188] sm:$0xff]  ;;  %v4522_v28 = vsel %vm3855_vm0, %v4489_v36, %v4521_v40 }
 0x69f   :  { %v5655_v8 = vadd.f32 %v13276_v6, %v5654_v34  ;;  %v3399_v10 = vrot.slane %v7852_v33, 2  ;;  %v3401_v13 = vrot.slane %v7853_v39, 2 }
 0x6a1   :  { %v5747_v60 = vadd.f32 %v5746_v30, %v5655_v8  ;;  %v4524_v8 = vsel %vm3855_vm0, %v4491_v21, %v4523_v32  ;;  %v3400_v30 = vsel %vm3368_vm9, %v3395_v37, %v3399_v10  ;;  %v3402_v51 = vsel %vm3368_vm9, %v3397_v25, %v3401_v13  ;;  %v4202_v37 = vld [vmem:[%s16382_s7 + $0x448] sm:$0xff] }
 0x6a2   :  { %v4218_v25 = vld [vmem:[%s16382_s7 + $0x4c8] sm:$0xff]  ;;  %6343 = vmatpush.msra.mxu2 %v4202_v37 }
 0x6a3   :  { %v5838_v19 = vpop.f32.mrf.mxu0  ;;  %v5930_v52 = vpop.f32.mrf.mxu1  ;;  %5997 = vmatmul.f32.gmra.mxu2 %v4490_v50  ;;  %6089 = vmatmul.f32.gmra.mxu3 %v4492_v56 }
 0x6a4   :  { %v5839_v44 = vadd.f32 %v5838_v19, %v5747_v60  ;;  %6435 = vmatpush.msra.mxu3 %v4218_v25 }
 0x6a6   :  { %v13702_v54 = vadd.f32 %v5930_v52, %v5839_v44  ;;  %v5657_v16 = vpop.f32.mrf.mxu2  ;;  %6178 = vmatmul.f32.gmra.mxu0 %v4490_v50  ;;  %6270 = vmatmul.f32.gmra.mxu1 %v4492_v56  ;;  %v5749_v42 = vpop.f32.mrf.mxu3  ;;  %v4553_v50 = vrot.slane %v3400_v30, 5  ;;  %v4555_v52 = vrot.slane %v3402_v51, 5  ;;  %v7854_v56 = vld [vmem:[#allocation2 + $0x198] sm:$0xff] }
 0x6a7   :  { %v5658_v29 = vadd.f32 %v13276_v6, %v5657_v16  ;;  %v3403_v48 = vrot.slane %v7854_v56, 2  ;;  %v7855_v44 = vld [vmem:[#allocation2 + $0x1b8] sm:$0xff] }
 0x6a8   :  { %v3405_v21 = vrot.slane %v7855_v44, 2  ;;  %v4554_v16 = vsel %vm3855_vm0, %v4521_v40, %v4553_v50 }
 0x6a9   :  { %v5750_v1 = vadd.f32 %v5749_v42, %v5658_v29  ;;  %v4556_v42 = vsel %vm3855_vm0, %v4523_v32, %v4555_v52  ;;  %v3404_v33 = vsel %vm3368_vm9, %v3399_v10, %v3403_v48 }
 0x6ab   :  { %v5841_v24 = vpop.f32.mrf.mxu0  ;;  %v5933_v34 = vpop.f32.mrf.mxu1  ;;  %6000 = vmatmul.f32.gmra.mxu2 %v4522_v28  ;;  %6092 = vmatmul.f32.gmra.mxu3 %v4524_v8 }
 0x6ac   :  { %v5842_v61 = vadd.f32 %v5841_v24, %v5750_v1  ;;  %v3406_v1 = vsel %vm3368_vm9, %v3401_v13, %v3405_v21 }
 0x6ad   :  { %v4587_v30 = vrot.slane %v3406_v1, 5 }
 0x6ae   :  { %v13712_v60 = vadd.f32 %v5933_v34, %v5842_v61  ;;  %v5660_v7 = vpop.f32.mrf.mxu2  ;;  %6181 = vmatmul.f32.gmra.mxu0 %v4522_v28  ;;  %6273 = vmatmul.f32.gmra.mxu1 %v4524_v8  ;;  %v5752_v36 = vpop.f32.mrf.mxu3  ;;  %v4585_v34 = vrot.slane %v3404_v33, 5  ;;  %v7856_v61 = vld [vmem:[#allocation2 + $0xd0] sm:$0xff]  ;;  %v7858_v33 = vld [vmem:[#allocation2 + $0x108] sm:$0xff] }
 0x6af   :  { %v5661_v19 = vadd.f32 %v13276_v6, %v5660_v7  ;;  %v3407_v51 = vrot.slane %v7856_v61, 2  ;;  %v7857_v7 = vld [vmem:[#allocation2 + $0x138] sm:$0xff]  ;;  %v4588_v13 = vsel %vm3855_vm0, %v4555_v52, %v4587_v30  ;;  %v4217_v52 = vld [vmem:[%s16382_s7 + $0x4c0] sm:$0xff] }
 0x6b0   :  { %v3409_v32 = vrot.slane %v7857_v7, 2  ;;  %v4586_v10 = vsel %vm3855_vm0, %v4553_v50, %v4585_v34  ;;  %v4201_v50 = vld [vmem:[%s16382_s7 + $0x440] sm:$0xff]  ;;  %6436 = vmatpush.msra.mxu3 %v4217_v52  ;;  %v7861_v52 = vld [vmem:[#allocation2 + $0x150] sm:$0xff] }
 0x6b1   :  { %v5753_v35 = vadd.f32 %v5752_v36, %v5661_v19  ;;  %v3408_v44 = vsel %vm3368_vm9, %v3403_v48, %v3407_v51  ;;  %6344 = vmatpush.msra.mxu2 %v4201_v50 }
 0x6b2   :  { %v3410_v37 = vsel %vm3368_vm9, %v3405_v21, %v3409_v32  ;;  %v3411_v21 = vrot.slane %v7858_v33, 2 }
 0x6b3   :  { %v5844_v62 = vpop.f32.mrf.mxu0  ;;  %v5936_v29 = vpop.f32.mrf.mxu1  ;;  %6003 = vmatmul.f32.gmra.mxu2 %v4554_v16  ;;  %6095 = vmatmul.f32.gmra.mxu3 %v4556_v42 }
 0x6b4   :  { %v5845_v39 = vadd.f32 %v5844_v62, %v5753_v35  ;;  %v4617_v62 = vrot.slane %v3408_v44, 5 }
 0x6b6   :  { %v13725_v28 = vadd.f32 %v5936_v29, %v5845_v39  ;;  %v5663_v24 = vpop.f32.mrf.mxu2  ;;  %6184 = vmatmul.f32.gmra.mxu0 %v4554_v16  ;;  %6276 = vmatmul.f32.gmra.mxu1 %v4556_v42  ;;  %v5755_v8 = vpop.f32.mrf.mxu3  ;;  %v4619_v42 = vrot.slane %v3410_v37, 5  ;;  %v7859_v39 = vld [vmem:[#allocation2 + $0x10] sm:$0xff] }
 0x6b7   :  { %v5664_v40 = vadd.f32 %v13276_v6, %v5663_v24  ;;  %v3413_v1 = vrot.slane %v7859_v39, 2 }
 0x6b8   :  { %v4620_v7 = vsel %vm3855_vm0, %v4587_v30, %v4619_v42  ;;  %v3417_v30 = vrot.slane %v7861_v52, 2 }
 0x6b9   :  { %v5756_v19 = vadd.f32 %v5755_v8, %v5664_v40  ;;  %v4618_v40 = vsel %vm3855_vm0, %v4585_v34, %v4617_v62 }
 0x6bb   :  { %v5847_v36 = vpop.f32.mrf.mxu0  ;;  %v5939_v56 = vpop.f32.mrf.mxu1  ;;  %6006 = vmatmul.f32.gmra.mxu2 %v4586_v10  ;;  %6098 = vmatmul.f32.gmra.mxu3 %v4588_v13 }
 0x6bc   :  { %v5848_v35 = vadd.f32 %v5847_v36, %v5756_v19  ;;  %v3412_v19 = vsel %vm3368_vm9, %v3407_v51, %v3411_v21  ;;  %v3414_v36 = vsel %vm3368_vm9, %v3409_v32, %v3413_v1  ;;  %v4200_v51 = vld [vmem:[%s16382_s7 + $0x438] sm:$0xff] }
 0x6bd   :  { %v4649_v44 = vrot.slane %v3412_v19, 5  ;;  %v4651_v37 = vrot.slane %v3414_v36, 5  ;;  %v4216_v32 = vld [vmem:[%s16382_s7 + $0x4b8] sm:$0xff]  ;;  %6345 = vmatpush.msra.mxu2 %v4200_v51 }
 0x6be   :  { %v13732_v25 = vadd.f32 %v5939_v56, %v5848_v35  ;;  %v5666_v16 = vpop.f32.mrf.mxu2  ;;  %6187 = vmatmul.f32.gmra.mxu0 %v4586_v10  ;;  %6279 = vmatmul.f32.gmra.mxu1 %v4588_v13  ;;  %v5758_v29 = vpop.f32.mrf.mxu3 }
 0x6bf   :  { %v5667_v48 = vadd.f32 %v13276_v6, %v5666_v16  ;;  %v7860_v16 = vld [vmem:[#allocation2 + $0x8] sm:$0xff]  ;;  %6437 = vmatpush.msra.mxu3 %v4216_v32  ;;  %v4652_v39 = vsel %vm3855_vm0, %v4619_v42, %v4651_v37 }
 0x6c0   :  { %v3415_v50 = vrot.slane %v7860_v16, 2 }
 0x6c1   :  { %v5759_v24 = vadd.f32 %v5758_v29, %v5667_v48  ;;  %v4650_v29 = vsel %vm3855_vm0, %v4617_v62, %v4649_v44  ;;  %v13763_v62 = vld [vmem:[%s16385_s8] ss:$0 sm:$0xff] }
 0x6c3   :  { %v5850_v8 = vpop.f32.mrf.mxu0  ;;  %v5942_v61 = vpop.f32.mrf.mxu1  ;;  %6009 = vmatmul.f32.gmra.mxu2 %v4618_v40  ;;  %6101 = vmatmul.f32.gmra.mxu3 %v4620_v7 }
 0x6c4   :  { %v5851_v10 = vadd.f32 %v5850_v8, %v5759_v24  ;;  %v3416_v24 = vsel %vm3368_vm9, %v3411_v21, %v3415_v50  ;;  %v3418_v8 = vsel %vm3368_vm9, %v3413_v1, %v3417_v30  ;;  %v7863_v21 = vld [vmem:[#allocation2 + $0xa0] sm:$0xff] }
 0x6c5   :  { %v4681_v19 = vrot.slane %v3416_v24, 5  ;;  %v4683_v36 = vrot.slane %v3418_v8, 5 }
 0x6c6   :  { %v13745_v56 = vadd.f32 %v5942_v61, %v5851_v10  ;;  %v5669_v13 = vpop.f32.mrf.mxu2  ;;  %6190 = vmatmul.f32.gmra.mxu0 %v4618_v40  ;;  %6282 = vmatmul.f32.gmra.mxu1 %v4620_v7  ;;  %v5761_v34 = vpop.f32.mrf.mxu3 }
 0x6c7   :  { %v5670_v35 = vadd.f32 %v13276_v6, %v5669_v13  ;;  %v3419_v13 = vrot.slane %v7863_v21, 2  ;;  %v4682_v16 = vsel %vm3855_vm0, %v4649_v44, %v4681_v19  ;;  %v4684_v51 = vsel %vm3855_vm0, %v4651_v37, %v4683_v36  ;;  %v4199_v44 = vld [vmem:[%s16382_s7 + $0x430] sm:$0xff] }
 0x6c8   :  { %6346 = vmatpush.msra.mxu2 %v4199_v44  ;;  %v4215_v21 = vld [vmem:[%s16382_s7 + $0x4b0] sm:$0xff] }
 0x6c9   :  { %v5762_v48 = vadd.f32 %v5761_v34, %v5670_v35  ;;  %v7864_v35 = vld [vmem:[#allocation2 + $0x80] sm:$0xff]  ;;  %v3420_v32 = vsel %vm3368_vm9, %v3415_v50, %v3419_v13  ;;  %6438 = vmatpush.msra.mxu3 %v4215_v21 }
 0x6ca   :  { %v3421_v34 = vrot.slane %v7864_v35, 2  ;;  %v4713_v24 = vrot.slane %v3420_v32, 5 }
 0x6cb   :  { %v5853_v6 = vpop.f32.mrf.mxu0  ;;  %v5945_v33 = vpop.f32.mrf.mxu1  ;;  %6012 = vmatmul.f32.gmra.mxu2 %v4650_v29  ;;  %6104 = vmatmul.f32.gmra.mxu3 %v4652_v39 }
 0x6cc   :  { %v5854_v40 = vadd.f32 %v5853_v6, %v5762_v48  ;;  %v3422_v6 = vsel %vm3368_vm9, %v3417_v30, %v3421_v34  ;;  %v4714_v35 = vsel %vm3855_vm0, %v4681_v19, %v4713_v24 }
 0x6cd   :  { %v4715_v37 = vrot.slane %v3422_v6, 5 }
 0x6ce   :  { %v13758_v61 = vadd.f32 %v5945_v33, %v5854_v40  ;;  %v5672_v7 = vpop.f32.mrf.mxu2  ;;  %6193 = vmatmul.f32.gmra.mxu0 %v4650_v29  ;;  %6285 = vmatmul.f32.gmra.mxu1 %v4652_v39  ;;  %v5764_v42 = vpop.f32.mrf.mxu3 }
 0x6cf   :  { %v5673_v10 = vadd.f32 %v13763_v62, %v5672_v7  ;;  %v7865_v7 = vld [vmem:[#allocation2 + $0x128] sm:$0xff] }
 0x6d0   :  { %v3423_v50 = vrot.slane %v7865_v7, 2 }
 0x6d1   :  { %v5765_v1 = vadd.f32 %v5764_v42, %v5673_v10  ;;  %v7866_v10 = vld [vmem:[#allocation2 + $0x38] sm:$0xff] }
 0x6d2   :  { %v3425_v42 = vrot.slane %v7866_v10, 2  ;;  %v7868_v10 = vld [vmem:[#allocation2 + $0x158] sm:$0xff] }
 0x6d3   :  { %v5856_v52 = vpop.f32.mrf.mxu0  ;;  %v5948_v48 = vpop.f32.mrf.mxu1  ;;  %6015 = vmatmul.f32.gmra.mxu2 %v4682_v16  ;;  %6107 = vmatmul.f32.gmra.mxu3 %v4684_v51 }
 0x6d4   :  { %v5857_v29 = vadd.f32 %v5856_v52, %v5765_v1  ;;  %v4716_v52 = vsel %vm3855_vm0, %v4683_v36, %v4715_v37  ;;  %v3426_v32 = vsel %vm3368_vm9, %v3421_v34, %v3425_v42  ;;  %v3429_v36 = vrot.slane %v7868_v10, 2  ;;  %v4214_v34 = vld [vmem:[%s16382_s7 + $0x4a8] sm:$0xff]  ;;  %v7869_v10 = vld [vmem:[#allocation2 + $0x180] sm:$0xff] }
 0x6d5   :  { %6439 = vmatpush.msra.mxu3 %v4214_v34  ;;  %v7870_v34 = vld [vmem:[#allocation2 + $0x68] sm:$0xff] }
 0x6d6   :  { %v13770_v33 = vadd.f32 %v5948_v48, %v5857_v29  ;;  %v5675_v39 = vpop.f32.mrf.mxu2  ;;  %6196 = vmatmul.f32.gmra.mxu0 %v4682_v16  ;;  %6288 = vmatmul.f32.gmra.mxu1 %v4684_v51  ;;  %v5767_v8 = vpop.f32.mrf.mxu3  ;;  %v3424_v48 = vsel %vm3368_vm9, %v3419_v13, %v3423_v50  ;;  %v4198_v13 = vld [vmem:[%s16382_s7 + $0x428] sm:$0xff] }
 0x6d7   :  { %v5676_v40 = vadd.f32 %v13763_v62, %v5675_v39  ;;  %v4745_v39 = vrot.slane %v3424_v48, 5  ;;  %6347 = vmatpush.msra.mxu2 %v4198_v13  ;;  %v3431_v13 = vrot.slane %v7869_v10, 2 }
 0x6d9   :  { %v5768_v30 = vadd.f32 %v5767_v8, %v5676_v40  ;;  %v4747_v40 = vrot.slane %v3426_v32, 5  ;;  %v7867_v8 = vld [vmem:[#allocation2 + $0x88] sm:$0xff] }
 0x6da   :  { %v3427_v7 = vrot.slane %v7867_v8, 2 }
 0x6db   :  { %v5859_v1 = vpop.f32.mrf.mxu0  ;;  %v5951_v16 = vpop.f32.mrf.mxu1  ;;  %6018 = vmatmul.f32.gmra.mxu2 %v4714_v35  ;;  %6110 = vmatmul.f32.gmra.mxu3 %v4716_v52 }
 0x6dc   :  { %v5860_v51 = vadd.f32 %v5859_v1, %v5768_v30  ;;  %v4746_v30 = vsel %vm3855_vm0, %v4713_v24, %v4745_v39 }
 0x6de   :  { %v13783_v29 = vadd.f32 %v5951_v16, %v5860_v51  ;;  %v5678_v6 = vpop.f32.mrf.mxu2  ;;  %6199 = vmatmul.f32.gmra.mxu0 %v4714_v35  ;;  %6291 = vmatmul.f32.gmra.mxu1 %v4716_v52  ;;  %v5770_v44 = vpop.f32.mrf.mxu3  ;;  %v4748_v16 = vsel %vm3855_vm0, %v4715_v37, %v4747_v40  ;;  %v3428_v52 = vsel %vm3368_vm9, %v3423_v50, %v3427_v7  ;;  %v3433_v37 = vrot.slane %v7870_v34, 2  ;;  %v4213_v34 = vld [vmem:[%s16382_s7 + $0x4a0] sm:$0xff] }
 0x6df   :  { %v5679_v19 = vadd.f32 %v13763_v62, %v5678_v6  ;;  %v3430_v51 = vsel %vm3368_vm9, %v3425_v42, %v3429_v36  ;;  %6440 = vmatpush.msra.mxu3 %v4213_v34 }
 0x6e0   :  { %v4779_v8 = vrot.slane %v3430_v51, 5 }
 0x6e1   :  { %v5771_v21 = vadd.f32 %v5770_v44, %v5679_v19  ;;  %v4777_v19 = vrot.slane %v3428_v52, 5 }
 0x6e2   :  { %v4780_v42 = vsel %vm3855_vm0, %v4747_v40, %v4779_v8 }
 0x6e3   :  { %v5862_v35 = vpop.f32.mrf.mxu0  ;;  %v5954_v1 = vpop.f32.mrf.mxu1  ;;  %6021 = vmatmul.f32.gmra.mxu2 %v4746_v30  ;;  %6113 = vmatmul.f32.gmra.mxu3 %v4748_v16  ;;  %v4778_v50 = vsel %vm3855_vm0, %v4745_v39, %v4777_v19  ;;  %v4197_v39 = vld [vmem:[%s16382_s7 + $0x420] sm:$0xff] }
 0x6e4   :  { %v5863_v48 = vadd.f32 %v5862_v35, %v5771_v21  ;;  %6348 = vmatpush.msra.mxu2 %v4197_v39 }
 0x6e6   :  { %v13796_v32 = vadd.f32 %v5954_v1, %v5863_v48  ;;  %v5681_v6 = vpop.f32.mrf.mxu2  ;;  %6202 = vmatmul.f32.gmra.mxu0 %v4746_v30  ;;  %6294 = vmatmul.f32.gmra.mxu1 %v4748_v16  ;;  %v5773_v44 = vpop.f32.mrf.mxu3  ;;  %v3432_v30 = vsel %vm3368_vm9, %v3427_v7, %v3431_v13  ;;  %v3434_v16 = vsel %vm3368_vm9, %v3429_v36, %v3433_v37 }
 0x6e7   :  { %v5682_v24 = vadd.f32 %v13763_v62, %v5681_v6  ;;  %v4809_v51 = vrot.slane %v3432_v30, 5  ;;  %v4811_v40 = vrot.slane %v3434_v16, 5 }
 0x6e9   :  { %v5774_v63 = vadd.f32 %v5773_v44, %v5682_v24  ;;  %v7871_v44 = vld [vmem:[#allocation2 + $0x178] sm:$0xff] }
 0x6ea   :  { %v3435_v7 = vrot.slane %v7871_v44, 2 }
 0x6eb   :  { %v5865_v21 = vpop.f32.mrf.mxu0  ;;  %v5957_v35 = vpop.f32.mrf.mxu1  ;;  %6024 = vmatmul.f32.gmra.mxu2 %v4778_v50  ;;  %6116 = vmatmul.f32.gmra.mxu3 %v4780_v42 }
 0x6ec   :  { %v5866_v1 = vadd.f32 %v5865_v21, %v5774_v63  ;;  %v7872_v63 = vld [vmem:[#allocation2 + $0x140] sm:$0xff]  ;;  %v3436_v30 = vsel %vm3368_vm9, %v3431_v13, %v3435_v7  ;;  %v5619_v13 = vadd.f32 %v13763_v62, %v13249_v3 }
 0x6ed   :  { %v3437_v10 = vrot.slane %v7872_v63, 2  ;;  %v7873_v63 = vld [vmem:[#allocation2 + $0xd8] sm:$0xff] }
 0x6ee   :  { %v13803_v52 = vadd.f32 %v5957_v35, %v5866_v1  ;;  %v5684_v48 = vpop.f32.mrf.mxu2  ;;  %6205 = vmatmul.f32.gmra.mxu0 %v4778_v50  ;;  %6297 = vmatmul.f32.gmra.mxu1 %v4780_v42  ;;  %v5776_v24 = vpop.f32.mrf.mxu3  ;;  %v4810_v50 = vsel %vm3855_vm0, %v4777_v19, %v4809_v51  ;;  %v4812_v42 = vsel %vm3855_vm0, %v4779_v8, %v4811_v40  ;;  %v3439_v34 = vrot.slane %v7873_v63, 2  ;;  %v7875_v63 = vld [vmem:[#allocation2 + $0x1c8] sm:$0xff] }
 0x6ef   :  { %v5685_v6 = vadd.f32 %v13763_v62, %v5684_v48  ;;  %v3438_v16 = vsel %vm3368_vm9, %v3433_v37, %v3437_v10  ;;  %v3441_v8 = vrot.slane %v7874_v38, 2  ;;  %v4196_v37 = vld [vmem:[%s16382_s7 + $0x418] sm:$0xff]  ;;  %v5711_v3 = vadd.f32 %v13251_v55, %v5619_v13 }
 0x6f0   :  { %v4843_v44 = vrot.slane %v3438_v16, 5  ;;  %6349 = vmatpush.msra.mxu2 %v4196_v37 }
 0x6f1   :  { %v5777_v36 = vadd.f32 %v5776_v24, %v5685_v6  ;;  %v4841_v6 = vrot.slane %v3436_v30, 5  ;;  %v3440_v30 = vsel %vm3368_vm9, %v3435_v7, %v3439_v34  ;;  %v3442_v38 = vsel %vm3368_vm9, %v3437_v10, %v3441_v8  ;;  %v7876_v10 = vld [vmem:[#allocation2 + $0xa8] sm:$0xff] }
 0x6f2   :  { %v4875_v7 = vrot.slane %v3442_v38, 5  ;;  %v3445_v37 = vrot.slane %v7876_v10, 2  ;;  %v5803_v55 = vadd.f32 %v13269_v4, %v5711_v3 }
 0x6f3   :  { %v5868_v21 = vpop.f32.mrf.mxu0  ;;  %v5960_v35 = vpop.f32.mrf.mxu1  ;;  %6027 = vmatmul.f32.gmra.mxu2 %v4810_v50  ;;  %6119 = vmatmul.f32.gmra.mxu3 %v4812_v42 }
 0x6f4   :  { %v5869_v1 = vadd.f32 %v5868_v21, %v5777_v36  ;;  %v5895_v38 = vadd.f32 %v13271_v31, %v5803_v55  ;;  %v4211_v31 = vld [vmem:[%s16382_s7 + $0x490] sm:$0xff] }
 0x6f6   :  { %v13816_v48 = vadd.f32 %v5960_v35, %v5869_v1  ;;  %v5687_v39 = vpop.f32.mrf.mxu2  ;;  %6208 = vmatmul.f32.gmra.mxu0 %v4810_v50  ;;  %6300 = vmatmul.f32.gmra.mxu1 %v4812_v42  ;;  %v5779_v24 = vpop.f32.mrf.mxu3  ;;  %v4842_v50 = vsel %vm3855_vm0, %v4809_v51, %v4841_v6  ;;  %v4844_v42 = vsel %vm3855_vm0, %v4811_v40, %v4843_v44  ;;  %v4873_v51 = vrot.slane %v3440_v30, 5 }
 0x6f7   :  { %v5688_v19 = vadd.f32 %v13763_v62, %v5687_v39 }
 0x6f9   :  { %v5780_v36 = vadd.f32 %v5779_v24, %v5688_v19  ;;  %v4212_v19 = vld [vmem:[%s16382_s7 + $0x498] sm:$0xff] }
 0x6fa   :  { %6441 = vmatpush.msra.mxu3 %v4212_v19 }
 0x6fb   :  { %v5871_v21 = vpop.f32.mrf.mxu0  ;;  %v5963_v35 = vpop.f32.mrf.mxu1  ;;  %6030 = vmatmul.f32.gmra.mxu2 %v4842_v50  ;;  %6122 = vmatmul.f32.gmra.mxu3 %v4844_v42 }
 0x6fc   :  { %v5872_v1 = vadd.f32 %v5871_v21, %v5780_v36  ;;  %v3443_v36 = vrot.slane %v7875_v63, 2  ;;  %6442 = vmatpush.msra.mxu3 %v4211_v31 }
 0x6fe   :  { %v13829_v16 = vadd.f32 %v5963_v35, %v5872_v1  ;;  %v5690_v39 = vpop.f32.mrf.mxu2  ;;  %6211 = vmatmul.f32.gmra.mxu0 %v4842_v50  ;;  %6303 = vmatmul.f32.gmra.mxu1 %v4844_v42  ;;  %v5782_v24 = vpop.f32.mrf.mxu3  ;;  %v4874_v50 = vsel %vm3855_vm0, %v4841_v6, %v4873_v51  ;;  %v4876_v42 = vsel %vm3855_vm0, %v4843_v44, %v4875_v7  ;;  %v7878_v44 = vld [vmem:[#allocation2 + $0x1c0] sm:$0xff] }
 0x6ff   :  { %v5691_v40 = vadd.f32 %v13763_v62, %v5690_v39  ;;  %v3444_v30 = vsel %vm3368_vm9, %v3439_v34, %v3443_v36  ;;  %v3446_v1 = vsel %vm3368_vm9, %v3441_v8, %v3445_v37  ;;  %v3449_v10 = vrot.slane %v7878_v44, 2  ;;  %v4195_v8 = vld [vmem:[%s16382_s7 + $0x410] sm:$0xff] }
 0x700   :  { %v4905_v4 = vrot.slane %v3444_v30, 5  ;;  %6350 = vmatpush.msra.mxu2 %v4195_v8 }
 0x701   :  { %v5783_v13 = vadd.f32 %v5782_v24, %v5691_v40  ;;  %v4907_v40 = vrot.slane %v3446_v1, 5  ;;  %v7877_v24 = vld [vmem:[#allocation2 + $0x1b0] sm:$0xff]  ;;  %v3450_v30 = vsel %vm3368_vm9, %v3445_v37, %v3449_v10 }
 0x702   :  { %v3447_v63 = vrot.slane %v7877_v24, 2  ;;  %v4906_v55 = vsel %vm3855_vm0, %v4873_v51, %v4905_v4  ;;  %v7880_v24 = vld [vmem:[#allocation2 + $0x58] sm:$0xff] }
 0x703   :  { %v5874_v21 = vpop.f32.mrf.mxu0  ;;  %v5966_v35 = vpop.f32.mrf.mxu1  ;;  %6033 = vmatmul.f32.gmra.mxu2 %v4874_v50  ;;  %6125 = vmatmul.f32.gmra.mxu3 %v4876_v42  ;;  %v3453_v44 = vrot.slane %v7880_v24, 2  ;;  %v4240_v24 = vld [vmem:[%s16382_s7 + $0x578] sm:$0xff] }
 0x704   :  { %v5875_v62 = vadd.f32 %v5874_v21, %v5783_v13  ;;  %v4908_v13 = vsel %vm3855_vm0, %v4875_v7, %v4907_v40  ;;  %6521 = vmatpush.msra.mxu0 %v4240_v24  ;;  %v4253_v24 = vld [vmem:[%s16382_s7 + $0x5e0] sm:$0xff] }
 0x706   :  { %v13841_v39 = vadd.f32 %v5966_v35, %v5875_v62  ;;  %v5986_v19 = vpop.f32.mrf.mxu2  ;;  %6214 = vmatmul.f32.gmra.mxu0 %v4874_v50  ;;  %6306 = vmatmul.f32.gmra.mxu1 %v4876_v42  ;;  %v6078_v3 = vpop.f32.mrf.mxu3  ;;  %v3448_v35 = vsel %vm3368_vm9, %v3443_v36, %v3447_v63  ;;  %v4194_v36 = vld [vmem:[%s16382_s7 + $0x408] sm:$0xff] }
 0x707   :  { %v5987_v6 = vadd.f32 %v5986_v19, %v5895_v38  ;;  %v4937_v38 = vrot.slane %v3448_v35, 5  ;;  %6351 = vmatpush.msra.mxu2 %v4194_v36 }
 0x709   :  { %v6079_v34 = vadd.f32 %v6078_v3, %v5987_v6  ;;  %v4939_v6 = vrot.slane %v3450_v30, 5  ;;  %v7879_v3 = vld [vmem:[#allocation2 + $0x48] sm:$0xff]  ;;  %v4938_v37 = vsel %vm3855_vm0, %v4905_v4, %v4937_v38 }
 0x70a   :  { %v3451_v7 = vrot.slane %v7879_v3, 2  ;;  %v4210_v4 = vld [vmem:[%s16382_s7 + $0x488] sm:$0xff] }
 0x70b   :  { %6036 = vmatmul.f32.gmra.mxu2 %v4906_v55  ;;  %v6170_v50 = vpop.f32.mrf.mxu0  ;;  %v6262_v21 = vpop.f32.mrf.mxu1  ;;  %6128 = vmatmul.f32.gmra.mxu3 %v4908_v13 }
 0x70c   :  { %v6171_v42 = vadd.f32 %v6170_v50, %v6079_v34  ;;  %v4940_v34 = vsel %vm3855_vm0, %v4907_v40, %v4939_v6  ;;  %v13863_v50 = vsel %vm3368_vm9, %v3449_v10, %v3453_v44  ;;  %6443 = vmatpush.msra.mxu3 %v4210_v4  ;;  %v7882_v10 = vld [vmem:[#allocation2 + $0x70] sm:$0xff] }
 0x70e   :  { %v13853_v62 = vadd.f32 %v6262_v21, %v6171_v42  ;;  %v5989_v1 = vpop.f32.mrf.mxu2  ;;  %6217 = vmatmul.f32.gmra.mxu0 %v4906_v55  ;;  %6309 = vmatmul.f32.gmra.mxu1 %v4908_v13  ;;  %v6081_v19 = vpop.f32.mrf.mxu3 }
 0x70f   :  { %v5990_v51 = vadd.f32 %v5989_v1, %v13294_v45  ;;  %v3452_v45 = vsel %vm3368_vm9, %v3447_v63, %v3451_v7  ;;  %v4971_v63 = vrot.slane %v13863_v50, 5  ;;  %v7881_v1 = vld [vmem:[#allocation2 + $0xb0] sm:$0xff] }
 0x710   :  { %v4969_v42 = vrot.slane %v3452_v45, 5 }
 0x711   :  { %v6082_v8 = vadd.f32 %v6081_v19, %v5990_v51  ;;  %v3455_v51 = vrot.slane %v7881_v1, 2  ;;  %v3457_v19 = vrot.slane %v7882_v10, 2  ;;  %v7883_v10 = vld [vmem:[#allocation2 + $0x98] sm:$0xff] }
 0x712   :  { %v4970_v36 = vsel %vm3855_vm0, %v4937_v38, %v4969_v42 }
 0x713   :  { %6039 = vmatmul.f32.gmra.mxu2 %v4938_v37  ;;  %v6173_v31 = vpop.f32.mrf.mxu0  ;;  %v6265_v55 = vpop.f32.mrf.mxu1  ;;  %6131 = vmatmul.f32.gmra.mxu3 %v4940_v34  ;;  %v13887_v45 = vsel %vm3368_vm9, %v3451_v7, %v3455_v51  ;;  %v13890_v50 = vsel %vm3368_vm9, %v3453_v44, %v3457_v19  ;;  %v4254_v7 = vld [vmem:[%s16382_s7 + $0x5e8] sm:$0xff]  ;;  %v4237_v44 = vld [vmem:[%s16382_s7 + $0x560] sm:$0xff] }
 0x714   :  { %v6174_v13 = vadd.f32 %v6173_v31, %v6082_v8  ;;  %v4256_v8 = vld [vmem:[%s16382_s7 + $0x5f8] sm:$0xff]  ;;  %v5001_v4 = vrot.slane %v13887_v45, 5  ;;  %v5003_v1 = vrot.slane %v13890_v50, 5  ;;  %v4235_v45 = vld [vmem:[%s16382_s7 + $0x550] sm:$0xff] }
 0x715   :  { %6613 = vmatpush.msra.mxu1 %v4256_v8  ;;  %v7884_v8 = vld [vmem:[#allocation2 + $0x1a0] sm:$0xff] }
 0x716   :  { %v13865_v21 = vadd.f32 %v6265_v55, %v6174_v13  ;;  %v5992_v35 = vpop.f32.mrf.mxu2  ;;  %6220 = vmatmul.f32.gmra.mxu0 %v4938_v37  ;;  %6312 = vmatmul.f32.gmra.mxu1 %v4940_v34  ;;  %v6084_v30 = vpop.f32.mrf.mxu3  ;;  %v4255_v37 = vld [vmem:[%s16382_s7 + $0x5f0] sm:$0xff]  ;;  %v4972_v34 = vsel %vm3855_vm0, %v4939_v6, %v4971_v63  ;;  %v4238_v6 = vld [vmem:[%s16382_s7 + $0x568] sm:$0xff] }
 0x717   :  { %v5993_v40 = vadd.f32 %v5992_v35, %v13328_v26  ;;  %v4239_v26 = vld [vmem:[%s16382_s7 + $0x570] sm:$0xff]  ;;  %6614 = vmatpush.msra.mxu1 %v4255_v37  ;;  %v4236_v37 = vld [vmem:[%s16382_s7 + $0x558] sm:$0xff] }
 0x718   :  { %6522 = vmatpush.msra.mxu0 %v4239_v26  ;;  %v3461_v26 = vrot.slane %v7884_v8, 2 }
 0x719   :  { %v6085_v3 = vadd.f32 %v6084_v30, %v5993_v40  ;;  %6615 = vmatpush.msra.mxu1 %v4254_v7 }
 0x71a   :  { %6523 = vmatpush.msra.mxu0 %v4238_v6  ;;  %v13930_v7 = vsel %vm3368_vm9, %v3457_v19, %v3461_v26  ;;  %v4250_v19 = vld [vmem:[%s16382_s7 + $0x5c8] sm:$0xff] }
 0x71b   :  { %6042 = vmatmul.f32.gmra.mxu2 %v4970_v36  ;;  %v6176_v31 = vpop.f32.mrf.mxu0  ;;  %v6268_v55 = vpop.f32.mrf.mxu1  ;;  %6134 = vmatmul.f32.gmra.mxu3 %v4972_v34 }
 0x71c   :  { %v6177_v13 = vadd.f32 %v6176_v31, %v6085_v3  ;;  %v3459_v3 = vrot.slane %v7883_v10, 2  ;;  %6524 = vmatpush.msra.mxu0 %v4237_v44  ;;  %6616 = vmatpush.msra.mxu1 %v4253_v24  ;;  %v5002_v31 = vsel %vm3855_vm0, %v4969_v42, %v5001_v4  ;;  %v4251_v44 = vld [vmem:[%s16382_s7 + $0x5d0] sm:$0xff]  ;;  %v4233_v10 = vld [vmem:[%s16382_s7 + $0x540] sm:$0xff] }
 0x71e   :  { %v13892_v38 = vadd.f32 %v6268_v55, %v6177_v13  ;;  %v5995_v35 = vpop.f32.mrf.mxu2  ;;  %6223 = vmatmul.f32.gmra.mxu0 %v4970_v36  ;;  %6315 = vmatmul.f32.gmra.mxu1 %v4972_v34  ;;  %v6087_v30 = vpop.f32.mrf.mxu3  ;;  %v4252_v34 = vld [vmem:[%s16382_s7 + $0x5d8] sm:$0xff]  ;;  %v4209_v55 = vld [vmem:[%s16382_s7 + $0x480] sm:$0xff]  ;;  %v5004_v13 = vsel %vm3855_vm0, %v4971_v63, %v5003_v1  ;;  %v13927_v6 = vsel %vm3368_vm9, %v3455_v51, %v3459_v3 }
 0x71f   :  { %v5996_v40 = vadd.f32 %v5995_v35, %v13385_v59  ;;  %v4193_v59 = vld [vmem:[%s16382_s7 + $0x400] sm:$0xff]  ;;  %6525 = vmatpush.msra.mxu0 %v4236_v37  ;;  %6617 = vmatpush.msra.mxu1 %v4252_v34  ;;  %v5033_v51 = vrot.slane %v13927_v6, 5  ;;  %v7886_v34 = vld [vmem:[#allocation2 + $0x170] sm:$0xff] }
 0x720   :  { %6352 = vmatpush.msra.mxu2 %v4193_v59  ;;  %6444 = vmatpush.msra.mxu3 %v4209_v55  ;;  %v7885_v59 = vld [vmem:[#allocation2] sm:$0xff] }
 0x721   :  { %v6088_v36 = vadd.f32 %v6087_v30, %v5996_v40  ;;  %6526 = vmatpush.msra.mxu0 %v4235_v45  ;;  %v4234_v30 = vld [vmem:[%s16382_s7 + $0x548] sm:$0xff]  ;;  %v13949_v37 = vrot.slane %v7885_v59, 2  ;;  %6618 = vmatpush.msra.mxu1 %v4251_v44  ;;  %v4249_v55 = vld [vmem:[%s16382_s7 + $0x5c0] sm:$0xff]  ;;  %v4272_v59 = vld [vmem:[%s16382_s7 + $0x678] sm:$0xff] }
 0x722   :  { %6705 = vmatpush.msrb.mxu2 %v4272_v59 }
 0x723   :  { %6045 = vmatmul.f32.gmra.mxu2 %v5002_v31  ;;  %v6179_v50 = vpop.f32.mrf.mxu0  ;;  %v6271_v35 = vpop.f32.mrf.mxu1  ;;  %6137 = vmatmul.f32.gmra.mxu3 %v5004_v13 }
 0x724   :  { %v6180_v42 = vadd.f32 %v6179_v50, %v6088_v36  ;;  %v5035_v36 = vrot.slane %v13930_v7, 5  ;;  %6527 = vmatpush.msra.mxu0 %v4234_v30  ;;  %6619 = vmatpush.msra.mxu1 %v4250_v19  ;;  %v4248_v50 = vld [vmem:[%s16382_s7 + $0x5b8] sm:$0xff]  ;;  %v3464_v7 = vsel %vm3368_vm9, %v3459_v3, %v13949_v37  ;;  %v13968_v30 = vld [vmem:[#allocation2 + $0x1a8] sm:$0x7f]  ;;  %v13976_v19 = vld [vmem:[#allocation2 + $0x20] sm:$0x7f] }
 0x726   :  { %v13935_v40 = vadd.f32 %v6271_v35, %v6180_v42  ;;  %v5998_v63 = vpop.f32.mrf.mxu2  ;;  %6226 = vmatmul.f32.gmra.mxu0 %v5002_v31  ;;  %6318 = vmatmul.f32.gmra.mxu1 %v5004_v13  ;;  %v6090_v8 = vpop.f32.mrf.mxu3  ;;  %v13951_v31 = vrot.slane %v7886_v34, 2  ;;  %v5034_v13 = vsel %vm3855_vm0, %v5001_v4, %v5033_v51  ;;  %v5036_v35 = vsel %vm3855_vm0, %v5003_v1, %v5035_v36  ;;  %v4231_v4 = vld [vmem:[%s16382_s7 + $0x530] sm:$0xff] }
 0x727   :  { %v5999_v24 = vadd.f32 %v5998_v63, %v13446_v18  ;;  %6528 = vmatpush.msra.mxu0 %v4233_v10  ;;  %v4232_v18 = vld [vmem:[%s16382_s7 + $0x538] sm:$0xff]  ;;  %6620 = vmatpush.msra.mxu1 %v4249_v55  ;;  %v4247_v1 = vld [vmem:[%s16382_s7 + $0x5b0] sm:$0xff] }
 0x728   :  { %v3466_v63 = vsel %vm3368_vm9, %v3461_v26, %v13951_v31  ;;  %v13980_v26 = vrot.slane %v3464_v7, 5  ;;  %v4245_v7 = vld [vmem:[%s16382_s7 + $0x5a0] sm:$0xff] }
 0x729   :  { %v6091_v45 = vadd.f32 %v6090_v8, %v5999_v24  ;;  %6529 = vmatpush.msra.mxu0 %v4232_v18  ;;  %6621 = vmatpush.msra.mxu1 %v4248_v50  ;;  %v4230_v24 = vld [vmem:[%s16382_s7 + $0x528] sm:$0xff]  ;;  %v16513_v18 = vrot.slane %v13968_v30, 2  ;;  %v13997_v50 = vld [vmem:[#allocation2 + $0x20] sm:$0xff] }
 0x72a   :  { %v4246_v8 = vld [vmem:[%s16382_s7 + $0x5a8] sm:$0xff] }
 0x72b   :  { %6048 = vmatmul.f32.gmra.mxu2 %v5034_v13  ;;  %v6182_v6 = vpop.f32.mrf.mxu0  ;;  %v6274_v42 = vpop.f32.mrf.mxu1  ;;  %6140 = vmatmul.f32.gmra.mxu3 %v5036_v35  ;;  %v14022_v59 = vsel %vm3368_vm9, %v13949_v37, %v16513_v18 }
 0x72c   :  { %v6183_v44 = vadd.f32 %v6182_v6, %v6091_v45  ;;  %v13992_v45 = vrot.slane %v3466_v63, 5  ;;  %6530 = vmatpush.msra.mxu0 %v4231_v4  ;;  %6622 = vmatpush.msra.mxu1 %v4247_v1  ;;  %v16510_v6 = vrot.slane %v13976_v19, 2  ;;  %v16511_v4 = vrot.slane %v13997_v50, 2  ;;  %v4228_v1 = vld [vmem:[%s16382_s7 + $0x518] sm:$0xff] }
 0x72e   :  { %v13978_v3 = vadd.f32 %v6274_v42, %v6183_v44  ;;  %v6001_v10 = vpop.f32.mrf.mxu2  ;;  %6229 = vmatmul.f32.gmra.mxu0 %v5034_v13  ;;  %6321 = vmatmul.f32.gmra.mxu1 %v5036_v35  ;;  %v6093_v55 = vpop.f32.mrf.mxu3  ;;  %v13995_v13 = vld [vmem:[#allocation2 + $0x1a8] sm:$0xff]  ;;  %v4288_v35 = vld [vmem:[%s16382_s7 + $0x6f8] sm:$0xff]  ;;  %v5066_v44 = vsel %vm3855_vm0, %v5033_v51, %v13980_v26 }
 0x72f   :  { %v6002_v34 = vadd.f32 %v6001_v10, %v13528_v5  ;;  %v4229_v5 = vld [vmem:[%s16382_s7 + $0x520] sm:$0xff]  ;;  %6797 = vmatpush.msrb.mxu3 %v4288_v35  ;;  %6531 = vmatpush.msra.mxu0 %v4230_v24  ;;  %v16512_v63 = vrot.slane %v13995_v13, 2  ;;  %v5068_v10 = vsel %vm3855_vm0, %v5035_v36, %v13992_v45  ;;  %v4244_v36 = vld [vmem:[%s16382_s7 + $0x598] sm:$0xff] }
 0x730   :  { %6623 = vmatpush.msra.mxu1 %v4246_v8 }
 0x731   :  { %v6094_v42 = vadd.f32 %v6093_v55, %v6002_v34  ;;  %6532 = vmatpush.msra.mxu0 %v4229_v5  ;;  %v14028_v34 = vsel %vm3368_vm9, %v13951_v31, %v16510_v6  ;;  %v4227_v55 = vld [vmem:[%s16382_s7 + $0x510] sm:$0xff] }
 0x732   :  { %6624 = vmatpush.msra.mxu1 %v4245_v7  ;;  %v14043_v7 = vsel %vm3368_vm9, %v13949_v37, %v16512_v63  ;;  %v5131_v37 = vrot.slane %v14028_v34, 5  ;;  %v4271_v34 = vld [vmem:[%s16382_s7 + $0x670] sm:$0xff] }
 0x733   :  { %6051 = vmatmul.f32.gmra.mxu2 %v5066_v44  ;;  %v6185_v24 = vpop.f32.mrf.mxu0  ;;  %v6277_v8 = vpop.f32.mrf.mxu1  ;;  %6143 = vmatmul.f32.gmra.mxu3 %v5068_v10 }
 0x734   :  { %v6186_v51 = vadd.f32 %v6185_v24, %v6094_v42  ;;  %6533 = vmatpush.msra.mxu0 %v4228_v1  ;;  %v5129_v42 = vrot.slane %v14022_v59, 5  ;;  %v14049_v24 = vsel %vm3368_vm9, %v13951_v31, %v16511_v4  ;;  %v4243_v1 = vld [vmem:[%s16382_s7 + $0x590] sm:$0xff]  ;;  %v14059_v59 = vld [vmem:[#allocation2 + $0xc8] sm:$0x7f]  ;;  %6625 = vmatpush.msra.mxu1 %v4244_v36  ;;  %v5097_v4 = vrot.slane %v14043_v7, 5 }
 0x735   :  { %v4242_v31 = vld [vmem:[%s16382_s7 + $0x588] sm:$0xff]  ;;  %v5099_v63 = vrot.slane %v14049_v24, 5  ;;  %v4287_v36 = vld [vmem:[%s16382_s7 + $0x6f0] sm:$0xff]  ;;  %v4241_v24 = vld [vmem:[%s16382_s7 + $0x580] sm:$0xff]  ;;  %6706 = vmatpush.msrb.mxu2 %v4271_v34 }
 0x736   :  { %v14036_v35 = vadd.f32 %v6277_v8, %v6186_v51  ;;  %v6004_v5 = vpop.f32.mrf.mxu2  ;;  %6232 = vmatmul.f32.gmra.mxu0 %v5066_v44  ;;  %6324 = vmatmul.f32.gmra.mxu1 %v5068_v10  ;;  %v4226_v44 = vld [vmem:[%s16382_s7 + $0x508] sm:$0xff]  ;;  %v6096_v8 = vpop.f32.mrf.mxu3  ;;  %v14061_v51 = vld [vmem:[#allocation2 + $0xe0] sm:$0x7f] }
 0x737   :  { %v6005_v10 = vadd.f32 %v6004_v5, %v13590_v53  ;;  %6534 = vmatpush.msra.mxu0 %v4227_v55  ;;  %6626 = vmatpush.msra.mxu1 %v4243_v1  ;;  %v4225_v53 = vld [vmem:[%s16382_s7 + $0x500] sm:$0xff]  ;;  %v5130_v55 = vsel %vm3855_vm0, %v13980_v26, %v5129_v42  ;;  %v5132_v1 = vsel %vm3855_vm0, %v13992_v45, %v5131_v37 }
 0x738   :  { %6798 = vmatpush.msrb.mxu3 %v4287_v36  ;;  %v5098_v5 = vsel %vm3855_vm0, %v13980_v26, %v5097_v4  ;;  %v5100_v7 = vsel %vm3855_vm0, %v13992_v45, %v5099_v63  ;;  %v17087_v36 = vrot.slane %v13968_v30, 2  ;;  %v17090_v26 = vrot.slane %v14061_v51, 2 }
 0x739   :  { %v6097_v6 = vadd.f32 %v6096_v8, %v6005_v10  ;;  %6535 = vmatpush.msra.mxu0 %v4226_v44  ;;  %6627 = vmatpush.msra.mxu1 %v4242_v31  ;;  %v17088_v31 = vrot.slane %v14059_v59, 2  ;;  %v17091_v45 = vrot.slane %v13997_v50, 2  ;;  %v17092_v30 = vrot.slane %v13976_v19, 2 }
 0x73b   :  { %6054 = vmatmul.f32.gmra.mxu2 %v5130_v55  ;;  %v6188_v44 = vpop.f32.mrf.mxu0  ;;  %v6280_v10 = vpop.f32.mrf.mxu1  ;;  %6146 = vmatmul.f32.gmra.mxu3 %v5132_v1  ;;  %v5165_v55 = vrot.slane %v17087_v36, 5  ;;  %v5167_v1 = vrot.slane %v17092_v30, 5  ;;  %v7889_v36 = vld [vmem:[#allocation2 + $0xf0] sm:$0xff] }
 0x73c   :  { %v6189_v8 = vadd.f32 %v6188_v44, %v6097_v6  ;;  %6536 = vmatpush.msra.mxu0 %v4225_v53  ;;  %6628 = vmatpush.msra.mxu1 %v4241_v24  ;;  %v17089_v6 = vrot.slane %v13995_v13, 2  ;;  %v14106_v24 = vsel %vm3368_vm9, %v17091_v45, %v17090_v26  ;;  %v7887_v44 = vld [vmem:[#allocation2 + $0x160] sm:$0xff] }
 0x73d   :  { %v5166_v19 = vsel %vm3855_vm0, %v5129_v42, %v5165_v55  ;;  %v5168_v45 = vsel %vm3855_vm0, %v5131_v37, %v5167_v1  ;;  %v4270_v1 = vld [vmem:[%s16382_s7 + $0x668] sm:$0xff] }
 0x73e   :  { %v14090_v18 = vadd.f32 %v6280_v10, %v6189_v8  ;;  %v6007_v34 = vpop.f32.mrf.mxu2  ;;  %6235 = vmatmul.f32.gmra.mxu0 %v5098_v5  ;;  %6327 = vmatmul.f32.gmra.mxu1 %v5100_v7  ;;  %v14099_v53 = vsel %vm3368_vm9, %v17089_v6, %v17088_v31  ;;  %v6099_v7 = vpop.f32.mrf.mxu3  ;;  %v3492_v10 = vrot.slane %v7887_v44, 3  ;;  %v14111_v8 = vld [vmem:[#allocation2 + $0xf8] sm:$0xff]  ;;  %v3493_v31 = vrot.slane %v7889_v36, 3 }
 0x73f   :  { %v6008_v5 = vadd.f32 %v6007_v34, %v13632_v23  ;;  %v3494_v13 = vrot.slane %v14111_v8, 3  ;;  %v14114_v6 = vld [vmem:[#allocation2 + $0x78] sm:$0xff]  ;;  %v5133_v23 = vrot.slane %v14099_v53, 5  ;;  %v5135_v34 = vrot.slane %v14106_v24, 5  ;;  %6707 = vmatpush.msrb.mxu2 %v4270_v1 }
 0x740   :  { %v3496_v50 = vrot.slane %v14114_v6, 3  ;;  %v4385_v37 = vrot.slane %v3492_v10, 5 }
 0x741   :  { %v6100_v26 = vadd.f32 %v6099_v7, %v6008_v5  ;;  %v14122_v12 = vsel %vm3491_vm10, %v3492_v10, %v3494_v13  ;;  %v5134_v5 = vsel %vm3855_vm0, %v5097_v4, %v5133_v23  ;;  %v5136_v53 = vsel %vm3855_vm0, %v5099_v63, %v5135_v34  ;;  %v3145_v7 = vld [vmem:[#allocation2 + $0x160] sm:$0xfe]  ;;  %v14140_v10 = vld [vmem:[#allocation2 + $0x130] sm:$0xff] }
 0x742   :  { %v14125_v2 = vsel %vm3491_vm10, %v3493_v31, %v3496_v50  ;;  %v4386_v55 = vrot.slane %v14122_v12, 5  ;;  %v14137_v63 = vld [vmem:[#allocation2 + $0x100] sm:$0xff]  ;;  %v3500_v12 = vrot.slane %v14140_v10, 3  ;;  %v3595_v9 = vrot.slane %v3145_v7, 4 }
 0x743   :  { %6057 = vmatmul.f32.gmra.mxu2 %v5166_v19  ;;  %v6191_v30 = vpop.f32.mrf.mxu0  ;;  %v6283_v44 = vpop.f32.mrf.mxu1  ;;  %6149 = vmatmul.f32.gmra.mxu3 %v5168_v45  ;;  %v4388_v45 = vrot.slane %v3493_v31, 5  ;;  %v4389_v4 = vrot.slane %v14125_v2, 5  ;;  %v4286_v2 = vld [vmem:[%s16382_s7 + $0x6e8] sm:$0xff] }
 0x744   :  { %v6192_v36 = vadd.f32 %v6191_v30, %v6100_v26  ;;  %v3498_v30 = vrot.slane %v14137_v63, 3  ;;  %v4387_v31 = vsel %vm3855_vm0, %v4385_v37, %v4386_v55  ;;  %6799 = vmatpush.msrb.mxu3 %v4286_v2 }
 0x746   :  { %v14129_v24 = vadd.f32 %v6283_v44, %v6192_v36  ;;  %v6010_v42 = vpop.f32.mrf.mxu2  ;;  %6238 = vmatmul.f32.gmra.mxu0 %v5134_v5  ;;  %6330 = vmatmul.f32.gmra.mxu1 %v5136_v53  ;;  %v6102_v19 = vpop.f32.mrf.mxu3  ;;  %v3146_v44 = vld [vmem:[#allocation2 + $0xf0] sm:$0xfe]  ;;  %v17093_v5 = vrot.slane %v14059_v59, 2  ;;  %v3499_v59 = vsel %vm3491_vm10, %v3494_v13, %v3498_v30 }
 0x747   :  { %v6011_v26 = vadd.f32 %v6010_v42, %v13654_v58  ;;  %v17094_v58 = vrot.slane %v14061_v51, 2  ;;  %v3596_v46 = vrot.slane %v3146_v44, 4  ;;  %v14154_v51 = vsel %vm3491_vm10, %v3496_v50, %v3500_v12 }
 0x748   :  { %v5169_v53 = vrot.slane %v17093_v5, 5  ;;  %v3597_v5 = vrot.slane %v14111_v8, 4  ;;  %v4429_v13 = vrot.slane %v3499_v59, 5 }
 0x749   :  { %v6103_v36 = vadd.f32 %v6102_v19, %v6011_v26  ;;  %v5171_v42 = vrot.slane %v17094_v58, 5  ;;  %v4390_v26 = vsel %vm3855_vm0, %v4388_v45, %v4389_v4  ;;  %v3599_v58 = vrot.slane %v14114_v6, 4 }
 0x74a   :  { %v5170_v37 = vsel %vm3855_vm0, %v5133_v23, %v5169_v53  ;;  %v3598_v45 = vsel %vm3594_vm11, %v3595_v9, %v3597_v5  ;;  %v4431_v6 = vrot.slane %v14154_v51, 5 }
 0x74b   :  { %v6194_v1 = vpop.f32.mrf.mxu0  ;;  %v6286_v15 = vpop.f32.mrf.mxu1  ;;  %6353 = vmatmul.f32.vlgmr.msra.gmra.mxu2 %v4387_v31  ;;  %6445 = vmatmul.f32.vlgmr.msra.gmra.mxu3 %v4390_v26  ;;  %v5172_v7 = vsel %vm3855_vm0, %v5135_v34, %v5171_v42  ;;  %v3600_v50 = vsel %vm3594_vm11, %v3596_v46, %v3599_v58  ;;  %v14166_v31 = vld [vmem:[#allocation2 + $0xe8] sm:$0xff]  ;;  %v4391_v34 = vrot.slane %v3595_v9, 5  ;;  %v4394_v26 = vrot.slane %v3596_v46, 5 }
 0x74c   :  { %v6195_v19 = vadd.f32 %v6194_v1, %v6103_v36  ;;  %v3502_v23 = vrot.slane %v14166_v31, 3  ;;  %v4392_v1 = vrot.slane %v3598_v45, 5  ;;  %v4395_v59 = vrot.slane %v3600_v50, 5 }
 0x74d   :  { %v4432_v9 = vsel %vm3855_vm0, %v4389_v4, %v4431_v6  ;;  %v3601_v46 = vrot.slane %v14137_v63, 4  ;;  %v3603_v50 = vrot.slane %v14140_v10, 4  ;;  %v14192_v10 = vld [vmem:[#allocation2 + $0xc0] sm:$0xff] }
 0x74e   :  { %v14160_v44 = vadd.f32 %v6286_v15, %v6195_v19  ;;  %v6013_v2 = vpop.f32.mrf.mxu2  ;;  %6241 = vmatmul.f32.gmra.mxu0 %v5170_v37  ;;  %6333 = vmatmul.f32.gmra.mxu1 %v5172_v7  ;;  %v6105_v8 = vpop.f32.mrf.mxu3  ;;  %v14169_v15 = vld [vmem:[#allocation2 + $0x40] sm:$0xff]  ;;  %v4430_v19 = vsel %vm3855_vm0, %v4386_v55, %v4429_v13  ;;  %v3503_v7 = vsel %vm3491_vm10, %v3498_v30, %v3502_v23 }
 0x74f   :  { %v6014_v36 = vadd.f32 %v6013_v2, %v13669_v27  ;;  %v3504_v53 = vrot.slane %v14169_v15, 3  ;;  %v4269_v27 = vld [vmem:[%s16382_s7 + $0x660] sm:$0xff]  ;;  %v4396_v55 = vsel %vm3855_vm0, %v4394_v26, %v4395_v59  ;;  %v4461_v4 = vrot.slane %v3503_v7, 5 }
 0x750   :  { %6708 = vmatpush.msrb.mxu2 %v4269_v27  ;;  %v4285_v30 = vld [vmem:[%s16382_s7 + $0x6e0] sm:$0xff]  ;;  %v3602_v26 = vsel %vm3594_vm11, %v3597_v5, %v3601_v46 }
 0x751   :  { %v6106_v42 = vadd.f32 %v6105_v8, %v6014_v36  ;;  %v14179_v45 = vsel %vm3491_vm10, %v3500_v12, %v3504_v53  ;;  %v4393_v36 = vsel %vm3855_vm0, %v4391_v34, %v4392_v1  ;;  %v3506_v34 = vrot.slane %v14192_v10, 3  ;;  %6800 = vmatpush.msrb.mxu3 %v4285_v30 }
 0x752   :  { %v4463_v63 = vrot.slane %v14179_v45, 5  ;;  %v4462_v7 = vsel %vm3855_vm0, %v4429_v13, %v4461_v4 }
 0x753   :  { %v6197_v51 = vpop.f32.mrf.mxu0  ;;  %v6289_v37 = vpop.f32.mrf.mxu1  ;;  %6356 = vmatmul.f32.gmra.mxu2 %v4430_v19  ;;  %6448 = vmatmul.f32.gmra.mxu3 %v4432_v9  ;;  %v3604_v19 = vsel %vm3594_vm11, %v3599_v58, %v3603_v50  ;;  %v3507_v58 = vsel %vm3491_vm10, %v3502_v23, %v3506_v34  ;;  %v4268_v23 = vld [vmem:[%s16382_s7 + $0x658] sm:$0xff] }
 0x754   :  { %v6198_v2 = vadd.f32 %v6197_v51, %v6106_v42  ;;  %v14197_v51 = vld [vmem:[#allocation2 + $0x168] sm:$0xff]  ;;  %v4435_v5 = vrot.slane %v3604_v19, 5  ;;  %6709 = vmatpush.msrb.mxu2 %v4268_v23 }
 0x756   :  { %v14185_v8 = vadd.f32 %v6289_v37, %v6198_v2  ;;  %v6016_v27 = vpop.f32.mrf.mxu2  ;;  %6537 = vmatmul.f32.vlgmr.msra.gmra.mxu0 %v4393_v36  ;;  %6629 = vmatmul.f32.vlgmr.msra.gmra.mxu1 %v4396_v55  ;;  %v6108_v42 = vpop.f32.mrf.mxu3  ;;  %v3508_v37 = vrot.slane %v14197_v51, 3  ;;  %v3607_v2 = vrot.slane %v14169_v15, 4  ;;  %v4464_v55 = vsel %vm3855_vm0, %v4431_v6, %v4463_v63 }
 0x757   :  { %v6017_v12 = vadd.f32 %v6016_v27, %v13679_v17  ;;  %v3605_v17 = vrot.slane %v14166_v31, 4  ;;  %v4433_v27 = vrot.slane %v3602_v26, 5  ;;  %v4436_v31 = vsel %vm3855_vm0, %v4395_v59, %v4435_v5  ;;  %v14219_v59 = vld [vmem:[#allocation2 + $0x118] sm:$0xff] }
 0x758   :  { %v14206_v14 = vsel %vm3491_vm10, %v3504_v53, %v3508_v37  ;;  %v3608_v26 = vsel %vm3594_vm11, %v3603_v50, %v3607_v2 }
 0x759   :  { %v6109_v9 = vadd.f32 %v6108_v42, %v6017_v12  ;;  %v4434_v13 = vsel %vm3855_vm0, %v4392_v1, %v4433_v27  ;;  %v4493_v42 = vrot.slane %v3507_v58, 5  ;;  %v3606_v6 = vsel %vm3594_vm11, %v3601_v46, %v3605_v17 }
 0x75a   :  { %v4495_v1 = vrot.slane %v14206_v14, 5  ;;  %v4465_v50 = vrot.slane %v3606_v6, 5  ;;  %v3609_v14 = vrot.slane %v14192_v10, 4  ;;  %v3611_v58 = vrot.slane %v14197_v51, 4 }
 0x75b   :  { %v6200_v45 = vpop.f32.mrf.mxu0  ;;  %v6292_v36 = vpop.f32.mrf.mxu1  ;;  %6359 = vmatmul.f32.gmra.mxu2 %v4462_v7  ;;  %6451 = vmatmul.f32.gmra.mxu3 %v4464_v55  ;;  %v14222_v7 = vld [vmem:[#allocation2 + $0x120] sm:$0xff]  ;;  %v4284_v55 = vld [vmem:[%s16382_s7 + $0x6d8] sm:$0xff] }
 0x75c   :  { %v6201_v30 = vadd.f32 %v6200_v45, %v6109_v9  ;;  %v3510_v9 = vrot.slane %v14219_v59, 3  ;;  %v3512_v46 = vrot.slane %v14222_v7, 3  ;;  %6801 = vmatpush.msrb.mxu3 %v4284_v55  ;;  %v4466_v23 = vsel %vm3855_vm0, %v4433_v27, %v4465_v50  ;;  %v14244_v27 = vld [vmem:[#allocation2 + $0x188] sm:$0xff] }
 0x75e   :  { %v14210_v12 = vadd.f32 %v6292_v36, %v6201_v30  ;;  %v6019_v15 = vpop.f32.mrf.mxu2  ;;  %6540 = vmatmul.f32.gmra.mxu0 %v4434_v13  ;;  %6632 = vmatmul.f32.gmra.mxu1 %v4436_v31  ;;  %v6111_v19 = vpop.f32.mrf.mxu3  ;;  %v4467_v36 = vrot.slane %v3608_v26, 5  ;;  %v4496_v31 = vsel %vm3855_vm0, %v4463_v63, %v4495_v1  ;;  %v3513_v26 = vsel %vm3491_vm10, %v3508_v37, %v3512_v46 }
 0x75f   :  { %v6020_v53 = vadd.f32 %v6019_v15, %v13692_v49  ;;  %v4494_v49 = vsel %vm3855_vm0, %v4461_v4, %v4493_v42  ;;  %v3511_v15 = vsel %vm3491_vm10, %v3506_v34, %v3510_v9  ;;  %v3612_v63 = vsel %vm3594_vm11, %v3607_v2, %v3611_v58 }
 0x760   :  { %v4468_v4 = vsel %vm3855_vm0, %v4435_v5, %v4467_v36  ;;  %v4525_v51 = vrot.slane %v3511_v15, 5  ;;  %v4527_v55 = vrot.slane %v3513_v26, 5  ;;  %v3516_v5 = vrot.slane %v14244_v27, 3 }
 0x761   :  { %v6112_v45 = vadd.f32 %v6111_v19, %v6020_v53  ;;  %v3610_v19 = vsel %vm3594_vm11, %v3605_v17, %v3609_v14  ;;  %v4267_v17 = vld [vmem:[%s16382_s7 + $0x650] sm:$0xff]  ;;  %v3615_v15 = vrot.slane %v14222_v7, 4 }
 0x762   :  { %v4526_v2 = vsel %vm3855_vm0, %v4493_v42, %v4525_v51  ;;  %6710 = vmatpush.msrb.mxu2 %v4267_v17 }
 0x763   :  { %v6203_v30 = vpop.f32.mrf.mxu0  ;;  %v6295_v13 = vpop.f32.mrf.mxu1  ;;  %6362 = vmatmul.f32.gmra.mxu2 %v4494_v49  ;;  %6454 = vmatmul.f32.gmra.mxu3 %v4496_v31  ;;  %v14241_v49 = vld [vmem:[#allocation2 + $0x60] sm:$0xff]  ;;  %v4499_v31 = vrot.slane %v3612_v63, 5 }
 0x764   :  { %v6204_v6 = vadd.f32 %v6203_v30, %v6112_v45  ;;  %v3514_v37 = vrot.slane %v14241_v49, 3 }
 0x765   :  { %v4500_v42 = vsel %vm3855_vm0, %v4467_v36, %v4499_v31  ;;  %v14269_v36 = vld [vmem:[#allocation2 + $0x198] sm:$0xff] }
 0x766   :  { %v14236_v53 = vadd.f32 %v6295_v13, %v6204_v6  ;;  %v6022_v10 = vpop.f32.mrf.mxu2  ;;  %6543 = vmatmul.f32.gmra.mxu0 %v4466_v23  ;;  %6635 = vmatmul.f32.gmra.mxu1 %v4468_v4  ;;  %v6114_v45 = vpop.f32.mrf.mxu3  ;;  %v4497_v13 = vrot.slane %v3610_v19, 5  ;;  %v4528_v23 = vsel %vm3855_vm0, %v4495_v1, %v4527_v55  ;;  %v3515_v4 = vsel %vm3491_vm10, %v3510_v9, %v3514_v37  ;;  %v4283_v9 = vld [vmem:[%s16382_s7 + $0x6d0] sm:$0xff] }
 0x767   :  { %v6023_v34 = vadd.f32 %v6022_v10, %v13702_v54  ;;  %v3613_v54 = vrot.slane %v14219_v59, 4  ;;  %v14256_v19 = vsel %vm3491_vm10, %v3512_v46, %v3516_v5  ;;  %v3616_v1 = vsel %vm3594_vm11, %v3611_v58, %v3615_v15  ;;  %6802 = vmatpush.msrb.mxu3 %v4283_v9 }
 0x768   :  { %v4498_v63 = vsel %vm3855_vm0, %v4465_v50, %v4497_v13  ;;  %v4559_v50 = vrot.slane %v14256_v19, 5  ;;  %v3518_v17 = vrot.slane %v14269_v36, 3 }
 0x769   :  { %v6115_v30 = vadd.f32 %v6114_v45, %v6023_v34  ;;  %v4557_v34 = vrot.slane %v3515_v4, 5  ;;  %v3614_v45 = vsel %vm3594_vm11, %v3609_v14, %v3613_v54  ;;  %v3617_v4 = vrot.slane %v14241_v49, 4 }
 0x76a   :  { %v4529_v58 = vrot.slane %v3614_v45, 5 }
 0x76b   :  { %v6206_v6 = vpop.f32.mrf.mxu0  ;;  %v6298_v26 = vpop.f32.mrf.mxu1  ;;  %6365 = vmatmul.f32.gmra.mxu2 %v4526_v2  ;;  %6457 = vmatmul.f32.gmra.mxu3 %v4528_v23  ;;  %v14272_v2 = vld [vmem:[#allocation2 + $0x1b8] sm:$0xff]  ;;  %v4558_v23 = vsel %vm3855_vm0, %v4525_v51, %v4557_v34 }
 0x76c   :  { %v6207_v10 = vadd.f32 %v6206_v6, %v6115_v30  ;;  %v3520_v14 = vrot.slane %v14272_v2, 3  ;;  %v4530_v45 = vsel %vm3855_vm0, %v4497_v13, %v4529_v58  ;;  %v14291_v13 = vld [vmem:[#allocation2 + $0x138] sm:$0xff] }
 0x76e   :  { %v14260_v59 = vadd.f32 %v6298_v26, %v6207_v10  ;;  %v6025_v7 = vpop.f32.mrf.mxu2  ;;  %6546 = vmatmul.f32.gmra.mxu0 %v4498_v63  ;;  %6638 = vmatmul.f32.gmra.mxu1 %v4500_v42  ;;  %v6117_v30 = vpop.f32.mrf.mxu3  ;;  %v4531_v26 = vrot.slane %v3616_v1, 5  ;;  %v4560_v63 = vsel %vm3855_vm0, %v4527_v55, %v4559_v50  ;;  %v3519_v42 = vsel %vm3491_vm10, %v3514_v37, %v3518_v17 }
 0x76f   :  { %v6026_v46 = vadd.f32 %v6025_v7, %v13712_v60  ;;  %v3619_v60 = vrot.slane %v14244_v27, 4  ;;  %v3521_v9 = vsel %vm3491_vm10, %v3516_v5, %v3520_v14  ;;  %v4589_v27 = vrot.slane %v3519_v42, 5 }
 0x770   :  { %v4532_v1 = vsel %vm3855_vm0, %v4499_v31, %v4531_v26  ;;  %v3524_v31 = vrot.slane %v14291_v13, 3  ;;  %v3621_v42 = vrot.slane %v14269_v36, 4 }
 0x771   :  { %v6118_v6 = vadd.f32 %v6117_v30, %v6026_v46  ;;  %v3618_v46 = vsel %vm3594_vm11, %v3613_v54, %v3617_v4  ;;  %v3620_v55 = vsel %vm3594_vm11, %v3615_v15, %v3619_v60  ;;  %v4266_v54 = vld [vmem:[%s16382_s7 + $0x648] sm:$0xff]  ;;  %v4590_v15 = vsel %vm3855_vm0, %v4557_v34, %v4589_v27 }
 0x772   :  { %6711 = vmatpush.msrb.mxu2 %v4266_v54  ;;  %v3622_v54 = vsel %vm3594_vm11, %v3617_v4, %v3621_v42 }
 0x773   :  { %v6209_v10 = vpop.f32.mrf.mxu0  ;;  %v6301_v19 = vpop.f32.mrf.mxu1  ;;  %6368 = vmatmul.f32.gmra.mxu2 %v4558_v23  ;;  %6460 = vmatmul.f32.gmra.mxu3 %v4560_v63  ;;  %v14288_v23 = vld [vmem:[#allocation2 + $0xd0] sm:$0xff]  ;;  %v4563_v63 = vrot.slane %v3620_v55, 5  ;;  %v3525_v55 = vsel %vm3491_vm10, %v3520_v14, %v3524_v31 }
 0x774   :  { %v6210_v7 = vadd.f32 %v6209_v10, %v6118_v6  ;;  %v4591_v6 = vrot.slane %v3521_v9, 5  ;;  %v3522_v5 = vrot.slane %v14288_v23, 3  ;;  %v3625_v4 = vrot.slane %v14288_v23, 4 }
 0x775   :  { %v4564_v34 = vsel %vm3855_vm0, %v4531_v26, %v4563_v63 }
 0x776   :  { %v14283_v51 = vadd.f32 %v6301_v19, %v6210_v7  ;;  %v6028_v49 = vpop.f32.mrf.mxu2  ;;  %6549 = vmatmul.f32.gmra.mxu0 %v4530_v45  ;;  %6641 = vmatmul.f32.gmra.mxu1 %v4532_v1  ;;  %v6120_v30 = vpop.f32.mrf.mxu3  ;;  %v4561_v19 = vrot.slane %v3618_v46, 5  ;;  %v3623_v7 = vrot.slane %v14272_v2, 4  ;;  %v4592_v1 = vsel %vm3855_vm0, %v4559_v50, %v4591_v6 }
 0x777   :  { %v6029_v37 = vadd.f32 %v6028_v49, %v13725_v28  ;;  %v4282_v28 = vld [vmem:[%s16382_s7 + $0x6c8] sm:$0xff]  ;;  %v3523_v49 = vsel %vm3491_vm10, %v3518_v17, %v3522_v5 }
 0x778   :  { %6803 = vmatpush.msrb.mxu3 %v4282_v28  ;;  %v3624_v50 = vsel %vm3594_vm11, %v3619_v60, %v3623_v7  ;;  %v4623_v28 = vrot.slane %v3525_v55, 5  ;;  %v3627_v60 = vrot.slane %v14291_v13, 4 }
 0x779   :  { %v6121_v10 = vadd.f32 %v6120_v30, %v6029_v37  ;;  %v4562_v37 = vsel %vm3855_vm0, %v4529_v58, %v4561_v19  ;;  %v4621_v30 = vrot.slane %v3523_v49, 5  ;;  %v14316_v58 = vld [vmem:[#allocation2 + $0x10] sm:$0xff] }
 0x77a   :  { %v3528_v26 = vrot.slane %v14316_v58, 3  ;;  %v4624_v55 = vsel %vm3855_vm0, %v4591_v6, %v4623_v28  ;;  %v14335_v6 = vsel %vm3594_vm11, %v3623_v7, %v3627_v60  ;;  %v14348_v7 = vld [vmem:[#allocation2 + $0x150] sm:$0xff] }
 0x77b   :  { %v6212_v9 = vpop.f32.mrf.mxu0  ;;  %v6304_v45 = vpop.f32.mrf.mxu1  ;;  %6371 = vmatmul.f32.gmra.mxu2 %v4590_v15  ;;  %6463 = vmatmul.f32.gmra.mxu3 %v4592_v1  ;;  %v14313_v15 = vld [vmem:[#allocation2 + $0x108] sm:$0xff]  ;;  %v4595_v1 = vrot.slane %v3624_v50, 5  ;;  %v4622_v49 = vsel %vm3855_vm0, %v4589_v27, %v4621_v30 }
 0x77c   :  { %v6213_v46 = vadd.f32 %v6212_v9, %v6121_v10  ;;  %v3526_v14 = vrot.slane %v14313_v15, 3 }
 0x77d   :  { %v4596_v27 = vsel %vm3855_vm0, %v4563_v63, %v4595_v1 }
 0x77e   :  { %v14308_v36 = vadd.f32 %v6304_v45, %v6213_v46  ;;  %v6031_v2 = vpop.f32.mrf.mxu2  ;;  %6552 = vmatmul.f32.gmra.mxu0 %v4562_v37  ;;  %6644 = vmatmul.f32.gmra.mxu1 %v4564_v34  ;;  %v6123_v10 = vpop.f32.mrf.mxu3  ;;  %v4593_v45 = vrot.slane %v3622_v54, 5  ;;  %v3527_v37 = vsel %vm3491_vm10, %v3522_v5, %v3526_v14  ;;  %v4265_v5 = vld [vmem:[%s16382_s7 + $0x640] sm:$0xff] }
 0x77f   :  { %v6032_v17 = vadd.f32 %v6031_v2, %v13732_v25  ;;  %v14325_v2 = vsel %vm3491_vm10, %v3524_v31, %v3528_v26  ;;  %v4653_v13 = vrot.slane %v3527_v37, 5  ;;  %v4281_v31 = vld [vmem:[%s16382_s7 + $0x6c0] sm:$0xff]  ;;  %6712 = vmatpush.msrb.mxu2 %v4265_v5  ;;  %v3629_v37 = vrot.slane %v14313_v15, 4 }
 0x780   :  { %v4594_v54 = vsel %vm3855_vm0, %v4561_v19, %v4593_v45  ;;  %6804 = vmatpush.msrb.mxu3 %v4281_v31 }
 0x781   :  { %v6124_v9 = vadd.f32 %v6123_v10, %v6032_v17  ;;  %v14332_v17 = vsel %vm3594_vm11, %v3621_v42, %v3625_v4  ;;  %v4655_v10 = vrot.slane %v14325_v2, 5 }
 0x783   :  { %v6215_v25 = vpop.f32.mrf.mxu0  ;;  %v6307_v46 = vpop.f32.mrf.mxu1  ;;  %6374 = vmatmul.f32.gmra.mxu2 %v4622_v49  ;;  %6466 = vmatmul.f32.gmra.mxu3 %v4624_v55  ;;  %v3532_v49 = vrot.slane %v14348_v7, 3  ;;  %v4627_v55 = vrot.slane %v14335_v6, 5 }
 0x784   :  { %v6216_v34 = vadd.f32 %v6215_v25, %v6124_v9  ;;  %v14345_v9 = vld [vmem:[#allocation2 + $0x8] sm:$0xff] }
 0x785   :  { %v3530_v42 = vrot.slane %v14345_v9, 3  ;;  %v3533_v31 = vsel %vm3491_vm10, %v3528_v26, %v3532_v49  ;;  %v4628_v6 = vsel %vm3855_vm0, %v4595_v1, %v4627_v55 }
 0x786   :  { %v14329_v50 = vadd.f32 %v6307_v46, %v6216_v34  ;;  %v6034_v23 = vpop.f32.mrf.mxu2  ;;  %6555 = vmatmul.f32.gmra.mxu0 %v4594_v54  ;;  %6647 = vmatmul.f32.gmra.mxu1 %v4596_v27  ;;  %v6126_v63 = vpop.f32.mrf.mxu3  ;;  %v4625_v46 = vrot.slane %v14332_v17, 5  ;;  %v3631_v34 = vrot.slane %v14316_v58, 4  ;;  %v4656_v27 = vsel %vm3855_vm0, %v4623_v28, %v4655_v10 }
 0x787   :  { %v6035_v19 = vadd.f32 %v6034_v23, %v13745_v56  ;;  %v4654_v56 = vsel %vm3855_vm0, %v4621_v30, %v4653_v13  ;;  %v3531_v23 = vsel %vm3491_vm10, %v3526_v14, %v3530_v42 }
 0x788   :  { %v4626_v17 = vsel %vm3855_vm0, %v4593_v45, %v4625_v46  ;;  %v4685_v58 = vrot.slane %v3531_v23, 5  ;;  %v3632_v28 = vsel %vm3594_vm11, %v3627_v60, %v3631_v34  ;;  %v14369_v45 = vld [vmem:[#allocation2 + $0x80] sm:$0xff]  ;;  %v3633_v23 = vrot.slane %v14345_v9, 4 }
 0x789   :  { %v6127_v25 = vadd.f32 %v6126_v63, %v6035_v19  ;;  %v3630_v19 = vsel %vm3594_vm11, %v3625_v4, %v3629_v37  ;;  %v3536_v1 = vrot.slane %v14369_v45, 3  ;;  %v4264_v4 = vld [vmem:[%s16382_s7 + $0x638] sm:$0xff] }
 0x78a   :  { %v4686_v60 = vsel %vm3855_vm0, %v4653_v13, %v4685_v58  ;;  %6713 = vmatpush.msrb.mxu2 %v4264_v4  ;;  %v3634_v4 = vsel %vm3594_vm11, %v3629_v37, %v3633_v23 }
 0x78b   :  { %v6218_v2 = vpop.f32.mrf.mxu0  ;;  %v6310_v54 = vpop.f32.mrf.mxu1  ;;  %6377 = vmatmul.f32.gmra.mxu2 %v4654_v56  ;;  %6469 = vmatmul.f32.gmra.mxu3 %v4656_v27  ;;  %v14366_v56 = vld [vmem:[#allocation2 + $0xa0] sm:$0xff]  ;;  %v4659_v27 = vrot.slane %v3632_v28, 5  ;;  %v3537_v28 = vsel %vm3491_vm10, %v3532_v49, %v3536_v1 }
 0x78c   :  { %v6219_v5 = vadd.f32 %v6218_v2, %v6127_v25  ;;  %v4687_v25 = vrot.slane %v3533_v31, 5  ;;  %v3534_v26 = vrot.slane %v14366_v56, 3  ;;  %v3637_v37 = vrot.slane %v14366_v56, 4 }
 0x78d   :  { %v4660_v13 = vsel %vm3855_vm0, %v4627_v55, %v4659_v27 }
 0x78e   :  { %v14361_v30 = vadd.f32 %v6310_v54, %v6219_v5  ;;  %v6037_v15 = vpop.f32.mrf.mxu2  ;;  %6558 = vmatmul.f32.gmra.mxu0 %v4626_v17  ;;  %6650 = vmatmul.f32.gmra.mxu1 %v4628_v6  ;;  %v6129_v63 = vpop.f32.mrf.mxu3  ;;  %v4657_v54 = vrot.slane %v3630_v19, 5  ;;  %v3635_v5 = vrot.slane %v14348_v7, 4  ;;  %v4688_v6 = vsel %vm3855_vm0, %v4655_v10, %v4687_v25 }
 0x78f   :  { %v6038_v14 = vadd.f32 %v6037_v15, %v13758_v61  ;;  %v4280_v61 = vld [vmem:[%s16382_s7 + $0x6b8] sm:$0xff]  ;;  %v3535_v15 = vsel %vm3491_vm10, %v3530_v42, %v3534_v26 }
 0x790   :  { %6805 = vmatpush.msrb.mxu3 %v4280_v61  ;;  %v3636_v10 = vsel %vm3594_vm11, %v3631_v34, %v3635_v5  ;;  %v4719_v61 = vrot.slane %v3537_v28, 5  ;;  %v3639_v34 = vrot.slane %v14369_v45, 4 }
 0x791   :  { %v6130_v2 = vadd.f32 %v6129_v63, %v6038_v14  ;;  %v4658_v14 = vsel %vm3855_vm0, %v4625_v46, %v4657_v54  ;;  %v4717_v63 = vrot.slane %v3535_v15, 5  ;;  %v14394_v46 = vld [vmem:[#allocation2 + $0x38] sm:$0xff] }
 0x792   :  { %v3540_v55 = vrot.slane %v14394_v46, 3  ;;  %v4720_v28 = vsel %vm3855_vm0, %v4687_v25, %v4719_v61  ;;  %v14413_v25 = vsel %vm3594_vm11, %v3635_v5, %v3639_v34 }
 0x793   :  { %v6221_v31 = vpop.f32.mrf.mxu0  ;;  %v6313_v17 = vpop.f32.mrf.mxu1  ;;  %6380 = vmatmul.f32.gmra.mxu2 %v4686_v60  ;;  %6472 = vmatmul.f32.gmra.mxu3 %v4688_v6  ;;  %v14391_v60 = vld [vmem:[#allocation2 + $0x128] sm:$0xff]  ;;  %v4691_v6 = vrot.slane %v3636_v10, 5  ;;  %v4718_v15 = vsel %vm3855_vm0, %v4685_v58, %v4717_v63 }
 0x794   :  { %v6222_v19 = vadd.f32 %v6221_v31, %v6130_v2  ;;  %v3538_v49 = vrot.slane %v14391_v60, 3 }
 0x795   :  { %v4692_v58 = vsel %vm3855_vm0, %v4659_v27, %v4691_v6 }
 0x796   :  { %v14386_v9 = vadd.f32 %v6313_v17, %v6222_v19  ;;  %v6040_v7 = vpop.f32.mrf.mxu2  ;;  %6561 = vmatmul.f32.gmra.mxu0 %v4658_v14  ;;  %6653 = vmatmul.f32.gmra.mxu1 %v4660_v13  ;;  %v6132_v2 = vpop.f32.mrf.mxu3  ;;  %v4689_v17 = vrot.slane %v3634_v4, 5  ;;  %v3539_v14 = vsel %vm3491_vm10, %v3534_v26, %v3538_v49  ;;  %v4263_v26 = vld [vmem:[%s16382_s7 + $0x630] sm:$0xff] }
 0x797   :  { %v6041_v42 = vadd.f32 %v6040_v7, %v13770_v33  ;;  %v14403_v7 = vsel %vm3491_vm10, %v3536_v1, %v3540_v55  ;;  %v4749_v45 = vrot.slane %v3539_v14, 5  ;;  %6714 = vmatpush.msrb.mxu2 %v4263_v26  ;;  %v3641_v14 = vrot.slane %v14391_v60, 4 }
 0x798   :  { %v4690_v4 = vsel %vm3855_vm0, %v4657_v54, %v4689_v17  ;;  %v4751_v27 = vrot.slane %v14403_v7, 5 }
 0x799   :  { %v6133_v31 = vadd.f32 %v6132_v2, %v6041_v42  ;;  %v14410_v42 = vsel %vm3594_vm11, %v3633_v23, %v3637_v37  ;;  %v14420_v2 = vld [vmem:[#allocation2 + $0x88] sm:$0xff] }
 0x79b   :  { %v6224_v33 = vpop.f32.mrf.mxu0  ;;  %v6316_v19 = vpop.f32.mrf.mxu1  ;;  %6383 = vmatmul.f32.gmra.mxu2 %v4718_v15  ;;  %6475 = vmatmul.f32.gmra.mxu3 %v4720_v28  ;;  %v14423_v15 = vld [vmem:[#allocation2 + $0x158] sm:$0xff]  ;;  %v4750_v28 = vsel %vm3855_vm0, %v4717_v63, %v4749_v45 }
 0x79c   :  { %v6225_v13 = vadd.f32 %v6224_v33, %v6133_v31  ;;  %v3542_v31 = vrot.slane %v14420_v2, 3  ;;  %v3544_v23 = vrot.slane %v14423_v15, 3  ;;  %v4721_v33 = vrot.slane %v14410_v42, 5 }
 0x79e   :  { %v14407_v10 = vadd.f32 %v6316_v19, %v6225_v13  ;;  %v6043_v56 = vpop.f32.mrf.mxu2  ;;  %6564 = vmatmul.f32.gmra.mxu0 %v4690_v4  ;;  %6656 = vmatmul.f32.gmra.mxu1 %v4692_v58  ;;  %v6135_v54 = vpop.f32.mrf.mxu3  ;;  %v4723_v19 = vrot.slane %v14413_v25, 5  ;;  %v3643_v13 = vrot.slane %v14394_v46, 4  ;;  %v4752_v58 = vsel %vm3855_vm0, %v4719_v61, %v4751_v27 }
 0x79f   :  { %v6044_v1 = vadd.f32 %v6043_v56, %v13783_v29  ;;  %v4279_v29 = vld [vmem:[%s16382_s7 + $0x6b0] sm:$0xff]  ;;  %v3543_v56 = vsel %vm3491_vm10, %v3538_v49, %v3542_v31  ;;  %v3545_v25 = vsel %vm3491_vm10, %v3540_v55, %v3544_v23  ;;  %v4722_v26 = vsel %vm3855_vm0, %v4689_v17, %v4721_v33  ;;  %v14447_v17 = vld [vmem:[#allocation2 + $0x68] sm:$0xff] }
 0x7a0   :  { %6806 = vmatpush.msrb.mxu3 %v4279_v29  ;;  %v4724_v63 = vsel %vm3855_vm0, %v4691_v6, %v4723_v19  ;;  %v4781_v46 = vrot.slane %v3543_v56, 5  ;;  %v3644_v61 = vsel %vm3594_vm11, %v3639_v34, %v3643_v13  ;;  %v4783_v29 = vrot.slane %v3545_v25, 5 }
 0x7a1   :  { %v6136_v5 = vadd.f32 %v6135_v54, %v6044_v1  ;;  %v3642_v54 = vsel %vm3594_vm11, %v3637_v37, %v3641_v14  ;;  %v3548_v6 = vrot.slane %v14447_v17, 3  ;;  %v4262_v37 = vld [vmem:[%s16382_s7 + $0x628] sm:$0xff]  ;;  %v3645_v56 = vrot.slane %v14420_v2, 4 }
 0x7a2   :  { %v4782_v34 = vsel %vm3855_vm0, %v4749_v45, %v4781_v46  ;;  %6715 = vmatpush.msrb.mxu2 %v4262_v37 }
 0x7a3   :  { %v6227_v7 = vpop.f32.mrf.mxu0  ;;  %v6319_v4 = vpop.f32.mrf.mxu1  ;;  %6386 = vmatmul.f32.gmra.mxu2 %v4750_v28  ;;  %6478 = vmatmul.f32.gmra.mxu3 %v4752_v58  ;;  %v14444_v28 = vld [vmem:[#allocation2 + $0x180] sm:$0xff]  ;;  %v4755_v58 = vrot.slane %v3644_v61, 5  ;;  %v3549_v61 = vsel %vm3491_vm10, %v3544_v23, %v3548_v6  ;;  %v3646_v37 = vsel %vm3594_vm11, %v3641_v14, %v3645_v56 }
 0x7a4   :  { %v6228_v42 = vadd.f32 %v6227_v7, %v6136_v5  ;;  %v3546_v55 = vrot.slane %v14444_v28, 3  ;;  %v3649_v14 = vrot.slane %v14444_v28, 4 }
 0x7a5   :  { %v4756_v45 = vsel %vm3855_vm0, %v4723_v19, %v4755_v58 }
 0x7a6   :  { %v14439_v1 = vadd.f32 %v6319_v4, %v6228_v42  ;;  %v6046_v60 = vpop.f32.mrf.mxu2  ;;  %6567 = vmatmul.f32.gmra.mxu0 %v4722_v26  ;;  %6659 = vmatmul.f32.gmra.mxu1 %v4724_v63  ;;  %v6138_v5 = vpop.f32.mrf.mxu3  ;;  %v4753_v4 = vrot.slane %v3642_v54, 5  ;;  %v3647_v42 = vrot.slane %v14423_v15, 4  ;;  %v4784_v63 = vsel %vm3855_vm0, %v4751_v27, %v4783_v29 }
 0x7a7   :  { %v6047_v49 = vadd.f32 %v6046_v60, %v13796_v32  ;;  %v4278_v32 = vld [vmem:[%s16382_s7 + $0x6a8] sm:$0xff]  ;;  %v3547_v60 = vsel %vm3491_vm10, %v3542_v31, %v3546_v55 }
 0x7a8   :  { %6807 = vmatpush.msrb.mxu3 %v4278_v32  ;;  %v3648_v27 = vsel %vm3594_vm11, %v3643_v13, %v3647_v42  ;;  %v4815_v32 = vrot.slane %v3549_v61, 5  ;;  %v3651_v13 = vrot.slane %v14447_v17, 4 }
 0x7a9   :  { %v6139_v7 = vadd.f32 %v6138_v5, %v6047_v49  ;;  %v4754_v49 = vsel %vm3855_vm0, %v4721_v33, %v4753_v4  ;;  %v4813_v5 = vrot.slane %v3547_v60, 5  ;;  %v14472_v33 = vld [vmem:[#allocation2 + $0x140] sm:$0xff] }
 0x7aa   :  { %v3552_v19 = vrot.slane %v14472_v33, 3  ;;  %v4816_v61 = vsel %vm3855_vm0, %v4783_v29, %v4815_v32  ;;  %v3652_v29 = vsel %vm3594_vm11, %v3647_v42, %v3651_v13 }
 0x7ab   :  { %v6230_v25 = vpop.f32.mrf.mxu0  ;;  %v6322_v26 = vpop.f32.mrf.mxu1  ;;  %6389 = vmatmul.f32.gmra.mxu2 %v4782_v34  ;;  %6481 = vmatmul.f32.gmra.mxu3 %v4784_v63  ;;  %v14469_v34 = vld [vmem:[#allocation2 + $0x178] sm:$0xff]  ;;  %v4787_v63 = vrot.slane %v3648_v27, 5  ;;  %v4814_v60 = vsel %vm3855_vm0, %v4781_v46, %v4813_v5 }
 0x7ac   :  { %v6231_v54 = vadd.f32 %v6230_v25, %v6139_v7  ;;  %v3550_v23 = vrot.slane %v14469_v34, 3 }
 0x7ad   :  { %v4788_v46 = vsel %vm3855_vm0, %v4755_v58, %v4787_v63  ;;  %v14494_v58 = vld [vmem:[#allocation2 + $0xd8] sm:$0xff] }
 0x7ae   :  { %v14464_v2 = vadd.f32 %v6322_v26, %v6231_v54  ;;  %v6049_v15 = vpop.f32.mrf.mxu2  ;;  %6570 = vmatmul.f32.gmra.mxu0 %v4754_v49  ;;  %6662 = vmatmul.f32.gmra.mxu1 %v4756_v45  ;;  %v6141_v7 = vpop.f32.mrf.mxu3  ;;  %v4785_v26 = vrot.slane %v3646_v37, 5  ;;  %v3551_v49 = vsel %vm3491_vm10, %v3546_v55, %v3550_v23  ;;  %v4261_v55 = vld [vmem:[%s16382_s7 + $0x620] sm:$0xff] }
 0x7af   :  { %v6050_v31 = vadd.f32 %v6049_v15, %v13803_v52  ;;  %v14481_v15 = vsel %vm3491_vm10, %v3548_v6, %v3552_v19  ;;  %v4845_v17 = vrot.slane %v3551_v49, 5  ;;  %6716 = vmatpush.msrb.mxu2 %v4261_v55  ;;  %v3653_v49 = vrot.slane %v14469_v34, 4 }
 0x7b0   :  { %v4786_v37 = vsel %vm3855_vm0, %v4753_v4, %v4785_v26  ;;  %v4847_v4 = vrot.slane %v14481_v15, 5 }
 0x7b1   :  { %v6142_v25 = vadd.f32 %v6141_v7, %v6050_v31  ;;  %v3650_v31 = vsel %vm3594_vm11, %v3645_v56, %v3649_v14 }
 0x7b2   :  { %v4817_v42 = vrot.slane %v3650_v31, 5 }
 0x7b3   :  { %v6233_v52 = vpop.f32.mrf.mxu0  ;;  %v6325_v54 = vpop.f32.mrf.mxu1  ;;  %6392 = vmatmul.f32.gmra.mxu2 %v4814_v60  ;;  %6484 = vmatmul.f32.gmra.mxu3 %v4816_v61  ;;  %v14497_v60 = vld [vmem:[#allocation2 + $0x50] sm:$0xff]  ;;  %v4277_v61 = vld [vmem:[%s16382_s7 + $0x6a0] sm:$0xff] }
 0x7b4   :  { %v6234_v45 = vadd.f32 %v6233_v52, %v6142_v25  ;;  %v3554_v25 = vrot.slane %v14494_v58, 3  ;;  %v3556_v56 = vrot.slane %v14497_v60, 3  ;;  %6808 = vmatpush.msrb.mxu3 %v4277_v61  ;;  %v4818_v55 = vsel %vm3855_vm0, %v4785_v26, %v4817_v42  ;;  %v14519_v26 = vld [vmem:[#allocation2 + $0xa8] sm:$0xff] }
 0x7b6   :  { %v14485_v27 = vadd.f32 %v6325_v54, %v6234_v45  ;;  %v6052_v28 = vpop.f32.mrf.mxu2  ;;  %6573 = vmatmul.f32.gmra.mxu0 %v4786_v37  ;;  %6665 = vmatmul.f32.gmra.mxu1 %v4788_v46  ;;  %v6144_v7 = vpop.f32.mrf.mxu3  ;;  %v4819_v54 = vrot.slane %v3652_v29, 5  ;;  %v3655_v45 = vrot.slane %v14472_v33, 4  ;;  %v4848_v46 = vsel %vm3855_vm0, %v4815_v32, %v4847_v4 }
 0x7b7   :  { %v6053_v6 = vadd.f32 %v6052_v28, %v13816_v48  ;;  %v4846_v48 = vsel %vm3855_vm0, %v4813_v5, %v4845_v17  ;;  %v3555_v28 = vsel %vm3491_vm10, %v3550_v23, %v3554_v25  ;;  %v3557_v29 = vsel %vm3491_vm10, %v3552_v19, %v3556_v56 }
 0x7b8   :  { %v4820_v5 = vsel %vm3855_vm0, %v4787_v63, %v4819_v54  ;;  %v4877_v33 = vrot.slane %v3555_v28, 5  ;;  %v3656_v32 = vsel %vm3594_vm11, %v3651_v13, %v3655_v45  ;;  %v4879_v61 = vrot.slane %v3557_v29, 5 }
 0x7b9   :  { %v6145_v52 = vadd.f32 %v6144_v7, %v6053_v6  ;;  %v3654_v7 = vsel %vm3594_vm11, %v3649_v14, %v3653_v49  ;;  %v3560_v63 = vrot.slane %v14519_v26, 3  ;;  %v4260_v14 = vld [vmem:[%s16382_s7 + $0x618] sm:$0xff]  ;;  %v3659_v28 = vrot.slane %v14497_v60, 4 }
 0x7ba   :  { %v4878_v13 = vsel %vm3855_vm0, %v4845_v17, %v4877_v33  ;;  %6717 = vmatpush.msrb.mxu2 %v4260_v14  ;;  %v14541_v14 = vld [vmem:[#allocation2 + $0x1b0] sm:$0xff] }
 0x7bb   :  { %v6236_v15 = vpop.f32.mrf.mxu0  ;;  %v6328_v37 = vpop.f32.mrf.mxu1  ;;  %6395 = vmatmul.f32.gmra.mxu2 %v4846_v48  ;;  %6487 = vmatmul.f32.gmra.mxu3 %v4848_v46  ;;  %v14516_v48 = vld [vmem:[#allocation2 + $0x1c8] sm:$0xff]  ;;  %v4851_v46 = vrot.slane %v3656_v32, 5 }
 0x7bc   :  { %v6237_v31 = vadd.f32 %v6236_v15, %v6145_v52  ;;  %v3558_v19 = vrot.slane %v14516_v48, 3 }
 0x7bd   :  { %v4852_v17 = vsel %vm3855_vm0, %v4819_v54, %v4851_v46  ;;  %v3562_v54 = vrot.slane %v14541_v14, 3 }
 0x7be   :  { %v14511_v6 = vadd.f32 %v6328_v37, %v6237_v31  ;;  %v6055_v34 = vpop.f32.mrf.mxu2  ;;  %6576 = vmatmul.f32.gmra.mxu0 %v4818_v55  ;;  %6668 = vmatmul.f32.gmra.mxu1 %v4820_v5  ;;  %v6147_v52 = vpop.f32.mrf.mxu3  ;;  %v4849_v37 = vrot.slane %v3654_v7, 5  ;;  %v4880_v55 = vsel %vm3855_vm0, %v4847_v4, %v4879_v61  ;;  %v3559_v5 = vsel %vm3491_vm10, %v3554_v25, %v3558_v19  ;;  %v4276_v25 = vld [vmem:[%s16382_s7 + $0x698] sm:$0xff] }
 0x7bf   :  { %v6056_v23 = vadd.f32 %v6055_v34, %v13829_v16  ;;  %v3657_v16 = vrot.slane %v14494_v58, 4  ;;  %v3561_v7 = vsel %vm3491_vm10, %v3556_v56, %v3560_v63  ;;  %v4909_v60 = vrot.slane %v3559_v5, 5  ;;  %6809 = vmatpush.msrb.mxu3 %v4276_v25 }
 0x7c0   :  { %v4850_v32 = vsel %vm3855_vm0, %v4817_v42, %v4849_v37  ;;  %v3660_v4 = vsel %vm3594_vm11, %v3655_v45, %v3659_v28  ;;  %v4911_v42 = vrot.slane %v3561_v7, 5  ;;  %v3661_v5 = vrot.slane %v14516_v48, 4 }
 0x7c1   :  { %v6148_v15 = vadd.f32 %v6147_v52, %v6056_v23  ;;  %v3658_v52 = vsel %vm3594_vm11, %v3653_v49, %v3657_v16  ;;  %v4883_v45 = vrot.slane %v3660_v4, 5 }
 0x7c3   :  { %v6239_v31 = vpop.f32.mrf.mxu0  ;;  %v6331_v29 = vpop.f32.mrf.mxu1  ;;  %6398 = vmatmul.f32.gmra.mxu2 %v4878_v13  ;;  %6490 = vmatmul.f32.gmra.mxu3 %v4880_v55  ;;  %v14544_v13 = vld [vmem:[#allocation2 + $0x1c0] sm:$0xff]  ;;  %v4910_v55 = vsel %vm3855_vm0, %v4877_v33, %v4909_v60  ;;  %v4884_v4 = vsel %vm3855_vm0, %v4851_v46, %v4883_v45 }
 0x7c4   :  { %v6240_v34 = vadd.f32 %v6239_v31, %v6148_v15  ;;  %v3564_v31 = vrot.slane %v14544_v13, 3 }
 0x7c6   :  { %v14533_v23 = vadd.f32 %v6331_v29, %v6240_v34  ;;  %v6058_v58 = vpop.f32.mrf.mxu2  ;;  %6579 = vmatmul.f32.gmra.mxu0 %v4850_v32  ;;  %6671 = vmatmul.f32.gmra.mxu1 %v4852_v17  ;;  %v6150_v15 = vpop.f32.mrf.mxu3  ;;  %v4881_v29 = vrot.slane %v3658_v52, 5  ;;  %v4912_v32 = vsel %vm3855_vm0, %v4879_v61, %v4911_v42  ;;  %v3563_v17 = vsel %vm3491_vm10, %v3558_v19, %v3562_v54 }
 0x7c7   :  { %v6059_v56 = vadd.f32 %v6058_v58, %v13841_v39  ;;  %v3663_v39 = vrot.slane %v14519_v26, 4  ;;  %v3565_v25 = vsel %vm3491_vm10, %v3560_v63, %v3564_v31  ;;  %v4941_v26 = vrot.slane %v3563_v17, 5 }
 0x7c8   :  { %v4882_v52 = vsel %vm3855_vm0, %v4849_v37, %v4881_v29  ;;  %v14563_v37 = vld [vmem:[#allocation2 + $0x58] sm:$0xff]  ;;  %v3665_v17 = vrot.slane %v14541_v14, 4 }
 0x7c9   :  { %v6151_v49 = vadd.f32 %v6150_v15, %v6059_v56  ;;  %v3662_v56 = vsel %vm3594_vm11, %v3657_v16, %v3661_v5  ;;  %v3664_v61 = vsel %vm3594_vm11, %v3659_v28, %v3663_v39  ;;  %v3568_v46 = vrot.slane %v14563_v37, 3  ;;  %v4259_v16 = vld [vmem:[%s16382_s7 + $0x610] sm:$0xff] }
 0x7ca   :  { %v4942_v28 = vsel %vm3855_vm0, %v4909_v60, %v4941_v26  ;;  %6718 = vmatpush.msrb.mxu2 %v4259_v16 }
 0x7cb   :  { %v6242_v34 = vpop.f32.mrf.mxu0  ;;  %v6334_v7 = vpop.f32.mrf.mxu1  ;;  %6401 = vmatmul.f32.gmra.mxu2 %v4910_v55  ;;  %6493 = vmatmul.f32.gmra.mxu3 %v4912_v32  ;;  %v14560_v55 = vld [vmem:[#allocation2 + $0x48] sm:$0xff]  ;;  %v4915_v32 = vrot.slane %v3664_v61, 5  ;;  %v14578_v61 = vsel %vm3491_vm10, %v3564_v31, %v3568_v46 }
 0x7cc   :  { %v6243_v58 = vadd.f32 %v6242_v34, %v6151_v49  ;;  %v4943_v49 = vrot.slane %v3565_v25, 5  ;;  %v3566_v63 = vrot.slane %v14560_v55, 3  ;;  %v4975_v16 = vrot.slane %v14578_v61, 5 }
 0x7cd   :  { %v4916_v14 = vsel %vm3855_vm0, %v4883_v45, %v4915_v32 }
 0x7ce   :  { %v14555_v33 = vadd.f32 %v6334_v7, %v6243_v58  ;;  %v6354_v48 = vpop.f32.mrf.mxu2  ;;  %6582 = vmatmul.f32.gmra.mxu0 %v4882_v52  ;;  %6674 = vmatmul.f32.gmra.mxu1 %v4884_v4  ;;  %v6446_v15 = vpop.f32.mrf.mxu3  ;;  %v4913_v7 = vrot.slane %v3662_v56, 5  ;;  %v3667_v58 = vrot.slane %v14544_v13, 4  ;;  %v4944_v25 = vsel %vm3855_vm0, %v4911_v42, %v4943_v49 }
 0x7cf   :  { %v6355_v19 = vadd.f32 %v6354_v48, %v13853_v62  ;;  %v4275_v62 = vld [vmem:[%s16382_s7 + $0x690] sm:$0xff]  ;;  %v3567_v48 = vsel %vm3491_vm10, %v3562_v54, %v3566_v63  ;;  %v14585_v42 = vsel %vm3594_vm11, %v3661_v5, %v3665_v17 }
 0x7d0   :  { %6810 = vmatpush.msrb.mxu3 %v4275_v62  ;;  %v4914_v60 = vsel %vm3855_vm0, %v4881_v29, %v4913_v7  ;;  %v14588_v54 = vsel %vm3594_vm11, %v3663_v39, %v3667_v58  ;;  %v14592_v29 = vld [vmem:[#allocation2 + $0xb0] sm:$0xff]  ;;  %v4945_v5 = vrot.slane %v14585_v42, 5 }
 0x7d1   :  { %v6447_v34 = vadd.f32 %v6446_v15, %v6355_v19  ;;  %v4973_v15 = vrot.slane %v3567_v48, 5  ;;  %v3570_v45 = vrot.slane %v14592_v29, 3  ;;  %v14595_v62 = vld [vmem:[#allocation2 + $0x70] sm:$0xff]  ;;  %v3671_v48 = vrot.slane %v14563_v37, 4 }
 0x7d3   :  { %6404 = vmatmul.f32.gmra.mxu2 %v4942_v28  ;;  %v6538_v52 = vpop.f32.mrf.mxu0  ;;  %v6630_v4 = vpop.f32.mrf.mxu1  ;;  %6496 = vmatmul.f32.gmra.mxu3 %v4944_v25  ;;  %v3572_v28 = vrot.slane %v14595_v62, 3  ;;  %v4974_v39 = vsel %vm3855_vm0, %v4941_v26, %v4973_v15  ;;  %v4946_v26 = vsel %vm3855_vm0, %v4913_v7, %v4945_v5 }
 0x7d4   :  { %v6539_v56 = vadd.f32 %v6538_v52, %v6447_v34  ;;  %v4947_v52 = vrot.slane %v14588_v54, 5 }
 0x7d5   :  { %v14611_v42 = vsel %vm3491_vm10, %v3568_v46, %v3572_v28  ;;  %v4274_v46 = vld [vmem:[%s16382_s7 + $0x688] sm:$0xff] }
 0x7d6   :  { %v14582_v19 = vadd.f32 %v6630_v4, %v6539_v56  ;;  %v6357_v13 = vpop.f32.mrf.mxu2  ;;  %6585 = vmatmul.f32.gmra.mxu0 %v4914_v60  ;;  %6677 = vmatmul.f32.gmra.mxu1 %v4916_v14  ;;  %v6449_v31 = vpop.f32.mrf.mxu3  ;;  %v3669_v4 = vrot.slane %v14560_v55, 4  ;;  %v4976_v56 = vsel %vm3855_vm0, %v4943_v49, %v4975_v16  ;;  %v14608_v14 = vsel %vm3491_vm10, %v3566_v63, %v3570_v45 }
 0x7d7   :  { %v6358_v34 = vadd.f32 %v6357_v13, %v13865_v21  ;;  %v4258_v21 = vld [vmem:[%s16382_s7 + $0x608] sm:$0xff]  ;;  %v4948_v55 = vsel %vm3855_vm0, %v4915_v32, %v4947_v52  ;;  %v16520_v49 = vrot.slane %v14608_v14, 5  ;;  %v14622_v63 = vsel %vm3594_vm11, %v3667_v58, %v3671_v48  ;;  %6811 = vmatpush.msrb.mxu3 %v4274_v46  ;;  %v4319_v46 = vld [vmem:[%s16382_s7 + $0x7f0] sm:$0xff] }
 0x7d8   :  { %6719 = vmatpush.msrb.mxu2 %v4258_v21 }
 0x7d9   :  { %v6450_v25 = vadd.f32 %v6449_v31, %v6358_v34  ;;  %v14619_v34 = vsel %vm3594_vm11, %v3665_v17, %v3669_v4  ;;  %v16521_v31 = vrot.slane %v14611_v42, 5 }
 0x7db   :  { %6407 = vmatmul.f32.gmra.mxu2 %v4974_v39  ;;  %v6541_v61 = vpop.f32.mrf.mxu0  ;;  %v6633_v60 = vpop.f32.mrf.mxu1  ;;  %6499 = vmatmul.f32.gmra.mxu3 %v4976_v56  ;;  %v14632_v39 = vld [vmem:[#allocation2 + $0x1a0] sm:$0xff]  ;;  %v4977_v56 = vrot.slane %v14619_v34, 5  ;;  %v17101_v34 = vrot.slane %v14592_v29, 4 }
 0x7dc   :  { %v6542_v13 = vadd.f32 %v6541_v61, %v6450_v25  ;;  %v14629_v25 = vld [vmem:[#allocation2 + $0x98] sm:$0xff]  ;;  %v3576_v17 = vrot.slane %v14632_v39, 3 }
 0x7dd   :  { %v3574_v21 = vrot.slane %v14629_v25, 3 }
 0x7de   :  { %v14615_v54 = vadd.f32 %v6633_v60, %v6542_v13  ;;  %v6360_v37 = vpop.f32.mrf.mxu2  ;;  %6588 = vmatmul.f32.gmra.mxu0 %v4946_v26  ;;  %6680 = vmatmul.f32.gmra.mxu1 %v4948_v55  ;;  %v6452_v32 = vpop.f32.mrf.mxu3  ;;  %v4320_v60 = vld [vmem:[%s16382_s7 + $0x7f8] sm:$0xff]  ;;  %v4303_v13 = vld [vmem:[%s16382_s7 + $0x770] sm:$0xff]  ;;  %v5006_v26 = vsel %vm3855_vm0, %v4973_v15, %v16520_v49  ;;  %v16523_v55 = vrot.slane %v14592_v29, 4  ;;  %v4297_v29 = vld [vmem:[%s16382_s7 + $0x740] sm:$0xff] }
 0x7df   :  { %v6361_v7 = vadd.f32 %v6360_v37, %v13892_v38  ;;  %v4304_v38 = vld [vmem:[%s16382_s7 + $0x778] sm:$0xff]  ;;  %v16522_v37 = vrot.slane %v14595_v62, 4  ;;  %6981 = vmatpush.msrb.mxu1 %v4320_v60  ;;  %v14660_v15 = vsel %vm3491_vm10, %v3570_v45, %v3574_v21  ;;  %v4978_v60 = vsel %vm3855_vm0, %v4945_v5, %v4977_v56 }
 0x7e0   :  { %6889 = vmatpush.msrb.mxu0 %v4304_v38  ;;  %v14665_v38 = vsel %vm3491_vm10, %v3572_v28, %v3576_v17  ;;  %v14679_v28 = vsel %vm3594_vm11, %v3669_v4, %v16523_v55  ;;  %v4273_v55 = vld [vmem:[%s16382_s7 + $0x680] sm:$0xff] }
 0x7e1   :  { %v6453_v58 = vadd.f32 %v6452_v32, %v6361_v7  ;;  %v5008_v7 = vsel %vm3855_vm0, %v4975_v16, %v16521_v31  ;;  %v17095_v16 = vrot.slane %v14622_v63, 5  ;;  %6982 = vmatpush.msrb.mxu1 %v4319_v46  ;;  %v14684_v5 = vsel %vm3594_vm11, %v3671_v48, %v16522_v37  ;;  %v4316_v37 = vld [vmem:[%s16382_s7 + $0x7d8] sm:$0xff]  ;;  %6812 = vmatpush.msrb.mxu3 %v4273_v55 }
 0x7e2   :  { %6890 = vmatpush.msrb.mxu0 %v4303_v13  ;;  %v5039_v46 = vrot.slane %v14665_v38, 5 }
 0x7e3   :  { %6410 = vmatmul.f32.gmra.mxu2 %v5006_v26  ;;  %v6544_v32 = vpop.f32.mrf.mxu0  ;;  %v6636_v61 = vpop.f32.mrf.mxu1  ;;  %6502 = vmatmul.f32.gmra.mxu3 %v5008_v7  ;;  %v4980_v26 = vsel %vm3855_vm0, %v4947_v52, %v17095_v16  ;;  %v4302_v52 = vld [vmem:[%s16382_s7 + $0x768] sm:$0xff]  ;;  %v14697_v7 = vld [vmem:[#allocation2] sm:$0xff] }
 0x7e4   :  { %v6545_v49 = vadd.f32 %v6544_v32, %v6453_v58  ;;  %v16524_v58 = vrot.slane %v14660_v15, 5  ;;  %v3578_v48 = vrot.slane %v14697_v7, 3  ;;  %6891 = vmatpush.msrb.mxu0 %v4302_v52  ;;  %v4317_v32 = vld [vmem:[%s16382_s7 + $0x7e0] sm:$0xff] }
 0x7e5   :  { %v4257_v52 = vld [vmem:[%s16382_s7 + $0x600] sm:$0xff] }
 0x7e6   :  { %v14673_v31 = vadd.f32 %v6636_v61, %v6545_v49  ;;  %v6363_v45 = vpop.f32.mrf.mxu2  ;;  %6591 = vmatmul.f32.gmra.mxu0 %v4978_v60  ;;  %6683 = vmatmul.f32.gmra.mxu1 %v4980_v26  ;;  %v4318_v49 = vld [vmem:[%s16382_s7 + $0x7e8] sm:$0xff]  ;;  %v4301_v61 = vld [vmem:[%s16382_s7 + $0x760] sm:$0xff]  ;;  %v6455_v13 = vpop.f32.mrf.mxu3  ;;  %v14703_v60 = vld [vmem:[#allocation2 + $0x170] sm:$0xff] }
 0x7e7   :  { %v6364_v4 = vadd.f32 %v6363_v45, %v13935_v40  ;;  %6983 = vmatpush.msrb.mxu1 %v4318_v49  ;;  %v16526_v16 = vrot.slane %v14703_v60, 3  ;;  %v16525_v40 = vrot.slane %v14679_v28, 5  ;;  %6892 = vmatpush.msrb.mxu0 %v4301_v61  ;;  %v4300_v49 = vld [vmem:[%s16382_s7 + $0x758] sm:$0xff]  ;;  %v4299_v45 = vld [vmem:[%s16382_s7 + $0x750] sm:$0xff] }
 0x7e8   :  { %6720 = vmatpush.msrb.mxu2 %v4257_v52  ;;  %v14740_v52 = vsel %vm3491_vm10, %v3574_v21, %v3578_v48 }
 0x7e9   :  { %v6456_v26 = vadd.f32 %v6455_v13, %v6364_v4  ;;  %6984 = vmatpush.msrb.mxu1 %v4317_v32  ;;  %v17096_v4 = vrot.slane %v14608_v14, 5  ;;  %v17097_v14 = vrot.slane %v14611_v42, 5  ;;  %6893 = vmatpush.msrb.mxu0 %v4300_v49  ;;  %v14747_v42 = vsel %vm3491_vm10, %v3576_v17, %v16526_v16 }
 0x7ea   :  { %v5010_v21 = vsel %vm3855_vm0, %v4977_v56, %v16525_v40  ;;  %v16532_v16 = vrot.slane %v14697_v7, 4 }
 0x7eb   :  { %v5038_v13 = vsel %vm3855_vm0, %v17096_v4, %v16524_v58  ;;  %v5040_v4 = vsel %vm3855_vm0, %v17097_v14, %v5039_v46  ;;  %v6547_v58 = vpop.f32.mrf.mxu0  ;;  %v6639_v61 = vpop.f32.mrf.mxu1  ;;  %6985 = vmatpush.msrb.mxu1 %v4316_v37  ;;  %6894 = vmatpush.msrb.mxu0 %v4299_v45  ;;  %v16530_v14 = vrot.slane %v14740_v52, 5  ;;  %v4298_v45 = vld [vmem:[%s16382_s7 + $0x748] sm:$0xff] }
 0x7ec   :  { %6413 = vmatmul.f32.gmra.mxu2 %v5038_v13  ;;  %6505 = vmatmul.f32.gmra.mxu3 %v5040_v4  ;;  %v6548_v32 = vadd.f32 %v6547_v58, %v6456_v26  ;;  %v4315_v13 = vld [vmem:[%s16382_s7 + $0x7d0] sm:$0xff]  ;;  %v17098_v58 = vrot.slane %v14684_v5, 5  ;;  %v17099_v26 = vrot.slane %v14622_v63, 5  ;;  %v17100_v4 = vrot.slane %v14629_v25, 4 }
 0x7ed   :  { %v17102_v63 = vrot.slane %v14632_v39, 4  ;;  %6986 = vmatpush.msrb.mxu1 %v4315_v13  ;;  %6895 = vmatpush.msrb.mxu0 %v4298_v45  ;;  %v4296_v13 = vld [vmem:[%s16382_s7 + $0x738] sm:$0xff]  ;;  %v17104_v45 = vrot.slane %v14660_v15, 5 }
 0x7ee   :  { %v5012_v49 = vsel %vm3855_vm0, %v17099_v26, %v17098_v58  ;;  %v14762_v17 = vadd.f32 %v6639_v61, %v6548_v32  ;;  %v6366_v37 = vpop.f32.mrf.mxu2  ;;  %6594 = vmatmul.f32.gmra.mxu0 %v5010_v21  ;;  %v14770_v56 = vsel %vm3594_vm11, %v17101_v34, %v17100_v4  ;;  %v17103_v58 = vrot.slane %v14595_v62, 4  ;;  %v4314_v61 = vld [vmem:[%s16382_s7 + $0x7c8] sm:$0xff]  ;;  %v6458_v21 = vpop.f32.mrf.mxu3  ;;  %v14793_v4 = vld [vmem:[#allocation2 + $0x20] sm:$0xff] }
 0x7ef   :  { %6686 = vmatmul.f32.gmra.mxu1 %v5012_v49  ;;  %v6367_v32 = vadd.f32 %v6366_v37, %v13978_v3  ;;  %v16527_v62 = vrot.slane %v14747_v42, 5  ;;  %v14790_v26 = vld [vmem:[#allocation2 + $0x1a8] sm:$0xff]  ;;  %v16528_v34 = vrot.slane %v14793_v4, 3  ;;  %v5041_v3 = vrot.slane %v14770_v56, 5  ;;  %6896 = vmatpush.msrb.mxu0 %v4297_v29 }
 0x7f0   :  { %v14777_v55 = vsel %vm3594_vm11, %v17103_v58, %v17102_v63  ;;  %v16529_v49 = vrot.slane %v14790_v26, 3  ;;  %v4313_v63 = vld [vmem:[%s16382_s7 + $0x7c0] sm:$0xff]  ;;  %6987 = vmatpush.msrb.mxu1 %v4314_v61  ;;  %v5070_v40 = vsel %vm3855_vm0, %v17104_v45, %v16530_v14 }
 0x7f1   :  { %v6459_v58 = vadd.f32 %v6458_v21, %v6367_v32  ;;  %v16531_v32 = vrot.slane %v14703_v60, 4  ;;  %v4312_v21 = vld [vmem:[%s16382_s7 + $0x7b8] sm:$0xff]  ;;  %v5072_v61 = vsel %vm3855_vm0, %v5039_v46, %v16527_v62  ;;  %v14833_v46 = vld [vmem:[#allocation2 + $0xc8] sm:$0xff]  ;;  %6897 = vmatpush.msrb.mxu0 %v4296_v13  ;;  %v4295_v62 = vld [vmem:[%s16382_s7 + $0x730] sm:$0xff] }
 0x7f2   :  { %v14824_v15 = vsel %vm3491_vm10, %v3578_v48, %v16529_v49  ;;  %6988 = vmatpush.msrb.mxu1 %v4313_v63  ;;  %v4311_v48 = vld [vmem:[%s16382_s7 + $0x7b0] sm:$0xff]  ;;  %v17106_v63 = vrot.slane %v14679_v28, 5  ;;  %v17109_v28 = vrot.slane %v14629_v25, 4  ;;  %v4336_v25 = vld [vmem:[%s16382_s7 + $0x878] sm:$0xff] }
 0x7f3   :  { %v6550_v29 = vpop.f32.mrf.mxu0  ;;  %v6642_v37 = vpop.f32.mrf.mxu1  ;;  %v16533_v14 = vrot.slane %v14824_v15, 5  ;;  %6898 = vmatpush.msrb.mxu0 %v4295_v62  ;;  %7073 = vmatpush.msra.mxu2 %v4336_v25  ;;  %v4309_v62 = vld [vmem:[%s16382_s7 + $0x7a0] sm:$0xff] }
 0x7f4   :  { %6416 = vmatmul.f32.gmra.mxu2 %v5070_v40  ;;  %6508 = vmatmul.f32.gmra.mxu3 %v5072_v61  ;;  %v6551_v45 = vadd.f32 %v6550_v29, %v6459_v58  ;;  %v17105_v40 = vrot.slane %v14703_v60, 3  ;;  %v5042_v58 = vsel %vm3855_vm0, %v17106_v63, %v5041_v3  ;;  %v17107_v61 = vrot.slane %v14777_v55, 5 }
 0x7f5   :  { %v17108_v29 = vrot.slane %v14684_v5, 5  ;;  %6989 = vmatpush.msrb.mxu1 %v4312_v21  ;;  %v14861_v63 = vsel %vm3594_vm11, %v17109_v28, %v16532_v16  ;;  %v17110_v5 = vrot.slane %v14632_v39, 4  ;;  %v3685_v16 = vrot.slane %v14790_v26, 4 }
 0x7f6   :  { %v14831_v38 = vsel %vm3491_vm10, %v17105_v40, %v16528_v34  ;;  %v14851_v40 = vld [vmem:[#allocation2 + $0xe0] sm:$0xff]  ;;  %v14853_v34 = vadd.f32 %v6642_v37, %v6551_v45  ;;  %v6369_v49 = vpop.f32.mrf.mxu2  ;;  %6597 = vmatmul.f32.gmra.mxu0 %v5042_v58  ;;  %v4294_v37 = vld [vmem:[%s16382_s7 + $0x728] sm:$0xff] }
 0x7f7   :  { %v5044_v13 = vsel %vm3855_vm0, %v17108_v29, %v17107_v61  ;;  %v14868_v21 = vsel %vm3594_vm11, %v17110_v5, %v16531_v32  ;;  %v4310_v45 = vld [vmem:[%s16382_s7 + $0x7a8] sm:$0xff]  ;;  %v6370_v58 = vadd.f32 %v6369_v49, %v14036_v35  ;;  %v6461_v61 = vpop.f32.mrf.mxu3  ;;  %v5103_v39 = vrot.slane %v14831_v38, 5  ;;  %6990 = vmatpush.msrb.mxu1 %v4311_v48  ;;  %v4293_v5 = vld [vmem:[%s16382_s7 + $0x720] sm:$0xff]  ;;  %6899 = vmatpush.msrb.mxu0 %v4294_v37 }
 0x7f8   :  { %6689 = vmatmul.f32.gmra.mxu1 %v5044_v13  ;;  %v3586_v29 = vrot.slane %v14833_v46, 3  ;;  %v4352_v13 = vld [vmem:[%s16382_s7 + $0x8f8] sm:$0xff]  ;;  %v16534_v28 = vrot.slane %v14851_v40, 3  ;;  %v5073_v49 = vrot.slane %v14861_v63, 5  ;;  %v17111_v48 = vrot.slane %v14740_v52, 5 }
 0x7f9   :  { %7165 = vmatpush.msra.mxu3 %v4352_v13  ;;  %v6462_v35 = vadd.f32 %v6461_v61, %v6370_v58  ;;  %6991 = vmatpush.msrb.mxu1 %v4310_v45  ;;  %v3687_v58 = vrot.slane %v14793_v4, 4  ;;  %v4292_v61 = vld [vmem:[%s16382_s7 + $0x718] sm:$0xff]  ;;  %v17112_v37 = vrot.slane %v14747_v42, 5  ;;  %v17113_v52 = vrot.slane %v14790_v26, 3  ;;  %v4291_v26 = vld [vmem:[%s16382_s7 + $0x710] sm:$0xff] }
 0x7fa   :  { %v5102_v25 = vsel %vm3855_vm0, %v17111_v48, %v16533_v14  ;;  %6900 = vmatpush.msrb.mxu0 %v4293_v5  ;;  %v5074_v5 = vsel %vm3855_vm0, %v5041_v3, %v5073_v49  ;;  %v17118_v3 = vrot.slane %v14703_v60, 4  ;;  %v4306_v60 = vld [vmem:[%s16382_s7 + $0x788] sm:$0xff]  ;;  %v5173_v38 = vrot.slane %v3586_v29, 5 }
 0x7fb   :  { %v5104_v45 = vsel %vm3855_vm0, %v17112_v37, %v5103_v39  ;;  %v6553_v13 = vpop.f32.mrf.mxu0  ;;  %v6645_v32 = vpop.f32.mrf.mxu1  ;;  %v14914_v48 = vsel %vm3491_vm10, %v17113_v52, %v3586_v29  ;;  %6992 = vmatpush.msrb.mxu1 %v4309_v62  ;;  %v4308_v37 = vld [vmem:[%s16382_s7 + $0x798] sm:$0xff] }
 0x7fc   :  { %6419 = vmatmul.f32.gmra.mxu2 %v5102_v25  ;;  %6511 = vmatmul.f32.gmra.mxu3 %v5104_v45  ;;  %v6554_v14 = vadd.f32 %v6553_v13, %v6462_v35  ;;  %v17114_v25 = vrot.slane %v14793_v4, 3  ;;  %v17115_v35 = vrot.slane %v14868_v21, 5  ;;  %v17116_v45 = vrot.slane %v14777_v55, 5 }
 0x7fd   :  { %6901 = vmatpush.msrb.mxu0 %v4292_v61  ;;  %v14952_v55 = vsel %vm3594_vm11, %v17118_v3, %v3687_v58  ;;  %6993 = vmatpush.msrb.mxu1 %v4308_v37  ;;  %v4351_v37 = vld [vmem:[%s16382_s7 + $0x8f0] sm:$0xff] }
 0x7fe   :  { %v14921_v42 = vsel %vm3491_vm10, %v17114_v25, %v16534_v28  ;;  %v5076_v62 = vsel %vm3855_vm0, %v17116_v45, %v17115_v35  ;;  %v14939_v13 = vadd.f32 %v6645_v32, %v6554_v14  ;;  %v6372_v52 = vpop.f32.mrf.mxu2  ;;  %6600 = vmatmul.f32.gmra.mxu0 %v5074_v5  ;;  %v5137_v25 = vrot.slane %v14914_v48, 5  ;;  %v4307_v14 = vld [vmem:[%s16382_s7 + $0x790] sm:$0xff]  ;;  %v4290_v32 = vld [vmem:[%s16382_s7 + $0x708] sm:$0xff]  ;;  %7166 = vmatpush.msra.mxu3 %v4351_v37 }
 0x7ff   :  { %v17117_v28 = vrot.slane %v14697_v7, 4  ;;  %v6373_v7 = vadd.f32 %v6372_v52, %v14090_v18  ;;  %v6464_v61 = vpop.f32.mrf.mxu3  ;;  %6902 = vmatpush.msrb.mxu0 %v4291_v26  ;;  %v5107_v35 = vrot.slane %v14952_v55, 5  ;;  %v3689_v45 = vrot.slane %v14833_v46, 4  ;;  %6994 = vmatpush.msrb.mxu1 %v4307_v14  ;;  %v4289_v18 = vld [vmem:[%s16382_s7 + $0x700] sm:$0xff] }
 0x800   :  { %6692 = vmatmul.f32.gmra.mxu1 %v5076_v62  ;;  %v17119_v26 = vrot.slane %v14824_v15, 5  ;;  %v3691_v52 = vrot.slane %v14851_v40, 4 }
 0x801   :  { %v14945_v56 = vsel %vm3594_vm11, %v17117_v28, %v3685_v16  ;;  %v5139_v28 = vrot.slane %v14921_v42, 5  ;;  %v6465_v48 = vadd.f32 %v6464_v61, %v6373_v7  ;;  %6903 = vmatpush.msrb.mxu0 %v4290_v32  ;;  %v4335_v42 = vld [vmem:[%s16382_s7 + $0x870] sm:$0xff]  ;;  %v3149_v32 = vld [vmem:[#allocation2 + $0xf8] sm:$0xfe]  ;;  %v14987_v7 = vld [vmem:[#allocation2 + $0x100] sm:$0xff]  ;;  %6995 = vmatpush.msrb.mxu1 %v4306_v60 }
 0x802   :  { %v5105_v5 = vrot.slane %v14945_v56, 5  ;;  %v5138_v62 = vsel %vm3855_vm0, %v17119_v26, %v5137_v25  ;;  %v4305_v56 = vld [vmem:[%s16382_s7 + $0x780] sm:$0xff]  ;;  %7074 = vmatpush.msra.mxu2 %v4335_v42  ;;  %v17120_v42 = vrot.slane %v14868_v21, 5  ;;  %v3150_v60 = vld [vmem:[#allocation2 + $0x78] sm:$0xfe]  ;;  %v15002_v26 = vld [vmem:[#allocation2 + $0x130] sm:$0xff]  ;;  %v15009_v21 = vsel %vm3594_vm11, %v3687_v58, %v3691_v52 }
 0x803   :  { %v5140_v3 = vsel %vm3855_vm0, %v5103_v39, %v5139_v28  ;;  %v6556_v55 = vpop.f32.mrf.mxu0  ;;  %v6648_v14 = vpop.f32.mrf.mxu1  ;;  %6904 = vmatpush.msrb.mxu0 %v4289_v18  ;;  %v15000_v39 = vsel %vm3594_vm11, %v3685_v16, %v3689_v45  ;;  %6996 = vmatpush.msrb.mxu1 %v4305_v56  ;;  %v3749_v29 = vrot.slane %v3149_v32, 4  ;;  %v3147_v56 = vld [vmem:[#allocation2 + $0x30] sm:$0x1]  ;;  %v5143_v58 = vrot.slane %v15009_v21, 5 }
 0x804   :  { %6422 = vmatmul.f32.gmra.mxu2 %v5138_v62  ;;  %6514 = vmatmul.f32.gmra.mxu3 %v5140_v3  ;;  %v6557_v15 = vadd.f32 %v6556_v55, %v6465_v48  ;;  %v5106_v61 = vsel %vm3855_vm0, %v5073_v49, %v5105_v5  ;;  %v5108_v37 = vsel %vm3855_vm0, %v17120_v42, %v5107_v35  ;;  %v3751_v49 = vrot.slane %v14987_v7, 4  ;;  %v3148_v55 = vld [vmem:[#allocation2 + $0x148] sm:$0x1] }
 0x805   :  { %v17121_v62 = vrot.slane %v14851_v40, 3  ;;  %v5141_v4 = vrot.slane %v15000_v39, 5  ;;  %v5174_v32 = vsel %vm3855_vm0, %v5137_v25, %v5173_v38  ;;  %v15026_v39 = vld [vmem:[#allocation2 + $0xe8] sm:$0xff]  ;;  %v5144_v25 = vsel %vm3855_vm0, %v5107_v35, %v5143_v58 }
 0x806   :  { %v15004_v48 = vadd.f32 %v6648_v14, %v6557_v15  ;;  %v6375_v63 = vpop.f32.mrf.mxu2  ;;  %6603 = vmatmul.f32.gmra.mxu0 %v5106_v61  ;;  %v3750_v14 = vrot.slane %v3150_v60, 4  ;;  %v3753_v15 = vrot.slane %v15002_v26, 4  ;;  %v15020_v42 = vsel %vm3594_vm11, %v3749_v29, %v3751_v49 }
 0x807   :  { %v6376_v16 = vadd.f32 %v6375_v63, %v14129_v24  ;;  %v6467_v18 = vpop.f32.mrf.mxu3  ;;  %v5175_v3 = vrot.slane %v17121_v62, 5  ;;  %v3693_v24 = vrot.slane %v3147_v56, 4  ;;  %v5142_v21 = vsel %vm3855_vm0, %v5105_v5, %v5141_v4  ;;  %v15031_v56 = vld [vmem:[#allocation2 + $0x40] sm:$0xff]  ;;  %v4334_v5 = vld [vmem:[%s16382_s7 + $0x868] sm:$0xff] }
 0x808   :  { %6695 = vmatmul.f32.gmra.mxu1 %v5108_v37  ;;  %v3695_v37 = vrot.slane %v3148_v55, 4  ;;  %v4397_v38 = vrot.slane %v3749_v29, 5  ;;  %7075 = vmatpush.msra.mxu2 %v4334_v5  ;;  %v3757_v46 = vrot.slane %v15031_v56, 4 }
 0x809   :  { %v6468_v61 = vadd.f32 %v6467_v18, %v6376_v16  ;;  %v5176_v40 = vsel %vm3855_vm0, %v5139_v28, %v5175_v3  ;;  %v15024_v16 = vsel %vm3594_vm11, %v3750_v14, %v3753_v15  ;;  %v4398_v18 = vrot.slane %v15020_v42, 5 }
 0x80a   :  { %v3694_v3 = vsel %vm3594_vm11, %v3689_v45, %v3693_v24  ;;  %v4400_v42 = vrot.slane %v3750_v14, 5  ;;  %v3858_v14 = vrot.slane %v14987_v7, 5 }
 0x80b   :  { %v6559_v63 = vpop.f32.mrf.mxu0  ;;  %v6651_v62 = vpop.f32.mrf.mxu1  ;;  %v5177_v24 = vrot.slane %v3694_v3, 5 }
 0x80c   :  { %6425 = vmatmul.f32.gmra.mxu2 %v5174_v32  ;;  %6517 = vmatmul.f32.gmra.mxu3 %v5176_v40  ;;  %v6560_v60 = vadd.f32 %v6559_v63, %v6468_v61  ;;  %v3696_v61 = vsel %vm3594_vm11, %v3691_v52, %v3695_v37  ;;  %v3201_v32 = vld [vmem:[#allocation2 + $0xf8] sm:$0xfc]  ;;  %v4401_v40 = vrot.slane %v15024_v16, 5  ;;  %v3755_v63 = vrot.slane %v15026_v39, 4 }
 0x80d   :  { %v4399_v52 = vsel %vm3855_vm0, %v4397_v38, %v4398_v18  ;;  %v5179_v37 = vrot.slane %v3696_v61, 5  ;;  %v3860_v16 = vrot.slane %v15002_v26, 5  ;;  %v15055_v61 = vsel %vm3594_vm11, %v3753_v15, %v3757_v46  ;;  %v15061_v26 = vld [vmem:[#allocation2 + $0x168] sm:$0xff] }
 0x80e   :  { %v15033_v55 = vadd.f32 %v6651_v62, %v6560_v60  ;;  %v6378_v28 = vpop.f32.mrf.mxu2  ;;  %6606 = vmatmul.f32.gmra.mxu0 %v5142_v21  ;;  %v3202_v62 = vld [vmem:[#allocation2 + $0x78] sm:$0xfc]  ;;  %v4350_v60 = vld [vmem:[%s16382_s7 + $0x8e8] sm:$0xff]  ;;  %v4402_v5 = vsel %vm3855_vm0, %v4400_v42, %v4401_v40  ;;  %v3756_v38 = vsel %vm3594_vm11, %v3751_v49, %v3755_v63  ;;  %v5178_v7 = vsel %vm3855_vm0, %v5141_v4, %v5177_v24 }
 0x80f   :  { %v6379_v35 = vadd.f32 %v6378_v28, %v14160_v44  ;;  %v6470_v29 = vpop.f32.mrf.mxu3  ;;  %v3856_v44 = vrot.slane %v3201_v32, 5  ;;  %v3857_v21 = vrot.slane %v3202_v62, 5  ;;  %7167 = vmatpush.msra.mxu3 %v4350_v60  ;;  %v5180_v32 = vsel %vm3855_vm0, %v5143_v58, %v5179_v37 }
 0x810   :  { %6698 = vmatmul.f32.gmra.mxu1 %v5144_v25  ;;  %v4437_v42 = vrot.slane %v3756_v38, 5  ;;  %v4439_v60 = vrot.slane %v15055_v61, 5  ;;  %v3761_v24 = vrot.slane %v15061_v26, 4  ;;  %v4333_v38 = vld [vmem:[%s16382_s7 + $0x860] sm:$0xff] }
 0x811   :  { %v6471_v45 = vadd.f32 %v6470_v29, %v6379_v35  ;;  %v15057_v35 = vld [vmem:[#allocation2 + $0xc0] sm:$0xff]  ;;  %v3859_v49 = vsel %vm3855_vm0, %v3856_v44, %v3858_v14  ;;  %v4403_v58 = vrot.slane %v3856_v44, 5  ;;  %7076 = vmatpush.msra.mxu2 %v4333_v38 }
 0x812   :  { %v3759_v4 = vrot.slane %v15057_v35, 4  ;;  %v4440_v44 = vsel %vm3855_vm0, %v4401_v40, %v4439_v60 }
 0x813   :  { %v6562_v25 = vpop.f32.mrf.mxu0  ;;  %v6654_v28 = vpop.f32.mrf.mxu1 }
 0x814   :  { %6721 = vmatmul.f32.vlgmr.msrb.gmra.mxu2 %v4399_v52  ;;  %v6563_v3 = vadd.f32 %v6562_v25, %v6471_v45  ;;  %6813 = vmatmul.f32.vlgmr.msrb.gmra.mxu3 %v4402_v5  ;;  %v3861_v45 = vsel %vm3855_vm0, %v3857_v21, %v3860_v16  ;;  %v4404_v25 = vrot.slane %v3859_v49, 5  ;;  %v15080_v49 = vsel %vm3594_vm11, %v3757_v46, %v3761_v24  ;;  %v4349_v46 = vld [vmem:[%s16382_s7 + $0x8e0] sm:$0xff] }
 0x815   :  { %v4407_v5 = vrot.slane %v3861_v45, 5  ;;  %v15082_v45 = vld [vmem:[#allocation2 + $0x118] sm:$0xff]  ;;  %7168 = vmatpush.msra.mxu3 %v4349_v46 }
 0x816   :  { %v15063_v29 = vadd.f32 %v6654_v28, %v6563_v3  ;;  %v6381_v62 = vpop.f32.mrf.mxu2  ;;  %6609 = vmatmul.f32.gmra.mxu0 %v5178_v7  ;;  %v4406_v28 = vrot.slane %v3857_v21, 5  ;;  %v4438_v3 = vsel %vm3855_vm0, %v4398_v18, %v4437_v42  ;;  %v3864_v7 = vrot.slane %v15031_v56, 5  ;;  %v15086_v56 = vld [vmem:[#allocation2 + $0x120] sm:$0xff] }
 0x817   :  { %v6382_v15 = vadd.f32 %v6381_v62, %v14185_v8  ;;  %v6473_v52 = vpop.f32.mrf.mxu3  ;;  %v3862_v8 = vrot.slane %v15026_v39, 5  ;;  %v3760_v62 = vsel %vm3594_vm11, %v3755_v63, %v3759_v4  ;;  %v4405_v18 = vsel %vm3855_vm0, %v4403_v58, %v4404_v25 }
 0x818   :  { %6701 = vmatmul.f32.gmra.mxu1 %v5180_v32  ;;  %v4408_v39 = vsel %vm3855_vm0, %v4406_v28, %v4407_v5  ;;  %v4469_v40 = vrot.slane %v3760_v62, 5  ;;  %v4471_v28 = vrot.slane %v15080_v49, 5 }
 0x819   :  { %v6474_v37 = vadd.f32 %v6473_v52, %v6382_v15  ;;  %v3863_v63 = vsel %vm3855_vm0, %v3858_v14, %v3862_v8 }
 0x81a   :  { %v4470_v14 = vsel %vm3855_vm0, %v4437_v42, %v4469_v40 }
 0x81b   :  { %v6565_v61 = vpop.f32.mrf.mxu0  ;;  %v6657_v32 = vpop.f32.mrf.mxu1 }
 0x81c   :  { %6724 = vmatmul.f32.gmra.mxu2 %v4438_v3  ;;  %v6566_v21 = vadd.f32 %v6565_v61, %v6474_v37  ;;  %6816 = vmatmul.f32.gmra.mxu3 %v4440_v44  ;;  %v3865_v37 = vsel %vm3855_vm0, %v3860_v16, %v3864_v7  ;;  %v3763_v3 = vrot.slane %v15082_v45, 4  ;;  %v3765_v61 = vrot.slane %v15086_v56, 4 }
 0x81d   :  { %v4441_v44 = vrot.slane %v3863_v63, 5  ;;  %v4443_v62 = vrot.slane %v3865_v37, 5  ;;  %v3866_v16 = vrot.slane %v15057_v35, 5  ;;  %v15107_v63 = vld [vmem:[#allocation2 + $0x60] sm:$0xff]  ;;  %v15111_v37 = vld [vmem:[#allocation2 + $0x188] sm:$0xff] }
 0x81e   :  { %v15088_v15 = vadd.f32 %v6657_v32, %v6566_v21  ;;  %v6384_v52 = vpop.f32.mrf.mxu2  ;;  %6905 = vmatmul.f32.vlgmr.msrb.gmra.mxu0 %v4405_v18  ;;  %v3868_v21 = vrot.slane %v15061_v26, 5  ;;  %v3764_v49 = vsel %vm3594_vm11, %v3759_v4, %v3763_v3  ;;  %v15105_v46 = vsel %vm3594_vm11, %v3761_v24, %v3765_v61  ;;  %v4332_v24 = vld [vmem:[%s16382_s7 + $0x858] sm:$0xff] }
 0x81f   :  { %v6385_v58 = vadd.f32 %v6384_v52, %v14210_v12  ;;  %v6476_v38 = vpop.f32.mrf.mxu3  ;;  %v4472_v12 = vsel %vm3855_vm0, %v4439_v60, %v4471_v28  ;;  %v4442_v42 = vsel %vm3855_vm0, %v4404_v25, %v4441_v44  ;;  %v4444_v35 = vsel %vm3855_vm0, %v4407_v5, %v4443_v62  ;;  %7077 = vmatpush.msra.mxu2 %v4332_v24  ;;  %v15133_v24 = vld [vmem:[#allocation2 + $0x198] sm:$0xff] }
 0x820   :  { %6997 = vmatmul.f32.vlgmr.msrb.gmra.mxu1 %v4408_v39  ;;  %v4501_v60 = vrot.slane %v3764_v49, 5  ;;  %v3867_v4 = vsel %vm3855_vm0, %v3862_v8, %v3866_v16  ;;  %v4503_v5 = vrot.slane %v15105_v46, 5  ;;  %v4348_v8 = vld [vmem:[%s16382_s7 + $0x8d8] sm:$0xff] }
 0x821   :  { %v6477_v32 = vadd.f32 %v6476_v38, %v6385_v58  ;;  %v3869_v38 = vsel %vm3855_vm0, %v3864_v7, %v3868_v21  ;;  %7169 = vmatpush.msra.mxu3 %v4348_v8 }
 0x822   :  { %v4475_v49 = vrot.slane %v3869_v38, 5  ;;  %v4502_v7 = vsel %vm3855_vm0, %v4469_v40, %v4501_v60 }
 0x823   :  { %v6568_v18 = vpop.f32.mrf.mxu0  ;;  %v6660_v39 = vpop.f32.mrf.mxu1 }
 0x824   :  { %6727 = vmatmul.f32.gmra.mxu2 %v4470_v14  ;;  %v6569_v52 = vadd.f32 %v6568_v18, %v6477_v32  ;;  %6819 = vmatmul.f32.gmra.mxu3 %v4472_v12  ;;  %v3767_v14 = vrot.slane %v15107_v63, 4  ;;  %v3769_v18 = vrot.slane %v15111_v37, 4  ;;  %v4473_v12 = vrot.slane %v3867_v4, 5 }
 0x826   :  { %v15113_v26 = vadd.f32 %v6660_v39, %v6569_v52  ;;  %v6387_v58 = vpop.f32.mrf.mxu2  ;;  %6908 = vmatmul.f32.gmra.mxu0 %v4442_v42  ;;  %v3870_v52 = vrot.slane %v15082_v45, 5  ;;  %v3770_v38 = vsel %vm3594_vm11, %v3765_v61, %v3769_v18  ;;  %v4474_v40 = vsel %vm3855_vm0, %v4441_v44, %v4473_v12 }
 0x827   :  { %v6388_v25 = vadd.f32 %v6387_v58, %v14236_v53  ;;  %v6479_v32 = vpop.f32.mrf.mxu3  ;;  %v3872_v53 = vrot.slane %v15086_v56, 5  ;;  %v3768_v58 = vsel %vm3594_vm11, %v3763_v3, %v3767_v14  ;;  %v4476_v45 = vsel %vm3855_vm0, %v4443_v62, %v4475_v49 }
 0x828   :  { %7000 = vmatmul.f32.gmra.mxu1 %v4444_v35  ;;  %v4504_v35 = vsel %vm3855_vm0, %v4471_v28, %v4503_v5  ;;  %v4533_v28 = vrot.slane %v3768_v58, 5  ;;  %v3871_v3 = vsel %vm3855_vm0, %v3866_v16, %v3870_v52  ;;  %v3771_v44 = vrot.slane %v15133_v24, 4 }
 0x829   :  { %v6480_v39 = vadd.f32 %v6479_v32, %v6388_v25  ;;  %v15137_v25 = vld [vmem:[#allocation2 + $0x1b8] sm:$0xff]  ;;  %v3874_v16 = vrot.slane %v15107_v63, 5 }
 0x82a   :  { %v3773_v62 = vrot.slane %v15137_v25, 4  ;;  %v4534_v58 = vsel %vm3855_vm0, %v4501_v60, %v4533_v28 }
 0x82b   :  { %v6571_v46 = vpop.f32.mrf.mxu0  ;;  %v6663_v42 = vpop.f32.mrf.mxu1 }
 0x82c   :  { %6730 = vmatmul.f32.gmra.mxu2 %v4502_v7  ;;  %v6572_v4 = vadd.f32 %v6571_v46, %v6480_v39  ;;  %6822 = vmatmul.f32.gmra.mxu3 %v4504_v35  ;;  %v3873_v39 = vsel %vm3855_vm0, %v3868_v21, %v3872_v53  ;;  %v4535_v7 = vrot.slane %v3770_v38, 5  ;;  %v4505_v35 = vrot.slane %v3871_v3, 5 }
 0x82d   :  { %v3876_v21 = vrot.slane %v15111_v37, 5  ;;  %v15155_v3 = vsel %vm3594_vm11, %v3769_v18, %v3773_v62  ;;  %v15161_v37 = vld [vmem:[#allocation2 + $0x138] sm:$0xff]  ;;  %v4347_v18 = vld [vmem:[%s16382_s7 + $0x8d0] sm:$0xff] }
 0x82e   :  { %v15139_v56 = vadd.f32 %v6663_v42, %v6572_v4  ;;  %v6390_v32 = vpop.f32.mrf.mxu2  ;;  %6911 = vmatmul.f32.gmra.mxu0 %v4474_v40  ;;  %v4507_v42 = vrot.slane %v3873_v39, 5  ;;  %v4331_v4 = vld [vmem:[%s16382_s7 + $0x850] sm:$0xff]  ;;  %v4536_v40 = vsel %vm3855_vm0, %v4503_v5, %v4535_v7  ;;  %v4506_v60 = vsel %vm3855_vm0, %v4473_v12, %v4505_v35  ;;  %7170 = vmatpush.msra.mxu3 %v4347_v18 }
 0x82f   :  { %v6391_v61 = vadd.f32 %v6390_v32, %v14260_v59  ;;  %v6482_v8 = vpop.f32.mrf.mxu3  ;;  %7078 = vmatpush.msra.mxu2 %v4331_v4  ;;  %v15157_v39 = vld [vmem:[#allocation2 + $0xd0] sm:$0xff] }
 0x830   :  { %7003 = vmatmul.f32.gmra.mxu1 %v4476_v45  ;;  %v3772_v45 = vsel %vm3594_vm11, %v3767_v14, %v3771_v44  ;;  %v4508_v63 = vsel %vm3855_vm0, %v4475_v49, %v4507_v42  ;;  %v3875_v14 = vsel %vm3855_vm0, %v3870_v52, %v3874_v16  ;;  %v4567_v49 = vrot.slane %v15155_v3, 5 }
 0x831   :  { %v6483_v46 = vadd.f32 %v6482_v8, %v6391_v61  ;;  %v4565_v5 = vrot.slane %v3772_v45, 5 }
 0x833   :  { %v6574_v59 = vpop.f32.mrf.mxu0  ;;  %v6666_v38 = vpop.f32.mrf.mxu1  ;;  %v4566_v52 = vsel %vm3855_vm0, %v4533_v28, %v4565_v5 }
 0x834   :  { %6733 = vmatmul.f32.gmra.mxu2 %v4534_v58  ;;  %v6575_v32 = vadd.f32 %v6574_v59, %v6483_v46  ;;  %6825 = vmatmul.f32.gmra.mxu3 %v4536_v40  ;;  %v3877_v46 = vsel %vm3855_vm0, %v3872_v53, %v3876_v21  ;;  %v3775_v58 = vrot.slane %v15157_v39, 4  ;;  %v3777_v59 = vrot.slane %v15161_v37, 4 }
 0x835   :  { %v4537_v40 = vrot.slane %v3875_v14, 5  ;;  %v4539_v45 = vrot.slane %v3877_v46, 5  ;;  %v3878_v53 = vrot.slane %v15133_v24, 5  ;;  %v15184_v24 = vld [vmem:[#allocation2 + $0x10] sm:$0xff] }
 0x836   :  { %v15163_v61 = vadd.f32 %v6666_v38, %v6575_v32  ;;  %v6393_v8 = vpop.f32.mrf.mxu2  ;;  %6914 = vmatmul.f32.gmra.mxu0 %v4506_v60  ;;  %v3880_v32 = vrot.slane %v15137_v25, 5  ;;  %v3776_v3 = vsel %vm3594_vm11, %v3771_v44, %v3775_v58  ;;  %v3778_v18 = vsel %vm3594_vm11, %v3773_v62, %v3777_v59 }
 0x837   :  { %v6394_v12 = vadd.f32 %v6393_v8, %v14283_v51  ;;  %v6485_v4 = vpop.f32.mrf.mxu3  ;;  %v4568_v51 = vsel %vm3855_vm0, %v4535_v7, %v4567_v49  ;;  %v4538_v14 = vsel %vm3855_vm0, %v4505_v35, %v4537_v40  ;;  %v4540_v28 = vsel %vm3855_vm0, %v4507_v42, %v4539_v45 }
 0x838   :  { %7006 = vmatmul.f32.gmra.mxu1 %v4508_v63  ;;  %v4597_v7 = vrot.slane %v3776_v3, 5  ;;  %v3879_v44 = vsel %vm3855_vm0, %v3874_v16, %v3878_v53  ;;  %v3781_v42 = vrot.slane %v15184_v24, 4  ;;  %v4346_v16 = vld [vmem:[%s16382_s7 + $0x8c8] sm:$0xff]  ;;  %v3884_v3 = vrot.slane %v15161_v37, 5  ;;  %v15209_v37 = vld [vmem:[#allocation2 + $0x150] sm:$0xff] }
 0x839   :  { %v6486_v38 = vadd.f32 %v6485_v4, %v6394_v12  ;;  %v15180_v12 = vld [vmem:[#allocation2 + $0x108] sm:$0xff]  ;;  %v3881_v4 = vsel %vm3855_vm0, %v3876_v21, %v3880_v32  ;;  %7171 = vmatpush.msra.mxu3 %v4346_v16 }
 0x83a   :  { %v3779_v35 = vrot.slane %v15180_v12, 4  ;;  %v4598_v21 = vsel %vm3855_vm0, %v4565_v5, %v4597_v7 }
 0x83b   :  { %v6577_v60 = vpop.f32.mrf.mxu0  ;;  %v6669_v63 = vpop.f32.mrf.mxu1 }
 0x83c   :  { %6736 = vmatmul.f32.gmra.mxu2 %v4566_v52  ;;  %v6578_v8 = vadd.f32 %v6577_v60, %v6486_v38  ;;  %6828 = vmatmul.f32.gmra.mxu3 %v4568_v51  ;;  %v4599_v52 = vrot.slane %v3778_v18, 5  ;;  %v4569_v51 = vrot.slane %v3879_v44, 5 }
 0x83e   :  { %v15186_v25 = vadd.f32 %v6669_v63, %v6578_v8  ;;  %v6396_v46 = vpop.f32.mrf.mxu2  ;;  %6917 = vmatmul.f32.gmra.mxu0 %v4538_v14  ;;  %v4571_v63 = vrot.slane %v3881_v4, 5  ;;  %v4330_v8 = vld [vmem:[%s16382_s7 + $0x848] sm:$0xff]  ;;  %v3782_v4 = vsel %vm3594_vm11, %v3777_v59, %v3781_v42  ;;  %v4570_v5 = vsel %vm3855_vm0, %v4537_v40, %v4569_v51 }
 0x83f   :  { %v6397_v62 = vadd.f32 %v6396_v46, %v14308_v36  ;;  %v6488_v38 = vpop.f32.mrf.mxu3  ;;  %v3882_v36 = vrot.slane %v15157_v39, 5  ;;  %7079 = vmatpush.msra.mxu2 %v4330_v8  ;;  %v3780_v46 = vsel %vm3594_vm11, %v3775_v58, %v3779_v35 }
 0x840   :  { %7009 = vmatmul.f32.gmra.mxu1 %v4540_v28  ;;  %v4600_v28 = vsel %vm3855_vm0, %v4567_v49, %v4599_v52  ;;  %v4572_v39 = vsel %vm3855_vm0, %v4539_v45, %v4571_v63  ;;  %v4629_v49 = vrot.slane %v3780_v46, 5  ;;  %v3785_v45 = vrot.slane %v15209_v37, 4 }
 0x841   :  { %v6489_v60 = vadd.f32 %v6488_v38, %v6397_v62  ;;  %v15205_v62 = vld [vmem:[#allocation2 + $0x8] sm:$0xff]  ;;  %v3883_v58 = vsel %vm3855_vm0, %v3878_v53, %v3882_v36  ;;  %v3888_v46 = vrot.slane %v15184_v24, 5 }
 0x842   :  { %v3783_v40 = vrot.slane %v15205_v62, 4 }
 0x843   :  { %v6580_v18 = vpop.f32.mrf.mxu0  ;;  %v6672_v14 = vpop.f32.mrf.mxu1 }
 0x844   :  { %6739 = vmatmul.f32.gmra.mxu2 %v4598_v21  ;;  %v6581_v44 = vadd.f32 %v6580_v18, %v6489_v60  ;;  %6831 = vmatmul.f32.gmra.mxu3 %v4600_v28  ;;  %v3885_v60 = vsel %vm3855_vm0, %v3880_v32, %v3884_v3  ;;  %v4631_v21 = vrot.slane %v3782_v4, 5  ;;  %v4601_v28 = vrot.slane %v3883_v58, 5  ;;  %v15226_v58 = vld [vmem:[#allocation2 + $0xa0] sm:$0xff] }
 0x845   :  { %v3784_v32 = vsel %vm3594_vm11, %v3779_v35, %v3783_v40 }
 0x846   :  { %v15211_v38 = vadd.f32 %v6672_v14, %v6581_v44  ;;  %v6399_v8 = vpop.f32.mrf.mxu2  ;;  %6920 = vmatmul.f32.gmra.mxu0 %v4570_v5  ;;  %v4603_v14 = vrot.slane %v3885_v60, 5  ;;  %v4630_v44 = vsel %vm3855_vm0, %v4597_v7, %v4629_v49  ;;  %v3886_v5 = vrot.slane %v15180_v12, 5  ;;  %v15230_v60 = vld [vmem:[#allocation2 + $0x80] sm:$0xff] }
 0x847   :  { %v6400_v59 = vadd.f32 %v6399_v8, %v14329_v50  ;;  %v6491_v16 = vpop.f32.mrf.mxu3  ;;  %v4632_v50 = vsel %vm3855_vm0, %v4599_v52, %v4631_v21  ;;  %v15224_v8 = vsel %vm3594_vm11, %v3781_v42, %v3785_v45  ;;  %v4602_v7 = vsel %vm3855_vm0, %v4569_v51, %v4601_v28  ;;  %v4329_v42 = vld [vmem:[%s16382_s7 + $0x840] sm:$0xff] }
 0x848   :  { %7012 = vmatmul.f32.gmra.mxu1 %v4572_v39  ;;  %v4604_v12 = vsel %vm3855_vm0, %v4571_v63, %v4603_v14  ;;  %v4661_v52 = vrot.slane %v3784_v32, 5  ;;  %v3887_v35 = vsel %vm3855_vm0, %v3882_v36, %v3886_v5  ;;  %v4345_v51 = vld [vmem:[%s16382_s7 + $0x8c0] sm:$0xff]  ;;  %7080 = vmatpush.msra.mxu2 %v4329_v42  ;;  %v3789_v36 = vrot.slane %v15230_v60, 4 }
 0x849   :  { %v6492_v18 = vadd.f32 %v6491_v16, %v6400_v59  ;;  %v3889_v16 = vsel %vm3855_vm0, %v3884_v3, %v3888_v46  ;;  %7172 = vmatpush.msra.mxu3 %v4345_v51 }
 0x84a   :  { %v4662_v32 = vsel %vm3855_vm0, %v4629_v49, %v4661_v52  ;;  %v3790_v51 = vsel %vm3594_vm11, %v3785_v45, %v3789_v36 }
 0x84b   :  { %v6583_v53 = vpop.f32.mrf.mxu0  ;;  %v6675_v39 = vpop.f32.mrf.mxu1 }
 0x84c   :  { %6742 = vmatmul.f32.gmra.mxu2 %v4630_v44  ;;  %v6584_v4 = vadd.f32 %v6583_v53, %v6492_v18  ;;  %6834 = vmatmul.f32.gmra.mxu3 %v4632_v50  ;;  %v4663_v44 = vrot.slane %v15224_v8, 5  ;;  %v3787_v53 = vrot.slane %v15226_v58, 4  ;;  %v4635_v50 = vrot.slane %v3889_v16, 5 }
 0x84e   :  { %v15232_v24 = vadd.f32 %v6675_v39, %v6584_v4  ;;  %v6402_v59 = vpop.f32.mrf.mxu2  ;;  %6923 = vmatmul.f32.gmra.mxu0 %v4602_v7  ;;  %v4633_v39 = vrot.slane %v3887_v35, 5  ;;  %v3890_v4 = vrot.slane %v15205_v62, 5  ;;  %v3892_v7 = vrot.slane %v15209_v37, 5  ;;  %v15256_v62 = vld [vmem:[#allocation2 + $0x38] sm:$0xff] }
 0x84f   :  { %v6403_v63 = vadd.f32 %v6402_v59, %v14361_v30  ;;  %v6494_v18 = vpop.f32.mrf.mxu3  ;;  %v4664_v8 = vsel %vm3855_vm0, %v4631_v21, %v4663_v44  ;;  %v3788_v59 = vsel %vm3594_vm11, %v3783_v40, %v3787_v53  ;;  %v4636_v49 = vsel %vm3855_vm0, %v4603_v14, %v4635_v50 }
 0x850   :  { %7015 = vmatmul.f32.gmra.mxu1 %v4604_v12  ;;  %v4634_v35 = vsel %vm3855_vm0, %v4601_v28, %v4633_v39  ;;  %v4693_v21 = vrot.slane %v3788_v59, 5  ;;  %v3891_v40 = vsel %vm3855_vm0, %v3886_v5, %v3890_v4  ;;  %v3793_v14 = vrot.slane %v15256_v62, 4  ;;  %v4344_v5 = vld [vmem:[%s16382_s7 + $0x8b8] sm:$0xff] }
 0x851   :  { %v6495_v3 = vadd.f32 %v6494_v18, %v6403_v63  ;;  %v15252_v63 = vld [vmem:[#allocation2 + $0x128] sm:$0xff]  ;;  %v3893_v18 = vsel %vm3855_vm0, %v3888_v46, %v3892_v7  ;;  %v3896_v59 = vrot.slane %v15230_v60, 5  ;;  %7173 = vmatpush.msra.mxu3 %v4344_v5  ;;  %v15281_v60 = vld [vmem:[#allocation2 + $0x158] sm:$0xff] }
 0x852   :  { %v3791_v28 = vrot.slane %v15252_v63, 4  ;;  %v4694_v46 = vsel %vm3855_vm0, %v4661_v52, %v4693_v21 }
 0x853   :  { %v6586_v12 = vpop.f32.mrf.mxu0  ;;  %v6678_v30 = vpop.f32.mrf.mxu1 }
 0x854   :  { %6745 = vmatmul.f32.gmra.mxu2 %v4662_v32  ;;  %v6587_v42 = vadd.f32 %v6586_v12, %v6495_v3  ;;  %6837 = vmatmul.f32.gmra.mxu3 %v4664_v8  ;;  %v4695_v32 = vrot.slane %v3790_v51, 5  ;;  %v4665_v8 = vrot.slane %v3891_v40, 5 }
 0x856   :  { %v15258_v37 = vadd.f32 %v6678_v30, %v6587_v42  ;;  %v6405_v16 = vpop.f32.mrf.mxu2  ;;  %6926 = vmatmul.f32.gmra.mxu0 %v4634_v35  ;;  %v4667_v30 = vrot.slane %v3893_v18, 5  ;;  %v4328_v42 = vld [vmem:[%s16382_s7 + $0x838] sm:$0xff]  ;;  %v3794_v18 = vsel %vm3594_vm11, %v3789_v36, %v3793_v14  ;;  %v4666_v52 = vsel %vm3855_vm0, %v4633_v39, %v4665_v8 }
 0x857   :  { %v6406_v45 = vadd.f32 %v6405_v16, %v14386_v9  ;;  %v6497_v3 = vpop.f32.mrf.mxu3  ;;  %v3894_v9 = vrot.slane %v15226_v58, 5  ;;  %7081 = vmatpush.msra.mxu2 %v4328_v42  ;;  %v3792_v16 = vsel %vm3594_vm11, %v3787_v53, %v3791_v28 }
 0x858   :  { %7018 = vmatmul.f32.gmra.mxu1 %v4636_v49  ;;  %v4696_v49 = vsel %vm3855_vm0, %v4663_v44, %v4695_v32  ;;  %v4668_v58 = vsel %vm3855_vm0, %v4635_v50, %v4667_v30  ;;  %v4725_v44 = vrot.slane %v3792_v16, 5  ;;  %v3797_v50 = vrot.slane %v15281_v60, 4 }
 0x859   :  { %v6498_v12 = vadd.f32 %v6497_v3, %v6406_v45  ;;  %v15277_v45 = vld [vmem:[#allocation2 + $0x88] sm:$0xff]  ;;  %v3895_v53 = vsel %vm3855_vm0, %v3890_v4, %v3894_v9  ;;  %v3900_v16 = vrot.slane %v15256_v62, 5 }
 0x85a   :  { %v3795_v39 = vrot.slane %v15277_v45, 4 }
 0x85b   :  { %v6589_v51 = vpop.f32.mrf.mxu0  ;;  %v6681_v35 = vpop.f32.mrf.mxu1 }
 0x85c   :  { %6748 = vmatmul.f32.gmra.mxu2 %v4694_v46  ;;  %v6590_v40 = vadd.f32 %v6589_v51, %v6498_v12  ;;  %6840 = vmatmul.f32.gmra.mxu3 %v4696_v49  ;;  %v3897_v12 = vsel %vm3855_vm0, %v3892_v7, %v3896_v59  ;;  %v4727_v46 = vrot.slane %v3794_v18, 5  ;;  %v4697_v49 = vrot.slane %v3895_v53, 5  ;;  %v15298_v53 = vld [vmem:[#allocation2 + $0x180] sm:$0xff] }
 0x85d   :  { %v3796_v7 = vsel %vm3594_vm11, %v3791_v28, %v3795_v39 }
 0x85e   :  { %v15283_v3 = vadd.f32 %v6681_v35, %v6590_v40  ;;  %v6408_v42 = vpop.f32.mrf.mxu2  ;;  %6929 = vmatmul.f32.gmra.mxu0 %v4666_v52  ;;  %v4699_v35 = vrot.slane %v3897_v12, 5  ;;  %v4726_v40 = vsel %vm3855_vm0, %v4693_v21, %v4725_v44  ;;  %v3898_v52 = vrot.slane %v15252_v63, 5  ;;  %v15302_v12 = vld [vmem:[#allocation2 + $0x68] sm:$0xff] }
 0x85f   :  { %v6409_v36 = vadd.f32 %v6408_v42, %v14407_v10  ;;  %v6500_v5 = vpop.f32.mrf.mxu3  ;;  %v4728_v10 = vsel %vm3855_vm0, %v4695_v32, %v4727_v46  ;;  %v15296_v42 = vsel %vm3594_vm11, %v3793_v14, %v3797_v50  ;;  %v4698_v21 = vsel %vm3855_vm0, %v4665_v8, %v4697_v49  ;;  %v4327_v14 = vld [vmem:[%s16382_s7 + $0x830] sm:$0xff] }
 0x860   :  { %7021 = vmatmul.f32.gmra.mxu1 %v4668_v58  ;;  %v4700_v63 = vsel %vm3855_vm0, %v4667_v30, %v4699_v35  ;;  %v4757_v32 = vrot.slane %v3796_v7, 5  ;;  %v3899_v28 = vsel %vm3855_vm0, %v3894_v9, %v3898_v52  ;;  %v4759_v30 = vrot.slane %v15296_v42, 5  ;;  %7082 = vmatpush.msra.mxu2 %v4327_v14  ;;  %v4343_v9 = vld [vmem:[%s16382_s7 + $0x8b0] sm:$0xff]  ;;  %v15324_v14 = vld [vmem:[#allocation2 + $0x178] sm:$0xff] }
 0x861   :  { %v6501_v51 = vadd.f32 %v6500_v5, %v6409_v36  ;;  %v3901_v5 = vsel %vm3855_vm0, %v3896_v59, %v3900_v16  ;;  %7174 = vmatpush.msra.mxu3 %v4343_v9 }
 0x862   :  { %v4731_v7 = vrot.slane %v3901_v5, 5  ;;  %v4758_v59 = vsel %vm3855_vm0, %v4725_v44, %v4757_v32 }
 0x863   :  { %v6592_v4 = vpop.f32.mrf.mxu0  ;;  %v6684_v58 = vpop.f32.mrf.mxu1 }
 0x864   :  { %6751 = vmatmul.f32.gmra.mxu2 %v4726_v40  ;;  %v6593_v18 = vadd.f32 %v6592_v4, %v6501_v51  ;;  %6843 = vmatmul.f32.gmra.mxu3 %v4728_v10  ;;  %v3799_v40 = vrot.slane %v15298_v53, 4  ;;  %v3801_v4 = vrot.slane %v15302_v12, 4  ;;  %v4729_v10 = vrot.slane %v3899_v28, 5 }
 0x866   :  { %v15304_v62 = vadd.f32 %v6684_v58, %v6593_v18  ;;  %v6411_v36 = vpop.f32.mrf.mxu2  ;;  %6932 = vmatmul.f32.gmra.mxu0 %v4698_v21  ;;  %v3902_v18 = vrot.slane %v15277_v45, 5  ;;  %v3802_v5 = vsel %vm3594_vm11, %v3797_v50, %v3801_v4  ;;  %v4730_v44 = vsel %vm3855_vm0, %v4697_v49, %v4729_v10 }
 0x867   :  { %v6412_v8 = vadd.f32 %v6411_v36, %v14439_v1  ;;  %v6503_v51 = vpop.f32.mrf.mxu3  ;;  %v3904_v1 = vrot.slane %v15281_v60, 5  ;;  %v3800_v36 = vsel %vm3594_vm11, %v3795_v39, %v3799_v40  ;;  %v4732_v45 = vsel %vm3855_vm0, %v4699_v35, %v4731_v7 }
 0x868   :  { %7024 = vmatmul.f32.gmra.mxu1 %v4700_v63  ;;  %v4760_v63 = vsel %vm3855_vm0, %v4727_v46, %v4759_v30  ;;  %v4789_v46 = vrot.slane %v3800_v36, 5  ;;  %v3903_v39 = vsel %vm3855_vm0, %v3898_v52, %v3902_v18  ;;  %v3803_v49 = vrot.slane %v15324_v14, 4  ;;  %v4342_v52 = vld [vmem:[%s16382_s7 + $0x8a8] sm:$0xff] }
 0x869   :  { %v6504_v58 = vadd.f32 %v6503_v51, %v6412_v8  ;;  %v15328_v8 = vld [vmem:[#allocation2 + $0x140] sm:$0xff]  ;;  %v3908_v36 = vrot.slane %v15302_v12, 5  ;;  %7175 = vmatpush.msra.mxu3 %v4342_v52  ;;  %v15353_v12 = vld [vmem:[#allocation2 + $0x50] sm:$0xff] }
 0x86a   :  { %v3805_v35 = vrot.slane %v15328_v8, 4 }
 0x86b   :  { %v6595_v42 = vpop.f32.mrf.mxu0 }
 0x86c   :  { %v6687_v21 = vpop.f32.mrf.mxu1  ;;  %6754 = vmatmul.f32.gmra.mxu2 %v4758_v59  ;;  %v6596_v28 = vadd.f32 %v6595_v42, %v6504_v58  ;;  %6846 = vmatmul.f32.gmra.mxu3 %v4760_v63  ;;  %v3905_v58 = vsel %vm3855_vm0, %v3900_v16, %v3904_v1  ;;  %v4791_v59 = vrot.slane %v3802_v5, 5  ;;  %v4761_v63 = vrot.slane %v3903_v39, 5 }
 0x86d   :  { %v4790_v16 = vsel %vm3855_vm0, %v4757_v32, %v4789_v46 }
 0x86e   :  { %v15330_v60 = vadd.f32 %v6687_v21, %v6596_v28  ;;  %6935 = vmatmul.f32.gmra.mxu0 %v4730_v44  ;;  %v4763_v21 = vrot.slane %v3905_v58, 5  ;;  %v4326_v28 = vld [vmem:[%s16382_s7 + $0x828] sm:$0xff]  ;;  %v3806_v58 = vsel %vm3594_vm11, %v3801_v4, %v3805_v35  ;;  %v4762_v32 = vsel %vm3855_vm0, %v4729_v10, %v4761_v63 }
 0x86f   :  { %v6414_v51 = vpop.f32.mrf.mxu2  ;;  %v6506_v9 = vpop.f32.mrf.mxu3  ;;  %7083 = vmatpush.msra.mxu2 %v4326_v28 }
 0x870   :  { %7027 = vmatmul.f32.gmra.mxu1 %v4732_v45  ;;  %v6415_v50 = vadd.f32 %v6414_v51, %v14464_v2  ;;  %v3906_v2 = vrot.slane %v15298_v53, 5  ;;  %v4792_v45 = vsel %vm3855_vm0, %v4759_v30, %v4791_v59  ;;  %v3804_v51 = vsel %vm3594_vm11, %v3799_v40, %v3803_v49 }
 0x871   :  { %v4764_v53 = vsel %vm3855_vm0, %v4731_v7, %v4763_v21  ;;  %v4821_v30 = vrot.slane %v3804_v51, 5  ;;  %v3809_v7 = vrot.slane %v15353_v12, 4  ;;  %v3912_v51 = vrot.slane %v15328_v8, 5 }
 0x872   :  { %v6507_v42 = vadd.f32 %v6506_v9, %v6415_v50  ;;  %v15349_v50 = vld [vmem:[#allocation2 + $0xd8] sm:$0xff]  ;;  %v3907_v40 = vsel %vm3855_vm0, %v3902_v18, %v3906_v2 }
 0x873   :  { %v6598_v5 = vpop.f32.mrf.mxu0  ;;  %v3807_v10 = vrot.slane %v15349_v50, 4 }
 0x874   :  { %6757 = vmatmul.f32.gmra.mxu2 %v4790_v16  ;;  %v6599_v39 = vadd.f32 %v6598_v5, %v6507_v42  ;;  %6849 = vmatmul.f32.gmra.mxu3 %v4792_v45  ;;  %v3909_v42 = vsel %vm3855_vm0, %v3904_v1, %v3908_v36  ;;  %v4823_v16 = vrot.slane %v3806_v58, 5  ;;  %v4793_v45 = vrot.slane %v3907_v40, 5  ;;  %v15370_v40 = vld [vmem:[#allocation2 + $0x1c8] sm:$0xff] }
 0x875   :  { %v6690_v44 = vpop.f32.mrf.mxu1  ;;  %v3808_v1 = vsel %vm3594_vm11, %v3803_v49, %v3807_v10 }
 0x876   :  { %v15355_v9 = vadd.f32 %v6690_v44, %v6599_v39  ;;  %6938 = vmatmul.f32.gmra.mxu0 %v4762_v32  ;;  %v4795_v44 = vrot.slane %v3909_v42, 5  ;;  %v4822_v39 = vsel %vm3855_vm0, %v4789_v46, %v4821_v30  ;;  %v3910_v32 = vrot.slane %v15324_v14, 5  ;;  %v15374_v42 = vld [vmem:[#allocation2 + $0xa8] sm:$0xff] }
 0x877   :  { %v6417_v28 = vpop.f32.mrf.mxu2  ;;  %v6509_v52 = vpop.f32.mrf.mxu3  ;;  %v4794_v46 = vsel %vm3855_vm0, %v4761_v63, %v4793_v45 }
 0x878   :  { %7030 = vmatmul.f32.gmra.mxu1 %v4764_v53  ;;  %v6418_v4 = vadd.f32 %v6417_v28, %v14485_v27  ;;  %v4824_v27 = vsel %vm3855_vm0, %v4791_v59, %v4823_v16  ;;  %v15368_v28 = vsel %vm3594_vm11, %v3805_v35, %v3809_v7  ;;  %v4796_v14 = vsel %vm3855_vm0, %v4763_v21, %v4795_v44  ;;  %v4325_v35 = vld [vmem:[%s16382_s7 + $0x820] sm:$0xff] }
 0x879   :  { %v4853_v59 = vrot.slane %v3808_v1, 5  ;;  %v3911_v49 = vsel %vm3855_vm0, %v3906_v2, %v3910_v32  ;;  %v4855_v21 = vrot.slane %v15368_v28, 5  ;;  %7084 = vmatpush.msra.mxu2 %v4325_v35  ;;  %v4341_v2 = vld [vmem:[%s16382_s7 + $0x8a0] sm:$0xff]  ;;  %v15396_v35 = vld [vmem:[#allocation2 + $0x1b0] sm:$0xff] }
 0x87a   :  { %v6510_v5 = vadd.f32 %v6509_v52, %v6418_v4  ;;  %v3913_v52 = vsel %vm3855_vm0, %v3908_v36, %v3912_v51  ;;  %7176 = vmatpush.msra.mxu3 %v4341_v2 }
 0x87b   :  { %v6601_v18 = vpop.f32.mrf.mxu0  ;;  %v4827_v1 = vrot.slane %v3913_v52, 5  ;;  %v4854_v36 = vsel %vm3855_vm0, %v4821_v30, %v4853_v59 }
 0x87c   :  { %6760 = vmatmul.f32.gmra.mxu2 %v4822_v39  ;;  %v6602_v58 = vadd.f32 %v6601_v18, %v6510_v5  ;;  %6852 = vmatmul.f32.gmra.mxu3 %v4824_v27  ;;  %v3811_v39 = vrot.slane %v15370_v40, 4  ;;  %v3813_v18 = vrot.slane %v15374_v42, 4  ;;  %v4825_v27 = vrot.slane %v3911_v49, 5 }
 0x87d   :  { %v6693_v53 = vpop.f32.mrf.mxu1 }
 0x87e   :  { %v15376_v8 = vadd.f32 %v6693_v53, %v6602_v58  ;;  %6941 = vmatmul.f32.gmra.mxu0 %v4794_v46  ;;  %v3914_v58 = vrot.slane %v15349_v50, 5  ;;  %v3814_v52 = vsel %vm3594_vm11, %v3809_v7, %v3813_v18  ;;  %v4826_v30 = vsel %vm3855_vm0, %v4793_v45, %v4825_v27 }
 0x87f   :  { %v6420_v4 = vpop.f32.mrf.mxu2  ;;  %v6512_v5 = vpop.f32.mrf.mxu3  ;;  %v4828_v50 = vsel %vm3855_vm0, %v4795_v44, %v4827_v1  ;;  %v3815_v45 = vrot.slane %v15396_v35, 4 }
 0x880   :  { %7033 = vmatmul.f32.gmra.mxu1 %v4796_v14  ;;  %v6421_v63 = vadd.f32 %v6420_v4, %v14511_v6  ;;  %v3916_v6 = vrot.slane %v15353_v12, 5  ;;  %v4856_v14 = vsel %vm3855_vm0, %v4823_v16, %v4855_v21  ;;  %v3812_v4 = vsel %vm3594_vm11, %v3807_v10, %v3811_v39 }
 0x881   :  { %v4885_v16 = vrot.slane %v3812_v4, 5  ;;  %v3915_v10 = vsel %vm3855_vm0, %v3910_v32, %v3914_v58  ;;  %v3918_v32 = vrot.slane %v15370_v40, 5 }
 0x882   :  { %v6513_v53 = vadd.f32 %v6512_v5, %v6421_v63  ;;  %v15400_v63 = vld [vmem:[#allocation2 + $0x1c0] sm:$0xff] }
 0x883   :  { %v6604_v28 = vpop.f32.mrf.mxu0  ;;  %v3817_v44 = vrot.slane %v15400_v63, 4  ;;  %v4886_v4 = vsel %vm3855_vm0, %v4853_v59, %v4885_v16 }
 0x884   :  { %6763 = vmatmul.f32.gmra.mxu2 %v4854_v36  ;;  %v6605_v49 = vadd.f32 %v6604_v28, %v6513_v53  ;;  %6855 = vmatmul.f32.gmra.mxu3 %v4856_v14  ;;  %v3917_v53 = vsel %vm3855_vm0, %v3912_v51, %v3916_v6  ;;  %v4887_v36 = vrot.slane %v3814_v52, 5  ;;  %v4857_v14 = vrot.slane %v3915_v10, 5 }
 0x885   :  { %v6696_v46 = vpop.f32.mrf.mxu1  ;;  %v3920_v51 = vrot.slane %v15374_v42, 5  ;;  %v3818_v10 = vsel %vm3594_vm11, %v3813_v18, %v3817_v44  ;;  %v4340_v18 = vld [vmem:[%s16382_s7 + $0x898] sm:$0xff] }
 0x886   :  { %v15402_v12 = vadd.f32 %v6696_v46, %v6605_v49  ;;  %6944 = vmatmul.f32.gmra.mxu0 %v4826_v30  ;;  %v4859_v46 = vrot.slane %v3917_v53, 5  ;;  %v4324_v49 = vld [vmem:[%s16382_s7 + $0x818] sm:$0xff]  ;;  %v4888_v30 = vsel %vm3855_vm0, %v4855_v21, %v4887_v36  ;;  %v15418_v53 = vld [vmem:[#allocation2 + $0x48] sm:$0xff]  ;;  %v4858_v59 = vsel %vm3855_vm0, %v4825_v27, %v4857_v14  ;;  %7177 = vmatpush.msra.mxu3 %v4340_v18 }
 0x887   :  { %v6423_v5 = vpop.f32.mrf.mxu2  ;;  %v6515_v2 = vpop.f32.mrf.mxu3  ;;  %7085 = vmatpush.msra.mxu2 %v4324_v49 }
 0x888   :  { %7036 = vmatmul.f32.gmra.mxu1 %v4828_v50  ;;  %v6424_v7 = vadd.f32 %v6423_v5, %v14533_v23  ;;  %v3816_v50 = vsel %vm3594_vm11, %v3811_v39, %v3815_v45  ;;  %v4860_v40 = vsel %vm3855_vm0, %v4827_v1, %v4859_v46  ;;  %v3919_v39 = vsel %vm3855_vm0, %v3914_v58, %v3918_v32 }
 0x889   :  { %v4917_v21 = vrot.slane %v3816_v50, 5  ;;  %v4919_v1 = vrot.slane %v3818_v10, 5 }
 0x88a   :  { %v6516_v28 = vadd.f32 %v6515_v2, %v6424_v7  ;;  %v15422_v7 = vld [vmem:[#allocation2 + $0x58] sm:$0xff] }
 0x88b   :  { %v6607_v23 = vpop.f32.mrf.mxu0  ;;  %v4918_v58 = vsel %vm3855_vm0, %v4885_v16, %v4917_v21 }
 0x88c   :  { %6766 = vmatmul.f32.gmra.mxu2 %v4886_v4  ;;  %v6608_v5 = vadd.f32 %v6607_v23, %v6516_v28  ;;  %6858 = vmatmul.f32.gmra.mxu3 %v4888_v30  ;;  %v3921_v28 = vsel %vm3855_vm0, %v3916_v6, %v3920_v51  ;;  %v3819_v4 = vrot.slane %v15418_v53, 4  ;;  %v3821_v23 = vrot.slane %v15422_v7, 4 }
 0x88d   :  { %v6699_v52 = vpop.f32.mrf.mxu1  ;;  %v4889_v30 = vrot.slane %v3919_v39, 5  ;;  %v4891_v50 = vrot.slane %v3921_v28, 5  ;;  %v3922_v6 = vrot.slane %v15396_v35, 5  ;;  %v15444_v35 = vld [vmem:[#allocation2 + $0x70] sm:$0xff] }
 0x88e   :  { %v15424_v42 = vadd.f32 %v6699_v52, %v6608_v5  ;;  %6947 = vmatmul.f32.gmra.mxu0 %v4858_v59  ;;  %v3924_v5 = vrot.slane %v15400_v63, 5  ;;  %v3820_v10 = vsel %vm3594_vm11, %v3815_v45, %v3819_v4  ;;  %v3822_v18 = vsel %vm3594_vm11, %v3817_v44, %v3821_v23 }
 0x88f   :  { %v6426_v2 = vpop.f32.mrf.mxu2  ;;  %v6518_v49 = vpop.f32.mrf.mxu3  ;;  %v4890_v39 = vsel %vm3855_vm0, %v4857_v14, %v4889_v30  ;;  %v4892_v16 = vsel %vm3855_vm0, %v4859_v46, %v4891_v50  ;;  %v3923_v45 = vsel %vm3855_vm0, %v3918_v32, %v3922_v6  ;;  %v3825_v46 = vrot.slane %v15444_v35, 4  ;;  %v4339_v32 = vld [vmem:[%s16382_s7 + $0x890] sm:$0xff] }
 0x890   :  { %7039 = vmatmul.f32.gmra.mxu1 %v4860_v40  ;;  %v6427_v27 = vadd.f32 %v6426_v2, %v14555_v33  ;;  %v4920_v33 = vsel %vm3855_vm0, %v4887_v36, %v4919_v1  ;;  %v4949_v36 = vrot.slane %v3820_v10, 5  ;;  %v3928_v10 = vrot.slane %v15422_v7, 5  ;;  %7178 = vmatpush.msra.mxu3 %v4339_v32  ;;  %v15469_v7 = vld [vmem:[#allocation2 + $0x1a0] sm:$0xff] }
 0x892   :  { %v6519_v52 = vadd.f32 %v6518_v49, %v6427_v27  ;;  %v15440_v27 = vld [vmem:[#allocation2 + $0xb0] sm:$0xff]  ;;  %v3925_v49 = vsel %vm3855_vm0, %v3920_v51, %v3924_v5  ;;  %v4950_v51 = vsel %vm3855_vm0, %v4917_v21, %v4949_v36 }
 0x893   :  { %v6610_v59 = vpop.f32.mrf.mxu0  ;;  %v3823_v14 = vrot.slane %v15440_v27, 4 }
 0x894   :  { %6769 = vmatmul.f32.gmra.mxu2 %v4918_v58  ;;  %v6611_v2 = vadd.f32 %v6610_v59, %v6519_v52  ;;  %6861 = vmatmul.f32.gmra.mxu3 %v4920_v33  ;;  %v4951_v58 = vrot.slane %v3822_v18, 5  ;;  %v4921_v33 = vrot.slane %v3923_v45, 5 }
 0x895   :  { %v6702_v40 = vpop.f32.mrf.mxu1 }
 0x896   :  { %v15446_v63 = vadd.f32 %v6702_v40, %v6611_v2  ;;  %6950 = vmatmul.f32.gmra.mxu0 %v4890_v39  ;;  %v4923_v40 = vrot.slane %v3925_v49, 5  ;;  %v4323_v2 = vld [vmem:[%s16382_s7 + $0x810] sm:$0xff]  ;;  %v4952_v18 = vsel %vm3855_vm0, %v4919_v1, %v4951_v58  ;;  %v3826_v49 = vsel %vm3594_vm11, %v3821_v23, %v3825_v46 }
 0x897   :  { %v6722_v28 = vpop.f32.mrf.mxu2  ;;  %v6814_v52 = vpop.f32.mrf.mxu3  ;;  %7086 = vmatpush.msra.mxu2 %v4323_v2  ;;  %v4922_v21 = vsel %vm3855_vm0, %v4889_v30, %v4921_v33 }
 0x898   :  { %7042 = vmatmul.f32.gmra.mxu1 %v4892_v16  ;;  %v6723_v44 = vadd.f32 %v6722_v28, %v14582_v19  ;;  %v3926_v19 = vrot.slane %v15418_v53, 5  ;;  %v3824_v28 = vsel %vm3594_vm11, %v3819_v4, %v3823_v14  ;;  %v4924_v53 = vsel %vm3855_vm0, %v4891_v50, %v4923_v40 }
 0x899   :  { %v4981_v1 = vrot.slane %v3824_v28, 5  ;;  %v3829_v50 = vrot.slane %v15469_v7, 4  ;;  %v4322_v28 = vld [vmem:[%s16382_s7 + $0x808] sm:$0xff] }
 0x89a   :  { %v6815_v59 = vadd.f32 %v6814_v52, %v6723_v44  ;;  %v15465_v44 = vld [vmem:[#allocation2 + $0x98] sm:$0xff]  ;;  %v3927_v4 = vsel %vm3855_vm0, %v3922_v6, %v3926_v19  ;;  %7087 = vmatpush.msra.mxu2 %v4322_v28 }
 0x89b   :  { %v6906_v39 = vpop.f32.mrf.mxu0  ;;  %v3827_v30 = vrot.slane %v15465_v44, 4  ;;  %v4982_v6 = vsel %vm3855_vm0, %v4949_v36, %v4981_v1 }
 0x89c   :  { %6772 = vmatmul.f32.gmra.mxu2 %v4950_v51  ;;  %6864 = vmatmul.f32.gmra.mxu3 %v4952_v18  ;;  %v6907_v45 = vadd.f32 %v6906_v39, %v6815_v59  ;;  %v3929_v59 = vsel %vm3855_vm0, %v3924_v5, %v3928_v10  ;;  %v4983_v51 = vrot.slane %v3826_v49, 5  ;;  %v4953_v39 = vrot.slane %v3927_v4, 5  ;;  %v15493_v4 = vld [vmem:[#allocation2] sm:$0xff] }
 0x89d   :  { %v6998_v16 = vpop.f32.mrf.mxu1  ;;  %v3930_v5 = vrot.slane %v15440_v27, 5 }
 0x89e   :  { %v15471_v52 = vadd.f32 %v6998_v16, %v6907_v45  ;;  %6953 = vmatmul.f32.gmra.mxu0 %v4922_v21  ;;  %v4955_v16 = vrot.slane %v3929_v59, 5  ;;  %v4984_v45 = vsel %vm3855_vm0, %v4951_v58, %v4983_v51  ;;  %v4954_v36 = vsel %vm3855_vm0, %v4921_v33, %v4953_v39 }
 0x89f   :  { %v6725_v2 = vpop.f32.mrf.mxu2  ;;  %v6817_v32 = vpop.f32.mrf.mxu3 }
 0x8a0   :  { %7045 = vmatmul.f32.gmra.mxu1 %v4924_v53  ;;  %v6726_v23 = vadd.f32 %v6725_v2, %v14615_v54  ;;  %v3932_v54 = vrot.slane %v15444_v35, 5  ;;  %v3828_v53 = vsel %vm3594_vm11, %v3823_v14, %v3827_v30  ;;  %v3830_v2 = vsel %vm3594_vm11, %v3825_v46, %v3829_v50  ;;  %v15497_v35 = vld [vmem:[#allocation2 + $0x170] sm:$0xff]  ;;  %v4338_v14 = vld [vmem:[%s16382_s7 + $0x888] sm:$0xff] }
 0x8a1   :  { %v4956_v27 = vsel %vm3855_vm0, %v4923_v40, %v4955_v16  ;;  %v5013_v58 = vrot.slane %v3828_v53, 5  ;;  %v5015_v33 = vrot.slane %v3830_v2, 5  ;;  %v3831_v40 = vrot.slane %v15493_v4, 4  ;;  %7179 = vmatpush.msra.mxu3 %v4338_v14 }
 0x8a2   :  { %v15478_v18 = vadd.f32 %v6817_v32, %v6726_v23  ;;  %v3931_v23 = vsel %vm3855_vm0, %v3926_v19, %v3930_v5  ;;  %v3933_v32 = vsel %vm3855_vm0, %v3928_v10, %v3932_v54  ;;  %v3934_v10 = vrot.slane %v15465_v44, 5  ;;  %v15517_v44 = vld [vmem:[#allocation2 + $0x20] sm:$0xff] }
 0x8a3   :  { %v15487_v49 = vpop.f32.mrf.mxu0  ;;  %v4987_v53 = vrot.slane %v3933_v32, 5  ;;  %v5014_v19 = vsel %vm3855_vm0, %v4981_v1, %v5013_v58  ;;  %v5016_v57 = vsel %vm3855_vm0, %v4983_v51, %v5015_v33  ;;  %v3832_v2 = vsel %vm3594_vm11, %v3827_v30, %v3831_v40 }
 0x8a4   :  { %6775 = vmatmul.f32.gmra.mxu2 %v4982_v6  ;;  %6867 = vmatmul.f32.gmra.mxu3 %v4984_v45  ;;  %v3833_v6 = vrot.slane %v15497_v35, 4  ;;  %v5045_v51 = vrot.slane %v3832_v2, 5  ;;  %v3935_v30 = vsel %vm3855_vm0, %v3930_v5, %v3934_v10  ;;  %v4337_v5 = vld [vmem:[%s16382_s7 + $0x880] sm:$0xff] }
 0x8a5   :  { %v15489_v21 = vpop.f32.mrf.mxu1  ;;  %v4988_v1 = vsel %vm3855_vm0, %v4955_v16, %v4987_v53  ;;  %v3837_v16 = vrot.slane %v15517_v44, 4  ;;  %7180 = vmatpush.msra.mxu3 %v4337_v5 }
 0x8a6   :  { %6956 = vmatmul.f32.gmra.mxu0 %v4954_v36  ;;  %v4985_v36 = vrot.slane %v3931_v23, 5  ;;  %v3834_v0 = vsel %vm3594_vm11, %v3829_v50, %v3833_v6 }
 0x8a7   :  { %v6728_v59 = vpop.f32.mrf.mxu2  ;;  %v6820_v28 = vpop.f32.mrf.mxu3 }
 0x8a8   :  { %7048 = vmatmul.f32.gmra.mxu1 %v4956_v27  ;;  %v6729_v46 = vadd.f32 %v6728_v59, %v14673_v31  ;;  %v3936_v27 = vrot.slane %v15469_v7, 5  ;;  %v4986_v23 = vsel %vm3855_vm0, %v4953_v39, %v4985_v36 }
 0x8aa   :  { %v6821_v45 = vadd.f32 %v6820_v28, %v6729_v46  ;;  %v15513_v46 = vld [vmem:[#allocation2 + $0x1a8] sm:$0xff] }
 0x8ab   :  { %v6912_v31 = vpop.f32.mrf.mxu0  ;;  %v3835_v39 = vrot.slane %v15513_v46, 4 }
 0x8ac   :  { %6778 = vmatmul.f32.gmra.mxu2 %v5014_v19  ;;  %6870 = vmatmul.f32.gmra.mxu3 %v5016_v57  ;;  %v6913_v14 = vadd.f32 %v6912_v31, %v6821_v45  ;;  %v3937_v57 = vsel %vm3855_vm0, %v3932_v54, %v3936_v27  ;;  %v5047_v45 = vrot.slane %v3834_v0, 5  ;;  %v5017_v31 = vrot.slane %v3935_v30, 5 }
 0x8ad   :  { %v7004_v59 = vpop.f32.mrf.mxu1  ;;  %v5046_v54 = vsel %vm3855_vm0, %v5013_v58, %v5045_v51  ;;  %v3940_v0 = vrot.slane %v15497_v35, 5 }
 0x8ae   :  { %v15519_v7 = vadd.f32 %v7004_v59, %v6913_v14  ;;  %6959 = vmatmul.f32.gmra.mxu0 %v4986_v23  ;;  %v5019_v59 = vrot.slane %v3937_v57, 5  ;;  %v4321_v14 = vld [vmem:[%s16382_s7 + $0x800] sm:$0xff]  ;;  %v5048_v2 = vsel %vm3855_vm0, %v5015_v33, %v5047_v45  ;;  %v3838_v57 = vsel %vm3594_vm11, %v3833_v6, %v3837_v16 }
 0x8af   :  { %v6731_v32 = vpop.f32.mrf.mxu2  ;;  %v6823_v28 = vpop.f32.mrf.mxu3  ;;  %7088 = vmatpush.msra.mxu2 %v4321_v14  ;;  %v5018_v58 = vsel %vm3855_vm0, %v4985_v36, %v5017_v31 }
 0x8b0   :  { %7051 = vmatmul.f32.gmra.mxu1 %v4988_v1  ;;  %v6732_v50 = vadd.f32 %v6731_v32, %v14762_v17  ;;  %v3938_v17 = vrot.slane %v15493_v4, 5  ;;  %v3836_v32 = vsel %vm3594_vm11, %v3831_v40, %v3835_v39 }
 0x8b1   :  { %v5077_v33 = vrot.slane %v3836_v32, 5  ;;  %v3944_v32 = vrot.slane %v15517_v44, 5 }
 0x8b2   :  { %v6824_v19 = vadd.f32 %v6823_v28, %v6732_v50  ;;  %v15538_v50 = vld [vmem:[#allocation2 + $0xc8] sm:$0xff]  ;;  %v5020_v28 = vsel %vm3855_vm0, %v4987_v53, %v5019_v59  ;;  %v3939_v40 = vsel %vm3855_vm0, %v3934_v10, %v3938_v17  ;;  %v3841_v53 = vrot.slane %v15542_v20, 4 }
 0x8b3   :  { %v6915_v23 = vpop.f32.mrf.mxu0  ;;  %v3839_v36 = vrot.slane %v15538_v50, 4  ;;  %v5049_v47 = vrot.slane %v3939_v40, 5 }
 0x8b4   :  { %6781 = vmatmul.f32.gmra.mxu2 %v5046_v54  ;;  %6873 = vmatmul.f32.gmra.mxu3 %v5048_v2  ;;  %v6916_v30 = vadd.f32 %v6915_v23, %v6824_v19  ;;  %v3941_v19 = vsel %vm3855_vm0, %v3936_v27, %v3940_v0  ;;  %v5079_v2 = vrot.slane %v3838_v57, 5 }
 0x8b5   :  { %v7007_v1 = vpop.f32.mrf.mxu1  ;;  %v3840_v57 = vsel %vm3594_vm11, %v3835_v39, %v3839_v36  ;;  %v5050_v40 = vsel %vm3855_vm0, %v5017_v31, %v5049_v47 }
 0x8b6   :  { %v15544_v14 = vadd.f32 %v7007_v1, %v6916_v30  ;;  %6962 = vmatmul.f32.gmra.mxu0 %v5018_v58  ;;  %v5051_v1 = vrot.slane %v3941_v19, 5  ;;  %v5078_v30 = vsel %vm3855_vm0, %v5045_v51, %v5077_v33  ;;  %v3942_v58 = vrot.slane %v15513_v46, 5 }
 0x8b7   :  { %v6734_v5 = vpop.f32.mrf.mxu2  ;;  %v6826_v54 = vpop.f32.mrf.mxu3  ;;  %v5080_v10 = vsel %vm3855_vm0, %v5047_v45, %v5079_v2 }
 0x8b8   :  { %7054 = vmatmul.f32.gmra.mxu1 %v5020_v28  ;;  %v6735_v6 = vadd.f32 %v6734_v5, %v14853_v34  ;;  %v3842_v5 = vsel %vm3594_vm11, %v3837_v16, %v3841_v53  ;;  %v5052_v19 = vsel %vm3855_vm0, %v5019_v59, %v5051_v1  ;;  %v3943_v45 = vsel %vm3855_vm0, %v3938_v17, %v3942_v58 }
 0x8b9   :  { %v5081_v59 = vrot.slane %v3943_v45, 5 }
 0x8ba   :  { %v6827_v23 = vadd.f32 %v6826_v54, %v6735_v6  ;;  %v5109_v54 = vrot.slane %v3840_v57, 5  ;;  %v3948_v57 = vrot.slane %v15542_v20, 5 }
 0x8bb   :  { %v6918_v27 = vpop.f32.mrf.mxu0  ;;  %v5082_v45 = vsel %vm3855_vm0, %v5049_v47, %v5081_v59 }
 0x8bc   :  { %6784 = vmatmul.f32.gmra.mxu2 %v5078_v30  ;;  %6876 = vmatmul.f32.gmra.mxu3 %v5080_v10  ;;  %v6919_v28 = vadd.f32 %v6918_v27, %v6827_v23  ;;  %v3945_v30 = vsel %vm3855_vm0, %v3940_v0, %v3944_v32  ;;  %v5111_v23 = vrot.slane %v3842_v5, 5  ;;  %v15564_v27 = vld [vmem:[#allocation2 + $0x90] sm:$0xff] }
 0x8bd   :  { %v7010_v34 = vpop.f32.mrf.mxu1  ;;  %v3843_v16 = vrot.slane %v15564_v27, 4 }
 0x8be   :  { %v15559_v51 = vadd.f32 %v7010_v34, %v6919_v28  ;;  %6965 = vmatmul.f32.gmra.mxu0 %v5050_v40  ;;  %v5083_v34 = vrot.slane %v3945_v30, 5  ;;  %v5110_v28 = vsel %vm3855_vm0, %v5077_v33, %v5109_v54  ;;  %v3946_v40 = vrot.slane %v15538_v50, 5  ;;  %v3200_v30 = vld [vmem:[#allocation2 + $0x28] sm:$0x1] }
 0x8bf   :  { %v6737_v6 = vpop.f32.mrf.mxu2  ;;  %v6829_v10 = vpop.f32.mrf.mxu3  ;;  %v5112_v17 = vsel %vm3855_vm0, %v5079_v2, %v5111_v23  ;;  %v3844_v5 = vsel %vm3594_vm11, %v3839_v36, %v3843_v16  ;;  %v3949_v36 = vsel %vm3855_vm0, %v3944_v32, %v3948_v57  ;;  %v3849_v11 = vrot.slane %v3200_v30, 4  ;;  %v3206_v30 = vld [vmem:[#allocation2 + $0x78] sm:$0xf8] }
 0x8c0   :  { %7057 = vmatmul.f32.gmra.mxu1 %v5052_v19  ;;  %v6738_v39 = vadd.f32 %v6737_v6, %v14939_v13  ;;  %v3846_v6 = vsel %vm3594_vm11, %v3841_v53, %v3843_v16  ;;  %v5084_v33 = vsel %vm3855_vm0, %v5051_v1, %v5083_v34  ;;  %v5145_v2 = vrot.slane %v3844_v5, 5 }
 0x8c1   :  { %v5147_v53 = vrot.slane %v3846_v6, 5  ;;  %v5115_v1 = vrot.slane %v3949_v36, 5  ;;  %v3205_v6 = vld [vmem:[#allocation2 + $0xf8] sm:$0xf8] }
 0x8c2   :  { %v6830_v31 = vadd.f32 %v6829_v10, %v6738_v39  ;;  %v3199_v39 = vld [vmem:[#allocation2 + $0x110] sm:$0x1] }
 0x8c3   :  { %v6921_v0 = vpop.f32.mrf.mxu0  ;;  %v5148_v5 = vsel %vm3855_vm0, %v5111_v23, %v5147_v53 }
 0x8c4   :  { %6787 = vmatmul.f32.gmra.mxu2 %v5110_v28  ;;  %6879 = vmatmul.f32.gmra.mxu3 %v5112_v17  ;;  %v6922_v19 = vadd.f32 %v6921_v0, %v6830_v31  ;;  %v3947_v28 = vsel %vm3855_vm0, %v3942_v58, %v3946_v40  ;;  %v3847_v0 = vrot.slane %v3199_v39, 4 }
 0x8c5   :  { %v7013_v13 = vpop.f32.mrf.mxu1  ;;  %v5113_v41 = vrot.slane %v3947_v28, 5 }
 0x8c6   :  { %v15575_v10 = vadd.f32 %v7013_v13, %v6922_v19  ;;  %6968 = vmatmul.f32.gmra.mxu0 %v5082_v45  ;;  %v5146_v13 = vsel %vm3855_vm0, %v5109_v54, %v5145_v2  ;;  %v3950_v19 = vrot.slane %v15564_v27, 5  ;;  %v3848_v32 = vsel %vm3594_vm11, %v3843_v16, %v3847_v0 }
 0x8c7   :  { %v6740_v22 = vpop.f32.mrf.mxu2  ;;  %v6832_v17 = vpop.f32.mrf.mxu3  ;;  %v5114_v39 = vsel %vm3855_vm0, %v5081_v59, %v5113_v41  ;;  %v5181_v23 = vrot.slane %v3848_v32, 5  ;;  %v7936_v59 = vld [vmem:[#allocation2 + $0x100] sm:$0xff] }
 0x8c8   :  { %7060 = vmatmul.f32.gmra.mxu1 %v5084_v33  ;;  %v6741_v31 = vadd.f32 %v6740_v22, %v15004_v48  ;;  %v3850_v48 = vsel %vm3594_vm11, %v3843_v16, %v3849_v11  ;;  %v5116_v33 = vsel %vm3855_vm0, %v5083_v34, %v5115_v1  ;;  %v3951_v36 = vsel %vm3855_vm0, %v3946_v40, %v3950_v19  ;;  %v3204_v34 = vld [vmem:[#allocation2 + $0x28] sm:$0x3] }
 0x8c9   :  { %v5183_v16 = vrot.slane %v3850_v48, 5  ;;  %v5182_v40 = vsel %vm3855_vm0, %v5145_v2, %v5181_v23 }
 0x8ca   :  { %v6833_v47 = vadd.f32 %v6832_v17, %v6741_v31  ;;  %v3953_v31 = vsel %vm3855_vm0, %v3948_v57, %v3950_v19  ;;  %v3203_v17 = vld [vmem:[#allocation2 + $0x110] sm:$0x3]  ;;  %v3956_v57 = vrot.slane %v3204_v34, 5 }
 0x8cb   :  { %v6924_v45 = vpop.f32.mrf.mxu0  ;;  %v5151_v32 = vrot.slane %v3953_v31, 5 }
 0x8cc   :  { %6790 = vmatmul.f32.gmra.mxu2 %v5146_v13  ;;  %6882 = vmatmul.f32.gmra.mxu3 %v5148_v5  ;;  %v6925_v22 = vadd.f32 %v6924_v45, %v6833_v47  ;;  %v3963_v47 = vrot.slane %v3205_v6, 6  ;;  %v3965_v13 = vrot.slane %v7936_v59, 6  ;;  %v3964_v5 = vrot.slane %v3206_v30, 6  ;;  %v7937_v45 = vld [vmem:[#allocation2 + $0x130] sm:$0xff] }
 0x8cd   :  { %v7016_v58 = vpop.f32.mrf.mxu1 }
 0x8ce   :  { %v15587_v54 = vadd.f32 %v7016_v58, %v6925_v22  ;;  %6971 = vmatmul.f32.gmra.mxu0 %v5114_v39  ;;  %v3967_v58 = vrot.slane %v7937_v45, 6  ;;  %v5149_v39 = vrot.slane %v3951_v36, 5  ;;  %v3966_v6 = vsel %vm3962_vm12, %v3963_v47, %v3965_v13 }
 0x8cf   :  { %v6743_v28 = vpop.f32.mrf.mxu2  ;;  %v6835_v11 = vpop.f32.mrf.mxu3  ;;  %v5152_v36 = vsel %vm3855_vm0, %v5115_v1, %v5151_v32  ;;  %v4409_v31 = vrot.slane %v3963_v47, 5  ;;  %v4410_v23 = vrot.slane %v3966_v6, 5  ;;  %v4412_v34 = vrot.slane %v3964_v5, 5 }
 0x8d0   :  { %7063 = vmatmul.f32.gmra.mxu1 %v5116_v33  ;;  %v6744_v0 = vadd.f32 %v6743_v28, %v15033_v55  ;;  %v3954_v33 = vrot.slane %v3203_v17, 5  ;;  %v5184_v55 = vsel %vm3855_vm0, %v5147_v53, %v5183_v16  ;;  %v3968_v30 = vsel %vm3962_vm12, %v3964_v5, %v3967_v58 }
 0x8d1   :  { %v5150_v45 = vsel %vm3855_vm0, %v5113_v41, %v5149_v39  ;;  %v3957_v17 = vsel %vm3855_vm0, %v3950_v19, %v3956_v57 }
 0x8d2   :  { %v6836_v22 = vadd.f32 %v6835_v11, %v6744_v0  ;;  %v3955_v53 = vsel %vm3855_vm0, %v3950_v19, %v3954_v33 }
 0x8d3   :  { %v6927_v28 = vpop.f32.mrf.mxu0 }
 0x8d4   :  { %6793 = vmatmul.f32.gmra.mxu2 %v5182_v40  ;;  %6885 = vmatmul.f32.gmra.mxu3 %v5184_v55  ;;  %v6928_v59 = vadd.f32 %v6927_v28, %v6836_v22  ;;  %v4413_v22 = vrot.slane %v3968_v30, 5  ;;  %v7938_v40 = vld [vmem:[#allocation2 + $0xe8] sm:$0xff]  ;;  %v7939_v55 = vld [vmem:[#allocation2 + $0x40] sm:$0xff]  ;;  %v5185_v28 = vrot.slane %v3955_v53, 5 }
 0x8d5   :  { %v7019_v48 = vpop.f32.mrf.mxu1  ;;  %v3969_v41 = vrot.slane %v7938_v40, 6  ;;  %v3971_v1 = vrot.slane %v7939_v55, 6 }
 0x8d6   :  { %v15598_v0 = vadd.f32 %v7019_v48, %v6928_v59  ;;  %6974 = vmatmul.f32.gmra.mxu0 %v5150_v45  ;;  %v5187_v48 = vrot.slane %v3957_v17, 5  ;;  %v4411_v59 = vsel %vm3855_vm0, %v4409_v31, %v4410_v23  ;;  %v4414_v33 = vsel %vm3855_vm0, %v4412_v34, %v4413_v22  ;;  %v7941_v34 = vld [vmem:[#allocation2 + $0x168] sm:$0xff] }
 0x8d7   :  { %v6746_v2 = vpop.f32.mrf.mxu2  ;;  %v6838_v16 = vpop.f32.mrf.mxu3  ;;  %v3970_v19 = vsel %vm3962_vm12, %v3965_v13, %v3969_v41  ;;  %v3972_v5 = vsel %vm3962_vm12, %v3967_v58, %v3971_v1  ;;  %v5186_v57 = vsel %vm3855_vm0, %v5149_v39, %v5185_v28  ;;  %v3975_v40 = vrot.slane %v7941_v34, 6 }
 0x8d8   :  { %7066 = vmatmul.f32.gmra.mxu1 %v5152_v36  ;;  %v6747_v11 = vadd.f32 %v6746_v2, %v15063_v29  ;;  %v5188_v30 = vsel %vm3855_vm0, %v5151_v32, %v5187_v48  ;;  %v4445_v31 = vrot.slane %v3970_v19, 5 }
 0x8da   :  { %v6839_v47 = vadd.f32 %v6838_v16, %v6747_v11  ;;  %v4447_v11 = vrot.slane %v3972_v5, 5  ;;  %v7940_v16 = vld [vmem:[#allocation2 + $0xc0] sm:$0xff]  ;;  %v4446_v58 = vsel %vm3855_vm0, %v4410_v23, %v4445_v31  ;;  %v7942_v23 = vld [vmem:[#allocation2 + $0x118] sm:$0xff] }
 0x8db   :  { %v6930_v45 = vpop.f32.mrf.mxu0  ;;  %v3973_v13 = vrot.slane %v7940_v16, 6  ;;  %v3977_v5 = vrot.slane %v7942_v23, 6 }
 0x8dc   :  { %7089 = vmatmul.f32.vlgmr.msra.gmra.mxu2 %v4411_v59  ;;  %v6931_v29 = vadd.f32 %v6930_v45, %v6839_v47  ;;  %7181 = vmatmul.f32.vlgmr.msra.gmra.mxu3 %v4414_v33  ;;  %v4448_v32 = vsel %vm3855_vm0, %v4413_v22, %v4447_v11 }
 0x8dd   :  { %v7022_v6 = vpop.f32.mrf.mxu1  ;;  %v3974_v28 = vsel %vm3962_vm12, %v3969_v41, %v3973_v13 }
 0x8de   :  { %v15609_v36 = vadd.f32 %v7022_v6, %v6931_v29  ;;  %6977 = vmatmul.f32.gmra.mxu0 %v5186_v57  ;;  %v4477_v6 = vrot.slane %v3974_v28, 5  ;;  %v7943_v57 = vld [vmem:[#allocation2 + $0x120] sm:$0xff] }
 0x8df   :  { %v6749_v2 = vpop.f32.mrf.mxu2  ;;  %v6841_v17 = vpop.f32.mrf.mxu3 }
 0x8e0   :  { %7069 = vmatmul.f32.gmra.mxu1 %v5188_v30  ;;  %v6750_v53 = vadd.f32 %v6749_v2, %v15088_v15  ;;  %v3976_v15 = vsel %vm3962_vm12, %v3971_v1, %v3975_v40  ;;  %v3979_v30 = vrot.slane %v7943_v57, 6  ;;  %v4478_v22 = vsel %vm3855_vm0, %v4445_v31, %v4477_v6  ;;  %v7944_v31 = vld [vmem:[#allocation2 + $0x60] sm:$0xff] }
 0x8e1   :  { %v4479_v29 = vrot.slane %v3976_v15, 5  ;;  %v3981_v28 = vrot.slane %v7944_v31, 6 }
 0x8e2   :  { %v6842_v55 = vadd.f32 %v6841_v17, %v6750_v53  ;;  %v3978_v17 = vsel %vm3962_vm12, %v3973_v13, %v3977_v5 }
 0x8e3   :  { %v6933_v39 = vpop.f32.mrf.mxu0  ;;  %v4480_v1 = vsel %vm3855_vm0, %v4447_v11, %v4479_v29 }
 0x8e4   :  { %7092 = vmatmul.f32.gmra.mxu2 %v4446_v58  ;;  %v6934_v48 = vadd.f32 %v6933_v39, %v6842_v55  ;;  %7184 = vmatmul.f32.gmra.mxu3 %v4448_v32  ;;  %v4509_v58 = vrot.slane %v3978_v17, 5 }
 0x8e5   :  { %v7025_v47 = vpop.f32.mrf.mxu1 }
 0x8e6   :  { %v15616_v59 = vadd.f32 %v7025_v47, %v6934_v48  ;;  %v7945_v48 = vld [vmem:[#allocation2 + $0x188] sm:$0xff]  ;;  %v4510_v11 = vsel %vm3855_vm0, %v4477_v6, %v4509_v58  ;;  %v7946_v6 = vld [vmem:[#allocation2 + $0x198] sm:$0xff] }
 0x8e7   :  { %v6752_v45 = vpop.f32.mrf.mxu2  ;;  %v6844_v19 = vpop.f32.mrf.mxu3  ;;  %v3983_v15 = vrot.slane %v7945_v48, 6  ;;  %v3985_v17 = vrot.slane %v7946_v6, 6 }
 0x8e8   :  { %v6753_v33 = vadd.f32 %v6752_v45, %v15113_v26  ;;  %v3980_v26 = vsel %vm3962_vm12, %v3975_v40, %v3979_v30 }
 0x8e9   :  { %v4511_v32 = vrot.slane %v3980_v26, 5 }
 0x8ea   :  { %v6845_v2 = vadd.f32 %v6844_v19, %v6753_v33  ;;  %v3982_v19 = vsel %vm3962_vm12, %v3977_v5, %v3981_v28 }
 0x8eb   :  { %v6936_v41 = vpop.f32.mrf.mxu0  ;;  %v4512_v40 = vsel %vm3855_vm0, %v4479_v29, %v4511_v32 }
 0x8ec   :  { %7095 = vmatmul.f32.gmra.mxu2 %v4478_v22  ;;  %v6937_v16 = vadd.f32 %v6936_v41, %v6845_v2  ;;  %7187 = vmatmul.f32.gmra.mxu3 %v4480_v1  ;;  %v4541_v22 = vrot.slane %v3982_v19, 5 }
 0x8ed   :  { %v7028_v53 = vpop.f32.mrf.mxu1 }
 0x8ee   :  { %v15623_v34 = vadd.f32 %v7028_v53, %v6937_v16  ;;  %v7947_v16 = vld [vmem:[#allocation2 + $0x1b8] sm:$0xff]  ;;  %v4542_v29 = vsel %vm3855_vm0, %v4509_v58, %v4541_v22  ;;  %v7948_v58 = vld [vmem:[#allocation2 + $0xd0] sm:$0xff] }
 0x8ef   :  { %v6755_v55 = vpop.f32.mrf.mxu2  ;;  %v6847_v47 = vpop.f32.mrf.mxu3  ;;  %v3987_v26 = vrot.slane %v7947_v16, 6  ;;  %v3989_v19 = vrot.slane %v7948_v58, 6 }
 0x8f0   :  { %v6756_v39 = vadd.f32 %v6755_v55, %v15139_v56  ;;  %v3984_v56 = vsel %vm3962_vm12, %v3979_v30, %v3983_v15 }
 0x8f1   :  { %v4543_v1 = vrot.slane %v3984_v56, 5 }
 0x8f2   :  { %v6848_v45 = vadd.f32 %v6847_v47, %v6756_v39  ;;  %v3986_v47 = vsel %vm3962_vm12, %v3981_v28, %v3985_v17 }
 0x8f3   :  { %v6939_v13 = vpop.f32.mrf.mxu0  ;;  %v4544_v30 = vsel %vm3855_vm0, %v4511_v32, %v4543_v1 }
 0x8f4   :  { %7098 = vmatmul.f32.gmra.mxu2 %v4510_v11  ;;  %v6940_v23 = vadd.f32 %v6939_v13, %v6848_v45  ;;  %7190 = vmatmul.f32.gmra.mxu3 %v4512_v40  ;;  %v4573_v11 = vrot.slane %v3986_v47, 5 }
 0x8f5   :  { %v7031_v33 = vpop.f32.mrf.mxu1 }
 0x8f6   :  { %v15630_v57 = vadd.f32 %v7031_v33, %v6940_v23  ;;  %v7949_v23 = vld [vmem:[#allocation2 + $0x138] sm:$0xff]  ;;  %v4574_v32 = vsel %vm3855_vm0, %v4541_v22, %v4573_v11  ;;  %v7950_v22 = vld [vmem:[#allocation2 + $0x108] sm:$0xff] }
 0x8f7   :  { %v6758_v2 = vpop.f32.mrf.mxu2  ;;  %v6850_v53 = vpop.f32.mrf.mxu3  ;;  %v3991_v56 = vrot.slane %v7949_v23, 6  ;;  %v3993_v47 = vrot.slane %v7950_v22, 6 }
 0x8f8   :  { %v6759_v41 = vadd.f32 %v6758_v2, %v15163_v61  ;;  %v3988_v61 = vsel %vm3962_vm12, %v3983_v15, %v3987_v26  ;;  %v3990_v15 = vsel %vm3962_vm12, %v3985_v17, %v3989_v19 }
 0x8f9   :  { %v4575_v40 = vrot.slane %v3988_v61, 5  ;;  %v3992_v6 = vsel %vm3962_vm12, %v3987_v26, %v3991_v56 }
 0x8fa   :  { %v6851_v55 = vadd.f32 %v6850_v53, %v6759_v41 }
 0x8fb   :  { %v6942_v5 = vpop.f32.mrf.mxu0  ;;  %v4576_v41 = vsel %vm3855_vm0, %v4543_v1, %v4575_v40 }
 0x8fc   :  { %7101 = vmatmul.f32.gmra.mxu2 %v4542_v29  ;;  %v6943_v31 = vadd.f32 %v6942_v5, %v6851_v55  ;;  %7193 = vmatmul.f32.gmra.mxu3 %v4544_v30  ;;  %v4605_v29 = vrot.slane %v3990_v15, 5  ;;  %v4607_v30 = vrot.slane %v3992_v6, 5 }
 0x8fd   :  { %v7034_v39 = vpop.f32.mrf.mxu1 }
 0x8fe   :  { %v15637_v48 = vadd.f32 %v7034_v39, %v6943_v31  ;;  %v7951_v31 = vld [vmem:[#allocation2 + $0x10] sm:$0xff]  ;;  %v4606_v17 = vsel %vm3855_vm0, %v4573_v11, %v4605_v29  ;;  %v4608_v26 = vsel %vm3855_vm0, %v4575_v40, %v4607_v30 }
 0x8ff   :  { %v6761_v45 = vpop.f32.mrf.mxu2  ;;  %v6853_v33 = vpop.f32.mrf.mxu3  ;;  %v3995_v61 = vrot.slane %v7951_v31, 6  ;;  %v7955_v31 = vld [vmem:[#allocation2 + $0x80] sm:$0xff] }
 0x900   :  { %v6762_v13 = vadd.f32 %v6761_v45, %v15186_v25  ;;  %v3994_v45 = vsel %vm3962_vm12, %v3989_v19, %v3993_v47 }
 0x902   :  { %v6854_v2 = vadd.f32 %v6853_v33, %v6762_v13  ;;  %v3996_v13 = vsel %vm3962_vm12, %v3991_v56, %v3995_v61 }
 0x903   :  { %v6945_v28 = vpop.f32.mrf.mxu0 }
 0x904   :  { %7104 = vmatmul.f32.gmra.mxu2 %v4574_v32  ;;  %v6946_v53 = vadd.f32 %v6945_v28, %v6854_v2  ;;  %7196 = vmatmul.f32.gmra.mxu3 %v4576_v41  ;;  %v4639_v2 = vrot.slane %v3996_v13, 5  ;;  %v7952_v32 = vld [vmem:[#allocation2 + $0x8] sm:$0xff]  ;;  %v7953_v41 = vld [vmem:[#allocation2 + $0x150] sm:$0xff] }
 0x905   :  { %v7037_v25 = vpop.f32.mrf.mxu1  ;;  %v3997_v28 = vrot.slane %v7952_v32, 6  ;;  %v3999_v15 = vrot.slane %v7953_v41, 6  ;;  %v7957_v41 = vld [vmem:[#allocation2 + $0x38] sm:$0xff] }
 0x906   :  { %v15644_v16 = vadd.f32 %v7037_v25, %v6946_v53  ;;  %v4640_v40 = vsel %vm3855_vm0, %v4607_v30, %v4639_v2 }
 0x907   :  { %v6764_v55 = vpop.f32.mrf.mxu2  ;;  %v6856_v39 = vpop.f32.mrf.mxu3  ;;  %v3998_v19 = vsel %vm3962_vm12, %v3993_v47, %v3997_v28  ;;  %v4000_v56 = vsel %vm3962_vm12, %v3995_v61, %v3999_v15 }
 0x908   :  { %v6765_v5 = vadd.f32 %v6764_v55, %v15211_v38  ;;  %v4637_v38 = vrot.slane %v3994_v45, 5 }
 0x90a   :  { %v15647_v1 = vadd.f32 %v6856_v39, %v6765_v5  ;;  %v4638_v11 = vsel %vm3855_vm0, %v4605_v29, %v4637_v38  ;;  %v4671_v5 = vrot.slane %v4000_v56, 5  ;;  %v7954_v39 = vld [vmem:[#allocation2 + $0xa0] sm:$0xff] }
 0x90b   :  { %v4001_v22 = vrot.slane %v7954_v39, 6 }
 0x90c   :  { %7107 = vmatmul.f32.gmra.mxu2 %v4606_v17  ;;  %7199 = vmatmul.f32.gmra.mxu3 %v4608_v26  ;;  %v4003_v17 = vrot.slane %v7955_v31, 6  ;;  %v4672_v30 = vsel %vm3855_vm0, %v4639_v2, %v4671_v5  ;;  %v7959_v31 = vld [vmem:[#allocation2 + $0x158] sm:$0xff] }
 0x90d   :  { %v4002_v47 = vsel %vm3962_vm12, %v3997_v28, %v4001_v22 }
 0x90e   :  { %v4004_v61 = vsel %vm3962_vm12, %v3999_v15, %v4003_v17 }
 0x90f   :  { %v6767_v33 = vpop.f32.mrf.mxu2  ;;  %v6859_v23 = vpop.f32.mrf.mxu3 }
 0x910   :  { %v6768_v58 = vadd.f32 %v6767_v33, %v15232_v24  ;;  %v4669_v24 = vrot.slane %v3998_v19, 5 }
 0x912   :  { %v15654_v53 = vadd.f32 %v6859_v23, %v6768_v58  ;;  %v4670_v29 = vsel %vm3855_vm0, %v4637_v38, %v4669_v24  ;;  %v4703_v58 = vrot.slane %v4004_v61, 5  ;;  %v7956_v23 = vld [vmem:[#allocation2 + $0x128] sm:$0xff] }
 0x913   :  { %v4005_v32 = vrot.slane %v7956_v23, 6 }
 0x914   :  { %7110 = vmatmul.f32.gmra.mxu2 %v4638_v11  ;;  %7202 = vmatmul.f32.gmra.mxu3 %v4640_v40  ;;  %v4007_v11 = vrot.slane %v7957_v41, 6  ;;  %v4704_v2 = vsel %vm3855_vm0, %v4671_v5, %v4703_v58  ;;  %v7961_v41 = vld [vmem:[#allocation2 + $0x68] sm:$0xff] }
 0x915   :  { %v4006_v28 = vsel %vm3962_vm12, %v4001_v22, %v4005_v32 }
 0x916   :  { %v4008_v15 = vsel %vm3962_vm12, %v4003_v17, %v4007_v11 }
 0x917   :  { %v6770_v6 = vpop.f32.mrf.mxu2  ;;  %v6862_v55 = vpop.f32.mrf.mxu3 }
 0x918   :  { %v6771_v25 = vadd.f32 %v6770_v6, %v15258_v37  ;;  %v4701_v37 = vrot.slane %v4002_v47, 5 }
 0x91a   :  { %v15661_v26 = vadd.f32 %v6862_v55, %v6771_v25  ;;  %v4702_v38 = vsel %vm3855_vm0, %v4669_v24, %v4701_v37  ;;  %v4735_v25 = vrot.slane %v4008_v15, 5  ;;  %v7958_v55 = vld [vmem:[#allocation2 + $0x88] sm:$0xff] }
 0x91b   :  { %v4009_v39 = vrot.slane %v7958_v55, 6 }
 0x91c   :  { %7113 = vmatmul.f32.gmra.mxu2 %v4670_v29  ;;  %7205 = vmatmul.f32.gmra.mxu3 %v4672_v30  ;;  %v4011_v29 = vrot.slane %v7959_v31, 6  ;;  %v4736_v5 = vsel %vm3855_vm0, %v4703_v58, %v4735_v25  ;;  %v7963_v31 = vld [vmem:[#allocation2 + $0x140] sm:$0xff] }
 0x91d   :  { %v4010_v22 = vsel %vm3962_vm12, %v4005_v32, %v4009_v39 }
 0x91e   :  { %v4012_v17 = vsel %vm3962_vm12, %v4007_v11, %v4011_v29 }
 0x91f   :  { %v6773_v45 = vpop.f32.mrf.mxu2  ;;  %v6865_v33 = vpop.f32.mrf.mxu3 }
 0x920   :  { %v6774_v13 = vadd.f32 %v6773_v45, %v15283_v3  ;;  %v4733_v3 = vrot.slane %v4006_v28, 5 }
 0x922   :  { %v15668_v40 = vadd.f32 %v6865_v33, %v6774_v13  ;;  %v4734_v24 = vsel %vm3855_vm0, %v4701_v37, %v4733_v3  ;;  %v4767_v13 = vrot.slane %v4012_v17, 5  ;;  %v7960_v33 = vld [vmem:[#allocation2 + $0x180] sm:$0xff] }
 0x923   :  { %v4013_v23 = vrot.slane %v7960_v33, 6 }
 0x924   :  { %7116 = vmatmul.f32.gmra.mxu2 %v4702_v38  ;;  %7208 = vmatmul.f32.gmra.mxu3 %v4704_v2  ;;  %v4015_v38 = vrot.slane %v7961_v41, 6  ;;  %v4768_v58 = vsel %vm3855_vm0, %v4735_v25, %v4767_v13  ;;  %v7965_v41 = vld [vmem:[#allocation2 + $0x50] sm:$0xff] }
 0x925   :  { %v4014_v32 = vsel %vm3962_vm12, %v4009_v39, %v4013_v23 }
 0x926   :  { %v4016_v11 = vsel %vm3962_vm12, %v4011_v29, %v4015_v38 }
 0x927   :  { %v6776_v19 = vpop.f32.mrf.mxu2  ;;  %v6868_v6 = vpop.f32.mrf.mxu3 }
 0x928   :  { %v6777_v56 = vadd.f32 %v6776_v19, %v15304_v62  ;;  %v4765_v62 = vrot.slane %v4010_v22, 5 }
 0x92a   :  { %v15675_v30 = vadd.f32 %v6868_v6, %v6777_v56  ;;  %v4766_v37 = vsel %vm3855_vm0, %v4733_v3, %v4765_v62  ;;  %v4799_v56 = vrot.slane %v4016_v11, 5  ;;  %v7962_v6 = vld [vmem:[#allocation2 + $0x178] sm:$0xff] }
 0x92b   :  { %v4017_v55 = vrot.slane %v7962_v6, 6 }
 0x92c   :  { %7119 = vmatmul.f32.gmra.mxu2 %v4734_v24  ;;  %7211 = vmatmul.f32.gmra.mxu3 %v4736_v5  ;;  %v4019_v24 = vrot.slane %v7963_v31, 6  ;;  %v4800_v25 = vsel %vm3855_vm0, %v4767_v13, %v4799_v56  ;;  %v7967_v31 = vld [vmem:[#allocation2 + $0xa8] sm:$0xff] }
 0x92d   :  { %v4018_v39 = vsel %vm3962_vm12, %v4013_v23, %v4017_v55 }
 0x92e   :  { %v4020_v29 = vsel %vm3962_vm12, %v4015_v38, %v4019_v24 }
 0x92f   :  { %v6779_v47 = vpop.f32.mrf.mxu2  ;;  %v6871_v45 = vpop.f32.mrf.mxu3 }
 0x930   :  { %v6780_v61 = vadd.f32 %v6779_v47, %v15330_v60  ;;  %v4797_v60 = vrot.slane %v4014_v32, 5 }
 0x932   :  { %v15682_v2 = vadd.f32 %v6871_v45, %v6780_v61  ;;  %v4798_v3 = vsel %vm3855_vm0, %v4765_v62, %v4797_v60  ;;  %v4831_v61 = vrot.slane %v4020_v29, 5  ;;  %v7964_v45 = vld [vmem:[#allocation2 + $0xd8] sm:$0xff] }
 0x933   :  { %v4021_v33 = vrot.slane %v7964_v45, 6 }
 0x934   :  { %7122 = vmatmul.f32.gmra.mxu2 %v4766_v37  ;;  %7214 = vmatmul.f32.gmra.mxu3 %v4768_v58  ;;  %v4023_v37 = vrot.slane %v7965_v41, 6  ;;  %v4832_v13 = vsel %vm3855_vm0, %v4799_v56, %v4831_v61  ;;  %v7969_v41 = vld [vmem:[#allocation2 + $0x1c0] sm:$0xff] }
 0x935   :  { %v4022_v23 = vsel %vm3962_vm12, %v4017_v55, %v4021_v33 }
 0x936   :  { %v4024_v38 = vsel %vm3962_vm12, %v4019_v24, %v4023_v37 }
 0x937   :  { %v6782_v28 = vpop.f32.mrf.mxu2  ;;  %v6874_v19 = vpop.f32.mrf.mxu3 }
 0x938   :  { %v6783_v15 = vadd.f32 %v6782_v28, %v15355_v9  ;;  %v4829_v9 = vrot.slane %v4018_v39, 5 }
 0x93a   :  { %v15689_v5 = vadd.f32 %v6874_v19, %v6783_v15  ;;  %v4830_v62 = vsel %vm3855_vm0, %v4797_v60, %v4829_v9  ;;  %v4863_v15 = vrot.slane %v4024_v38, 5  ;;  %v7966_v19 = vld [vmem:[#allocation2 + $0x1c8] sm:$0xff] }
 0x93b   :  { %v4025_v6 = vrot.slane %v7966_v19, 6  ;;  %v7970_v19 = vld [vmem:[#allocation2 + $0x48] sm:$0xff] }
 0x93c   :  { %7125 = vmatmul.f32.gmra.mxu2 %v4798_v3  ;;  %7217 = vmatmul.f32.gmra.mxu3 %v4800_v25  ;;  %v4027_v3 = vrot.slane %v7967_v31, 6  ;;  %v4864_v56 = vsel %vm3855_vm0, %v4831_v61, %v4863_v15  ;;  %v4033_v31 = vrot.slane %v7970_v19, 6 }
 0x93d   :  { %v4026_v55 = vsel %vm3962_vm12, %v4021_v33, %v4025_v6 }
 0x93e   :  { %v4028_v24 = vsel %vm3962_vm12, %v4023_v37, %v4027_v3 }
 0x93f   :  { %v6785_v22 = vpop.f32.mrf.mxu2  ;;  %v6877_v47 = vpop.f32.mrf.mxu3 }
 0x940   :  { %v6786_v17 = vadd.f32 %v6785_v22, %v15376_v8  ;;  %v4861_v8 = vrot.slane %v4022_v23, 5 }
 0x942   :  { %v15696_v58 = vadd.f32 %v6877_v47, %v6786_v17  ;;  %v4862_v60 = vsel %vm3855_vm0, %v4829_v9, %v4861_v8  ;;  %v4895_v17 = vrot.slane %v4028_v24, 5  ;;  %v7968_v47 = vld [vmem:[#allocation2 + $0x1b0] sm:$0xff]  ;;  %v7327_v9 = vld [vmem:[%s16386_s11 + $0x78] sm:$0xff] }
 0x943   :  { %v4029_v45 = vrot.slane %v7968_v47, 6  ;;  %7328 = vmatpush.msra.mxu0 %v7327_v9  ;;  %7403 = vmatpush.msra.mxu1 %v7327_v9  ;;  %v7972_v47 = vld [vmem:[#allocation2 + $0xb0] sm:$0xff] }
 0x944   :  { %7128 = vmatmul.f32.gmra.mxu2 %v4830_v62  ;;  %7220 = vmatmul.f32.gmra.mxu3 %v4832_v13  ;;  %v4031_v62 = vrot.slane %v7969_v41, 6  ;;  %v4896_v37 = vsel %vm3855_vm0, %v4863_v15, %v4895_v17  ;;  %v4037_v9 = vrot.slane %v7972_v47, 6  ;;  %v7973_v41 = vld [vmem:[#allocation2 + $0x70] sm:$0xff] }
 0x946   :  { %v4032_v13 = vsel %vm3962_vm12, %v4027_v3, %v4031_v62 }
 0x947   :  { %v6788_v32 = vpop.f32.mrf.mxu2  ;;  %v6880_v28 = vpop.f32.mrf.mxu3 }
 0x948   :  { %v6789_v11 = vadd.f32 %v6788_v32, %v15402_v12  ;;  %v4893_v12 = vrot.slane %v4026_v55, 5 }
 0x94a   :  { %v15703_v25 = vadd.f32 %v6880_v28, %v6789_v11  ;;  %v4894_v33 = vsel %vm3855_vm0, %v4861_v8, %v4893_v12  ;;  %v4927_v28 = vrot.slane %v4032_v13, 5 }
 0x94c   :  { %7131 = vmatmul.f32.gmra.mxu2 %v4862_v60  ;;  %7223 = vmatmul.f32.gmra.mxu3 %v4864_v56  ;;  %v7971_v60 = vld [vmem:[#allocation2 + $0x58] sm:$0xff]  ;;  %v4928_v15 = vsel %vm3855_vm0, %v4895_v17, %v4927_v28  ;;  %v6910_v17 = vadd.f32 %v15487_v49, %v15478_v18 }
 0x94d   :  { %v4035_v56 = vrot.slane %v7971_v60, 6  ;;  %v7974_v18 = vld [vmem:[#allocation2 + $0x98] sm:$0xff] }
 0x94e   :  { %v7002_v13 = vadd.f32 %v15489_v21, %v6910_v17  ;;  %v4041_v49 = vrot.slane %v7974_v18, 6 }
 0x94f   :  { %v6791_v39 = vpop.f32.mrf.mxu2  ;;  %v6883_v22 = vpop.f32.mrf.mxu3  ;;  %v4036_v3 = vsel %vm3962_vm12, %v4031_v62, %v4035_v56 }
 0x950   :  { %v6792_v29 = vadd.f32 %v6791_v39, %v15424_v42  ;;  %v4030_v42 = vsel %vm3962_vm12, %v4025_v6, %v4029_v45  ;;  %v4034_v6 = vsel %vm3962_vm12, %v4029_v45, %v4033_v31 }
 0x951   :  { %v4925_v38 = vrot.slane %v4030_v42, 5 }
 0x952   :  { %v15713_v61 = vadd.f32 %v6883_v22, %v6792_v29  ;;  %v4959_v22 = vrot.slane %v4036_v3, 5 }
 0x953   :  { %v4926_v8 = vsel %vm3855_vm0, %v4893_v12, %v4925_v38  ;;  %v7326_v12 = vld [vmem:[%s16386_s11 + $0x70] sm:$0xff] }
 0x954   :  { %7134 = vmatmul.f32.gmra.mxu2 %v4894_v33  ;;  %7226 = vmatmul.f32.gmra.mxu3 %v4896_v37  ;;  %v4039_v33 = vrot.slane %v7973_v41, 6  ;;  %v4038_v37 = vsel %vm3962_vm12, %v4033_v31, %v4037_v9  ;;  %v4047_v41 = vrot.slane %v15497_v35, 6  ;;  %v4049_v35 = vrot.slane %v15513_v46, 6 }
 0x955   :  { %7329 = vmatpush.msra.mxu0 %v7326_v12  ;;  %7404 = vmatpush.msra.mxu1 %v7326_v12  ;;  %v4045_v12 = vrot.slane %v15493_v4, 6 }
 0x956   :  { %v4040_v42 = vsel %vm3962_vm12, %v4035_v56, %v4039_v33 }
 0x957   :  { %v6794_v23 = vpop.f32.mrf.mxu2  ;;  %v6886_v11 = vpop.f32.mrf.mxu3  ;;  %v4991_v60 = vrot.slane %v4040_v42, 5  ;;  %v7324_v42 = vld [vmem:[%s16386_s11 + $0x60] sm:$0xff] }
 0x958   :  { %v6795_v32 = vadd.f32 %v6794_v23, %v15446_v63  ;;  %v4957_v63 = vrot.slane %v4034_v6, 5 }
 0x959   :  { %v4992_v21 = vsel %vm3855_vm0, %v4959_v22, %v4991_v60 }
 0x95a   :  { %v15720_v55 = vadd.f32 %v6886_v11, %v6795_v32  ;;  %v4958_v62 = vsel %vm3855_vm0, %v4925_v38, %v4957_v63  ;;  %v4989_v32 = vrot.slane %v4038_v37, 5  ;;  %v7325_v38 = vld [vmem:[%s16386_s11 + $0x68] sm:$0xff] }
 0x95b   :  { %7330 = vmatpush.msra.mxu0 %v7325_v38  ;;  %7405 = vmatpush.msra.mxu1 %v7325_v38  ;;  %v4053_v38 = vrot.slane %v15538_v50, 6 }
 0x95c   :  { %7137 = vmatmul.f32.gmra.mxu2 %v4926_v8  ;;  %7229 = vmatmul.f32.gmra.mxu3 %v4928_v15  ;;  %v7975_v8 = vld [vmem:[#allocation2 + $0x1a0] sm:$0xff]  ;;  %v4990_v56 = vsel %vm3855_vm0, %v4957_v63, %v4989_v32  ;;  %v4042_v15 = vsel %vm3962_vm12, %v4037_v9, %v4041_v49  ;;  %v4046_v9 = vsel %vm3962_vm12, %v4041_v49, %v4045_v12 }
 0x95d   :  { %7331 = vmatpush.msra.mxu0 %v7324_v42  ;;  %7406 = vmatpush.msra.mxu1 %v7324_v42 }
 0x95f   :  { %v7090_v24 = vpop.f32.mrf.mxu2  ;;  %v7182_v29 = vpop.f32.mrf.mxu3 }
 0x960   :  { %v7091_v39 = vadd.f32 %v7090_v24, %v15471_v52  ;;  %v4960_v52 = vsel %vm3855_vm0, %v4927_v28, %v4959_v22  ;;  %v4043_v28 = vrot.slane %v7975_v8, 6  ;;  %v5021_v24 = vrot.slane %v4042_v15, 5  ;;  %v7323_v8 = vld [vmem:[%s16386_s11 + $0x58] sm:$0xff] }
 0x961   :  { %7332 = vmatpush.msra.mxu0 %v7323_v8  ;;  %7407 = vmatpush.msra.mxu1 %v7323_v8 }
 0x962   :  { %v15732_v45 = vadd.f32 %v7182_v29, %v7091_v39  ;;  %v4044_v6 = vsel %vm3962_vm12, %v4039_v33, %v4043_v28  ;;  %v5022_v63 = vsel %vm3855_vm0, %v4989_v32, %v5021_v24  ;;  %v4048_v33 = vsel %vm3962_vm12, %v4043_v28, %v4047_v41 }
 0x963   :  { %v5023_v47 = vrot.slane %v4044_v6, 5  ;;  %v5055_v4 = vrot.slane %v4048_v33, 5  ;;  %v4055_v28 = vrot.slane %v15542_v20, 6  ;;  %v3208_v33 = vld [vmem:[#allocation2 + $0x28] sm:$0x7] }
 0x964   :  { %7140 = vmatmul.f32.gmra.mxu2 %v4958_v62  ;;  %7232 = vmatmul.f32.gmra.mxu3 %v4960_v52 }
 0x965   :  { %v5024_v22 = vsel %vm3855_vm0, %v4991_v60, %v5023_v47 }
 0x967   :  { %v7093_v23 = vpop.f32.mrf.mxu2  ;;  %v7185_v19 = vpop.f32.mrf.mxu3 }
 0x968   :  { %v7094_v11 = vadd.f32 %v7093_v23, %v7002_v13  ;;  %v4051_v13 = vrot.slane %v15517_v44, 6 }
 0x96a   :  { %v15742_v31 = vadd.f32 %v7185_v19, %v7094_v11  ;;  %v5056_v11 = vsel %vm3855_vm0, %v5023_v47, %v5055_v4  ;;  %v4052_v46 = vsel %vm3962_vm12, %v4047_v41, %v4051_v13  ;;  %v4056_v50 = vsel %vm3962_vm12, %v4051_v13, %v4055_v28 }
 0x96b   :  { %v5087_v44 = vrot.slane %v4052_v46, 5  ;;  %v5119_v20 = vrot.slane %v4056_v50, 5 }
 0x96c   :  { %7143 = vmatmul.f32.gmra.mxu2 %v4990_v56  ;;  %7235 = vmatmul.f32.gmra.mxu3 %v4992_v21 }
 0x96d   :  { %v5088_v15 = vsel %vm3855_vm0, %v5055_v4, %v5087_v44  ;;  %v5120_v41 = vsel %vm3855_vm0, %v5087_v44, %v5119_v20  ;;  %v7322_v4 = vld [vmem:[%s16386_s11 + $0x50] sm:$0xff] }
 0x96e   :  { %7333 = vmatpush.msra.mxu0 %v7322_v4  ;;  %7408 = vmatpush.msra.mxu1 %v7322_v4 }
 0x96f   :  { %v7096_v3 = vpop.f32.mrf.mxu2  ;;  %v7188_v29 = vpop.f32.mrf.mxu3 }
 0x970   :  { %v7097_v39 = vadd.f32 %v7096_v3, %v15519_v7  ;;  %v5053_v7 = vrot.slane %v4046_v9, 5  ;;  %v3207_v9 = vld [vmem:[#allocation2 + $0x110] sm:$0x7] }
 0x972   :  { %v15751_v17 = vadd.f32 %v7188_v29, %v7097_v39  ;;  %v5054_v32 = vsel %vm3855_vm0, %v5021_v24, %v5053_v7  ;;  %v4057_v29 = vrot.slane %v15564_v27, 6 }
 0x974   :  { %7146 = vmatmul.f32.gmra.mxu2 %v5022_v63  ;;  %7238 = vmatmul.f32.gmra.mxu3 %v5024_v22  ;;  %v4058_v63 = vsel %vm3962_vm12, %v4053_v38, %v4057_v29  ;;  %v4060_v22 = vsel %vm3962_vm12, %v4055_v28, %v4057_v29 }
 0x975   :  { %v5155_v27 = vrot.slane %v4060_v22, 5 }
 0x977   :  { %v7099_v62 = vpop.f32.mrf.mxu2  ;;  %v7191_v37 = vpop.f32.mrf.mxu3 }
 0x978   :  { %v7100_v52 = vadd.f32 %v7099_v62, %v15544_v14  ;;  %v4050_v14 = vsel %vm3962_vm12, %v4045_v12, %v4049_v35 }
 0x979   :  { %v5085_v60 = vrot.slane %v4050_v14, 5 }
 0x97a   :  { %v15763_v23 = vadd.f32 %v7191_v37, %v7100_v52  ;;  %v4061_v37 = vrot.slane %v3207_v9, 6  ;;  %v7319_v9 = vld [vmem:[%s16386_s11 + $0x38] sm:$0xff] }
 0x97b   :  { %v5086_v21 = vsel %vm3855_vm0, %v5053_v7, %v5085_v60 }
 0x97c   :  { %7149 = vmatmul.f32.gmra.mxu2 %v5054_v32  ;;  %7241 = vmatmul.f32.gmra.mxu3 %v5056_v11  ;;  %v5156_v32 = vsel %vm3855_vm0, %v5119_v20, %v5155_v27  ;;  %v4062_v11 = vsel %vm3962_vm12, %v4057_v29, %v4061_v37 }
 0x97d   :  { %v5189_v46 = vrot.slane %v4062_v11, 5 }
 0x97f   :  { %v7102_v19 = vpop.f32.mrf.mxu2  ;;  %v7194_v49 = vpop.f32.mrf.mxu3 }
 0x980   :  { %v7103_v18 = vadd.f32 %v7102_v19, %v15559_v51  ;;  %v4054_v51 = vsel %vm3962_vm12, %v4049_v35, %v4053_v38  ;;  %v4063_v35 = vrot.slane %v3208_v33, 6 }
 0x981   :  { %v5117_v3 = vrot.slane %v4054_v51, 5 }
 0x982   :  { %v15775_v56 = vadd.f32 %v7194_v49, %v7103_v18 }
 0x983   :  { %v5118_v12 = vsel %vm3855_vm0, %v5085_v60, %v5117_v3 }
 0x984   :  { %7152 = vmatmul.f32.gmra.mxu2 %v5086_v21  ;;  %7244 = vmatmul.f32.gmra.mxu3 %v5088_v15  ;;  %v7321_v15 = vld [vmem:[%s16386_s11 + $0x48] sm:$0xff] }
 0x985   :  { %7334 = vmatpush.msra.mxu0 %v7321_v15  ;;  %7409 = vmatpush.msra.mxu1 %v7321_v15 }
 0x987   :  { %v7105_v6 = vpop.f32.mrf.mxu2  ;;  %v7197_v39 = vpop.f32.mrf.mxu3 }
 0x988   :  { %v7106_v24 = vadd.f32 %v7105_v6, %v15575_v10  ;;  %v5153_v10 = vrot.slane %v4058_v63, 5  ;;  %v15821_v63 = vpop.f32.mrf.mxu1 }
 0x98a   :  { %v15783_v47 = vadd.f32 %v7197_v39, %v7106_v24  ;;  %v5154_v13 = vsel %vm3855_vm0, %v5117_v3, %v5153_v10  ;;  %v5190_v44 = vsel %vm3855_vm0, %v5153_v10, %v5189_v46  ;;  %v7320_v3 = vld [vmem:[%s16386_s11 + $0x40] sm:$0xff]  ;;  %v7317_v46 = vld [vmem:[%s16386_s11 + $0x28] sm:$0xff] }
 0x98b   :  { %7335 = vmatpush.msra.mxu0 %v7320_v3  ;;  %7410 = vmatpush.msra.mxu1 %v7320_v3 }
 0x98c   :  { %7155 = vmatmul.f32.gmra.mxu2 %v5118_v12  ;;  %7247 = vmatmul.f32.gmra.mxu3 %v5120_v41 }
 0x98d   :  { %7336 = vmatpush.msra.mxu0 %v7319_v9  ;;  %7411 = vmatpush.msra.mxu1 %v7319_v9 }
 0x98f   :  { %v7108_v62 = vpop.f32.mrf.mxu2  ;;  %v7200_v52 = vpop.f32.mrf.mxu3 }
 0x990   :  { %v7109_v7 = vadd.f32 %v7108_v62, %v15587_v54  ;;  %v4064_v54 = vsel %vm3962_vm12, %v4057_v29, %v4063_v35  ;;  %v15817_v29 = vpop.f32.mrf.mxu0 }
 0x991   :  { %v5191_v18 = vrot.slane %v4064_v54, 5 }
 0x992   :  { %v15793_v42 = vadd.f32 %v7200_v52, %v7109_v7  ;;  %v7318_v52 = vld [vmem:[%s16386_s11 + $0x30] sm:$0xff] }
 0x993   :  { %v5192_v38 = vsel %vm3855_vm0, %v5155_v27, %v5191_v18  ;;  %7337 = vmatpush.msra.mxu0 %v7318_v52  ;;  %7412 = vmatpush.msra.mxu1 %v7318_v52  ;;  %v7316_v18 = vld [vmem:[%s16386_s11 + $0x20] sm:$0xff] }
 0x994   :  { %7158 = vmatmul.f32.gmra.mxu2 %v5154_v13  ;;  %7250 = vmatmul.f32.gmra.mxu3 %v5156_v32 }
 0x995   :  { %7338 = vmatpush.msra.mxu0 %v7317_v46  ;;  %7413 = vmatpush.msra.mxu1 %v7317_v46 }
 0x997   :  { %v7111_v14 = vpop.f32.mrf.mxu2  ;;  %v7203_v60 = vpop.f32.mrf.mxu3  ;;  %7339 = vmatpush.msra.mxu0 %v7316_v18  ;;  %7414 = vmatpush.msra.mxu1 %v7316_v18 }
 0x998   :  { %v7112_v19 = vadd.f32 %v7111_v14, %v15598_v0 }
 0x99a   :  { %v15800_v49 = vadd.f32 %v7203_v60, %v7112_v19 }
 0x99c   :  { %7161 = vmatmul.f32.gmra.mxu2 %v5190_v44  ;;  %7253 = vmatmul.f32.gmra.mxu3 %v5192_v38 }
 0x99f   :  { %v7114_v8 = vpop.f32.mrf.mxu2  ;;  %v7206_v21 = vpop.f32.mrf.mxu3 }
 0x9a0   :  { %v7115_v28 = vadd.f32 %v7114_v8, %v15609_v36 }
 0x9a2   :  { %v15808_v0 = vadd.f32 %v7206_v21, %v7115_v28 }
 0x9a7   :  { %v7117_v51 = vpop.f32.mrf.mxu2  ;;  %v7209_v6 = vpop.f32.mrf.mxu3 }
 0x9a8   :  { %v7118_v50 = vadd.f32 %v7117_v51, %v15616_v59 }
 0x9aa   :  { %v15814_v36 = vadd.f32 %v7209_v6, %v7118_v50  ;;  %v7315_v50 = vld [vmem:[%s16386_s11 + $0x18] sm:$0xff] }
 0x9ab   :  { %7340 = vmatpush.msra.mxu0 %v7315_v50  ;;  %7415 = vmatpush.msra.mxu1 %v7315_v50  ;;  %v17129_v50 = vld [vmem:[#allocation81_spill] sm:$0xff] }
 0x9af   :  { %v7120_v24 = vpop.f32.mrf.mxu2  ;;  %v7212_v20 = vpop.f32.mrf.mxu3 }
 0x9b0   :  { %v7121_v39 = vadd.f32 %v7120_v24, %v15623_v34  ;;  %v15829_v34 = vpop.f32.mrf.mxu0 }
 0x9b2   :  { %v15819_v12 = vadd.f32 %v7212_v20, %v7121_v39  ;;  %v15889_v39 = vmul.f32 %v15742_v31, %v17048_v43 }
 0x9b4   :  { %17122 = vst [vmem:[#allocation9_spill] sm:$0xff] %v15889_v39 }
 0x9b7   :  { %v7123_v41 = vpop.f32.mrf.mxu2  ;;  %v7215_v22 = vpop.f32.mrf.mxu3 }
 0x9b8   :  { %v7124_v59 = vadd.f32 %v7123_v41, %v15630_v57  ;;  %v15835_v57 = vpop.f32.mrf.mxu1  ;;  %v15839_v37 = vpop.f32.mrf.mxu0  ;;  %v17123_v41 = vld [vmem:[#allocation62_spill] sm:$0xff] }
 0x9ba   :  { %v15827_v33 = vadd.f32 %v7215_v22, %v7124_v59  ;;  %v15895_v59 = vmul.f32 %v15732_v45, %v17123_v41  ;;  %v17125_v22 = vld [vmem:[#allocation65_spill] sm:$0xff] }
 0x9bb   :  { %v15899_v9 = vmul.f32 %v15751_v17, %v17125_v22 }
 0x9bc   :  { %17124 = vst [vmem:[#allocation14_spill] sm:$0xff] %v15895_v59  ;;  %v7348_v31 = vmul.f32 %v15895_v59, %v15895_v59  ;;  %v7282_v17 = vadd.f32 %v15889_v39, %v15895_v59 }
 0x9bd   :  { %17126 = vst [vmem:[#allocation15_spill] sm:$0xff] %v15899_v9  ;;  %v7350_v45 = vmul.f32 %v15899_v9, %v15899_v9 }
 0x9bf   :  { %v7126_v62 = vpop.f32.mrf.mxu2  ;;  %v7218_v7 = vpop.f32.mrf.mxu3 }
 0x9c0   :  { %v7127_v10 = vadd.f32 %v7126_v62, %v15637_v48  ;;  %v15844_v48 = vpop.f32.mrf.mxu1  ;;  %v15848_v54 = vpop.f32.mrf.mxu0 }
 0x9c2   :  { %v15837_v27 = vadd.f32 %v7218_v7, %v7127_v10  ;;  %v7349_v10 = vmul.f32 %v15889_v39, %v15889_v39  ;;  %v17127_v7 = vld [vmem:[#allocation79_spill] sm:$0xff] }
 0x9c3   :  { %v15907_v52 = vmul.f32 %v15763_v23, %v17127_v7  ;;  %v15927_v7 = vmul.f32 %v15783_v47, %v17129_v50  ;;  %v6949_v50 = vadd.f32 %v15817_v29, %v15647_v1 }
 0x9c4   :  { %v7373_v18 = vadd.f32 %v7349_v10, %v7348_v31  ;;  %v17130_v31 = vld [vmem:[#allocation82_spill] sm:$0xff] }
 0x9c5   :  { %v7351_v23 = vmul.f32 %v15907_v52, %v15907_v52  ;;  %v15939_v41 = vmul.f32 %v15793_v42, %v17130_v31  ;;  %v7353_v59 = vmul.f32 %v15927_v7, %v15927_v7 }
 0x9c6   :  { %v7374_v43 = vadd.f32 %v7373_v18, %v7350_v45 }
 0x9c7   :  { %v7129_v4 = vpop.f32.mrf.mxu2  ;;  %v7221_v13 = vpop.f32.mrf.mxu3  ;;  %v7354_v42 = vmul.f32 %v15939_v41, %v15939_v41 }
 0x9c8   :  { %v7130_v35 = vadd.f32 %v7129_v4, %v15644_v16  ;;  %v15855_v19 = vpop.f32.mrf.mxu1  ;;  %v15864_v44 = vpop.f32.mrf.mxu0  ;;  %v17128_v4 = vld [vmem:[#allocation69_spill] sm:$0xff]  ;;  %v7375_v39 = vadd.f32 %v7374_v43, %v7351_v23  ;;  %v6952_v43 = vadd.f32 %v15829_v34, %v15654_v53  ;;  %v7313_v53 = vld [vmem:[%s16386_s11 + $0x8] sm:$0xff] }
 0x9ca   :  { %v15842_v32 = vadd.f32 %v7221_v13, %v7130_v35  ;;  %v15915_v35 = vmul.f32 %v15775_v56, %v17128_v4  ;;  %v7314_v56 = vld [vmem:[%s16386_s11 + $0x10] sm:$0xff]  ;;  %v7283_v4 = vadd.f32 %v7282_v17, %v15899_v9 }
 0x9cb   :  { %7341 = vmatpush.msra.mxu0 %v7314_v56  ;;  %7416 = vmatpush.msra.mxu1 %v7314_v56  ;;  %v17131_v17 = vld [vmem:[#allocation87_spill] sm:$0xff] }
 0x9cc   :  { %v7352_v10 = vmul.f32 %v15915_v35, %v15915_v35  ;;  %v7284_v47 = vadd.f32 %v7283_v4, %v15907_v52  ;;  %v15948_v56 = vmul.f32 %v15800_v49, %v17131_v17  ;;  %v17132_v4 = vld [vmem:[#allocation89_spill] sm:$0xff]  ;;  %v7041_v49 = vadd.f32 %v15821_v63, %v6949_v50  ;;  %v17134_v50 = vld [vmem:[#allocation96_spill] sm:$0xff] }
 0x9cd   :  { %v15957_v31 = vmul.f32 %v15808_v0, %v17132_v4  ;;  %v6955_v0 = vadd.f32 %v15839_v37, %v15661_v26  ;;  %v6958_v63 = vadd.f32 %v15848_v54, %v15668_v40  ;;  %7342 = vmatpush.msra.mxu0 %v7313_v53  ;;  %7417 = vmatpush.msra.mxu1 %v7313_v53 }
 0x9ce   :  { %v7285_v45 = vadd.f32 %v7284_v47, %v15915_v35  ;;  %v7376_v9 = vadd.f32 %v7375_v39, %v7352_v10  ;;  %v7355_v39 = vmul.f32 %v15948_v56, %v15948_v56  ;;  %v17133_v10 = vld [vmem:[#allocation93_spill] sm:$0xff] }
 0x9cf   :  { %v15846_v11 = vpop.f32.mrf.mxu2  ;;  %v15850_v14 = vpop.f32.mrf.mxu3  ;;  %v15969_v47 = vmul.f32 %v15814_v36, %v17133_v10  ;;  %v7356_v36 = vmul.f32 %v15957_v31, %v15957_v31  ;;  %v7044_v10 = vadd.f32 %v15835_v57, %v6952_v43  ;;  %v7050_v53 = vadd.f32 %v15855_v19, %v6958_v63  ;;  %v17137_v63 = vld [vmem:[#allocation104_spill] sm:$0xff] }
 0x9d0   :  { %v15868_v8 = vpop.f32.mrf.mxu1  ;;  %v15872_v21 = vpop.f32.mrf.mxu0  ;;  %v7286_v1 = vadd.f32 %v7285_v45, %v15927_v7  ;;  %v7377_v23 = vadd.f32 %v7376_v9, %v7353_v59  ;;  %v15985_v45 = vmul.f32 %v15819_v12, %v17134_v50  ;;  %v7133_v37 = vadd.f32 %v15846_v11, %v7041_v49 }
 0x9d1   :  { %v7357_v54 = vmul.f32 %v15969_v47, %v15969_v47  ;;  %v6961_v43 = vadd.f32 %v15864_v44, %v15675_v30 }
 0x9d2   :  { %v7287_v34 = vadd.f32 %v7286_v1, %v15939_v41  ;;  %v7378_v9 = vadd.f32 %v7377_v23, %v7354_v42  ;;  %v17135_v1 = vld [vmem:[#allocation99_spill] sm:$0xff]  ;;  %v7047_v23 = vadd.f32 %v15844_v48, %v6955_v0  ;;  %v7358_v49 = vmul.f32 %v15985_v45, %v15985_v45 }
 0x9d3   :  { %v15994_v42 = vmul.f32 %v15827_v33, %v17135_v1  ;;  %v6964_v33 = vadd.f32 %v15872_v21, %v15682_v2  ;;  %v7225_v19 = vadd.f32 %v15850_v14, %v7133_v37  ;;  %v7053_v14 = vadd.f32 %v15868_v8, %v6961_v43 }
 0x9d4   :  { %v7288_v26 = vadd.f32 %v7287_v34, %v15948_v56  ;;  %v7379_v40 = vadd.f32 %v7378_v9, %v7355_v39  ;;  %v17136_v39 = vld [vmem:[#allocation102_spill] sm:$0xff]  ;;  %v16017_v9 = vmul.f32 %v15842_v32, %v17137_v63 }
 0x9d5   :  { %v16006_v34 = vmul.f32 %v15837_v27, %v17136_v39  ;;  %v7359_v44 = vmul.f32 %v15994_v42, %v15994_v42 }
 0x9d6   :  { %v7289_v12 = vadd.f32 %v7288_v26, %v15957_v31  ;;  %v7380_v11 = vadd.f32 %v7379_v40, %v7356_v36 }
 0x9d7   :  { %v15857_v16 = vpop.f32.mrf.mxu2  ;;  %v15859_v60 = vpop.f32.mrf.mxu3  ;;  %v7360_v37 = vmul.f32 %v16006_v34, %v16006_v34 }
 0x9d8   :  { %v15881_v6 = vpop.f32.mrf.mxu1  ;;  %v15883_v3 = vpop.f32.mrf.mxu0  ;;  %v7136_v57 = vadd.f32 %v15857_v16, %v7044_v10  ;;  %v7290_v48 = vadd.f32 %v7289_v12, %v15969_v47  ;;  %v7381_v30 = vadd.f32 %v7380_v11, %v7357_v54  ;;  %v17138_v54 = vld [vmem:[#allocation107_spill] sm:$0xff] }
 0x9d9   :  { %v7056_v40 = vadd.f32 %v15881_v6, %v6964_v33  ;;  %v17139_v6 = vld [vmem:[#allocation111_spill] sm:$0xff] }
 0x9da   :  { %v7291_v36 = vadd.f32 %v7290_v48, %v15985_v45  ;;  %v7228_v2 = vadd.f32 %v15859_v60, %v7136_v57  ;;  %v7382_v26 = vadd.f32 %v7381_v30, %v7358_v49 }
 0x9dc   :  { %v7292_v32 = vadd.f32 %v7291_v36, %v15994_v42  ;;  %v16040_v57 = vmul.f32 %v7228_v2, %v17139_v6  ;;  %v17141_v36 = vld [vmem:[#allocation116_spill] sm:$0xff] }
 0x9de   :  { %v7293_v12 = vadd.f32 %v7292_v32, %v16006_v34 }
 0x9df   :  { %v15866_v38 = vpop.f32.mrf.mxu2  ;;  %v15870_v28 = vpop.f32.mrf.mxu3 }
 0x9e0   :  { %v15901_v62 = vpop.f32.mrf.mxu1  ;;  %v15921_v46 = vpop.f32.mrf.mxu0  ;;  %v7139_v16 = vadd.f32 %v15866_v38, %v7047_v23  ;;  %v6967_v38 = vadd.f32 %v15883_v3, %v15689_v5  ;;  %v16030_v23 = vmul.f32 %v7225_v19, %v17138_v54  ;;  %v7361_v5 = vmul.f32 %v16017_v9, %v16017_v9 }
 0x9e2   :  { %v7231_v60 = vadd.f32 %v15870_v28, %v7139_v16  ;;  %v7059_v11 = vadd.f32 %v15901_v62, %v6967_v38  ;;  %v7362_v33 = vmul.f32 %v16030_v23, %v16030_v23 }
 0x9e7   :  { %v15874_v15 = vpop.f32.mrf.mxu2  ;;  %v15876_v51 = vpop.f32.mrf.mxu3 }
 0x9e8   :  { %v15951_v18 = vpop.f32.mrf.mxu1  ;;  %v6972_v59 = vpop.f32.mrf.mxu0  ;;  %v7142_v21 = vadd.f32 %v15874_v15, %v7050_v53  ;;  %v6970_v15 = vadd.f32 %v15921_v46, %v15696_v58  ;;  %v7383_v53 = vadd.f32 %v7382_v26, %v7359_v44  ;;  %v7294_v46 = vadd.f32 %v7293_v12, %v16017_v9 }
 0x9e9   :  { %v6973_v28 = vadd.f32 %v6972_v59, %v15703_v25  ;;  %v7363_v44 = vmul.f32 %v16040_v57, %v16040_v57 }
 0x9ea   :  { %v7234_v43 = vadd.f32 %v15876_v51, %v7142_v21  ;;  %v7384_v49 = vadd.f32 %v7383_v53, %v7360_v37  ;;  %v7062_v16 = vadd.f32 %v15951_v18, %v6970_v15  ;;  %v7295_v59 = vadd.f32 %v7294_v46, %v16030_v23 }
 0x9ec   :  { %v7385_v30 = vadd.f32 %v7384_v49, %v7361_v5  ;;  %v16062_v2 = vmul.f32 %v7234_v43, %v17141_v36  ;;  %v7296_v26 = vadd.f32 %v7295_v59, %v16040_v57 }
 0x9ee   :  { %v7386_v38 = vadd.f32 %v7385_v30, %v7362_v33 }
 0x9ef   :  { %v15885_v24 = vpop.f32.mrf.mxu2  ;;  %v15891_v20 = vpop.f32.mrf.mxu3 }
 0x9f0   :  { %v7064_v0 = vpop.f32.mrf.mxu1  ;;  %v6975_v8 = vpop.f32.mrf.mxu0  ;;  %v7145_v3 = vadd.f32 %v15885_v24, %v7053_v14  ;;  %v17140_v24 = vld [vmem:[#allocation114_spill] sm:$0xff]  ;;  %v7387_v53 = vadd.f32 %v7386_v38, %v7363_v44 }
 0x9f1   :  { %v16050_v48 = vmul.f32 %v7231_v60, %v17140_v24  ;;  %v7065_v18 = vadd.f32 %v7064_v0, %v6973_v28  ;;  %v17144_v28 = vld [vmem:[#allocation124_spill] sm:$0xff] }
 0x9f2   :  { %v7237_v51 = vadd.f32 %v15891_v20, %v7145_v3  ;;  %v6976_v20 = vadd.f32 %v6975_v8, %v15713_v61  ;;  %v7365_v61 = vmul.f32 %v16062_v2, %v16062_v2  ;;  %v17143_v8 = vld [vmem:[#allocation122_spill] sm:$0xff] }
 0x9f3   :  { %v7364_v37 = vmul.f32 %v16050_v48, %v16050_v48  ;;  %v7297_v0 = vadd.f32 %v7296_v26, %v16050_v48  ;;  %v17147_v26 = vld [vmem:[#allocation132_spill] sm:$0xff] }
 0x9f5   :  { %v7388_v12 = vadd.f32 %v7387_v53, %v7364_v37  ;;  %v7298_v43 = vadd.f32 %v7297_v0, %v16062_v2 }
 0x9f7   :  { %v15919_v13 = vpop.f32.mrf.mxu2  ;;  %v15929_v22 = vpop.f32.mrf.mxu3 }
 0x9f8   :  { %v7148_v58 = vadd.f32 %v15919_v13, %v7056_v40  ;;  %v7312_v13 = vld [vmem:[%s16386_s11] sm:$0xff]  ;;  %v7067_v21 = vpop.f32.mrf.mxu1  ;;  %v17142_v40 = vld [vmem:[#allocation120_spill] sm:$0xff] }
 0x9f9   :  { %7343 = vmatpush.msra.mxu0 %v7312_v13  ;;  %7418 = vmatpush.msra.mxu1 %v7312_v13  ;;  %v16070_v32 = vmul.f32 %v7237_v51, %v17142_v40  ;;  %v17145_v51 = vld [vmem:[#allocation127_spill] sm:$0xff] }
 0x9fb   :  { %v7299_v30 = vadd.f32 %v7298_v43, %v16070_v32 }
 0x9ff   :  { %v15962_v29 = vpop.f32.mrf.mxu2  ;;  %v15971_v17 = vpop.f32.mrf.mxu3 }
 0xa00   :  { %v7151_v62 = vadd.f32 %v15962_v29, %v7059_v11  ;;  %v7240_v29 = vadd.f32 %v15929_v22, %v7148_v58  ;;  %v7068_v22 = vadd.f32 %v7067_v21, %v6976_v20  ;;  %v7070_v59 = vpop.f32.mrf.mxu1  ;;  %v17146_v20 = vld [vmem:[#allocation130_spill] sm:$0xff] }
 0xa02   :  { %v7243_v60 = vadd.f32 %v15971_v17, %v7151_v62  ;;  %v16077_v5 = vmul.f32 %v7240_v29, %v17143_v8  ;;  %v7366_v17 = vmul.f32 %v16070_v32, %v16070_v32 }
 0xa04   :  { %v16083_v49 = vmul.f32 %v7243_v60, %v17144_v28 }
 0xa07   :  { %v7153_v10 = vpop.f32.mrf.mxu2  ;;  %v7245_v27 = vpop.f32.mrf.mxu3 }
 0xa08   :  { %v7154_v14 = vadd.f32 %v7153_v10, %v7062_v16  ;;  %v6978_v10 = vpop.f32.mrf.mxu0  ;;  %v7389_v16 = vadd.f32 %v7388_v12, %v7365_v61 }
 0xa0a   :  { %v7246_v3 = vadd.f32 %v7245_v27, %v7154_v14  ;;  %v7367_v27 = vmul.f32 %v16077_v5, %v16077_v5  ;;  %v7390_v44 = vadd.f32 %v7389_v16, %v7366_v17 }
 0xa0c   :  { %v16090_v62 = vmul.f32 %v7246_v3, %v17145_v51  ;;  %v7391_v29 = vadd.f32 %v7390_v44, %v7367_v27 }
 0xa0e   :  { %v7369_v38 = vmul.f32 %v16090_v62, %v16090_v62 }
 0xa0f   :  { %v7156_v19 = vpop.f32.mrf.mxu2  ;;  %v7248_v25 = vpop.f32.mrf.mxu3 }
 0xa10   :  { %v7157_v15 = vadd.f32 %v7156_v19, %v7065_v18  ;;  %v6979_v19 = vadd.f32 %v6978_v10, %v15720_v55  ;;  %v7300_v18 = vadd.f32 %v7299_v30, %v16077_v5 }
 0xa12   :  { %v7249_v58 = vadd.f32 %v7248_v25, %v7157_v15  ;;  %v7368_v25 = vmul.f32 %v16083_v49, %v16083_v49  ;;  %v7071_v55 = vadd.f32 %v7070_v59, %v6979_v19  ;;  %v7301_v14 = vadd.f32 %v7300_v18, %v16083_v49 }
 0xa14   :  { %v16096_v21 = vmul.f32 %v7249_v58, %v17146_v20  ;;  %v7392_v15 = vadd.f32 %v7391_v29, %v7368_v25  ;;  %v7302_v53 = vadd.f32 %v7301_v14, %v16090_v62  ;;  %v17148_v58 = vld [vmem:[#allocation134_spill] sm:$0xff] }
 0xa16   :  { %v7370_v0 = vmul.f32 %v16096_v21, %v16096_v21  ;;  %v7393_v10 = vadd.f32 %v7392_v15, %v7369_v38  ;;  %v7303_v3 = vadd.f32 %v7302_v53, %v16096_v21 }
 0xa17   :  { %v7159_v11 = vpop.f32.mrf.mxu2  ;;  %v7251_v33 = vpop.f32.mrf.mxu3 }
 0xa18   :  { %v7160_v46 = vadd.f32 %v7159_v11, %v7068_v22  ;;  %v7394_v11 = vadd.f32 %v7393_v10, %v7370_v0 }
 0xa1a   :  { %v7252_v13 = vadd.f32 %v7251_v33, %v7160_v46 }
 0xa1c   :  { %v16102_v37 = vmul.f32 %v7252_v13, %v17147_v26 }
 0xa1e   :  { %v7371_v12 = vmul.f32 %v16102_v37, %v16102_v37  ;;  %v7304_v17 = vadd.f32 %v7303_v3, %v16102_v37 }
 0xa1f   :  { %v7162_v60 = vpop.f32.mrf.mxu2  ;;  %v7254_v22 = vpop.f32.mrf.mxu3 }
 0xa20   :  { %v7163_v61 = vadd.f32 %v7162_v60, %v7071_v55  ;;  %v7395_v33 = vadd.f32 %v7394_v11, %v7371_v12 }
 0xa22   :  { %v7255_v43 = vadd.f32 %v7254_v22, %v7163_v61 }
 0xa24   :  { %v16112_v46 = vmul.f32 %v7255_v43, %v17148_v58 }
 0xa26   :  { %v7305_v19 = vadd.f32 %v7304_v17, %v16112_v46  ;;  %v7372_v16 = vmul.f32 %v16112_v46, %v16112_v46 }
 0xa28   :  { %v7306_v30 = vrot.slane %v7305_v19, 4  ;;  %v7396_v27 = vadd.f32 %v7395_v33, %v7372_v16  ;;  %v7427_v16 = vld [vmem:[%s16387_s9] sm:$0x1] }
 0xa2a   :  { %v7307_v13 = vadd.f32 %v7306_v30, %v7305_v19  ;;  %v7397_v59 = vrot.slane %v7396_v27, 4 }
 0xa2c   :  { %v7308_v44 = vrot.slane %v7307_v13, 2  ;;  %v7398_v18 = vadd.f32 %v7397_v59, %v7396_v27 }
 0xa2e   :  { %v7309_v25 = vadd.f32 %v7308_v44, %v7307_v13  ;;  %v7399_v55 = vrot.slane %v7398_v18, 2  ;;  %v7440_v44 = vld [vmem:[%s16388_s10] sm:$0x1] }
 0xa30   :  { %v7310_v29 = vrot.slane %v7309_v25, 1  ;;  %v7400_v14 = vadd.f32 %v7399_v55, %v7398_v18 }
 0xa32   :  { %v7311_v38 = vadd.f32 %v7310_v29, %v7309_v25  ;;  %v7401_v60 = vrot.slane %v7400_v14, 1  ;;  %v17149_v29 = vld [vmem:[#allocation14_spill] sm:$0xff] }
 0xa34   :  { %7344 = vmatmul.f32.vlgmr.msra.gmra.mxu0 %v7311_v38  ;;  %v7402_v15 = vadd.f32 %v7401_v60, %v7400_v14  ;;  %v17150_v38 = vld [vmem:[#allocation9_spill] sm:$0xff] }
 0xa36   :  { %7419 = vmatmul.f32.vlgmr.msra.gmra.mxu1 %v7402_v15  ;;  %v17151_v15 = vld [vmem:[#allocation15_spill] sm:$0xff] }
 0xab1   :  { %v7345_v53 = vpop.f32.mrf.mxu0 }
 0xab2   :  { %v7423_v0 = vmul.f32 0.0009765625, %v7345_v53 }
 0xab3   :  { %v7420_v61 = vpop.f32.mrf.mxu1 }
 0xab4   :  { %v7425_v22 = vmul.f32 %v7423_v0, %v7423_v0  ;;  %v7424_v10 = vmul.f32 0.0009765625, %v7420_v61 }
 0xab6   :  { %v7426_v3 = vsub.f32 %v7424_v10, %v7425_v22 }
 0xab8   :  { %v7428_v12 = vadd.f32 1e-05, %v7426_v3 }
 0xaba   :  { %7645 = vrsqrt.f32 %v7428_v12  ;;  %vm7435_vm14 = vweird.f32 %v7428_v12 }
 0xac0   :  { %v7646_v43 = vpop.eup %7645 }
 0xac1   :  { %v7430_v11 = vmul.f32 %v7646_v43, %v7428_v12  ;;  %vm7436_vm13 = vweird.f32 %v7646_v43 }
 0xac2   :  { %vm7437_vm15 = vmor %vm7435_vm14, %vm7436_vm13 }
 0xac3   :  { %v7431_v17 = vmul.f32 %v7646_v43, %v7430_v11 }
 0xac5   :  { %v7432_v33 = vmul.f32 0.5, %v7431_v17 }
 0xac7   :  { %v7433_v19 = vsub.f32 1.5, %v7432_v33 }
 0xac9   :  { %v7434_v30 = vmul.f32 %v7646_v43, %v7433_v19 }
 0xacb   :  { %v7438_v27 = vsel %vm7437_vm15, %v7646_v43, %v7434_v30  ;;  %v17153_v30 = vld [vmem:[#allocation73_spill] sm:$0xff] }
 0xacc   :  { %v7439_v13 = vmul.f32 %v7438_v27, %v7427_v16 }
 0xace   :  { %v7441_v59 = vmul.f32 %v7439_v13, %v7423_v0  ;;  %v16123_v25 = vperm.slane %v7439_v13, 0  ;;  %v7444_v13 = vld [vmem:[%s16378_s0 + $0x18] sm:$0xff] }
 0xad0   :  { %v7442_v18 = vsub.f32 %v7440_v44, %v7441_v59  ;;  %v7471_v14 = vmul.f32 %v16123_v25, %v17149_v29  ;;  %v7472_v60 = vmul.f32 %v16123_v25, %v17150_v38  ;;  %v7473_v53 = vmul.f32 %v16123_v25, %v17151_v15  ;;  %v7446_v38 = vld [vmem:[%s16378_s0 + $0x28] sm:$0xff] }
 0xad1   :  { %v7474_v0 = vmul.f32 %v16123_v25, %v15907_v52  ;;  %v7475_v61 = vmul.f32 %v16123_v25, %v15915_v35  ;;  %v7476_v3 = vmul.f32 %v16123_v25, %v15927_v7  ;;  %v7477_v11 = vmul.f32 %v16123_v25, %v15939_v41  ;;  %v17152_v7 = vld [vmem:[#allocation62_spill] sm:$0xff]  ;;  %v7443_v41 = vld [vmem:[%s16378_s0 + $0x10] sm:$0xff] }
 0xad2   :  { %v16125_v55 = vperm.slane %v7442_v18, 0  ;;  %v7478_v52 = vmul.f32 %v16123_v25, %v15948_v56  ;;  %v7479_v33 = vmul.f32 %v16123_v25, %v15957_v31  ;;  %v7480_v56 = vmul.f32 %v16123_v25, %v15969_v47  ;;  %v17154_v31 = vld [vmem:[#allocation65_spill] sm:$0xff]  ;;  %v17155_v18 = vld [vmem:[#allocation79_spill] sm:$0xff] }
 0xad3   :  { %v7482_v47 = vmul.f32 %v16123_v25, %v15994_v42  ;;  %v7448_v42 = vld [vmem:[%s16378_s0 + $0x38] sm:$0xff] }
 0xad4   :  { %v7499_v22 = vadd.f32 %v16125_v55, %v7471_v14  ;;  %v7500_v10 = vadd.f32 %v16125_v55, %v7472_v60  ;;  %v7501_v12 = vadd.f32 %v16125_v55, %v7473_v53  ;;  %v7502_v43 = vadd.f32 %v16125_v55, %v7474_v0  ;;  %v7445_v14 = vld [vmem:[%s16378_s0 + $0x20] sm:$0xff] }
 0xad5   :  { %v7503_v17 = vadd.f32 %v16125_v55, %v7475_v61  ;;  %v7504_v35 = vadd.f32 %v16125_v55, %v7476_v3  ;;  %v7505_v19 = vadd.f32 %v16125_v55, %v7477_v11  ;;  %v7506_v59 = vadd.f32 %v16125_v55, %v7478_v52  ;;  %v17156_v53 = vld [vmem:[#allocation69_spill] sm:$0xff]  ;;  %v7447_v61 = vld [vmem:[%s16378_s0 + $0x30] sm:$0xff]  ;;  %v17158_v11 = vld [vmem:[#allocation82_spill] sm:$0xff] }
 0xad6   :  { %v7524_v16 = vmul.f32 %v7499_v22, %v17152_v7  ;;  %v7525_v27 = vmul.f32 %v7500_v10, %v17153_v30  ;;  %v7526_v44 = vmul.f32 %v7501_v12, %v17154_v31  ;;  %v7527_v29 = vmul.f32 %v7502_v43, %v17155_v18  ;;  %v17159_v7 = vld [vmem:[#allocation87_spill] sm:$0xff]  ;;  %v7450_v31 = vld [vmem:[%s16378_s0 + $0x48] sm:$0xff] }
 0xad7   :  { %v7481_v60 = vmul.f32 %v16123_v25, %v15985_v45  ;;  %v7507_v15 = vadd.f32 %v16125_v55, %v7479_v33  ;;  %v7528_v0 = vmul.f32 %v7503_v17, %v17156_v53  ;;  %v7483_v22 = vmul.f32 %v16123_v25, %v16006_v34  ;;  %v17157_v45 = vld [vmem:[#allocation81_spill] sm:$0xff] }
 0xad8   :  { %v7484_v10 = vmul.f32 %v16123_v25, %v16017_v9  ;;  %v7508_v3 = vadd.f32 %v16125_v55, %v7480_v56  ;;  %v7529_v12 = vmul.f32 %v7504_v35, %v17157_v45  ;;  %v7530_v17 = vmul.f32 %v7505_v19, %v17158_v11  ;;  %v7449_v34 = vld [vmem:[%s16378_s0 + $0x40] sm:$0xff] }
 0xad9   :  { %v7509_v43 = vadd.f32 %v16125_v55, %v7481_v60  ;;  %v7549_v52 = vadd.f32 %v7524_v16, %v7443_v41  ;;  %v7550_v33 = vadd.f32 %v7525_v27, %v7444_v13  ;;  %v7510_v9 = vadd.f32 %v16125_v55, %v7482_v47  ;;  %v7451_v41 = vld [vmem:[%s16378_s0 + $0x50] sm:$0xff]  ;;  %v7453_v47 = vld [vmem:[%s16378_s0 + $0x60] sm:$0xff] }
 0xada   :  { %v7531_v30 = vmul.f32 %v7506_v59, %v17159_v7  ;;  %v7551_v56 = vadd.f32 %v7526_v44, %v7445_v14  ;;  %v7552_v35 = vadd.f32 %v7527_v29, %v7446_v38  ;;  %v7485_v18 = vmul.f32 %v16123_v25, %v16030_v23  ;;  %v17160_v44 = vld [vmem:[#allocation93_spill] sm:$0xff] }
 0xadb   :  { %v7511_v19 = vadd.f32 %v16125_v55, %v7483_v22  ;;  %v7532_v16 = vmul.f32 %v7507_v15, %v17132_v4  ;;  %v7553_v27 = vadd.f32 %v7528_v0, %v7447_v61  ;;  %7574 = vst [vmem:[%s16389_s12] sm:$0xff] %v7549_v52  ;;  %v7486_v13 = vmul.f32 %v16123_v25, %v16040_v57  ;;  %v7452_v4 = vld [vmem:[%s16378_s0 + $0x58] sm:$0xff] }
 0xadc   :  { %v7512_v59 = vadd.f32 %v16125_v55, %v7484_v10  ;;  %v7533_v23 = vmul.f32 %v7508_v3, %v17160_v44  ;;  %v7554_v29 = vadd.f32 %v7529_v12, %v7448_v42  ;;  %7575 = vst [vmem:[%s16389_s12 + $0x8] sm:$0xff] %v7550_v33  ;;  %v7487_v14 = vmul.f32 %v16123_v25, %v16050_v48 }
 0xadd   :  { %v7513_v38 = vadd.f32 %v16125_v55, %v7485_v18  ;;  %v7534_v57 = vmul.f32 %v7509_v43, %v17134_v50  ;;  %v7555_v60 = vadd.f32 %v7530_v17, %v7449_v34  ;;  %7576 = vst [vmem:[%s16389_s12 + $0x10] sm:$0xff] %v7551_v56  ;;  %v7488_v15 = vmul.f32 %v16123_v25, %v16062_v2  ;;  %v7454_v50 = vld [vmem:[%s16378_s0 + $0x68] sm:$0xff] }
 0xade   :  { %v7514_v53 = vadd.f32 %v16125_v55, %v7486_v13  ;;  %v7535_v48 = vmul.f32 %v7510_v9, %v17135_v1  ;;  %v7556_v0 = vadd.f32 %v7531_v30, %v7450_v31  ;;  %7577 = vst [vmem:[%s16389_s12 + $0x18] sm:$0xff] %v7552_v35  ;;  %v7489_v61 = vmul.f32 %v16123_v25, %v16070_v32  ;;  %v7455_v1 = vld [vmem:[%s16378_s0 + $0x70] sm:$0xff] }
 0xadf   :  { %v7515_v22 = vadd.f32 %v16125_v55, %v7487_v14  ;;  %v7536_v2 = vmul.f32 %v7511_v19, %v17136_v39  ;;  %v7557_v10 = vadd.f32 %v7532_v16, %v7451_v41  ;;  %7578 = vst [vmem:[%s16389_s12 + $0x20] sm:$0xff] %v7553_v27  ;;  %v7490_v3 = vmul.f32 %v16123_v25, %v16077_v5  ;;  %v7456_v39 = vld [vmem:[%s16378_s0 + $0x78] sm:$0xff] }
 0xae0   :  { %v7516_v45 = vadd.f32 %v16125_v55, %v7488_v15  ;;  %v7537_v32 = vmul.f32 %v7512_v59, %v17137_v63  ;;  %v7558_v12 = vadd.f32 %v7533_v23, %v7452_v4  ;;  %7579 = vst [vmem:[%s16389_s12 + $0x28] sm:$0xff] %v7554_v29  ;;  %v7491_v42 = vmul.f32 %v16123_v25, %v16083_v49  ;;  %v7457_v63 = vld [vmem:[%s16378_s0 + $0x80] sm:$0xff] }
 0xae1   :  { %v7517_v43 = vadd.f32 %v16125_v55, %v7489_v61  ;;  %v7538_v5 = vmul.f32 %v7513_v38, %v17138_v54  ;;  %v7559_v11 = vadd.f32 %v7534_v57, %v7453_v47  ;;  %7580 = vst [vmem:[%s16389_s12 + $0x30] sm:$0xff] %v7555_v60  ;;  %v7492_v17 = vmul.f32 %v16123_v25, %v16090_v62  ;;  %v7458_v54 = vld [vmem:[%s16378_s0 + $0x88] sm:$0xff] }
 0xae2   :  { %v7518_v52 = vadd.f32 %v16125_v55, %v7490_v3  ;;  %v7539_v49 = vmul.f32 %v7514_v53, %v17139_v6  ;;  %v7560_v33 = vadd.f32 %v7535_v48, %v7454_v50  ;;  %7581 = vst [vmem:[%s16389_s12 + $0x38] sm:$0xff] %v7556_v0  ;;  %v7493_v34 = vmul.f32 %v16123_v25, %v16096_v21  ;;  %v7459_v6 = vld [vmem:[%s16378_s0 + $0x90] sm:$0xff] }
 0xae3   :  { %v7519_v9 = vadd.f32 %v16125_v55, %v7491_v42  ;;  %v7540_v62 = vmul.f32 %v7515_v22, %v17140_v24  ;;  %v7561_v7 = vadd.f32 %v7536_v2, %v7455_v1  ;;  %7582 = vst [vmem:[%s16389_s12 + $0x40] sm:$0xff] %v7557_v10  ;;  %v7494_v30 = vmul.f32 %v16123_v25, %v16102_v37  ;;  %v7460_v24 = vld [vmem:[%s16378_s0 + $0x98] sm:$0xff] }
 0xae4   :  { %v7520_v56 = vadd.f32 %v16125_v55, %v7492_v17  ;;  %v7541_v21 = vmul.f32 %v7516_v45, %v17141_v36  ;;  %v7562_v35 = vadd.f32 %v7537_v32, %v7456_v39  ;;  %7583 = vst [vmem:[%s16389_s12 + $0x48] sm:$0xff] %v7558_v12  ;;  %v7495_v31 = vmul.f32 %v16123_v25, %v16112_v46  ;;  %v7461_v36 = vld [vmem:[%s16378_s0 + $0xa0] sm:$0xff] }
 0xae5   :  { %v7521_v18 = vadd.f32 %v16125_v55, %v7493_v34  ;;  %v7542_v37 = vmul.f32 %v7517_v43, %v17142_v40  ;;  %v7563_v19 = vadd.f32 %v7538_v5, %v7457_v63  ;;  %7584 = vst [vmem:[%s16389_s12 + $0x50] sm:$0xff] %v7559_v11  ;;  %v7522_v16 = vadd.f32 %v16125_v55, %v7494_v30  ;;  %v7462_v40 = vld [vmem:[%s16378_s0 + $0xa8] sm:$0xff] }
 0xae6   :  { %v7543_v27 = vmul.f32 %v7518_v52, %v17143_v8  ;;  %v7564_v41 = vadd.f32 %v7539_v49, %v7458_v54  ;;  %7585 = vst [vmem:[%s16389_s12 + $0x58] sm:$0xff] %v7560_v33  ;;  %v7523_v46 = vadd.f32 %v16125_v55, %v7495_v31  ;;  %v7544_v25 = vmul.f32 %v7519_v9, %v17144_v28  ;;  %v7463_v8 = vld [vmem:[%s16378_s0 + $0xb0] sm:$0xff]  ;;  %v7464_v28 = vld [vmem:[%s16378_s0 + $0xb8] sm:$0xff] }
 0xae7   :  { %v7565_v13 = vadd.f32 %v7540_v62, %v7459_v6  ;;  %7586 = vst [vmem:[%s16389_s12 + $0x60] sm:$0xff] %v7561_v7  ;;  %v7545_v59 = vmul.f32 %v7520_v56, %v17145_v51  ;;  %v7566_v44 = vadd.f32 %v7541_v21, %v7460_v24  ;;  %v7546_v55 = vmul.f32 %v7521_v18, %v17146_v20  ;;  %v7465_v51 = vld [vmem:[%s16378_s0 + $0xc0] sm:$0xff]  ;;  %v7466_v20 = vld [vmem:[%s16378_s0 + $0xc8] sm:$0xff] }
 0xae8   :  { %7587 = vst [vmem:[%s16389_s12 + $0x68] sm:$0xff] %v7562_v35  ;;  %v7567_v23 = vadd.f32 %v7542_v37, %v7461_v36  ;;  %v7547_v29 = vmul.f32 %v7522_v16, %v17147_v26  ;;  %v7568_v4 = vadd.f32 %v7543_v27, %v7462_v40  ;;  %v7548_v14 = vmul.f32 %v7523_v46, %v17148_v58  ;;  %v7467_v26 = vld [vmem:[%s16378_s0 + $0xd0] sm:$0xff] }
 0xae9   :  { %7588 = vst [vmem:[%s16389_s12 + $0x70] sm:$0xff] %v7563_v19  ;;  %v7569_v38 = vadd.f32 %v7544_v25, %v7463_v8  ;;  %v7570_v57 = vadd.f32 %v7545_v59, %v7464_v28  ;;  %v7571_v60 = vadd.f32 %v7546_v55, %v7465_v51 }
 0xaea   :  { %7589 = vst [vmem:[%s16389_s12 + $0x78] sm:$0xff] %v7564_v41  ;;  %v7572_v58 = vadd.f32 %v7547_v29, %v7466_v20  ;;  %v7573_v47 = vadd.f32 %v7548_v14, %v7467_v26 }
 0xaeb   :  { %7590 = vst [vmem:[%s16389_s12 + $0x80] sm:$0xff] %v7565_v13 }
 0xaec   :  { %7591 = vst [vmem:[%s16389_s12 + $0x88] sm:$0xff] %v7566_v44 }
 0xaed   :  { %7592 = vst [vmem:[%s16389_s12 + $0x90] sm:$0xff] %v7567_v23 }
 0xaee   :  { %7593 = vst [vmem:[%s16389_s12 + $0x98] sm:$0xff] %v7568_v4 }
 0xaef   :  { %7594 = vst [vmem:[%s16389_s12 + $0xa0] sm:$0xff] %v7569_v38 }
 0xaf0   :  { %7595 = vst [vmem:[%s16389_s12 + $0xa8] sm:$0xff] %v7570_v57 }
 0xaf1   :  { %7596 = vst [vmem:[%s16389_s12 + $0xb0] sm:$0xff] %v7571_v60 }
 0xaf2   :  { %7597 = vst [vmem:[%s16389_s12 + $0xb8] sm:$0xff] %v7572_v58 }
 0xaf3   :  { %7598 = vst [vmem:[%s16389_s12 + $0xc0] sm:$0xff] %v7573_v47 }

</bundles_post_ra>
